<compile_context>
chip_gen: v7x
topology: tpu7x:2x2x1
jax: 0.10.0
libtpu: 0.0.40
codegen_flags: <defaults>
</compile_context>

<pallas_src>
import functools

import numpy as np
import jax
import jax.numpy as jnp
from jax import lax
from jax.experimental import pallas as pl
from jax.experimental.pallas import tpu as pltpu


def _device_kind() -> str:
    try:
        return jax.devices()[0].device_kind.lower()
    except Exception:
        return ""


def _nonlocal_kernel(x_ref, wgtp_ref, bgtp_ref, wo_ref, bo_ref, o_ref,
                     *, inter_channels, seq_len, quads, exp_in_bf16):
    f32, bf16 = jnp.float32, jnp.bfloat16
    ci, n = inter_channels, seq_len

    x = x_ref[...]                                        # (C, G*N), input dtype
    x_bf = x.astype(bf16)

    # Fused g/theta/phi projections: one (3Ci, C) x (C, G*N) bf16 MXU matmul
    # (f32 accumulation); bias add in f32; slices are sublane-aligned.
    proj = jnp.dot(wgtp_ref[...], x_bf, preferred_element_type=f32) + bgtp_ref[...]
    g_all = proj[:ci].astype(bf16)                        # (Ci, G*N)
    th_all = proj[ci:2 * ci].astype(bf16)                 # (Ci, G*N)
    ph_all = proj[2 * ci:3 * ci].astype(bf16)             # (Ci, G*N)

    ones_col = jnp.ones((n, 1), bf16)                     # MXU row-sum rhs (hoisted)

    y_parts = []
    for q in range(quads):                                # static unroll; quads is small
        sl = slice(q * n, (q + 1) * n)                    # lane slices at multiples of N
        th_q, ph_q, g_q = th_all[:, sl], ph_all[:, sl], g_all[:, sl]

        # Attention logits f[a, b] = sum_c th[c, a] * ph[c, b]  -> (N, N) f32.
        # Only the small (Ci, N) lhs is transposed; rhs is already K-major.
        f = lax.dot_general(th_q, ph_q, (((0,), (0,)), ((), ())),
                            preferred_element_type=f32)

        # Stable softmax with deferred normalization.
        f = f - jnp.max(f, axis=-1, keepdims=True)        # XLU row max (f32)
        if exp_in_bf16:
            e = jnp.exp(f.astype(bf16))                   # bf16 EUP exp (v6e / v7x)
        else:
            e = jnp.exp(f).astype(bf16)                   # f32 exp path (v5e)

        # Row sums on the MXU (bf16 operands, f32 accumulation) instead of XLU.
        l = jnp.dot(e, ones_col, preferred_element_type=f32)      # (N, 1)
        inv_l = pl.reciprocal(l, approx=True)                     # EUP, ~free slot

        # Unnormalized aggregation yT[a, i] = sum_b e[a, b] * g[i, b] -> (N, Ci).
        # Only the small (Ci, N) rhs gets transposed; no (N, N) vxpose.
        yT = lax.dot_general(e, g_q, (((1,), (1,)), ((), ())),
                             preferred_element_type=f32)
        yT = yT * inv_l                                   # deferred softmax normalization
        y_parts.append(jnp.transpose(yT).astype(bf16))    # (Ci, N), small transpose

    y_all = y_parts[0] if quads == 1 else jnp.concatenate(y_parts, axis=-1)

    # BN-folded output 1x1 conv + residual (broadcast add).
    out = (x.astype(f32)
           + jnp.dot(wo_ref[...], y_all, preferred_element_type=f32)
           + bo_ref[...])
    o_ref[...] = out.astype(o_ref.dtype)


def nonlocal_channel_attention(x, wg, bg, wt, bt, wp, bp, wo, bo,
                               bn_gamma, bn_beta, bn_mean, bn_var, bn_eps=1e-5,
                               quads_per_step=None, exp_in_bf16=None):
    """x: (B, C, H, W). wg/wt/wp: (Ci, C); bg/bt/bp: (Ci,); wo: (C, Ci); bo: (C,).
    BatchNorm2d (eval mode) is folded into the output 1x1 conv."""
    B, C, H, W = x.shape
    assert H % 2 == 0 and W % 2 == 0, "NonLocalChannelAttension needs even H, W"
    H2, W2 = H // 2, W // 2
    N = H2 * W2
    Ci = wg.shape[0]
    f32, bf16 = jnp.float32, jnp.bfloat16

    kind = _device_kind()
    if exp_in_bf16 is None:
        # bf16 EUP exists on v6e / v7x; keep f32 elementwise softmax path on v5e.
        exp_in_bf16 = ("v6" in kind) or ("v7" in kind)
    if quads_per_step is None:
        # v7x: 2 TCs share the "parallel" axis -> keep >=2 steps; else batch 4.
        quads_per_step = 2 if "v7" in kind else 4

    total = B * 4
    G = max(1, min(quads_per_step, total))
    while G > 1 and (total % G != 0 or total // G < 2):
        G -= 1
    nblk = total // G

    # Gather quadrants -> lane-dense (nblk, C, G*N) slab (layout plumbing, once in XLA).
    xq = (x.reshape(B, C, 2, H2, 2, W2)
            .transpose(0, 2, 4, 1, 3, 5)                  # (B, 2, 2, C, H2, W2)
            .reshape(total, C, N)
            .reshape(nblk, G, C, N)
            .transpose(0, 2, 1, 3)
            .reshape(nblk, C, G * N))

    # Fold eval-mode BatchNorm into the output conv; fuse g/theta/phi weights.
    scale = jnp.asarray(bn_gamma, f32) * lax.rsqrt(jnp.asarray(bn_var, f32) + bn_eps)
    shift = jnp.asarray(bn_beta, f32) - scale * jnp.asarray(bn_mean, f32)
    wo_bf = (scale[:, None] * jnp.asarray(wo, f32)).astype(bf16)          # (C, Ci)
    bo_f = (scale * jnp.asarray(bo, f32) + shift).reshape(C, 1)           # (C, 1)

    wgtp_bf = jnp.concatenate([jnp.asarray(wg, f32), jnp.asarray(wt, f32),
                               jnp.asarray(wp, f32)], axis=0).astype(bf16)  # (3Ci, C)
    bgtp_f = jnp.concatenate([jnp.asarray(bg, f32), jnp.asarray(bt, f32),
                              jnp.asarray(bp, f32)], axis=0).reshape(3 * Ci, 1)

    kernel = functools.partial(_nonlocal_kernel, inter_channels=Ci, seq_len=N,
                               quads=G, exp_in_bf16=exp_in_bf16)

    const = lambda b: (0, 0)
    out = pl.pallas_call(
        kernel,
        out_shape=jax.ShapeDtypeStruct((nblk, C, G * N), x.dtype),
        grid=(nblk,),
        in_specs=[
            pl.BlockSpec((None, C, G * N), lambda b: (b, 0, 0)),   # G quadrants per step
            pl.BlockSpec((3 * Ci, C), const),                      # fused g/theta/phi W
            pl.BlockSpec((3 * Ci, 1), const),                      # fused biases
            pl.BlockSpec((C, Ci), const),                          # output W (BN folded)
            pl.BlockSpec((C, 1), const),                           # output bias (BN folded)
        ],
        out_specs=pl.BlockSpec((None, C, G * N), lambda b: (b, 0, 0)),
        compiler_params=pltpu.CompilerParams(
            dimension_semantics=("parallel",)),
    )(xq, wgtp_bf, bgtp_f, wo_bf, bo_f)

    # Scatter quadrants back to NCHW.
    return (out.reshape(nblk, C, G, N)
               .transpose(0, 2, 1, 3)
               .reshape(B, 2, 2, C, H2, W2)
               .transpose(0, 3, 1, 4, 2, 5)
               .reshape(B, C, H, W))


def _reference(x, wg, bg, wt, bt, wp, bp, wo, bo, gamma, beta, mean, var, eps=1e-5):
    """Pure numpy reference matching the PyTorch module (BN in eval mode)."""
    x = np.asarray(x, np.float32)
    wg, bg, wt, bt, wp, bp, wo, bo, gamma, beta, mean, var = (
        np.asarray(a, np.float32) for a in
        (wg, bg, wt, bt, wp, bp, wo, bo, gamma, beta, mean, var))
    B, C, H, W = x.shape
    H2, W2 = H // 2, W // 2
    scale = gamma / np.sqrt(var + eps)
    shift = beta - scale * mean

    def block(xquad):
        b, c, h, w = xquad.shape
        n = h * w
        xf = xquad.reshape(b, c, n)
        g = np.einsum('oc,bcn->bon', wg, xf) + bg[None, :, None]
        th = np.einsum('oc,bcn->bon', wt, xf) + bt[None, :, None]
        ph = np.einsum('oc,bcn->bon', wp, xf) + bp[None, :, None]
        f = np.einsum('bcn,bcm->bnm', th, ph)
        f = f - f.max(-1, keepdims=True)
        e = np.exp(f)
        p = e / e.sum(-1, keepdims=True)
        y = np.einsum('bnm,bcm->bcn', p, g)
        wy = np.einsum('oc,bcn->bon', wo, y) + bo[None, :, None]
        wy = scale[None, :, None] * wy + shift[None, :, None]
        return (xf + wy).reshape(b, c, h, w)

    out = np.zeros_like(x)
    out[:, :, :H2, :W2] = block(x[:, :, :H2, :W2])
    out[:, :, H2:, :W2] = block(x[:, :, H2:, :W2])
    out[:, :, :H2, W2:] = block(x[:, :, :H2, W2:])
    out[:, :, H2:, W2:] = block(x[:, :, H2:, W2:])
    return out


if __name__ == "__main__":
    # module defaults: in_channels=64, inter_channels=32
    B, C, H, W = 2, 64, 32, 32
    Ci = 32

    key = jax.random.PRNGKey(0)
    ks = jax.random.split(key, 13)
    x = jax.random.normal(ks[0], (B, C, H, W), jnp.float32)
    wg = jax.random.normal(ks[1], (Ci, C), jnp.float32) / np.sqrt(C)
    bg = jax.random.normal(ks[2], (Ci,), jnp.float32) * 0.1
    wt = jax.random.normal(ks[3], (Ci, C), jnp.float32) / np.sqrt(C)
    bt = jax.random.normal(ks[4], (Ci,), jnp.float32) * 0.1
    wp = jax.random.normal(ks[5], (Ci, C), jnp.float32) / np.sqrt(C)
    bp = jax.random.normal(ks[6], (Ci,), jnp.float32) * 0.1
    wo = jax.random.normal(ks[7], (C, Ci), jnp.float32) / np.sqrt(Ci)
    bo = jax.random.normal(ks[8], (C,), jnp.float32) * 0.1
    gamma = 1.0 + 0.1 * jax.random.normal(ks[9], (C,), jnp.float32)
    beta = 0.1 * jax.random.normal(ks[10], (C,), jnp.float32)
    mean = 0.1 * jax.random.normal(ks[11], (C,), jnp.float32)
    var = jnp.abs(1.0 + 0.1 * jax.random.normal(ks[12], (C,), jnp.float32))

    out = nonlocal_channel_attention(x, wg, bg, wt, bt, wp, bp, wo, bo,
                                     gamma, beta, mean, var)
    out = jax.block_until_ready(out)

    ref = _reference(np.asarray(x), np.asarray(wg), np.asarray(bg),
                     np.asarray(wt), np.asarray(bt), np.asarray(wp),
                     np.asarray(bp), np.asarray(wo), np.asarray(bo),
                     np.asarray(gamma), np.asarray(beta),
                     np.asarray(mean), np.asarray(var))

    # Tolerances: all matmuls use bf16 operands (per perf guidance) against an
    # f32 reference; the module's unscaled (no 1/sqrt(d)) logits give a sharp
    # softmax that amplifies bf16 logit rounding on rare worst-case elements.
    # Typical deviation is ~1e-2 (checked via the mean-error bound); atol=1e-1
    # covers the rare amplified elements.
    err = np.abs(np.asarray(out, np.float32) - ref)
    assert float(err.mean()) < 2e-2, f"mean abs error too large: {err.mean()}"
    np.testing.assert_allclose(np.asarray(out), ref, rtol=5e-2, atol=1e-1)

    print("KERNEL_OK")
</pallas_src>

<mosaic_0001>
module attributes {stable_mosaic.version = 11 : i64} {
  func.func @_nonlocal_kernel(%arg0: i32, %arg1: memref<1x64x1024xf32, #tpu.memory_space<vmem>>, %arg2: memref<96x64xbf16, #tpu.memory_space<vmem>>, %arg3: memref<96x1xf32, #tpu.memory_space<vmem>>, %arg4: memref<64x32xbf16, #tpu.memory_space<vmem>>, %arg5: memref<64x1xf32, #tpu.memory_space<vmem>>, %arg6: memref<1x64x1024xf32, #tpu.memory_space<vmem>>) attributes {dimension_semantics = [#tpu.dimension_semantics<parallel>], iteration_bounds = array<i64: 2>, scalar_prefetch = 0 : i64, scratch_operands = 0 : i64, tpu.core_type = #tpu.core_type<tc>, window_params = [{transform_indices = @transform_0, window_bounds = array<i64: 1, 64, 1024>}, {pipeline_mode = #tpu.pipeline_mode<synchronous>, transform_indices = @transform_1, window_bounds = array<i64: 96, 64>}, {pipeline_mode = #tpu.pipeline_mode<synchronous>, transform_indices = @transform_2, window_bounds = array<i64: 96, 1>}, {pipeline_mode = #tpu.pipeline_mode<synchronous>, transform_indices = @transform_3, window_bounds = array<i64: 64, 32>}, {pipeline_mode = #tpu.pipeline_mode<synchronous>, transform_indices = @transform_4, window_bounds = array<i64: 64, 1>}, {transform_indices = @transform_5, window_bounds = array<i64: 1, 64, 1024>}]} {
    %c0 = arith.constant 0 : index
    %c0_0 = arith.constant 0 : index
    %c0_1 = arith.constant 0 : index
    %0 = vector.load %arg1[%c0, %c0_0, %c0_1] : memref<1x64x1024xf32, #tpu.memory_space<vmem>>, vector<1x64x1024xf32>
    %1 = vector.shape_cast %0 : vector<1x64x1024xf32> to vector<64x1024xf32>
    %2 = arith.truncf %1 : vector<64x1024xf32> to vector<64x1024xbf16>
    %c0_2 = arith.constant 0 : index
    %c0_3 = arith.constant 0 : index
    %3 = vector.load %arg2[%c0_2, %c0_3] : memref<96x64xbf16, #tpu.memory_space<vmem>>, vector<96x64xbf16>
    %cst = arith.constant dense<0.000000e+00> : vector<96x1024xf32>
    %4 = tpu.matmul %3, %2, %cst {dimension_numbers = #tpu.dot_dimension_numbers<[1], [0], [0], [1], [0, 0, 1, 1], [], []>} : vector<96x64xbf16>, vector<64x1024xbf16>, vector<96x1024xf32> -> vector<96x1024xf32>
    %c0_4 = arith.constant 0 : index
    %c0_5 = arith.constant 0 : index
    %5 = vector.load %arg3[%c0_4, %c0_5] : memref<96x1xf32, #tpu.memory_space<vmem>>, vector<96x1xf32>
    %6 = vector.broadcast %5 : vector<96x1xf32> to vector<96x1024xf32>
    %7 = arith.addf %4, %6 : vector<96x1024xf32>
    %8 = vector.extract_strided_slice %7 {offsets = [0, 0], sizes = [32, 1024], strides = [1, 1]} : vector<96x1024xf32> to vector<32x1024xf32>
    %9 = arith.truncf %8 : vector<32x1024xf32> to vector<32x1024xbf16>
    %10 = vector.extract_strided_slice %7 {offsets = [32, 0], sizes = [32, 1024], strides = [1, 1]} : vector<96x1024xf32> to vector<32x1024xf32>
    %11 = arith.truncf %10 : vector<32x1024xf32> to vector<32x1024xbf16>
    %12 = vector.extract_strided_slice %7 {offsets = [64, 0], sizes = [32, 1024], strides = [1, 1]} : vector<96x1024xf32> to vector<32x1024xf32>
    %13 = arith.truncf %12 : vector<32x1024xf32> to vector<32x1024xbf16>
    %cst_6 = arith.constant 1.000000e+00 : bf16
    %14 = vector.broadcast %cst_6 : bf16 to vector<256x1xbf16>
    %15 = vector.extract_strided_slice %11 {offsets = [0, 0], sizes = [32, 256], strides = [1, 1]} : vector<32x1024xbf16> to vector<32x256xbf16>
    %16 = vector.extract_strided_slice %13 {offsets = [0, 0], sizes = [32, 256], strides = [1, 1]} : vector<32x1024xbf16> to vector<32x256xbf16>
    %17 = vector.extract_strided_slice %9 {offsets = [0, 0], sizes = [32, 256], strides = [1, 1]} : vector<32x1024xbf16> to vector<32x256xbf16>
    %cst_7 = arith.constant dense<0.000000e+00> : vector<256x256xf32>
    %18 = tpu.matmul %15, %16, %cst_7 {dimension_numbers = #tpu.dot_dimension_numbers<[0], [0], [1], [1], [0, 1, 1, 1], [], []>} : vector<32x256xbf16>, vector<32x256xbf16>, vector<256x256xf32> -> vector<256x256xf32>
    %cst_8 = arith.constant dense<0xFF800000> : vector<256xf32>
    %19 = vector.multi_reduction <maximumf>, %18, %cst_8 [1] : vector<256x256xf32> to vector<256xf32>
    %20 = vector.shape_cast %19 : vector<256xf32> to vector<256x1xf32>
    %21 = vector.broadcast %20 : vector<256x1xf32> to vector<256x256xf32>
    %22 = arith.subf %18, %21 : vector<256x256xf32>
    %23 = math.exp %22 : vector<256x256xf32>
    %24 = arith.truncf %23 : vector<256x256xf32> to vector<256x256xbf16>
    %cst_9 = arith.constant dense<0.000000e+00> : vector<256x1xf32>
    %25 = tpu.matmul %24, %14, %cst_9 {dimension_numbers = #tpu.dot_dimension_numbers<[1], [0], [0], [1], [0, 0, 1, 1], [], []>} : vector<256x256xbf16>, vector<256x1xbf16>, vector<256x1xf32> -> vector<256x1xf32>
    %26 = tpu.reciprocal %25 {approx = true} : vector<256x1xf32> -> vector<256x1xf32>
    %cst_10 = arith.constant dense<0.000000e+00> : vector<256x32xf32>
    %27 = tpu.matmul %24, %17, %cst_10 {dimension_numbers = #tpu.dot_dimension_numbers<[1], [1], [0], [0], [0, 0, 1, 0], [], []>} : vector<256x256xbf16>, vector<32x256xbf16>, vector<256x32xf32> -> vector<256x32xf32>
    %28 = vector.broadcast %26 : vector<256x1xf32> to vector<256x32xf32>
    %29 = arith.mulf %27, %28 : vector<256x32xf32>
    %30 = tpu.transpose %29, [1, 0] : vector<256x32xf32> -> vector<32x256xf32>
    %31 = arith.truncf %30 : vector<32x256xf32> to vector<32x256xbf16>
    %32 = vector.extract_strided_slice %11 {offsets = [0, 256], sizes = [32, 256], strides = [1, 1]} : vector<32x1024xbf16> to vector<32x256xbf16>
    %33 = vector.extract_strided_slice %13 {offsets = [0, 256], sizes = [32, 256], strides = [1, 1]} : vector<32x1024xbf16> to vector<32x256xbf16>
    %34 = vector.extract_strided_slice %9 {offsets = [0, 256], sizes = [32, 256], strides = [1, 1]} : vector<32x1024xbf16> to vector<32x256xbf16>
    %cst_11 = arith.constant dense<0.000000e+00> : vector<256x256xf32>
    %35 = tpu.matmul %32, %33, %cst_11 {dimension_numbers = #tpu.dot_dimension_numbers<[0], [0], [1], [1], [0, 1, 1, 1], [], []>} : vector<32x256xbf16>, vector<32x256xbf16>, vector<256x256xf32> -> vector<256x256xf32>
    %cst_12 = arith.constant dense<0xFF800000> : vector<256xf32>
    %36 = vector.multi_reduction <maximumf>, %35, %cst_12 [1] : vector<256x256xf32> to vector<256xf32>
    %37 = vector.shape_cast %36 : vector<256xf32> to vector<256x1xf32>
    %38 = vector.broadcast %37 : vector<256x1xf32> to vector<256x256xf32>
    %39 = arith.subf %35, %38 : vector<256x256xf32>
    %40 = math.exp %39 : vector<256x256xf32>
    %41 = arith.truncf %40 : vector<256x256xf32> to vector<256x256xbf16>
    %cst_13 = arith.constant dense<0.000000e+00> : vector<256x1xf32>
    %42 = tpu.matmul %41, %14, %cst_13 {dimension_numbers = #tpu.dot_dimension_numbers<[1], [0], [0], [1], [0, 0, 1, 1], [], []>} : vector<256x256xbf16>, vector<256x1xbf16>, vector<256x1xf32> -> vector<256x1xf32>
    %43 = tpu.reciprocal %42 {approx = true} : vector<256x1xf32> -> vector<256x1xf32>
    %cst_14 = arith.constant dense<0.000000e+00> : vector<256x32xf32>
    %44 = tpu.matmul %41, %34, %cst_14 {dimension_numbers = #tpu.dot_dimension_numbers<[1], [1], [0], [0], [0, 0, 1, 0], [], []>} : vector<256x256xbf16>, vector<32x256xbf16>, vector<256x32xf32> -> vector<256x32xf32>
    %45 = vector.broadcast %43 : vector<256x1xf32> to vector<256x32xf32>
    %46 = arith.mulf %44, %45 : vector<256x32xf32>
    %47 = tpu.transpose %46, [1, 0] : vector<256x32xf32> -> vector<32x256xf32>
    %48 = arith.truncf %47 : vector<32x256xf32> to vector<32x256xbf16>
    %49 = vector.extract_strided_slice %11 {offsets = [0, 512], sizes = [32, 256], strides = [1, 1]} : vector<32x1024xbf16> to vector<32x256xbf16>
    %50 = vector.extract_strided_slice %13 {offsets = [0, 512], sizes = [32, 256], strides = [1, 1]} : vector<32x1024xbf16> to vector<32x256xbf16>
    %51 = vector.extract_strided_slice %9 {offsets = [0, 512], sizes = [32, 256], strides = [1, 1]} : vector<32x1024xbf16> to vector<32x256xbf16>
    %cst_15 = arith.constant dense<0.000000e+00> : vector<256x256xf32>
    %52 = tpu.matmul %49, %50, %cst_15 {dimension_numbers = #tpu.dot_dimension_numbers<[0], [0], [1], [1], [0, 1, 1, 1], [], []>} : vector<32x256xbf16>, vector<32x256xbf16>, vector<256x256xf32> -> vector<256x256xf32>
    %cst_16 = arith.constant dense<0xFF800000> : vector<256xf32>
    %53 = vector.multi_reduction <maximumf>, %52, %cst_16 [1] : vector<256x256xf32> to vector<256xf32>
    %54 = vector.shape_cast %53 : vector<256xf32> to vector<256x1xf32>
    %55 = vector.broadcast %54 : vector<256x1xf32> to vector<256x256xf32>
    %56 = arith.subf %52, %55 : vector<256x256xf32>
    %57 = math.exp %56 : vector<256x256xf32>
    %58 = arith.truncf %57 : vector<256x256xf32> to vector<256x256xbf16>
    %cst_17 = arith.constant dense<0.000000e+00> : vector<256x1xf32>
    %59 = tpu.matmul %58, %14, %cst_17 {dimension_numbers = #tpu.dot_dimension_numbers<[1], [0], [0], [1], [0, 0, 1, 1], [], []>} : vector<256x256xbf16>, vector<256x1xbf16>, vector<256x1xf32> -> vector<256x1xf32>
    %60 = tpu.reciprocal %59 {approx = true} : vector<256x1xf32> -> vector<256x1xf32>
    %cst_18 = arith.constant dense<0.000000e+00> : vector<256x32xf32>
    %61 = tpu.matmul %58, %51, %cst_18 {dimension_numbers = #tpu.dot_dimension_numbers<[1], [1], [0], [0], [0, 0, 1, 0], [], []>} : vector<256x256xbf16>, vector<32x256xbf16>, vector<256x32xf32> -> vector<256x32xf32>
    %62 = vector.broadcast %60 : vector<256x1xf32> to vector<256x32xf32>
    %63 = arith.mulf %61, %62 : vector<256x32xf32>
    %64 = tpu.transpose %63, [1, 0] : vector<256x32xf32> -> vector<32x256xf32>
    %65 = arith.truncf %64 : vector<32x256xf32> to vector<32x256xbf16>
    %66 = vector.extract_strided_slice %11 {offsets = [0, 768], sizes = [32, 256], strides = [1, 1]} : vector<32x1024xbf16> to vector<32x256xbf16>
    %67 = vector.extract_strided_slice %13 {offsets = [0, 768], sizes = [32, 256], strides = [1, 1]} : vector<32x1024xbf16> to vector<32x256xbf16>
    %68 = vector.extract_strided_slice %9 {offsets = [0, 768], sizes = [32, 256], strides = [1, 1]} : vector<32x1024xbf16> to vector<32x256xbf16>
    %cst_19 = arith.constant dense<0.000000e+00> : vector<256x256xf32>
    %69 = tpu.matmul %66, %67, %cst_19 {dimension_numbers = #tpu.dot_dimension_numbers<[0], [0], [1], [1], [0, 1, 1, 1], [], []>} : vector<32x256xbf16>, vector<32x256xbf16>, vector<256x256xf32> -> vector<256x256xf32>
    %cst_20 = arith.constant dense<0xFF800000> : vector<256xf32>
    %70 = vector.multi_reduction <maximumf>, %69, %cst_20 [1] : vector<256x256xf32> to vector<256xf32>
    %71 = vector.shape_cast %70 : vector<256xf32> to vector<256x1xf32>
    %72 = vector.broadcast %71 : vector<256x1xf32> to vector<256x256xf32>
    %73 = arith.subf %69, %72 : vector<256x256xf32>
    %74 = math.exp %73 : vector<256x256xf32>
    %75 = arith.truncf %74 : vector<256x256xf32> to vector<256x256xbf16>
    %cst_21 = arith.constant dense<0.000000e+00> : vector<256x1xf32>
    %76 = tpu.matmul %75, %14, %cst_21 {dimension_numbers = #tpu.dot_dimension_numbers<[1], [0], [0], [1], [0, 0, 1, 1], [], []>} : vector<256x256xbf16>, vector<256x1xbf16>, vector<256x1xf32> -> vector<256x1xf32>
    %77 = tpu.reciprocal %76 {approx = true} : vector<256x1xf32> -> vector<256x1xf32>
    %cst_22 = arith.constant dense<0.000000e+00> : vector<256x32xf32>
    %78 = tpu.matmul %75, %68, %cst_22 {dimension_numbers = #tpu.dot_dimension_numbers<[1], [1], [0], [0], [0, 0, 1, 0], [], []>} : vector<256x256xbf16>, vector<32x256xbf16>, vector<256x32xf32> -> vector<256x32xf32>
    %79 = vector.broadcast %77 : vector<256x1xf32> to vector<256x32xf32>
    %80 = arith.mulf %78, %79 : vector<256x32xf32>
    %81 = tpu.transpose %80, [1, 0] : vector<256x32xf32> -> vector<32x256xf32>
    %82 = arith.truncf %81 : vector<32x256xf32> to vector<32x256xbf16>
    %83 = tpu.concatenate %31, %48, %65, %82 in 1 : vector<32x256xbf16>, vector<32x256xbf16>, vector<32x256xbf16>, vector<32x256xbf16> -> vector<32x1024xbf16>
    %c0_23 = arith.constant 0 : index
    %c0_24 = arith.constant 0 : index
    %84 = vector.load %arg4[%c0_23, %c0_24] : memref<64x32xbf16, #tpu.memory_space<vmem>>, vector<64x32xbf16>
    %cst_25 = arith.constant dense<0.000000e+00> : vector<64x1024xf32>
    %85 = tpu.matmul %84, %83, %cst_25 {dimension_numbers = #tpu.dot_dimension_numbers<[1], [0], [0], [1], [0, 0, 1, 1], [], []>} : vector<64x32xbf16>, vector<32x1024xbf16>, vector<64x1024xf32> -> vector<64x1024xf32>
    %86 = arith.addf %1, %85 : vector<64x1024xf32>
    %c0_26 = arith.constant 0 : index
    %c0_27 = arith.constant 0 : index
    %87 = vector.load %arg5[%c0_26, %c0_27] : memref<64x1xf32, #tpu.memory_space<vmem>>, vector<64x1xf32>
    %88 = vector.broadcast %87 : vector<64x1xf32> to vector<64x1024xf32>
    %89 = arith.addf %86, %88 : vector<64x1024xf32>
    %c0_28 = arith.constant 0 : index
    %c0_29 = arith.constant 0 : index
    %c0_30 = arith.constant 0 : index
    %90 = vector.load %arg6[%c0_28, %c0_29, %c0_30] : memref<1x64x1024xf32, #tpu.memory_space<vmem>>, vector<1x64x1024xf32>
    %91 = vector.shape_cast %90 : vector<1x64x1024xf32> to vector<64x1024xf32>
    %92 = vector.shape_cast %89 : vector<64x1024xf32> to vector<1x64x1024xf32>
    tpu.vector_store %arg6[%c0_28, %c0_29, %c0_30], %92 {strides = array<i32>} : memref<1x64x1024xf32, #tpu.memory_space<vmem>>, vector<1x64x1024xf32>,
    return
  }
  func.func @transform_0(%arg0: i32) -> (i32, i32, i32) {
    %c0_i32 = arith.constant 0 : i32
    %c0_i32_0 = arith.constant 0 : i32
    %c0_i32_1 = arith.constant 0 : i32
    return %arg0, %c0_i32, %c0_i32_0 : i32, i32, i32
  }
  func.func @transform_1(%arg0: i32) -> (i32, i32) {
    %c0_i32 = arith.constant 0 : i32
    %c0_i32_0 = arith.constant 0 : i32
    %c0_i32_1 = arith.constant 0 : i32
    return %c0_i32, %c0_i32_0 : i32, i32
  }
  func.func @transform_2(%arg0: i32) -> (i32, i32) {
    %c0_i32 = arith.constant 0 : i32
    %c0_i32_0 = arith.constant 0 : i32
    %c0_i32_1 = arith.constant 0 : i32
    return %c0_i32, %c0_i32_0 : i32, i32
  }
  func.func @transform_3(%arg0: i32) -> (i32, i32) {
    %c0_i32 = arith.constant 0 : i32
    %c0_i32_0 = arith.constant 0 : i32
    %c0_i32_1 = arith.constant 0 : i32
    return %c0_i32, %c0_i32_0 : i32, i32
  }
  func.func @transform_4(%arg0: i32) -> (i32, i32) {
    %c0_i32 = arith.constant 0 : i32
    %c0_i32_0 = arith.constant 0 : i32
    %c0_i32_1 = arith.constant 0 : i32
    return %c0_i32, %c0_i32_0 : i32, i32
  }
  func.func @transform_5(%arg0: i32) -> (i32, i32, i32) {
    %c0_i32 = arith.constant 0 : i32
    %c0_i32_0 = arith.constant 0 : i32
    %c0_i32_1 = arith.constant 0 : i32
    return %arg0, %c0_i32, %c0_i32_0 : i32, i32, i32
  }
}

</mosaic_0001>

<bundles_post_ra>
// kernel: tpu_custom_call.1
= control target key start
LH: loop header
LB: loop body
LE: loop exit
PB: predicated region body
PF: predicated region fallthrough
CT: control target
= control target key end

     0   :  { %10 = vsyncpa [#allocation3], 0  ;;  %s11951_s0 = inlined_call_operand.hbm [shape: f32[2,64,1024], index: 0, kind: input, shape index: {}]   ;;  %s11952_s1 = inlined_call_operand.vmem [shape: bf16[96,64], index: 1, kind: input, shape index: {}]   ;;  %s11953_s2 = inlined_call_operand.vmem [shape: f32[96,1], index: 2, kind: input, shape index: {}]   ;;  %s11954_s3 = inlined_call_operand.vmem [shape: bf16[64,32], index: 3, kind: input, shape index: {}]   ;;  %s11955_s4 = inlined_call_operand.vmem [shape: f32[64,1], index: 4, kind: input, shape index: {}]   ;;  %s11956_s5 = inlined_call_operand.hbm [shape: f32[2,64,1024], index: 5, kind: output, shape index: {}]  }
   0x1   :  { %12 = vsyncpa [#allocation3 + $0x1], 0 }
   0x2   :  { %13 = vsyncpa [#allocation4], 0 }
   0x3   :  { %15 = vsyncpa [#allocation4 + $0x1], 0  ;;  %s8200_s18 = smov 0   ;;  %s8202_s19 = smov 0  }
   0x4   :  { %s8204_s20 = smov 0   ;;  %s8206_s21 = smov 0  }
   0x5 LB: > { %s8221_s22 = sadd.s32 4294967295, %s8160_s21   ;;  %s6382_s23 = sadd.s32 4294967294, %s8160_s21   ;;  %s8160_s21 = sphi %s8206_s21, %s13007_s21   ;;  %s8156_s20 = sphi %s8204_s20, %s13006_s20   ;;  %s8152_s19 = sphi %s8202_s19, %s13005_s19   ;;  %s8148_s18 = sphi %s8200_s18, %s13004_s18  }
   0x6   : > { %s8225_s24 = sadd.s32 1, %s8160_s21   ;;  %s28_s25 = sadd.s32 1, %s8156_s20 }
   0x7   : > { %s25_s26 = ssub.s32 %s8160_s21, %s8225_s24  ;;  %p35_p0 = scmp.ne.s32.totalorder %s8156_s20, %s8152_s19 }
   0x8   : > { %p26_p1 = scmp.eq.s32.totalorder %s25_s26, 0  ;;  %p36_p2 = scmp.eq.s32.totalorder %s8160_s21, 0 }
   0x9   : > { %p41_p3 = scmp.ne.s32.totalorder %s8152_s19, %s8148_s18  ;;  %p42_p4 = scmp.eq.s32.totalorder %s8221_s22, 0 }
   0xa   : > { %s8237_s27 = scalar_select %p26_p1, %s8156_s20, %s28_s25  }
   0xb   : > { %p8239_p5 = por %p36_p2, %p35_p0  ;;  %p8243_p6 = por %p42_p4, %p41_p3 }
   0xc   : > { %p149_p7 = scmp.eq.s32.totalorder %s8221_s22, 1  ;;  %p155_p8 = scmp.eq.s32.totalorder %s6382_s23, 1 }
   0xd   : > { %p6972_p10 = scmp.lt.s32.totalorder %s8160_s21, 2  ;;  %s187_s7 = sand.u32 1, %s8156_s20  }
   0xe   : > { %p8250_p11 = por %p149_p7, %p35_p0  ;;  %p8254_p12 = por %p155_p8, %p41_p3 }
   0xf   : > { %s6510_s8 = sshll.u32 %s8160_s21, 13  ;;  %s6385_s9 = sshll.u32 %s187_s7, 9 }
  0x10   : > { %s12138_s30 = scalar_select %p8250_p11, 1, 0 }
  0x11   : > { %s12139_s6 = scalar_select %p8254_p12, 1, 0 }
  0x12   : > { %s8263_s12 = scalar_lea.hbm %s11951_s0, %s6510_s8  ;;  %s191_s13 = scalar_lea.vmem [#allocation2], %s6385_s9 }
  0x13   : > { %s198_s14 = sshll.u32 %s191_s13, 4  ;;  %p8267_p13 = pnand %p6972_p10, %p8239_p5  ;;  %s8271_s14 = int_to_ptr.vmem [resolvable:$true] %s198_s14 }
  0x14   : > { %s8273_s16 = scalar_lea.sflag [#allocation3], %s187_s7  ;;  %s8064_s17 = scalar_lea.hbm %s8263_s12, 8192 }
  0x15   : > { %p8065_p0 = scmp.ne.s32.totalorder %s8263_s12, %s8064_s17  ;;  %p8066_p1 = pneg %p8267_p13 }
  0x16   : > { %s8069_s26 = scalar_lea.hbm %s11951_s0, 16384  ;;  %p8070_p4 = scmp.lt.u32.totalorder %s8263_s12, %s11951_s0 }
  0x17   : > { %p8067_p2 = pnand %p8066_p1, %p8065_p0  ;;  %p8071_p5 = scmp.lt.u32.totalorder %s8069_s26, %s8064_s17 }
  0x18   : > { %p8073_p8 = scmp.lt.u32.totalorder %s8064_s17, %s8263_s12 }
  0x19   : > { %p8068_p3 = pneg %p8067_p2  ;;  %p8072_p7 = por %p8071_p5, %p8070_p4 }
  0x1b   : > { %p8074_p10 = por %p8073_p8, %p8072_p7 }
  0x1d   : > { %p8075_p9 = pnand %p8074_p10, %p8068_p3 }
  0x1f   : > { %8078 = shalt.err (!%p8075_p9)
}
  0x20   : > { %s8079_s7 = scalar_lea.vmem %s8271_s14, 8192  ;;  %s8162_s9 = smov [#allocation2]  }
  0x21   : > { %p8080_p0 = scmp.ne.s32.totalorder %s8271_s14, %s8079_s7  ;;  %s8084_s10 = sshll.u32 %s8162_s9, 4  ;;  %s8085_s10 = int_to_ptr.vmem [resolvable:$false] %s8084_s10 }
  0x22   : > { %s8086_s11 = scalar_lea.vmem %s8085_s10, 16384  ;;  %p8087_p11 = scmp.lt.s32.totalorder %s8271_s14, %s8085_s10 }
  0x23   : > { %p8082_p2 = pnand %p8080_p0, %p8066_p1  ;;  %p8088_p4 = scmp.lt.s32.totalorder %s8086_s11, %s8079_s7 }
  0x25   : > { %p8083_p12 = pneg %p8082_p2  ;;  %p8089_p5 = por %p8088_p4, %p8087_p11 }
  0x27   : > { %p8090_p7 = pnand %p8089_p5, %p8083_p12 }
  0x29   : > { %8093 = shalt.err (!%p8090_p7)
}
  0x2a   : > { %s8163_s13 = smov 1024   ;;  %s8164_s17 = smov 64  }
  0x2b   : > { %6967 = dma.hbm_to_vmem [thread:$0]  (!%p8267_p13), %s8263_s12, 8192, %s8271_s14, %s8273_s16, %s8163_s13, %s8163_s13, %s8164_s17  }
  0x2c   : > { %p6388_p9 = scmp.ge.s32.totalorder %s8160_s21, 1  ;;  %p206_p1 = scmp.lt.s32.totalorder %s8160_s21, 3 }
  0x2e   : > { %p207_p3 = pnand %p6388_p9, %p206_p1 }
  0x30   : > { %210 = sbr.rel (%p207_p3) target bundleno = 3252 (0xcb4), region = 40 }
  0x37   : > { %s8304_s23 = sand.u32 1, %s8152_s19  }
  0x38   : > { %s6389_s25 = sshll.u32 %s8304_s23, 9  ;;  %s213_s26 = scalar_lea.sflag [#allocation3], %s8304_s23 }
  0x39   : > { %s8310_s28 = scalar_lea.vmem [#allocation2], %s6389_s25 }
  0x3a   : > { %8139 = dma.done.wait (%p8243_p6), %s213_s26, 8192  }
  0x3b   : > { %8141 = vsyncadd (%p8243_p6), %s213_s26, 4294959104  ;;  %v11960_v0 = vmov 0   ;;  %v246_v1 = vld [vmem:[%s8310_s28 + $0x8] sm:$0xff]  ;;  %v248_v3 = vld [vmem:[%s8310_s28 + $0x18] sm:$0xff]  ;;  %vm455_vm0 = vcmask 523264   ;;  %vm926_vm1 = vcmask 261120  }
  0x3c   : > { %506 = vmatprep.mubr.bf16.mxu0 %v11960_v0  ;;  %599 = vmatprep.mubr.bf16.mxu1 %v11960_v0  ;;  %v254_v2 = vld [vmem:[%s8310_s28 + $0x48] sm:$0xff]  ;;  %v256_v5 = vld [vmem:[%s8310_s28 + $0x58] sm:$0xff]  ;;  %v245_v6 = vld [vmem:[%s8310_s28] sm:$0xff]  ;;  %s11680_s10 = scalar_lea.vmem [#allocation5], %s6389_s25  ;;  %s6511_s25 = sshll.u32 %s8221_s22, 13 }
  0x3d   : > { %7012 = vset.pattern.permute.xlu0 %v11960_v0  ;;  %7013 = vset.pattern.permute.xlu1 %v11960_v0  ;;  %v310_v4 = vpack.c.bf16 %v254_v2, %v246_v1  ;;  %v253_v7 = vld [vmem:[%s8310_s28 + $0x40] sm:$0xff]  ;;  %v312_v8 = vpack.c.bf16 %v256_v5, %v248_v3  ;;  %v247_v10 = vld [vmem:[%s8310_s28 + $0x10] sm:$0xff]  ;;  %v262_v12 = vld [vmem:[%s8310_s28 + $0x88] sm:$0xff]  ;;  %s6309_s11 = sshll.u32 %s11680_s10, 4  ;;  %s11897_s17 = scalar_lea.hbm %s11956_s5, %s6511_s25  ;;  %s11899_s11 = int_to_ptr.vmem [resolvable:$true] %s6309_s11 }
  0x3e   : > { %v309_v9 = vpack.c.bf16 %v253_v7, %v245_v6  ;;  %v255_v11 = vld [vmem:[%s8310_s28 + $0x50] sm:$0xff]  ;;  %v270_v14 = vld [vmem:[%s8310_s28 + $0xc8] sm:$0xff]  ;;  %v264_v15 = vld [vmem:[%s8310_s28 + $0x98] sm:$0xff]  ;;  %s8094_s26 = scalar_lea.vmem %s11899_s11, 8192  ;;  %p13001_p11 = scmp.ne.s32.totalorder %s12138_s30, 0 }
  0x3f   : > { %474 = vmatprep.subr.bf16.mxu0 %v310_v4  ;;  %v311_v13 = vpack.c.bf16 %v255_v11, %v247_v10  ;;  %v272_v16 = vld [vmem:[%s8310_s28 + $0xd8] sm:$0xff]  ;;  %567 = vmatprep.subr.bf16.mxu1 %v312_v8  ;;  %v318_v17 = vpack.c.bf16 %v270_v14, %v262_v12  ;;  %v261_v19 = vld [vmem:[%s8310_s28 + $0x80] sm:$0xff]  ;;  %v263_v21 = vld [vmem:[%s8310_s28 + $0x90] sm:$0xff]  ;;  %p8095_p6 = scmp.ne.s32.totalorder %s11899_s11, %s8094_s26  ;;  %s8167_s29 = smov [#allocation5]  }
  0x40   : > { %475 = vmatpush1.bf16.msra.mxu0 %v309_v9  ;;  %v320_v18 = vpack.c.bf16 %v272_v16, %v264_v15  ;;  %v269_v20 = vld [vmem:[%s8310_s28 + $0xc0] sm:$0xff]  ;;  %v271_v23 = vld [vmem:[%s8310_s28 + $0xd0] sm:$0xff]  ;;  %v278_v24 = vld [vmem:[%s8310_s28 + $0x108] sm:$0xff]  ;;  %s8098_s12 = sshll.u32 %s8167_s29, 4  ;;  %s8099_s12 = int_to_ptr.vmem [resolvable:$false] %s8098_s12 }
  0x41   : > { %568 = vmatpush1.bf16.msra.mxu1 %v311_v13  ;;  %v317_v22 = vpack.c.bf16 %v269_v20, %v261_v19  ;;  %v286_v25 = vld [vmem:[%s8310_s28 + $0x148] sm:$0xff]  ;;  %476 = vmatprep.subr.bf16.mxu0 %v318_v17  ;;  %v319_v26 = vpack.c.bf16 %v271_v23, %v263_v21  ;;  %v280_v28 = vld [vmem:[%s8310_s28 + $0x118] sm:$0xff]  ;;  %v277_v30 = vld [vmem:[%s8310_s28 + $0x100] sm:$0xff]  ;;  %p8096_p12 = pnand %p8095_p6, %p13001_p11  ;;  %s8100_s14 = scalar_lea.vmem %s8099_s12, 16384 }
  0x42   : > { %569 = vmatprep.subr.bf16.mxu1 %v320_v18  ;;  %v326_v27 = vpack.c.bf16 %v286_v25, %v278_v24  ;;  %v288_v29 = vld [vmem:[%s8310_s28 + $0x158] sm:$0xff]  ;;  %v285_v32 = vld [vmem:[%s8310_s28 + $0x140] sm:$0xff]  ;;  %v279_v33 = vld [vmem:[%s8310_s28 + $0x110] sm:$0xff]  ;;  %p8101_p8 = scmp.lt.s32.totalorder %s11899_s11, %s8099_s12  ;;  %p8102_p10 = scmp.lt.s32.totalorder %s8100_s14, %s8094_s26 }
  0x43   : > { %v328_v31 = vpack.c.bf16 %v288_v29, %v280_v28  ;;  %v287_v34 = vld [vmem:[%s8310_s28 + $0x150] sm:$0xff]  ;;  %v325_v35 = vpack.c.bf16 %v285_v32, %v277_v30  ;;  %v294_v36 = vld [vmem:[%s8310_s28 + $0x188] sm:$0xff]  ;;  %v296_v38 = vld [vmem:[%s8310_s28 + $0x198] sm:$0xff]  ;;  %p8097_p13 = pneg %p8096_p12 }
  0x44   : > { %477 = vmatpush1.bf16.msra.mxu0 %v317_v22  ;;  %v302_v37 = vld [vmem:[%s8310_s28 + $0x1c8] sm:$0xff]  ;;  %v327_v39 = vpack.c.bf16 %v287_v34, %v279_v33  ;;  %v304_v41 = vld [vmem:[%s8310_s28 + $0x1d8] sm:$0xff]  ;;  %v293_v42 = vld [vmem:[%s8310_s28 + $0x180] sm:$0xff]  ;;  %p8103_p0 = por %p8102_p10, %p8101_p8 }
  0x45   : > { %570 = vmatpush1.bf16.msra.mxu1 %v319_v26  ;;  %478 = vmatprep.subr.bf16.mxu0 %v326_v27  ;;  %v334_v40 = vpack.c.bf16 %v302_v37, %v294_v36  ;;  %v301_v43 = vld [vmem:[%s8310_s28 + $0x1c0] sm:$0xff]  ;;  %v336_v44 = vpack.c.bf16 %v304_v41, %v296_v38  ;;  %v295_v45 = vld [vmem:[%s8310_s28 + $0x190] sm:$0xff]  ;;  %v250_v50 = vld [vmem:[%s8310_s28 + $0x28] sm:$0xff] }
  0x46   : > { %571 = vmatprep.subr.bf16.mxu1 %v328_v31  ;;  %v303_v46 = vld [vmem:[%s8310_s28 + $0x1d0] sm:$0xff]  ;;  %v333_v47 = vpack.c.bf16 %v301_v43, %v293_v42  ;;  %v8355_v49 = vld [vmem:[%s11952_s1] sm:$0xff]   ;;  %v258_v51 = vld [vmem:[%s8310_s28 + $0x68] sm:$0xff]  ;;  %p8104_p2 = pnand %p8103_p0, %p8097_p13 }
  0x47   : > { %v335_v48 = vpack.c.bf16 %v303_v46, %v295_v45  ;;  %v252_v52 = vld [vmem:[%s8310_s28 + $0x38] sm:$0xff]  ;;  %v314_v54 = vpack.c.bf16 %v258_v51, %v250_v50  ;;  %v249_v56 = vld [vmem:[%s8310_s28 + $0x20] sm:$0xff]  ;;  %v251_v58 = vld [vmem:[%s8310_s28 + $0x30] sm:$0xff] }
  0x48   : > { %479 = vmatpush1.bf16.msra.mxu0 %v325_v35  ;;  %v260_v53 = vld [vmem:[%s8310_s28 + $0x78] sm:$0xff]  ;;  %v257_v57 = vld [vmem:[%s8310_s28 + $0x60] sm:$0xff]  ;;  %v259_v60 = vld [vmem:[%s8310_s28 + $0x70] sm:$0xff] }
  0x49   : > { %572 = vmatpush1.bf16.msra.mxu1 %v327_v39  ;;  %480 = vmatprep.subr.bf16.mxu0 %v334_v40  ;;  %v316_v55 = vpack.c.bf16 %v260_v53, %v252_v52  ;;  %v313_v59 = vpack.c.bf16 %v257_v57, %v249_v56  ;;  %v266_v61 = vld [vmem:[%s8310_s28 + $0xa8] sm:$0xff]  ;;  %v315_v63 = vpack.c.bf16 %v259_v60, %v251_v58  ;;  %v268_v2 = vld [vmem:[%s8310_s28 + $0xb8] sm:$0xff]  ;;  %v265_v4 = vld [vmem:[%s8310_s28 + $0xa0] sm:$0xff] }
  0x4a   : > { %573 = vmatprep.subr.bf16.mxu1 %v336_v44  ;;  %v274_v62 = vld [vmem:[%s8310_s28 + $0xe8] sm:$0xff]  ;;  %v276_v3 = vld [vmem:[%s8310_s28 + $0xf8] sm:$0xff]  ;;  %v273_v6 = vld [vmem:[%s8310_s28 + $0xe0] sm:$0xff] }
  0x4b   : > { %v322_v1 = vpack.c.bf16 %v274_v62, %v266_v61  ;;  %v324_v5 = vpack.c.bf16 %v276_v3, %v268_v2  ;;  %v267_v7 = vld [vmem:[%s8310_s28 + $0xb0] sm:$0xff]  ;;  %v8382_v9 = vld [vmem:[%s11952_s1 + $0x8] sm:$0xff]   ;;  %v321_v10 = vpack.c.bf16 %v273_v6, %v265_v4  ;;  %v284_v14 = vld [vmem:[%s8310_s28 + $0x138] sm:$0xff] }
  0x4c   : > { %481 = vmatpush1.bf16.msra.mxu0 %v333_v47  ;;  %v275_v8 = vld [vmem:[%s8310_s28 + $0xf0] sm:$0xff]  ;;  %v282_v12 = vld [vmem:[%s8310_s28 + $0x128] sm:$0xff]  ;;  %v292_v16 = vld [vmem:[%s8310_s28 + $0x178] sm:$0xff] }
  0x4d   : > { %574 = vmatpush1.bf16.msra.mxu1 %v335_v48  ;;  %660 = vmatprep.subr.bf16.mxu0 %v314_v54  ;;  %v323_v11 = vpack.c.bf16 %v275_v8, %v267_v7  ;;  %v290_v13 = vld [vmem:[%s8310_s28 + $0x168] sm:$0xff]  ;;  %v281_v17 = vld [vmem:[%s8310_s28 + $0x120] sm:$0xff]  ;;  %v283_v19 = vld [vmem:[%s8310_s28 + $0x130] sm:$0xff]  ;;  %v332_v22 = vpack.c.bf16 %v292_v16, %v284_v14  ;;  %v11958_v48 = vmov 1065369472  }
  0x4e   : > { %753 = vmatprep.subr.bf16.mxu1 %v316_v55  ;;  %v330_v15 = vpack.c.bf16 %v290_v13, %v282_v12  ;;  %v289_v18 = vld [vmem:[%s8310_s28 + $0x160] sm:$0xff]  ;;  %v291_v20 = vld [vmem:[%s8310_s28 + $0x170] sm:$0xff]  ;;  %v298_v21 = vld [vmem:[%s8310_s28 + $0x1a8] sm:$0xff] }
  0x4f   : > { %6397 = vmatmul.mubr.msk.bf16.vlgmr.msra.gmra.mrb[0].mxu0 %vm455_vm0, %v8355_v49  ;;  %v306_v23 = vld [vmem:[%s8310_s28 + $0x1e8] sm:$0xff]  ;;  %v300_v24 = vld [vmem:[%s8310_s28 + $0x1b8] sm:$0xff]  ;;  %v329_v26 = vpack.c.bf16 %v289_v18, %v281_v17  ;;  %v331_v27 = vpack.c.bf16 %v291_v20, %v283_v19  ;;  %v297_v28 = vld [vmem:[%s8310_s28 + $0x1a0] sm:$0xff] }
  0x50   : > { %6403 = vmatmul.mubr.msk.bf16.vlgmr.msra.gmra.mrb[0].mxu1 %vm455_vm0, %v8355_v49  ;;  %516 = vmatprep.mubr.bf16.mxu0 %v11960_v0  ;;  %v308_v25 = vld [vmem:[%s8310_s28 + $0x1f8] sm:$0xff]  ;;  %v338_v29 = vpack.c.bf16 %v306_v23, %v298_v21  ;;  %v305_v31 = vld [vmem:[%s8310_s28 + $0x1e0] sm:$0xff]  ;;  %v299_v32 = vld [vmem:[%s8310_s28 + $0x1b0] sm:$0xff] }
  0x51   : > { %609 = vmatprep.mubr.bf16.mxu1 %v11960_v0  ;;  %661 = vmatpush1.bf16.msra.mxu0 %v313_v59  ;;  %v340_v30 = vpack.c.bf16 %v308_v25, %v300_v24  ;;  %v307_v33 = vld [vmem:[%s8310_s28 + $0x1f0] sm:$0xff]  ;;  %v357_v35 = vld [vmem:[%s11953_s2 + $0x20] sm:$0xff]  ;;  %v337_v37 = vpack.c.bf16 %v305_v31, %v297_v28  ;;  %v358_v39 = vld [vmem:[%s11953_s2 + $0x28] sm:$0xff] }
  0x52   : > { %754 = vmatpush1.bf16.msra.mxu1 %v315_v63  ;;  %662 = vmatprep.subr.bf16.mxu0 %v322_v1  ;;  %v7224_v34 = vld [vmem:[%s11952_s1 + $0x10] sm:$0xff]   ;;  %v339_v38 = vpack.c.bf16 %v307_v33, %v299_v32  ;;  %v360_v40 = vld [vmem:[%s11953_s2 + $0x38] sm:$0xff]  ;;  %v361_v41 = vld [vmem:[%s11953_s2 + $0x40] sm:$0xff] }
  0x53   : > { %755 = vmatprep.subr.bf16.mxu1 %v324_v5  ;;  %v359_v36 = vld [vmem:[%s11953_s2 + $0x30] sm:$0xff]  ;;  %387 = vperm.xlu0 %7012, %v357_v35   ;;  %v7225_v42 = vld [vmem:[%s11952_s1 + $0x18] sm:$0xff]   ;;  %v362_v43 = vld [vmem:[%s11953_s2 + $0x48] sm:$0xff] }
  0x54   : > { %397 = vperm.xlu1 %7013, %v359_v36   ;;  %v363_v44 = vld [vmem:[%s11953_s2 + $0x50] sm:$0xff]  ;;  %v364_v45 = vld [vmem:[%s11953_s2 + $0x58] sm:$0xff]  ;;  %v7226_v46 = vld [vmem:[%s11952_s1 + $0x20] sm:$0xff]  }
  0x55   : > { %663 = vmatpush1.bf16.msra.mxu0 %v321_v10  ;;  %v7227_v47 = vld [vmem:[%s11952_s1 + $0x28] sm:$0xff]  }
  0x56   : > { %756 = vmatpush1.bf16.msra.mxu1 %v323_v11  ;;  %664 = vmatprep.subr.bf16.mxu0 %v330_v15 }
  0x57   : > { %6398 = vmatmul.mubr.msk.bf16.gmra.mrb[4].mxu0 %vm455_vm0, %v8382_v9  ;;  %757 = vmatprep.subr.bf16.mxu1 %v332_v22 }
  0x58   : > { %6404 = vmatmul.mubr.msk.bf16.gmra.mrb[4].mxu1 %vm455_vm0, %v8382_v9  ;;  %526 = vmatprep.mubr.bf16.mxu0 %v11960_v0 }
  0x59   : > { %619 = vmatprep.mubr.bf16.mxu1 %v11960_v0  ;;  %665 = vmatpush1.bf16.msra.mxu0 %v329_v26 }
  0x5a   : > { %758 = vmatpush1.bf16.msra.mxu1 %v331_v27  ;;  %666 = vmatprep.subr.bf16.mxu0 %v338_v29 }
  0x5b   : > { %759 = vmatprep.subr.bf16.mxu1 %v340_v30  ;;  %392 = vperm.xlu0 %7012, %v358_v39  }
  0x5c   : > { %402 = vperm.xlu1 %7013, %v360_v40  }
  0x5d   : > { %667 = vmatpush1.bf16.msra.mxu0 %v337_v37 }
  0x5e   : > { %760 = vmatpush1.bf16.msra.mxu1 %v339_v38 }
  0x5f   : > { %6399 = vmatmul.mubr.msk.bf16.gmra.mrb[8].mxu0 %vm455_vm0, %v7224_v34  ;;  %407 = vperm.xlu0 %7012, %v361_v41  }
  0x60   : > { %6405 = vmatmul.mubr.msk.bf16.gmra.mrb[8].mxu1 %vm455_vm0, %v7224_v34  ;;  %536 = vmatprep.mubr.bf16.mxu0 %v11960_v0 }
  0x61   : > { %629 = vmatprep.mubr.bf16.mxu1 %v11960_v0  ;;  %412 = vperm.xlu1 %7013, %v362_v43  }
  0x62   : > { %6512 = vmatprep.subr.bf16.mxu1 %v11958_v48 }
  0x63   : > { %417 = vperm.xlu0 %7012, %v363_v44  }
  0x65   : > { %422 = vperm.xlu1 %7013, %v364_v45  }
  0x67   : > { %6400 = vmatmul.mubr.msk.bf16.gmra.mrb[12].mxu0 %vm455_vm0, %v7225_v42 }
  0x68   : > { %6406 = vmatmul.mubr.msk.bf16.gmra.mrb[12].mxu1 %vm455_vm0, %v7225_v42  ;;  %546 = vmatprep.mubr.bf16.mxu0 %v11960_v0 }
  0x69   : > { %639 = vmatprep.mubr.bf16.mxu1 %v11960_v0 }
  0x6f   : > { %6401 = vmatmul.mubr.msk.bf16.gmra.mrb[16].mxu0 %vm455_vm0, %v7226_v46 }
  0x70   : > { %6407 = vmatmul.mubr.msk.bf16.gmra.mrb[16].mxu1 %vm455_vm0, %v7226_v46  ;;  %556 = vmatprep.mubr.bf16.mxu0 %v11960_v0 }
  0x71   : > { %649 = vmatprep.mubr.bf16.mxu1 %v11960_v0 }
  0x77   : > { %6402 = vmatmul.mubr.msk.bf16.gmra.mrb[20].mxu0 %vm455_vm0, %v7227_v47 }
  0x78   : > { %6408 = vmatmul.mubr.msk.bf16.gmra.mrb[20].mxu1 %vm455_vm0, %v7227_v47  ;;  %692 = vmatprep.mubr.bf16.mxu0 %v11960_v0 }
  0x79   : > { %785 = vmatprep.mubr.bf16.mxu1 %v11960_v0 }
  0x7f   : > { %6409 = vmatmul.mubr.msk.bf16.vlgmr.msra.gmra.mrb[24].mxu0 %vm455_vm0, %v8355_v49 }
  0x80   : > { %6415 = vmatmul.mubr.msk.bf16.vlgmr.msra.gmra.mrb[24].mxu1 %vm455_vm0, %v8355_v49  ;;  %702 = vmatprep.mubr.bf16.mxu0 %v11960_v0 }
  0x81   : > { %795 = vmatprep.mubr.bf16.mxu1 %v11960_v0  ;;  %6513 = vmatpush3.bf16.msra.mxu1 %v11958_v48 }
  0x82   : > { %6514 = vmatprep.subr.bf16.mxu1 %v11958_v48 }
  0x85   : > { %6515 = vmatpush3.bf16.msra.mxu1 %v11958_v48 }
  0x86   : > { %6516 = vmatprep.subr.bf16.mxu1 %v11958_v48 }
  0x87   : > { %6410 = vmatmul.mubr.msk.bf16.gmra.mrb[28].mxu0 %vm455_vm0, %v8382_v9 }
  0x88   : > { %6416 = vmatmul.mubr.msk.bf16.gmra.mrb[28].mxu1 %vm455_vm0, %v8382_v9  ;;  %712 = vmatprep.mubr.bf16.mxu0 %v11960_v0 }
  0x89   : > { %805 = vmatprep.mubr.bf16.mxu1 %v11960_v0  ;;  %6517 = vmatpush3.bf16.msra.mxu1 %v11958_v48 }
  0x8a   : > { %6518 = vmatprep.subr.bf16.mxu1 %v11958_v48 }
  0x8d   : > { %6519 = vmatpush3.bf16.msra.mxu1 %v11958_v48 }
  0x8e   : > { %6520 = vmatprep.subr.bf16.mxu1 %v11958_v48 }
  0x8f   : > { %6411 = vmatmul.mubr.msk.bf16.gmra.mrb[32].mxu0 %vm455_vm0, %v7224_v34 }
  0x90   : > { %6417 = vmatmul.mubr.msk.bf16.gmra.mrb[32].mxu1 %vm455_vm0, %v7224_v34  ;;  %722 = vmatprep.mubr.bf16.mxu0 %v11960_v0 }
  0x91   : > { %815 = vmatprep.mubr.bf16.mxu1 %v11960_v0  ;;  %6521 = vmatpush3.bf16.msra.mxu1 %v11958_v48 }
  0x92   : > { %6522 = vmatprep.subr.bf16.mxu1 %v11958_v48 }
  0x95   : > { %6523 = vmatpush3.bf16.msra.mxu1 %v11958_v48 }
  0x96   : > { %6524 = vmatprep.subr.bf16.mxu1 %v11958_v48 }
  0x97   : > { %6412 = vmatmul.mubr.msk.bf16.gmra.mrb[36].mxu0 %vm455_vm0, %v7225_v42 }
  0x98   : > { %6418 = vmatmul.mubr.msk.bf16.gmra.mrb[36].mxu1 %vm455_vm0, %v7225_v42  ;;  %732 = vmatprep.mubr.bf16.mxu0 %v11960_v0 }
  0x99   : > { %825 = vmatprep.mubr.bf16.mxu1 %v11960_v0  ;;  %6525 = vmatpush3.bf16.msra.mxu1 %v11958_v48 }
  0x9a   : > { %6526 = vmatprep.subr.bf16.mxu1 %v11958_v48 }
  0x9d   : > { %6527 = vmatpush3.bf16.msra.mxu1 %v11958_v48 }
  0x9f   : > { %6413 = vmatmul.mubr.msk.bf16.gmra.mrb[40].mxu0 %vm455_vm0, %v7226_v46 }
  0xa0   : > { %6419 = vmatmul.mubr.msk.bf16.gmra.mrb[40].mxu1 %vm455_vm0, %v7226_v46  ;;  %742 = vmatprep.mubr.bf16.mxu0 %v11960_v0 }
  0xa1   : > { %835 = vmatprep.mubr.bf16.mxu1 %v11960_v0 }
  0xa7   : > { %6414 = vmatmul.mubr.msk.bf16.gmra.mrb[44].mxu0 %vm455_vm0, %v7227_v47 }
  0xa8   : > { %6420 = vmatmul.mubr.msk.bf16.gmra.mrb[44].mxu1 %vm455_vm0, %v7227_v47  ;;  %1007 = vmatprep.mubr.bf16.mxu0 %v11960_v0 }
  0xd2   : > { %v8517_v57 = vpop.permute.xlu0 %387 }
  0xd3   : > { %v8535_v3 = vpop.permute.xlu1 %397 }
  0xda   : > { %v8537_v4 = vpop.permute.xlu0 %392 }
  0xdb   : > { %v8559_v25 = vpop.permute.xlu1 %402 }
  0xde   : > { %v8579_v45 = vpop.permute.xlu0 %407 }
  0xe0   : > { %v8583_v47 = vpop.permute.xlu1 %412 }
 0x122   : > { %v8501_v49 = vpop.f32.mrb[0].mxu0 }
 0x123   : > { %12141 = vst [vmem:[#allocation8_spill] sm:$0xff] %v8501_v49  ;;  %v8503_v50 = vpop.f32.mrb[1].mxu0  ;;  %v8505_v51 = vpop.f32.mrb[0].mxu1 }
 0x124   : > { %12142 = vst [vmem:[#allocation9_spill] sm:$0xff] %v8503_v50  ;;  %12143 = vst [vmem:[#allocation10_spill] sm:$0xff] %v8505_v51  ;;  %v8507_v52 = vpop.f32.mrb[2].mxu0  ;;  %v8509_v53 = vpop.f32.mrb[1].mxu1 }
 0x125   : > { %12144 = vst [vmem:[#allocation11_spill] sm:$0xff] %v8507_v52  ;;  %12145 = vst [vmem:[#allocation12_spill] sm:$0xff] %v8509_v53  ;;  %v8511_v54 = vpop.f32.mrb[3].mxu0  ;;  %v8513_v55 = vpop.f32.mrb[2].mxu1 }
 0x126   : > { %12146 = vst [vmem:[#allocation13_spill] sm:$0xff] %v8511_v54  ;;  %12147 = vst [vmem:[#allocation14_spill] sm:$0xff] %v8513_v55  ;;  %v8515_v56 = vpop.f32.mrb[3].mxu1 }
 0x127   : > { %12148 = vst [vmem:[#allocation15_spill] sm:$0xff] %v8515_v56 }
 0x12a   : > { %v8519_v58 = vpop.f32.mrb[4].mxu0 }
 0x12b   : > { %12149 = vst [vmem:[#allocation16_spill] sm:$0xff] %v8519_v58  ;;  %v8521_v59 = vpop.f32.mrb[5].mxu0  ;;  %v8523_v60 = vpop.f32.mrb[4].mxu1 }
 0x12c   : > { %12150 = vst [vmem:[#allocation17_spill] sm:$0xff] %v8521_v59  ;;  %12151 = vst [vmem:[#allocation18_spill] sm:$0xff] %v8523_v60  ;;  %v8525_v61 = vpop.f32.mrb[6].mxu0  ;;  %v8527_v62 = vpop.f32.mrb[5].mxu1 }
 0x12d   : > { %12152 = vst [vmem:[#allocation19_spill] sm:$0xff] %v8525_v61  ;;  %12153 = vst [vmem:[#allocation20_spill] sm:$0xff] %v8527_v62  ;;  %v8529_v63 = vpop.f32.mrb[7].mxu0  ;;  %v8531_v1 = vpop.f32.mrb[6].mxu1 }
 0x12e   : > { %12154 = vst [vmem:[#allocation21_spill] sm:$0xff] %v8529_v63  ;;  %12155 = vst [vmem:[#allocation22_spill] sm:$0xff] %v8531_v1  ;;  %v8533_v2 = vpop.f32.mrb[7].mxu1 }
 0x12f   : > { %12156 = vst [vmem:[#allocation23_spill] sm:$0xff] %v8533_v2 }
 0x132   : > { %v528_v5 = vpop.f32.mrb[8].mxu0 }
 0x133   : > { %v621_v6 = vpop.f32.mrb[8].mxu1  ;;  %v530_v7 = vpop.f32.mrb[9].mxu0  ;;  %v529_v11 = vadd.f32 %v528_v5, %v8517_v57 }
 0x134   : > { %v8540_v8 = vadd.f32 %v621_v6, %v8517_v57  ;;  %v623_v9 = vpop.f32.mrb[9].mxu1  ;;  %v532_v10 = vpop.f32.mrb[10].mxu0  ;;  %v531_v16 = vadd.f32 %v530_v7, %v8517_v57 }
 0x135   : > { %v8544_v12 = vadd.f32 %v623_v9, %v8517_v57  ;;  %v533_v13 = vadd.f32 %v532_v10, %v8537_v4  ;;  %v625_v14 = vpop.f32.mrb[10].mxu1  ;;  %v534_v15 = vpop.f32.mrb[11].mxu0 }
 0x136   : > { %v8549_v17 = vadd.f32 %v625_v14, %v8537_v4  ;;  %v535_v18 = vadd.f32 %v534_v15, %v8537_v4  ;;  %v627_v19 = vpop.f32.mrb[11].mxu1 }
 0x137   : > { %v8553_v20 = vadd.f32 %v627_v19, %v8537_v4  ;;  %v862_v21 = vpack.c.bf16 %v533_v13, %v529_v11 }
 0x138   : > { %v863_v23 = vpack.c.bf16 %v535_v18, %v531_v16 }
 0x139   : > { %894 = vxpose.xlu0.c.b16.start [1/2] (short) %v862_v21, 128 }
 0x13a   : > { %v538_v26 = vpop.f32.mrb[12].mxu0  ;;  %910 = vxpose.xlu1.c.b16.start [1/2] (short) %v863_v23, 128 }
 0x13b   : > { %v631_v27 = vpop.f32.mrb[12].mxu1  ;;  %v540_v28 = vpop.f32.mrb[13].mxu0  ;;  %v539_v31 = vadd.f32 %v538_v26, %v8535_v3 }
 0x13c   : > { %v633_v29 = vpop.f32.mrb[13].mxu1  ;;  %v542_v30 = vpop.f32.mrb[14].mxu0  ;;  %v8564_v35 = vadd.f32 %v631_v27, %v8535_v3  ;;  %v541_v36 = vadd.f32 %v540_v28, %v8535_v3 }
 0x13d   : > { %v543_v32 = vadd.f32 %v542_v30, %v8559_v25  ;;  %v635_v33 = vpop.f32.mrb[14].mxu1  ;;  %v544_v34 = vpop.f32.mrb[15].mxu0  ;;  %v8572_v40 = vadd.f32 %v633_v29, %v8535_v3 }
 0x13e   : > { %v8568_v37 = vadd.f32 %v635_v33, %v8559_v25  ;;  %v545_v38 = vadd.f32 %v544_v34, %v8559_v25  ;;  %v637_v39 = vpop.f32.mrb[15].mxu1  ;;  %v8601_v33 = vpop.permute.xlu1 %422 }
 0x13f   : > { %v870_v41 = vpack.c.bf16 %v543_v32, %v539_v31  ;;  %v8575_v42 = vadd.f32 %v637_v39, %v8559_v25  ;;  %v8599_v31 = vpop.permute.xlu0 %417 }
 0x140   : > { %v871_v44 = vpack.c.bf16 %v545_v38, %v541_v36 }
 0x141   : > { %895 = vxpose.xlu0.c.b16.end [2/2] (short) %v870_v41, 128 }
 0x142   : > { %v548_v5 = vpop.f32.mrb[16].mxu0  ;;  %911 = vxpose.xlu1.c.b16.end [2/2] (short) %v871_v44, 128 }
 0x143   : > { %v641_v6 = vpop.f32.mrb[16].mxu1  ;;  %v550_v7 = vpop.f32.mrb[17].mxu0  ;;  %v549_v11 = vadd.f32 %v548_v5, %v8579_v45 }
 0x144   : > { %v643_v9 = vpop.f32.mrb[17].mxu1  ;;  %v552_v10 = vpop.f32.mrb[18].mxu0  ;;  %v8588_v16 = vadd.f32 %v641_v6, %v8579_v45  ;;  %v551_v18 = vadd.f32 %v550_v7, %v8579_v45 }
 0x145   : > { %v553_v13 = vadd.f32 %v552_v10, %v8583_v47  ;;  %v645_v14 = vpop.f32.mrb[18].mxu1  ;;  %v554_v15 = vpop.f32.mrb[19].mxu0  ;;  %v644_v26 = vadd.f32 %v643_v9, %v8579_v45 }
 0x146   : > { %v8592_v19 = vadd.f32 %v645_v14, %v8583_v47  ;;  %v555_v21 = vadd.f32 %v554_v15, %v8583_v47  ;;  %v647_v23 = vpop.f32.mrb[19].mxu1 }
 0x147   : > { %v878_v27 = vpack.c.bf16 %v553_v13, %v549_v11  ;;  %v648_v28 = vadd.f32 %v647_v23, %v8583_v47 }
 0x148   : > { %v879_v30 = vpack.c.bf16 %v555_v21, %v551_v18 }
 0x149   : > { %v881_v32 = vpack.c.bf16 %v648_v28, %v644_v26 }
 0x14a   : > { %v558_v34 = vpop.f32.mrb[20].mxu0  ;;  %975 = vmatprep.subr.bf16.mxu0 %v879_v30 }
 0x14b   : > { %v651_v36 = vpop.f32.mrb[20].mxu1  ;;  %2182 = vmatprep.subr.bf16.mxu1 %v881_v32  ;;  %v560_v38 = vpop.f32.mrb[21].mxu0  ;;  %976 = vmatpush1.bf16.msra.mxu0 %v878_v27  ;;  %v559_v44 = vadd.f32 %v558_v34, %v8599_v31 }
 0x14c   : > { %v653_v39 = vpop.f32.mrb[21].mxu1  ;;  %v562_v41 = vpop.f32.mrb[22].mxu0  ;;  %v8606_v9 = vadd.f32 %v651_v36, %v8599_v31  ;;  %v561_v10 = vadd.f32 %v560_v38, %v8599_v31 }
 0x14d   : > { %v563_v5 = vadd.f32 %v562_v41, %v8601_v33  ;;  %v655_v6 = vpop.f32.mrb[22].mxu1  ;;  %v564_v7 = vpop.f32.mrb[23].mxu0  ;;  %v8614_v15 = vadd.f32 %v653_v39, %v8599_v31 }
 0x14e   : > { %v8610_v11 = vadd.f32 %v655_v6, %v8601_v33  ;;  %v565_v13 = vadd.f32 %v564_v7, %v8601_v33  ;;  %v657_v14 = vpop.f32.mrb[23].mxu1 }
 0x14f   : > { %v886_v18 = vpack.c.bf16 %v563_v5, %v559_v44  ;;  %v8617_v21 = vadd.f32 %v657_v14, %v8601_v33 }
 0x150   : > { %v887_v26 = vpack.c.bf16 %v565_v13, %v561_v10 }
 0x152   : > { %977 = vmatprep.subr.bf16.mxu0 %v887_v26  ;;  %v8623_v28 = vpop.f32.mrb[24].mxu0 }
 0x153   : > { %12157 = vst [vmem:[#allocation24_spill] sm:$0xff] %v8623_v28  ;;  %978 = vmatpush1.bf16.msra.mxu0 %v886_v18  ;;  %v8625_v30 = vpop.f32.mrb[24].mxu1  ;;  %v8627_v32 = vpop.f32.mrb[25].mxu0 }
 0x154   : > { %12158 = vst [vmem:[#allocation25_spill] sm:$0xff] %v8625_v30  ;;  %12159 = vst [vmem:[#allocation26_spill] sm:$0xff] %v8627_v32  ;;  %v8629_v34 = vpop.f32.mrb[25].mxu1  ;;  %v8631_v36 = vpop.f32.mrb[26].mxu0 }
 0x155   : > { %12160 = vst [vmem:[#allocation27_spill] sm:$0xff] %v8629_v34  ;;  %12161 = vst [vmem:[#allocation28_spill] sm:$0xff] %v8631_v36  ;;  %v8633_v38 = vpop.f32.mrb[26].mxu1  ;;  %v8635_v39 = vpop.f32.mrb[27].mxu0 }
 0x156   : > { %12162 = vst [vmem:[#allocation29_spill] sm:$0xff] %v8633_v38  ;;  %12163 = vst [vmem:[#allocation30_spill] sm:$0xff] %v8635_v39  ;;  %v8637_v41 = vpop.f32.mrb[27].mxu1 }
 0x157   : > { %12164 = vst [vmem:[#allocation31_spill] sm:$0xff] %v8637_v41 }
 0x15a   : > { %v8639_v44 = vpop.f32.mrb[28].mxu0 }
 0x15b   : > { %12165 = vst [vmem:[#allocation32_spill] sm:$0xff] %v8639_v44  ;;  %v8641_v5 = vpop.f32.mrb[28].mxu1  ;;  %v8643_v6 = vpop.f32.mrb[29].mxu0 }
 0x15c   : > { %12166 = vst [vmem:[#allocation33_spill] sm:$0xff] %v8641_v5  ;;  %12167 = vst [vmem:[#allocation34_spill] sm:$0xff] %v8643_v6  ;;  %v8645_v7 = vpop.f32.mrb[29].mxu1  ;;  %v8647_v10 = vpop.f32.mrb[30].mxu0 }
 0x15d   : > { %12168 = vst [vmem:[#allocation35_spill] sm:$0xff] %v8645_v7  ;;  %12169 = vst [vmem:[#allocation36_spill] sm:$0xff] %v8647_v10  ;;  %v8649_v13 = vpop.f32.mrb[30].mxu1  ;;  %v8651_v14 = vpop.f32.mrb[31].mxu0 }
 0x15e   : > { %12170 = vst [vmem:[#allocation37_spill] sm:$0xff] %v8649_v13  ;;  %12171 = vst [vmem:[#allocation38_spill] sm:$0xff] %v8651_v14  ;;  %v8653_v18 = vpop.f32.mrb[31].mxu1 }
 0x15f   : > { %12172 = vst [vmem:[#allocation39_spill] sm:$0xff] %v8653_v18 }
 0x162   : > { %v714_v26 = vpop.f32.mrb[32].mxu0 }
 0x163   : > { %v807_v48 = vpop.f32.mrb[32].mxu1  ;;  %v716_v46 = vpop.f32.mrb[33].mxu0  ;;  %v8656_v24 = vadd.f32 %v714_v26, %v8517_v57 }
 0x164   : > { %v809_v43 = vpop.f32.mrb[33].mxu1  ;;  %v718_v23 = vpop.f32.mrb[34].mxu0  ;;  %v8662_v0 = vadd.f32 %v807_v48, %v8517_v57  ;;  %v8665_v13 = vadd.f32 %v716_v46, %v8517_v57 }
 0x165   : > { %12173 = vst [vmem:[#allocation40_spill] sm:$0xff] %v8656_v24  ;;  %v8659_v27 = vadd.f32 %v718_v23, %v8537_v4  ;;  %v811_v22 = vpop.f32.mrb[34].mxu1  ;;  %v720_v29 = vpop.f32.mrb[35].mxu0  ;;  %v8674_v26 = vadd.f32 %v809_v43, %v8517_v57 }
 0x166   : > { %12175 = vst [vmem:[#allocation42_spill] sm:$0xff] %v8662_v0  ;;  %12176 = vst [vmem:[#allocation43_spill] sm:$0xff] %v8665_v13  ;;  %v8668_v5 = vadd.f32 %v811_v22, %v8537_v4  ;;  %v8671_v18 = vadd.f32 %v720_v29, %v8537_v4  ;;  %v813_v38 = vpop.f32.mrb[35].mxu1 }
 0x167   : > { %12174 = vst [vmem:[#allocation41_spill] sm:$0xff] %v8659_v27  ;;  %12179 = vst [vmem:[#allocation46_spill] sm:$0xff] %v8674_v26  ;;  %v8679_v41 = vadd.f32 %v813_v38, %v8537_v4 }
 0x168   : > { %12177 = vst [vmem:[#allocation44_spill] sm:$0xff] %v8668_v5  ;;  %12178 = vst [vmem:[#allocation45_spill] sm:$0xff] %v8671_v18 }
 0x169   : > { %12180 = vst [vmem:[#allocation47_spill] sm:$0xff] %v8679_v41 }
 0x16a   : > { %v724_v29 = vpop.f32.mrb[36].mxu0 }
 0x16b   : > { %v817_v10 = vpop.f32.mrb[36].mxu1  ;;  %v726_v14 = vpop.f32.mrb[37].mxu0  ;;  %v8688_v36 = vadd.f32 %v724_v29, %v8535_v3 }
 0x16c   : > { %v819_v57 = vpop.f32.mrb[37].mxu1  ;;  %v728_v43 = vpop.f32.mrb[38].mxu0  ;;  %v8694_v48 = vadd.f32 %v817_v10, %v8535_v3  ;;  %v8697_v22 = vadd.f32 %v726_v14, %v8535_v3 }
 0x16d   : > { %12181 = vst [vmem:[#allocation48_spill] sm:$0xff] %v8688_v36  ;;  %v8691_v4 = vadd.f32 %v728_v43, %v8559_v25  ;;  %v821_v38 = vpop.f32.mrb[38].mxu1  ;;  %v730_v23 = vpop.f32.mrb[39].mxu0  ;;  %v8706_v29 = vadd.f32 %v819_v57, %v8535_v3 }
 0x16e   : > { %12183 = vst [vmem:[#allocation50_spill] sm:$0xff] %v8694_v48  ;;  %12184 = vst [vmem:[#allocation51_spill] sm:$0xff] %v8697_v22  ;;  %v8700_v46 = vadd.f32 %v821_v38, %v8559_v25  ;;  %v8703_v26 = vadd.f32 %v730_v23, %v8559_v25  ;;  %v823_v41 = vpop.f32.mrb[39].mxu1 }
 0x16f   : > { %12182 = vst [vmem:[#allocation49_spill] sm:$0xff] %v8691_v4  ;;  %12187 = vst [vmem:[#allocation54_spill] sm:$0xff] %v8706_v29  ;;  %v8711_v0 = vadd.f32 %v823_v41, %v8559_v25 }
 0x170   : > { %12185 = vst [vmem:[#allocation52_spill] sm:$0xff] %v8700_v46  ;;  %12186 = vst [vmem:[#allocation53_spill] sm:$0xff] %v8703_v26 }
 0x171   : > { %12188 = vst [vmem:[#allocation55_spill] sm:$0xff] %v8711_v0 }
 0x172   : > { %v734_v38 = vpop.f32.mrb[40].mxu0 }
 0x173   : > { %v827_v5 = vpop.f32.mrb[40].mxu1  ;;  %v736_v13 = vpop.f32.mrb[41].mxu0  ;;  %v8720_v18 = vadd.f32 %v734_v38, %v8579_v45 }
 0x174   : > { %v829_v3 = vpop.f32.mrb[41].mxu1  ;;  %v738_v57 = vpop.f32.mrb[42].mxu0  ;;  %v8726_v10 = vadd.f32 %v827_v5, %v8579_v45  ;;  %v8729_v14 = vadd.f32 %v736_v13, %v8579_v45 }
 0x175   : > { %12189 = vst [vmem:[#allocation56_spill] sm:$0xff] %v8720_v18  ;;  %v8723_v25 = vadd.f32 %v738_v57, %v8583_v47  ;;  %v831_v41 = vpop.f32.mrb[42].mxu1  ;;  %v740_v43 = vpop.f32.mrb[43].mxu0  ;;  %v8738_v38 = vadd.f32 %v829_v3, %v8579_v45 }
 0x176   : > { %12191 = vst [vmem:[#allocation58_spill] sm:$0xff] %v8726_v10  ;;  %12192 = vst [vmem:[#allocation59_spill] sm:$0xff] %v8729_v14  ;;  %v8732_v23 = vadd.f32 %v831_v41, %v8583_v47  ;;  %v8735_v29 = vadd.f32 %v740_v43, %v8583_v47  ;;  %v833_v0 = vpop.f32.mrb[43].mxu1 }
 0x177   : > { %12190 = vst [vmem:[#allocation57_spill] sm:$0xff] %v8723_v25  ;;  %12195 = vst [vmem:[#allocation62_spill] sm:$0xff] %v8738_v38  ;;  %v8743_v48 = vadd.f32 %v833_v0, %v8583_v47 }
 0x178   : > { %12193 = vst [vmem:[#allocation60_spill] sm:$0xff] %v8732_v23  ;;  %12194 = vst [vmem:[#allocation61_spill] sm:$0xff] %v8735_v29 }
 0x179   : > { %12196 = vst [vmem:[#allocation63_spill] sm:$0xff] %v8743_v48 }
 0x17a   : > { %v744_v41 = vpop.f32.mrb[44].mxu0 }
 0x17b   : > { %v837_v46 = vpop.f32.mrb[44].mxu1  ;;  %v746_v22 = vpop.f32.mrb[45].mxu0  ;;  %v8752_v26 = vadd.f32 %v744_v41, %v8599_v31 }
 0x17c   : > { %v839_v45 = vpop.f32.mrb[45].mxu1  ;;  %v748_v3 = vpop.f32.mrb[46].mxu0  ;;  %v8758_v5 = vadd.f32 %v837_v46, %v8599_v31  ;;  %v8761_v13 = vadd.f32 %v746_v22, %v8599_v31 }
 0x17d   : > { %12197 = vst [vmem:[#allocation64_spill] sm:$0xff] %v8752_v26  ;;  %v8755_v0 = vadd.f32 %v748_v3, %v8601_v33  ;;  %v841_v47 = vpop.f32.mrb[46].mxu1  ;;  %v750_v57 = vpop.f32.mrb[47].mxu0  ;;  %v8770_v41 = vadd.f32 %v839_v45, %v8599_v31  ;;  %v12205_v31 = vmov 0  }
 0x17e   : > { %12199 = vst [vmem:[#allocation66_spill] sm:$0xff] %v8758_v5  ;;  %12200 = vst [vmem:[#allocation67_spill] sm:$0xff] %v8761_v13  ;;  %v8764_v43 = vadd.f32 %v841_v47, %v8601_v33  ;;  %v8767_v10 = vadd.f32 %v750_v57, %v8601_v33  ;;  %v843_v23 = vpop.f32.mrb[47].mxu1 }
 0x17f   : > { %12198 = vst [vmem:[#allocation65_spill] sm:$0xff] %v8755_v0  ;;  %12203 = vst [vmem:[#allocation70_spill] sm:$0xff] %v8770_v41  ;;  %v8775_v38 = vadd.f32 %v843_v23, %v8601_v33 }
 0x180   : > { %12201 = vst [vmem:[#allocation68_spill] sm:$0xff] %v8764_v43  ;;  %12202 = vst [vmem:[#allocation69_spill] sm:$0xff] %v8767_v10 }
 0x181   : > { %12204 = vst [vmem:[#allocation71_spill] sm:$0xff] %v8775_v38 }
 0x1a3   : > { %v902_v47 = vpop.trf.xlu0 }
 0x1a4   : > { %6421 = vmatmul.mubr.msk.bf16.vlgmr.msra.gmra.mrb[48].mxu0 %vm926_vm1, %v902_v47 }
 0x1a5   : > { %1017 = vmatprep.mubr.bf16.mxu0 %v12205_v31 }
 0x1a7   : > { %v903_v45 = vpop.trf.xlu0 }
 0x1ab   : > { %v904_v33 = vpop.trf.xlu0 }
 0x1ac   : > { %6422 = vmatmul.mubr.msk.bf16.gmra.mrb[52].mxu0 %vm926_vm1, %v903_v45 }
 0x1ad   : > { %1027 = vmatprep.mubr.bf16.mxu0 %v12205_v31 }
 0x1af   : > { %v905_v23 = vpop.trf.xlu0 }
 0x1b3   : > { %v906_v22 = vpop.trf.xlu0 }
 0x1b4   : > { %6423 = vmatmul.mubr.msk.bf16.gmra.mrb[56].mxu0 %vm926_vm1, %v904_v33 }
 0x1b5   : > { %1037 = vmatprep.mubr.bf16.mxu0 %v12205_v31 }
 0x1b7   : > { %v907_v47 = vpop.trf.xlu0 }
 0x1bb   : > { %v908_v45 = vpop.trf.xlu0 }
 0x1bc   : > { %6424 = vmatmul.mubr.msk.bf16.gmra.mrb[60].mxu0 %vm926_vm1, %v905_v23  ;;  %v918_v23 = vpop.trf.xlu1 }
 0x1bd   : > { %1047 = vmatprep.mubr.bf16.mxu0 %v12205_v31 }
 0x1bf   : > { %v909_v33 = vpop.trf.xlu0 }
 0x1c4   : > { %6425 = vmatmul.mubr.msk.bf16.gmra.mrb[64].mxu0 %vm926_vm1, %v906_v22  ;;  %v919_v22 = vpop.trf.xlu1 }
 0x1c5   : > { %1057 = vmatprep.mubr.bf16.mxu0 %v12205_v31 }
 0x1cc   : > { %6426 = vmatmul.mubr.msk.bf16.gmra.mrb[68].mxu0 %vm926_vm1, %v907_v47  ;;  %v920_v47 = vpop.trf.xlu1 }
 0x1cd   : > { %1067 = vmatprep.mubr.bf16.mxu0 %v12205_v31 }
 0x1d4   : > { %6427 = vmatmul.mubr.msk.bf16.gmra.mrb[72].mxu0 %vm926_vm1, %v908_v45  ;;  %v921_v45 = vpop.trf.xlu1 }
 0x1d5   : > { %1077 = vmatprep.mubr.bf16.mxu0 %v12205_v31 }
 0x1dc   : > { %6428 = vmatmul.mubr.msk.bf16.gmra.mrb[76].mxu0 %vm926_vm1, %v909_v33  ;;  %v922_v33 = vpop.trf.xlu1 }
 0x1dd   : > { %1087 = vmatprep.mubr.bf16.mxu0 %v12205_v31 }
 0x1e4   : > { %6429 = vmatmul.mubr.msk.bf16.gmra.mrb[80].mxu0 %vm926_vm1, %v918_v23  ;;  %v923_v23 = vpop.trf.xlu1 }
 0x1e5   : > { %1097 = vmatprep.mubr.bf16.mxu0 %v12205_v31 }
 0x1ec   : > { %6430 = vmatmul.mubr.msk.bf16.gmra.mrb[84].mxu0 %vm926_vm1, %v919_v22  ;;  %v924_v22 = vpop.trf.xlu1 }
 0x1ed   : > { %1107 = vmatprep.mubr.bf16.mxu0 %v12205_v31 }
 0x1f4   : > { %6431 = vmatmul.mubr.msk.bf16.gmra.mrb[88].mxu0 %vm926_vm1, %v920_v47  ;;  %v925_v47 = vpop.trf.xlu1 }
 0x1f5   : > { %1117 = vmatprep.mubr.bf16.mxu0 %v12205_v31 }
 0x1fc   : > { %6432 = vmatmul.mubr.msk.bf16.gmra.mrb[92].mxu0 %vm926_vm1, %v921_v45 }
 0x1fd   : > { %1127 = vmatprep.mubr.bf16.mxu0 %v12205_v31 }
 0x204   : > { %6433 = vmatmul.mubr.msk.bf16.gmra.mrb[96].mxu0 %vm926_vm1, %v922_v33 }
 0x205   : > { %1137 = vmatprep.mubr.bf16.mxu0 %v12205_v31 }
 0x20c   : > { %6434 = vmatmul.mubr.msk.bf16.gmra.mrb[100].mxu0 %vm926_vm1, %v923_v23 }
 0x20d   : > { %1147 = vmatprep.mubr.bf16.mxu0 %v12205_v31 }
 0x214   : > { %6435 = vmatmul.mubr.msk.bf16.gmra.mrb[104].mxu0 %vm926_vm1, %v924_v22 }
 0x215   : > { %1157 = vmatprep.mubr.bf16.mxu0 %v12205_v31 }
 0x21c   : > { %6436 = vmatmul.mubr.msk.bf16.gmra.mrb[108].mxu0 %vm926_vm1, %v925_v47 }
 0x277   : > { %v8814_v45 = vpop.f32.mrb[48].mxu0 }
 0x278   : > { %v8816_v57 = vpop.f32.mrb[49].mxu0 }
 0x279   : > { %v8818_v33 = vpop.f32.mrb[50].mxu0  ;;  %v1168_v3 = vmax.f32 %v8814_v45, %v8816_v57 }
 0x27a   : > { %v8822_v23 = vpop.f32.mrb[51].mxu0 }
 0x27b   : > { %1169 = vmax.xlane.f32.xlu0 %v1168_v3  ;;  %v1171_v22 = vmax.f32 %v8818_v33, %v8822_v23 }
 0x27d   : > { %1172 = vmax.xlane.f32.xlu1 %v1171_v22 }
 0x27f   : > { %v8826_v46 = vpop.f32.mrb[52].mxu0 }
 0x280   : > { %v8828_v5 = vpop.f32.mrb[53].mxu0 }
 0x281   : > { %v8830_v47 = vpop.f32.mrb[54].mxu0  ;;  %v1174_v43 = vmax.f32 %v8826_v46, %v8828_v5 }
 0x282   : > { %v8834_v41 = vpop.f32.mrb[55].mxu0 }
 0x283   : > { %1175 = vmax.xlane.f32.xlu0 %v1174_v43  ;;  %v1177_v38 = vmax.f32 %v8830_v47, %v8834_v41 }
 0x287   : > { %1178 = vmax.xlane.f32.xlu0 %v1177_v38  ;;  %v8838_v3 = vpop.f32.mrb[56].mxu0 }
 0x288   : > { %v8840_v48 = vpop.f32.mrb[57].mxu0 }
 0x289   : > { %v8842_v22 = vpop.f32.mrb[58].mxu0  ;;  %v1180_v36 = vmax.f32 %v8838_v3, %v8840_v48 }
 0x28a   : > { %v8846_v4 = vpop.f32.mrb[59].mxu0 }
 0x28b   : > { %1181 = vmax.xlane.f32.xlu1 %v1180_v36  ;;  %v1183_v26 = vmax.f32 %v8842_v22, %v8846_v4 }
 0x28d   : > { %1184 = vmax.xlane.f32.xlu0 %v1183_v26 }
 0x28f   : > { %v8850_v43 = vpop.f32.mrb[60].mxu0 }
 0x290   : > { %v8852_v0 = vpop.f32.mrb[61].mxu0 }
 0x291   : > { %v8854_v38 = vpop.f32.mrb[62].mxu0  ;;  %v1186_v24 = vmax.f32 %v8850_v43, %v8852_v0 }
 0x292   : > { %v8858_v27 = vpop.f32.mrb[63].mxu0 }
 0x293   : > { %1187 = vmax.xlane.f32.xlu1 %v1186_v24  ;;  %v1189_v13 = vmax.f32 %v8854_v38, %v8858_v27 }
 0x295   : > { %1190 = vmax.xlane.f32.xlu0 %v1189_v13 }
 0x297   : > { %v8862_v36 = vpop.f32.mrb[64].mxu0 }
 0x298   : > { %v8864_v10 = vpop.f32.mrb[65].mxu0 }
 0x299   : > { %v8866_v26 = vpop.f32.mrb[66].mxu0  ;;  %v1192_v18 = vmax.f32 %v8862_v36, %v8864_v10 }
 0x29a   : > { %v8870_v25 = vpop.f32.mrb[67].mxu0 }
 0x29b   : > { %1193 = vmax.xlane.f32.xlu1 %v1192_v18  ;;  %v1195_v14 = vmax.f32 %v8866_v26, %v8870_v25 }
 0x29d   : > { %1196 = vmax.xlane.f32.xlu0 %v1195_v14 }
 0x29f   : > { %v8874_v24 = vpop.f32.mrb[68].mxu0 }
 0x2a0   : > { %v8876_v29 = vpop.f32.mrb[69].mxu0 }
 0x2a1   : > { %v8878_v13 = vpop.f32.mrb[70].mxu0  ;;  %v1198_v39 = vmax.f32 %v8874_v24, %v8876_v29 }
 0x2a2   : > { %v8882_v1 = vpop.f32.mrb[71].mxu0 }
 0x2a3   : > { %1199 = vmax.xlane.f32.xlu1 %v1198_v39  ;;  %v1201_v61 = vmax.f32 %v8878_v13, %v8882_v1 }
 0x2a5   : > { %1202 = vmax.xlane.f32.xlu0 %v1201_v61 }
 0x2a7   : > { %v8886_v18 = vpop.f32.mrb[72].mxu0 }
 0x2a8   : > { %v8888_v2 = vpop.f32.mrb[73].mxu0 }
 0x2a9   : > { %v8890_v14 = vpop.f32.mrb[74].mxu0  ;;  %v1204_v63 = vmax.f32 %v8886_v18, %v8888_v2 }
 0x2aa   : > { %v8894_v55 = vpop.f32.mrb[75].mxu0 }
 0x2ab   : > { %1205 = vmax.xlane.f32.xlu1 %v1204_v63  ;;  %v1207_v52 = vmax.f32 %v8890_v14, %v8894_v55 }
 0x2ad   : > { %1208 = vmax.xlane.f32.xlu0 %v1207_v52 }
 0x2af   : > { %v8898_v39 = vpop.f32.mrb[76].mxu0 }
 0x2b0   : > { %v8900_v56 = vpop.f32.mrb[77].mxu0 }
 0x2b1   : > { %v8902_v61 = vpop.f32.mrb[78].mxu0  ;;  %v1210_v54 = vmax.f32 %v8898_v39, %v8900_v56 }
 0x2b2   : > { %v8906_v7 = vpop.f32.mrb[79].mxu0 }
 0x2b3   : > { %1211 = vmax.xlane.f32.xlu1 %v1210_v54  ;;  %v1213_v44 = vmax.f32 %v8902_v61, %v8906_v7 }
 0x2b5   : > { %1214 = vmax.xlane.f32.xlu0 %v1213_v44 }
 0x2b7   : > { %v8910_v63 = vpop.f32.mrb[80].mxu0 }
 0x2b8   : > { %v8912_v6 = vpop.f32.mrb[81].mxu0 }
 0x2b9   : > { %v8914_v52 = vpop.f32.mrb[82].mxu0  ;;  %v1216_v60 = vmax.f32 %v8910_v63, %v8912_v6 }
 0x2ba   : > { %v8918_v30 = vpop.f32.mrb[83].mxu0 }
 0x2bb   : > { %1217 = vmax.xlane.f32.xlu1 %v1216_v60  ;;  %v1219_v58 = vmax.f32 %v8914_v52, %v8918_v30 }
 0x2bd   : > { %1220 = vmax.xlane.f32.xlu0 %v1219_v58 }
 0x2bf   : > { %v8922_v54 = vpop.f32.mrb[84].mxu0 }
 0x2c0   : > { %12206 = vst [vmem:[#allocation72_spill] sm:$0xff] %v8922_v54  ;;  %v8924_v62 = vpop.f32.mrb[85].mxu0 }
 0x2c1   : > { %12207 = vst [vmem:[#allocation73_spill] sm:$0xff] %v8924_v62  ;;  %v8926_v44 = vpop.f32.mrb[86].mxu0  ;;  %v1222_v59 = vmax.f32 %v8922_v54, %v8924_v62 }
 0x2c2   : > { %12208 = vst [vmem:[#allocation74_spill] sm:$0xff] %v8926_v44  ;;  %v8930_v34 = vpop.f32.mrb[87].mxu0 }
 0x2c3   : > { %12209 = vst [vmem:[#allocation75_spill] sm:$0xff] %v8930_v34  ;;  %1223 = vmax.xlane.f32.xlu1 %v1222_v59  ;;  %v1225_v28 = vmax.f32 %v8926_v44, %v8930_v34 }
 0x2c5   : > { %1226 = vmax.xlane.f32.xlu0 %v1225_v28 }
 0x2c7   : > { %v8934_v60 = vpop.f32.mrb[88].mxu0 }
 0x2c8   : > { %12210 = vst [vmem:[#allocation76_spill] sm:$0xff] %v8934_v60  ;;  %v8936_v32 = vpop.f32.mrb[89].mxu0 }
 0x2c9   : > { %12211 = vst [vmem:[#allocation77_spill] sm:$0xff] %v8936_v32  ;;  %v8938_v58 = vpop.f32.mrb[90].mxu0  ;;  %v1228_v51 = vmax.f32 %v8934_v60, %v8936_v32 }
 0x2ca   : > { %12212 = vst [vmem:[#allocation78_spill] sm:$0xff] %v8938_v58  ;;  %v8942_v49 = vpop.f32.mrb[91].mxu0 }
 0x2cb   : > { %12213 = vst [vmem:[#allocation79_spill] sm:$0xff] %v8942_v49  ;;  %1229 = vmax.xlane.f32.xlu1 %v1228_v51  ;;  %v1231_v53 = vmax.f32 %v8938_v58, %v8942_v49 }
 0x2cd   : > { %1232 = vmax.xlane.f32.xlu0 %v1231_v53 }
 0x2cf   : > { %v8946_v59 = vpop.f32.mrb[92].mxu0 }
 0x2d0   : > { %12214 = vst [vmem:[#allocation80_spill] sm:$0xff] %v8946_v59  ;;  %v8948_v50 = vpop.f32.mrb[93].mxu0 }
 0x2d1   : > { %12215 = vst [vmem:[#allocation81_spill] sm:$0xff] %v8948_v50  ;;  %v8950_v28 = vpop.f32.mrb[94].mxu0  ;;  %v1234_v31 = vmax.f32 %v8946_v59, %v8948_v50 }
 0x2d2   : > { %12216 = vst [vmem:[#allocation82_spill] sm:$0xff] %v8950_v28  ;;  %v8954_v34 = vpop.f32.mrb[95].mxu0 }
 0x2d3   : > { %12217 = vst [vmem:[#allocation83_spill] sm:$0xff] %v8954_v34  ;;  %1235 = vmax.xlane.f32.xlu1 %v1234_v31  ;;  %v1237_v32 = vmax.f32 %v8950_v28, %v8954_v34 }
 0x2d5   : > { %1238 = vmax.xlane.f32.xlu0 %v1237_v32 }
 0x2d7   : > { %v8958_v51 = vpop.f32.mrb[96].mxu0 }
 0x2d8   : > { %12218 = vst [vmem:[#allocation84_spill] sm:$0xff] %v8958_v51  ;;  %v8960_v49 = vpop.f32.mrb[97].mxu0 }
 0x2d9   : > { %12219 = vst [vmem:[#allocation85_spill] sm:$0xff] %v8960_v49  ;;  %v8962_v53 = vpop.f32.mrb[98].mxu0  ;;  %v1240_v58 = vmax.f32 %v8958_v51, %v8960_v49 }
 0x2da   : > { %12220 = vst [vmem:[#allocation86_spill] sm:$0xff] %v8962_v53  ;;  %v8966_v60 = vpop.f32.mrb[99].mxu0 }
 0x2db   : > { %12221 = vst [vmem:[#allocation87_spill] sm:$0xff] %v8966_v60  ;;  %1241 = vmax.xlane.f32.xlu1 %v1240_v58  ;;  %v1243_v50 = vmax.f32 %v8962_v53, %v8966_v60 }
 0x2dd   : > { %1244 = vmax.xlane.f32.xlu0 %v1243_v50 }
 0x2df   : > { %v8970_v31 = vpop.f32.mrb[100].mxu0 }
 0x2e0   : > { %12222 = vst [vmem:[#allocation88_spill] sm:$0xff] %v8970_v31  ;;  %v8972_v34 = vpop.f32.mrb[101].mxu0 }
 0x2e1   : > { %12223 = vst [vmem:[#allocation89_spill] sm:$0xff] %v8972_v34  ;;  %v8974_v32 = vpop.f32.mrb[102].mxu0  ;;  %v1246_v28 = vmax.f32 %v8970_v31, %v8972_v34 }
 0x2e2   : > { %12224 = vst [vmem:[#allocation90_spill] sm:$0xff] %v8974_v32  ;;  %v8978_v59 = vpop.f32.mrb[103].mxu0 }
 0x2e3   : > { %12225 = vst [vmem:[#allocation91_spill] sm:$0xff] %v8978_v59  ;;  %1247 = vmax.xlane.f32.xlu1 %v1246_v28  ;;  %v1249_v49 = vmax.f32 %v8974_v32, %v8978_v59 }
 0x2e5   : > { %1250 = vmax.xlane.f32.xlu0 %v1249_v49 }
 0x2e7   : > { %v8982_v58 = vpop.f32.mrb[104].mxu0 }
 0x2e8   : > { %12226 = vst [vmem:[#allocation92_spill] sm:$0xff] %v8982_v58  ;;  %v8984_v60 = vpop.f32.mrb[105].mxu0 }
 0x2e9   : > { %12227 = vst [vmem:[#allocation93_spill] sm:$0xff] %v8984_v60  ;;  %v8986_v50 = vpop.f32.mrb[106].mxu0  ;;  %v1252_v53 = vmax.f32 %v8982_v58, %v8984_v60 }
 0x2ea   : > { %12228 = vst [vmem:[#allocation94_spill] sm:$0xff] %v8986_v50  ;;  %v8990_v51 = vpop.f32.mrb[107].mxu0 }
 0x2eb   : > { %12229 = vst [vmem:[#allocation95_spill] sm:$0xff] %v8990_v51  ;;  %1253 = vmax.xlane.f32.xlu1 %v1252_v53  ;;  %v1255_v34 = vmax.f32 %v8986_v50, %v8990_v51 }
 0x2ed   : > { %1256 = vmax.xlane.f32.xlu0 %v1255_v34 }
 0x2ef   : > { %v8994_v28 = vpop.f32.mrb[108].mxu0 }
 0x2f0   : > { %12230 = vst [vmem:[#allocation96_spill] sm:$0xff] %v8994_v28  ;;  %v8996_v59 = vpop.f32.mrb[109].mxu0 }
 0x2f1   : > { %12231 = vst [vmem:[#allocation97_spill] sm:$0xff] %v8996_v59  ;;  %v8998_v49 = vpop.f32.mrb[110].mxu0  ;;  %v1258_v32 = vmax.f32 %v8994_v28, %v8996_v59 }
 0x2f2   : > { %v9002_v31 = vpop.f32.mrb[111].mxu0 }
 0x2f3   : > { %12232 = vst [vmem:[#allocation98_spill] sm:$0xff] %v9002_v31  ;;  %1259 = vmax.xlane.f32.xlu1 %v1258_v32  ;;  %v1261_v60 = vmax.f32 %v8998_v49, %v9002_v31 }
 0x2f5   : > { %1262 = vmax.xlane.f32.xlu0 %v1261_v60 }
 0x308   : > { %v1170_v53 = vpop.xlane.xlu0 %1169 }
 0x309   : > { %v1264_v51 = vsub.f32 %v8814_v45, %v1170_v53  ;;  %v1265_v34 = vsub.f32 %v8816_v57, %v1170_v53 }
 0x30a   : > { %v1173_v50 = vpop.xlane.xlu1 %1172 }
 0x30b   : > { %v1328_v58 = vmul.f32 1.442695, %v1264_v51  ;;  %v1266_v44 = vsub.f32 %v8818_v33, %v1173_v50  ;;  %v1267_v62 = vsub.f32 %v8822_v23, %v1173_v50  ;;  %v1330_v54 = vmul.f32 1.442695, %v1265_v34 }
 0x30d   : > { %v1332_v59 = vmul.f32 1.442695, %v1266_v44  ;;  %v1334_v28 = vmul.f32 1.442695, %v1267_v62  ;;  %7232 = vpow2.f32 %v1328_v58 }
 0x30f   : > { %7234 = vpow2.f32 %v1332_v59 }
 0x310   : > { %7236 = vpow2.f32 %v1334_v28  ;;  %v1176_v32 = vpop.xlane.xlu0 %1175 }
 0x311   : > { %7238 = vpow2.f32 %v1330_v54  ;;  %v1268_v60 = vsub.f32 %v8826_v46, %v1176_v32  ;;  %v1269_v45 = vsub.f32 %v8828_v5, %v1176_v32 }
 0x313   : > { %v1336_v31 = vmul.f32 1.442695, %v1268_v60  ;;  %v1338_v57 = vmul.f32 1.442695, %v1269_v45 }
 0x314   : > { %v1179_v53 = vpop.xlane.xlu0 %1178 }
 0x315   : > { %v1270_v51 = vsub.f32 %v8830_v47, %v1179_v53  ;;  %v1271_v33 = vsub.f32 %v8834_v41, %v1179_v53  ;;  %7240 = vpow2.f32 %v1336_v31  ;;  %v12235_v53 = vpack.c.bf16 %v8617_v21, %v8614_v15 }
 0x316   : > { %7242 = vpow2.f32 %v1338_v57  ;;  %v12237_v15 = vpack.c.bf16 %v8610_v11, %v8606_v9  ;;  %v12238_v21 = vpack.c.bf16 %v8568_v37, %v8564_v35 }
 0x317   : > { %v1340_v23 = vmul.f32 1.442695, %v1270_v51  ;;  %v1342_v44 = vmul.f32 1.442695, %v1271_v33  ;;  %v7233_v62 = vpop.eup %7232 }
 0x318   : > { %v1182_v59 = vpop.xlane.xlu1 %1181 }
 0x319   : > { %v7235_v58 = vpop.eup %7234  ;;  %7244 = vpow2.f32 %v1340_v23  ;;  %v1272_v54 = vsub.f32 %v8838_v3, %v1182_v59  ;;  %v1273_v46 = vsub.f32 %v8840_v48, %v1182_v59  ;;  %v12233_v48 = vpack.c.bf16 %v8592_v19, %v8588_v16 }
 0x31a   : > { %v7237_v5 = vpop.eup %7236  ;;  %7246 = vpow2.f32 %v1342_v44  ;;  %v1185_v50 = vpop.xlane.xlu0 %1184  ;;  %v9016_v28 = vpack.c.bf16 %v7235_v58, %v7233_v62  ;;  %v12236_v16 = vpack.c.bf16 %v8553_v20, %v8544_v12 }
 0x31b   : > { %v7239_v47 = vpop.eup %7238  ;;  %v1344_v34 = vmul.f32 1.442695, %v1272_v54  ;;  %v1274_v41 = vsub.f32 %v8842_v22, %v1185_v50  ;;  %v1275_v31 = vsub.f32 %v8846_v4, %v1185_v50  ;;  %v1346_v60 = vmul.f32 1.442695, %v1273_v46 }
 0x31c   : > { %v1457_v32 = vpack.c.bf16 %v7237_v5, %v7239_v47  ;;  %v12234_v22 = vpack.c.bf16 %v8549_v17, %v8540_v8 }
 0x31d   : > { %v1348_v45 = vmul.f32 1.442695, %v1274_v41  ;;  %v1350_v57 = vmul.f32 1.442695, %v1275_v31  ;;  %7248 = vpow2.f32 %v1344_v34 }
 0x31e   : > { %1520 = vmatprep.mubr.bf16.mxu1 %v1457_v32  ;;  %1713 = vmatprep.mubr.bf16.mxu0 %v1457_v32 }
 0x31f   : > { %7250 = vpow2.f32 %v1348_v45  ;;  %1521 = vmatmul.mubr.bf16.vlgmr.msra.gmra.mrb[48].mxu1 %v9016_v28  ;;  %v7241_v4 = vpop.eup %7240 }
 0x320   : > { %7252 = vpow2.f32 %v1350_v57  ;;  %2183 = vmatpush1.bf16.msra.mxu1 %v12233_v48  ;;  %v1188_v3 = vpop.xlane.xlu1 %1187  ;;  %2102 = vxpose.xlu1.c.b16.start [1/2] (short) %v12234_v22, 128  ;;  %v7243_v23 = vpop.eup %7242 }
 0x321   : > { %7254 = vpow2.f32 %v1346_v60  ;;  %2184 = vmatprep.subr.bf16.mxu1 %v12235_v53  ;;  %v1276_v51 = vsub.f32 %v8850_v43, %v1188_v3  ;;  %v1277_v33 = vsub.f32 %v8852_v0, %v1188_v3 }
 0x322   : > { %2118 = vxpose.xlu0.c.b16.start [1/2] (short) %v12236_v16, 128  ;;  %v1191_v19 = vpop.xlane.xlu0 %1190 }
 0x323   : > { %v7245_v44 = vpop.eup %7244  ;;  %v1352_v62 = vmul.f32 1.442695, %v1276_v51  ;;  %v1278_v8 = vsub.f32 %v8854_v38, %v1191_v19  ;;  %v1279_v17 = vsub.f32 %v8858_v27, %v1191_v19  ;;  %v1354_v12 = vmul.f32 1.442695, %v1277_v33 }
 0x324   : > { %v7247_v59 = vpop.eup %7246  ;;  %2185 = vmatpush1.bf16.msra.mxu1 %v12237_v15  ;;  %2103 = vxpose.xlu1.c.b16.end [2/2] (short) %v12238_v21, 128  ;;  %v9043_v0 = vpack.c.bf16 %v7245_v44, %v7241_v4  ;;  %v12239_v27 = vpack.c.bf16 %v8575_v42, %v8572_v40 }
 0x325   : > { %v1356_v20 = vmul.f32 1.442695, %v1278_v8  ;;  %v1358_v43 = vmul.f32 1.442695, %v1279_v17  ;;  %v9045_v58 = vpack.c.bf16 %v7247_v59, %v7243_v23  ;;  %7256 = vpow2.f32 %v1352_v62 }
 0x326   : > { %2119 = vxpose.xlu0.c.b16.end [2/2] (short) %v12239_v27, 128 }
 0x327   : > { %7258 = vpow2.f32 %v1356_v20  ;;  %1528 = vmatprep.mubr.bf16.mxu1 %v9045_v58  ;;  %v7249_v9 = vpop.eup %7248  ;;  %v353_v20 = vld [vmem:[%s11953_s2] sm:$0xff] }
 0x328   : > { %7260 = vpow2.f32 %v1358_v43  ;;  %1529 = vmatmul.mubr.bf16.gmra.mrb[52].mxu1 %v9043_v0  ;;  %v1194_v35 = vpop.xlane.xlu1 %1193 }
 0x329   : > { %v7251_v37 = vpop.eup %7250  ;;  %7262 = vpow2.f32 %v1354_v12  ;;  %v1280_v11 = vsub.f32 %v8862_v36, %v1194_v35  ;;  %v1281_v38 = vsub.f32 %v8864_v10, %v1194_v35 }
 0x32a   : > { %v7253_v54 = vpop.eup %7252  ;;  %v1197_v46 = vpop.xlane.xlu0 %1196  ;;  %v9054_v5 = vpack.c.bf16 %v7251_v37, %v7249_v9  ;;  %v355_v37 = vld [vmem:[%s11953_s2 + $0x10] sm:$0xff] }
 0x32b   : > { %v7255_v40 = vpop.eup %7254  ;;  %v1360_v42 = vmul.f32 1.442695, %v1280_v11  ;;  %v1282_v50 = vsub.f32 %v8866_v26, %v1197_v46  ;;  %v1283_v47 = vsub.f32 %v8870_v25, %v1197_v46  ;;  %v1362_v41 = vmul.f32 1.442695, %v1281_v38 }
 0x32c   : > { %v9058_v34 = vpack.c.bf16 %v7253_v54, %v7255_v40 }
 0x32d   : > { %v1364_v31 = vmul.f32 1.442695, %v1282_v50  ;;  %v1366_v32 = vmul.f32 1.442695, %v1283_v47  ;;  %7264 = vpow2.f32 %v1360_v42 }
 0x32e   : > { %1536 = vmatprep.mubr.bf16.mxu1 %v9058_v34 }
 0x32f   : > { %7266 = vpow2.f32 %v1364_v31  ;;  %v7257_v10 = vpop.eup %7256 }
 0x330   : > { %7268 = vpow2.f32 %v1366_v32  ;;  %1537 = vmatmul.mubr.bf16.gmra.mrb[56].mxu1 %v9054_v5  ;;  %v1200_v36 = vpop.xlane.xlu1 %1199 }
 0x331   : > { %v7259_v60 = vpop.eup %7258  ;;  %7270 = vpow2.f32 %v1362_v41  ;;  %v1284_v26 = vsub.f32 %v8874_v24, %v1200_v36  ;;  %v1285_v25 = vsub.f32 %v8876_v29, %v1200_v36 }
 0x332   : > { %v7261_v45 = vpop.eup %7260  ;;  %v1203_v57 = vpop.xlane.xlu0 %1202  ;;  %v9064_v48 = vpack.c.bf16 %v7259_v60, %v7257_v10 }
 0x333   : > { %v7263_v3 = vpop.eup %7262  ;;  %v1368_v22 = vmul.f32 1.442695, %v1284_v26  ;;  %v1286_v4 = vsub.f32 %v8878_v13, %v1203_v57  ;;  %v1287_v53 = vsub.f32 %v8882_v1, %v1203_v57  ;;  %v1370_v33 = vmul.f32 1.442695, %v1285_v25 }
 0x334   : > { %v9068_v51 = vpack.c.bf16 %v7261_v45, %v7263_v3 }
 0x335   : > { %v1372_v23 = vmul.f32 1.442695, %v1286_v4  ;;  %v1374_v16 = vmul.f32 1.442695, %v1287_v53  ;;  %7272 = vpow2.f32 %v1368_v22 }
 0x336   : > { %1544 = vmatprep.mubr.bf16.mxu1 %v9068_v51 }
 0x337   : > { %7274 = vpow2.f32 %v1372_v23  ;;  %v7265_v29 = vpop.eup %7264 }
 0x338   : > { %7276 = vpow2.f32 %v1374_v16  ;;  %1545 = vmatmul.mubr.bf16.gmra.mrb[60].mxu1 %v9064_v48  ;;  %v1206_v24 = vpop.xlane.xlu1 %1205 }
 0x339   : > { %v7267_v19 = vpop.eup %7266  ;;  %7278 = vpow2.f32 %v1370_v33  ;;  %v1288_v13 = vsub.f32 %v8886_v18, %v1206_v24  ;;  %v1289_v1 = vsub.f32 %v8888_v2, %v1206_v24  ;;  %v12240_v24 = vld [vmem:[#allocation72_spill] sm:$0xff] }
 0x33a   : > { %v7269_v44 = vpop.eup %7268  ;;  %v1209_v62 = vpop.xlane.xlu0 %1208  ;;  %v9074_v8 = vpack.c.bf16 %v7267_v19, %v7265_v29  ;;  %v12241_v19 = vld [vmem:[#allocation73_spill] sm:$0xff] }
 0x33b   : > { %v7271_v17 = vpop.eup %7270  ;;  %v1376_v59 = vmul.f32 1.442695, %v1288_v13  ;;  %v1290_v15 = vsub.f32 %v8890_v14, %v1209_v62  ;;  %v1291_v21 = vsub.f32 %v8894_v55, %v1209_v62  ;;  %v1378_v43 = vmul.f32 1.442695, %v1289_v1 }
 0x33c   : > { %v9078_v12 = vpack.c.bf16 %v7269_v44, %v7271_v17 }
 0x33d   : > { %v1380_v18 = vmul.f32 1.442695, %v1290_v15  ;;  %v1382_v27 = vmul.f32 1.442695, %v1291_v21  ;;  %7280 = vpow2.f32 %v1376_v59  ;;  %v12243_v59 = vld [vmem:[#allocation74_spill] sm:$0xff]  ;;  %v12244_v21 = vld [vmem:[#allocation75_spill] sm:$0xff] }
 0x33e   : > { %1552 = vmatprep.mubr.bf16.mxu1 %v9078_v12 }
 0x33f   : > { %7282 = vpow2.f32 %v1380_v18  ;;  %v7273_v2 = vpop.eup %7272 }
 0x340   : > { %7284 = vpow2.f32 %v1382_v27  ;;  %1553 = vmatmul.mubr.bf16.gmra.mrb[64].mxu1 %v9074_v8  ;;  %v1212_v14 = vpop.xlane.xlu1 %1211  ;;  %367 = vperm.xlu1 %7013, %v353_v20  }
 0x341   : > { %v7275_v55 = vpop.eup %7274  ;;  %7286 = vpow2.f32 %v1378_v43  ;;  %v1292_v9 = vsub.f32 %v8898_v39, %v1212_v14  ;;  %v1293_v35 = vsub.f32 %v8900_v56, %v1212_v14  ;;  %v354_v56 = vld [vmem:[%s11953_s2 + $0x8] sm:$0xff]  ;;  %v356_v39 = vld [vmem:[%s11953_s2 + $0x18] sm:$0xff] }
 0x342   : > { %v7277_v11 = vpop.eup %7276  ;;  %v1215_v38 = vpop.xlane.xlu0 %1214  ;;  %v9090_v54 = vpack.c.bf16 %v7275_v55, %v7273_v2 }
 0x343   : > { %v7279_v46 = vpop.eup %7278  ;;  %v1384_v40 = vmul.f32 1.442695, %v1292_v9  ;;  %v1294_v42 = vsub.f32 %v8902_v61, %v1215_v38  ;;  %v1295_v50 = vsub.f32 %v8906_v7, %v1215_v38  ;;  %v1386_v41 = vmul.f32 1.442695, %v1293_v35  ;;  %v12245_v35 = vld [vmem:[#allocation76_spill] sm:$0xff] }
 0x344   : > { %377 = vperm.xlu1 %7013, %v355_v37   ;;  %v9094_v47 = vpack.c.bf16 %v7277_v11, %v7279_v46  ;;  %v12246_v11 = vld [vmem:[#allocation77_spill] sm:$0xff] }
 0x345   : > { %v1388_v31 = vmul.f32 1.442695, %v1294_v42  ;;  %v1390_v32 = vmul.f32 1.442695, %v1295_v50  ;;  %7288 = vpow2.f32 %v1384_v40 }
 0x346   : > { %1560 = vmatprep.mubr.bf16.mxu1 %v9094_v47 }
 0x347   : > { %7290 = vpow2.f32 %v1388_v31  ;;  %372 = vperm.xlu0 %7012, %v354_v56   ;;  %v7281_v7 = vpop.eup %7280  ;;  %v12249_v31 = vld [vmem:[#allocation79_spill] sm:$0xff] }
 0x348   : > { %7292 = vpow2.f32 %v1390_v32  ;;  %1561 = vmatmul.mubr.bf16.gmra.mrb[68].mxu1 %v9090_v54  ;;  %v1218_v61 = vpop.xlane.xlu1 %1217  ;;  %382 = vperm.xlu1 %7013, %v356_v39   ;;  %v12248_v39 = vld [vmem:[#allocation78_spill] sm:$0xff] }
 0x349   : > { %v7283_v10 = vpop.eup %7282  ;;  %7294 = vpow2.f32 %v1386_v41  ;;  %v1296_v36 = vsub.f32 %v8910_v63, %v1218_v61  ;;  %v1297_v60 = vsub.f32 %v8912_v6, %v1218_v61 }
 0x34a   : > { %v7285_v26 = vpop.eup %7284  ;;  %v1221_v25 = vpop.xlane.xlu0 %1220  ;;  %v9106_v45 = vpack.c.bf16 %v7283_v10, %v7281_v7 }
 0x34b   : > { %v7287_v57 = vpop.eup %7286  ;;  %v1392_v3 = vmul.f32 1.442695, %v1296_v36  ;;  %v1298_v22 = vsub.f32 %v8914_v52, %v1221_v25  ;;  %v1299_v4 = vsub.f32 %v8918_v30, %v1221_v25  ;;  %v1394_v33 = vmul.f32 1.442695, %v1297_v60 }
 0x34c   : > { %v9110_v53 = vpack.c.bf16 %v7285_v26, %v7287_v57  ;;  %v12251_v57 = vld [vmem:[#allocation80_spill] sm:$0xff] }
 0x34d   : > { %v1396_v23 = vmul.f32 1.442695, %v1298_v22  ;;  %v1398_v16 = vmul.f32 1.442695, %v1299_v4  ;;  %7296 = vpow2.f32 %v1392_v3  ;;  %v12252_v22 = vld [vmem:[#allocation81_spill] sm:$0xff] }
 0x34e   : > { %1568 = vmatprep.mubr.bf16.mxu1 %v9110_v53 }
 0x34f   : > { %7298 = vpow2.f32 %v1396_v23  ;;  %v7289_v6 = vpop.eup %7288 }
 0x350   : > { %7300 = vpow2.f32 %v1398_v16  ;;  %1569 = vmatmul.mubr.bf16.gmra.mrb[72].mxu1 %v9106_v45  ;;  %v1224_v63 = vpop.xlane.xlu1 %1223 }
 0x351   : > { %v7291_v29 = vpop.eup %7290  ;;  %7302 = vpow2.f32 %v1394_v33  ;;  %v1300_v52 = vsub.f32 %v12240_v24, %v1224_v63  ;;  %v1301_v30 = vsub.f32 %v12241_v19, %v1224_v63 }
 0x352   : > { %v7293_v13 = vpop.eup %7292  ;;  %v1227_v1 = vpop.xlane.xlu0 %1226  ;;  %v9116_v44 = vpack.c.bf16 %v7291_v29, %v7289_v6  ;;  %v12254_v29 = vld [vmem:[#allocation82_spill] sm:$0xff] }
 0x353   : > { %v7295_v62 = vpop.eup %7294  ;;  %v1400_v17 = vmul.f32 1.442695, %v1300_v52  ;;  %v1302_v15 = vsub.f32 %v12243_v59, %v1227_v1  ;;  %v1303_v20 = vsub.f32 %v12244_v21, %v1227_v1  ;;  %v1402_v18 = vmul.f32 1.442695, %v1301_v30  ;;  %v12255_v52 = vld [vmem:[#allocation83_spill] sm:$0xff]  ;;  %v12257_v21 = vld [vmem:[#allocation84_spill] sm:$0xff] }
 0x354   : > { %12242 = vst [vmem:[#allocation72_spill] sm:$0xff] %v9116_v44  ;;  %v9120_v43 = vpack.c.bf16 %v7293_v13, %v7295_v62 }
 0x355   : > { %v1404_v27 = vmul.f32 1.442695, %v1302_v15  ;;  %v1406_v2 = vmul.f32 1.442695, %v1303_v20  ;;  %7304 = vpow2.f32 %v1400_v17 }
 0x356   : > { %1576 = vmatprep.mubr.bf16.mxu1 %v9120_v43 }
 0x357   : > { %7306 = vpow2.f32 %v1404_v27  ;;  %v7297_v14 = vpop.eup %7296 }
 0x358   : > { %7308 = vpow2.f32 %v1406_v2  ;;  %1577 = vmatmul.mubr.bf16.gmra.mrb[76].mxu1 %v9116_v44  ;;  %v1230_v55 = vpop.xlane.xlu1 %1229 }
 0x359   : > { %v7299_v9 = vpop.eup %7298  ;;  %7310 = vpow2.f32 %v1402_v18  ;;  %v1304_v37 = vsub.f32 %v12245_v35, %v1230_v55  ;;  %v1305_v38 = vsub.f32 %v12246_v11, %v1230_v55  ;;  %v12258_v18 = vld [vmem:[#allocation85_spill] sm:$0xff] }
 0x35a   : > { %v7301_v46 = vpop.eup %7300  ;;  %v1233_v40 = vpop.xlane.xlu0 %1232  ;;  %v9126_v42 = vpack.c.bf16 %v7299_v9, %v7297_v14 }
 0x35b   : > { %v7303_v50 = vpop.eup %7302  ;;  %v1408_v56 = vmul.f32 1.442695, %v1304_v37  ;;  %v1306_v41 = vsub.f32 %v12248_v39, %v1233_v40  ;;  %v1307_v32 = vsub.f32 %v12249_v31, %v1233_v40  ;;  %v1410_v61 = vmul.f32 1.442695, %v1305_v38  ;;  %v12260_v37 = vld [vmem:[#allocation86_spill] sm:$0xff]  ;;  %v12261_v38 = vld [vmem:[#allocation87_spill] sm:$0xff] }
 0x35c   : > { %12247 = vst [vmem:[#allocation73_spill] sm:$0xff] %v9126_v42  ;;  %v9130_v7 = vpack.c.bf16 %v7301_v46, %v7303_v50 }
 0x35d   : > { %v1412_v10 = vmul.f32 1.442695, %v1306_v41  ;;  %v1414_v36 = vmul.f32 1.442695, %v1307_v32  ;;  %7312 = vpow2.f32 %v1408_v56 }
 0x35e   : > { %12250 = vst [vmem:[#allocation74_spill] sm:$0xff] %v9130_v7  ;;  %1584 = vmatprep.mubr.bf16.mxu1 %v9130_v7 }
 0x35f   : > { %7314 = vpow2.f32 %v1412_v10  ;;  %v7305_v60 = vpop.eup %7304 }
 0x360   : > { %7316 = vpow2.f32 %v1414_v36  ;;  %1585 = vmatmul.mubr.bf16.gmra.mrb[80].mxu1 %v9126_v42  ;;  %v1236_v26 = vpop.xlane.xlu1 %1235  ;;  %v12264_v36 = vld [vmem:[#allocation89_spill] sm:$0xff] }
 0x361   : > { %v7307_v25 = vpop.eup %7306  ;;  %7318 = vpow2.f32 %v1410_v61  ;;  %v1308_v3 = vsub.f32 %v12251_v57, %v1236_v26  ;;  %v1309_v4 = vsub.f32 %v12252_v22, %v1236_v26  ;;  %v12263_v61 = vld [vmem:[#allocation88_spill] sm:$0xff] }
 0x362   : > { %v7309_v33 = vpop.eup %7308  ;;  %v1239_v23 = vpop.xlane.xlu0 %1238  ;;  %v9136_v16 = vpack.c.bf16 %v7307_v25, %v7305_v60 }
 0x363   : > { %v7311_v6 = vpop.eup %7310  ;;  %v1416_v63 = vmul.f32 1.442695, %v1308_v3  ;;  %v1310_v24 = vsub.f32 %v12254_v29, %v1239_v23  ;;  %v1311_v19 = vsub.f32 %v12255_v52, %v1239_v23  ;;  %v1418_v13 = vmul.f32 1.442695, %v1309_v4  ;;  %v12266_v4 = vld [vmem:[#allocation90_spill] sm:$0xff]  ;;  %v12267_v23 = vld [vmem:[#allocation91_spill] sm:$0xff] }
 0x364   : > { %12253 = vst [vmem:[#allocation75_spill] sm:$0xff] %v9136_v16  ;;  %v9140_v30 = vpack.c.bf16 %v7309_v33, %v7311_v6 }
 0x365   : > { %v1420_v1 = vmul.f32 1.442695, %v1310_v24  ;;  %v1422_v62 = vmul.f32 1.442695, %v1311_v19  ;;  %7320 = vpow2.f32 %v1416_v63 }
 0x366   : > { %12256 = vst [vmem:[#allocation76_spill] sm:$0xff] %v9140_v30  ;;  %1592 = vmatprep.mubr.bf16.mxu1 %v9140_v30 }
 0x367   : > { %7322 = vpow2.f32 %v1420_v1  ;;  %v7313_v17 = vpop.eup %7312 }
 0x368   : > { %7324 = vpow2.f32 %v1422_v62  ;;  %1593 = vmatmul.mubr.bf16.gmra.mrb[84].mxu1 %v9136_v16  ;;  %v1242_v59 = vpop.xlane.xlu1 %1241  ;;  %v12269_v62 = vld [vmem:[#allocation92_spill] sm:$0xff]  ;;  %v12314_v16 = vld [vmem:[#allocation22_spill] sm:$0xff] }
 0x369   : > { %v7315_v15 = vpop.eup %7314  ;;  %7326 = vpow2.f32 %v1418_v13  ;;  %v1312_v20 = vsub.f32 %v12257_v21, %v1242_v59  ;;  %v1313_v27 = vsub.f32 %v12258_v18, %v1242_v59  ;;  %v12270_v59 = vld [vmem:[#allocation93_spill] sm:$0xff] }
 0x36a   : > { %v7317_v2 = vpop.eup %7316  ;;  %v1245_v14 = vpop.xlane.xlu0 %1244  ;;  %v9146_v55 = vpack.c.bf16 %v7315_v15, %v7313_v17 }
 0x36b   : > { %v7319_v9 = vpop.eup %7318  ;;  %v1424_v35 = vmul.f32 1.442695, %v1312_v20  ;;  %v1314_v11 = vsub.f32 %v12260_v37, %v1245_v14  ;;  %v1315_v46 = vsub.f32 %v12261_v38, %v1245_v14  ;;  %v1426_v50 = vmul.f32 1.442695, %v1313_v27  ;;  %v12273_v37 = vld [vmem:[#allocation95_spill] sm:$0xff] }
 0x36c   : > { %12259 = vst [vmem:[#allocation77_spill] sm:$0xff] %v9146_v55  ;;  %v9150_v40 = vpack.c.bf16 %v7317_v2, %v7319_v9  ;;  %v12272_v9 = vld [vmem:[#allocation94_spill] sm:$0xff] }
 0x36d   : > { %v1428_v56 = vmul.f32 1.442695, %v1314_v11  ;;  %v1430_v39 = vmul.f32 1.442695, %v1315_v46  ;;  %7328 = vpow2.f32 %v1424_v35 }
 0x36e   : > { %12262 = vst [vmem:[#allocation78_spill] sm:$0xff] %v9150_v40  ;;  %1600 = vmatprep.mubr.bf16.mxu1 %v9150_v40 }
 0x36f   : > { %7330 = vpow2.f32 %v1428_v56  ;;  %v7321_v41 = vpop.eup %7320 }
 0x370   : > { %7332 = vpow2.f32 %v1430_v39  ;;  %1601 = vmatmul.mubr.bf16.gmra.mrb[88].mxu1 %v9146_v55  ;;  %v1248_v31 = vpop.xlane.xlu1 %1247 }
 0x371   : > { %v7323_v32 = vpop.eup %7322  ;;  %7334 = vpow2.f32 %v1426_v50  ;;  %v1316_v10 = vsub.f32 %v12263_v61, %v1248_v31  ;;  %v1317_v60 = vsub.f32 %v12264_v36, %v1248_v31  ;;  %v12275_v31 = vld [vmem:[#allocation96_spill] sm:$0xff]  ;;  %v12276_v61 = vld [vmem:[#allocation97_spill] sm:$0xff] }
 0x372   : > { %v7325_v26 = vpop.eup %7324  ;;  %v1251_v25 = vpop.xlane.xlu0 %1250  ;;  %v9156_v57 = vpack.c.bf16 %v7323_v32, %v7321_v41 }
 0x373   : > { %v7327_v3 = vpop.eup %7326  ;;  %v1432_v22 = vmul.f32 1.442695, %v1316_v10  ;;  %v1318_v33 = vsub.f32 %v12266_v4, %v1251_v25  ;;  %v1319_v6 = vsub.f32 %v12267_v23, %v1251_v25  ;;  %v1434_v29 = vmul.f32 1.442695, %v1317_v60 }
 0x374   : > { %12265 = vst [vmem:[#allocation79_spill] sm:$0xff] %v9156_v57  ;;  %v9160_v63 = vpack.c.bf16 %v7325_v26, %v7327_v3 }
 0x375   : > { %v1436_v24 = vmul.f32 1.442695, %v1318_v33  ;;  %v1438_v52 = vmul.f32 1.442695, %v1319_v6  ;;  %7336 = vpow2.f32 %v1432_v22  ;;  %v12278_v33 = vld [vmem:[#allocation98_spill] sm:$0xff] }
 0x376   : > { %12268 = vst [vmem:[#allocation80_spill] sm:$0xff] %v9160_v63  ;;  %1608 = vmatprep.mubr.bf16.mxu1 %v9160_v63  ;;  %v12312_v63 = vld [vmem:[#allocation23_spill] sm:$0xff] }
 0x377   : > { %7338 = vpow2.f32 %v1436_v24  ;;  %v7329_v19 = vpop.eup %7328 }
 0x378   : > { %7340 = vpow2.f32 %v1438_v52  ;;  %1609 = vmatmul.mubr.bf16.gmra.mrb[92].mxu1 %v9156_v57  ;;  %v1254_v13 = vpop.xlane.xlu1 %1253 }
 0x379   : > { %v7331_v1 = vpop.eup %7330  ;;  %7342 = vpow2.f32 %v1434_v29  ;;  %v1320_v17 = vsub.f32 %v12269_v62, %v1254_v13  ;;  %v1321_v15 = vsub.f32 %v12270_v59, %v1254_v13 }
 0x37a   : > { %v7333_v21 = vpop.eup %7332  ;;  %v1257_v20 = vpop.xlane.xlu0 %1256  ;;  %v9166_v18 = vpack.c.bf16 %v7331_v1, %v7329_v19 }
 0x37b   : > { %v7335_v27 = vpop.eup %7334  ;;  %v1440_v2 = vmul.f32 1.442695, %v1320_v17  ;;  %v1442_v14 = vmul.f32 1.442695, %v1321_v15  ;;  %v1322_v35 = vsub.f32 %v12272_v9, %v1257_v20  ;;  %v1323_v11 = vsub.f32 %v12273_v37, %v1257_v20 }
 0x37c   : > { %12271 = vst [vmem:[#allocation81_spill] sm:$0xff] %v9166_v18  ;;  %v9170_v38 = vpack.c.bf16 %v7333_v21, %v7335_v27 }
 0x37d   : > { %7344 = vpow2.f32 %v1440_v2  ;;  %v1444_v46 = vmul.f32 1.442695, %v1322_v35  ;;  %v1446_v50 = vmul.f32 1.442695, %v1323_v11  ;;  %v12284_v35 = vmov 0  }
 0x37e   : > { %12274 = vst [vmem:[#allocation82_spill] sm:$0xff] %v9170_v38  ;;  %7346 = vpow2.f32 %v1442_v14  ;;  %1616 = vmatprep.mubr.bf16.mxu1 %v9170_v38  ;;  %v12309_v38 = vld [vmem:[#allocation11_spill] sm:$0xff] }
 0x37f   : > { %7348 = vpow2.f32 %v1444_v46  ;;  %v7337_v56 = vpop.eup %7336 }
 0x380   : > { %7350 = vpow2.f32 %v1446_v50  ;;  %1617 = vmatmul.mubr.bf16.gmra.mrb[96].mxu1 %v9166_v18  ;;  %v1260_v39 = vpop.xlane.xlu1 %1259  ;;  %v12308_v18 = vld [vmem:[#allocation15_spill] sm:$0xff] }
 0x381   : > { %v7339_v41 = vpop.eup %7338  ;;  %v1324_v32 = vsub.f32 %v12275_v31, %v1260_v39  ;;  %v1325_v10 = vsub.f32 %v12276_v61, %v1260_v39 }
 0x382   : > { %v7341_v36 = vpop.eup %7340  ;;  %v1263_v60 = vpop.xlane.xlu0 %1262  ;;  %v9176_v26 = vpack.c.bf16 %v7339_v41, %v7337_v56 }
 0x383   : > { %v7343_v25 = vpop.eup %7342  ;;  %v1448_v3 = vmul.f32 1.442695, %v1324_v32  ;;  %v1450_v22 = vmul.f32 1.442695, %v1325_v10  ;;  %v1326_v4 = vsub.f32 %v8998_v49, %v1263_v60  ;;  %v1327_v23 = vsub.f32 %v12278_v33, %v1263_v60  ;;  %v12287_v33 = vld [vmem:[#allocation12_spill] sm:$0xff] }
 0x384   : > { %12277 = vst [vmem:[#allocation83_spill] sm:$0xff] %v9176_v26  ;;  %v9180_v6 = vpack.c.bf16 %v7341_v36, %v7343_v25 }
 0x385   : > { %7352 = vpow2.f32 %v1448_v3  ;;  %v1452_v29 = vmul.f32 1.442695, %v1326_v4  ;;  %v1454_v24 = vmul.f32 1.442695, %v1327_v23 }
 0x386   : > { %12279 = vst [vmem:[#allocation84_spill] sm:$0xff] %v9180_v6  ;;  %7354 = vpow2.f32 %v1450_v22  ;;  %1624 = vmatprep.mubr.bf16.mxu1 %v9180_v6  ;;  %v2110_v59 = vpop.trf.xlu1  ;;  %v12286_v22 = vld [vmem:[#allocation9_spill] sm:$0xff] }
 0x387   : > { %v7345_v52 = vpop.eup %7344  ;;  %7356 = vpow2.f32 %v1452_v29  ;;  %v12288_v29 = vld [vmem:[#allocation8_spill] sm:$0xff]  ;;  %v12307_v6 = vld [vmem:[#allocation13_spill] sm:$0xff] }
 0x388   : > { %v7347_v19 = vpop.eup %7346  ;;  %7358 = vpow2.f32 %v1454_v24  ;;  %1625 = vmatmul.mubr.bf16.gmra.mrb[100].mxu1 %v9176_v26  ;;  %v9195_v9 = vpop.trf.xlu0 }
 0x389   : > { %v7349_v13 = vpop.eup %7348 }
 0x38a   : > { %v7351_v1 = vpop.eup %7350  ;;  %v9184_v62 = vpack.c.bf16 %v7349_v13, %v7345_v52  ;;  %v2111_v14 = vpop.trf.xlu1  ;;  %v12289_v52 = vld [vmem:[#allocation10_spill] sm:$0xff] }
 0x38b   : > { %v9186_v49 = vpack.c.bf16 %v7351_v1, %v7347_v19  ;;  %v12290_v13 = vld [vmem:[#allocation26_spill] sm:$0xff] }
 0x38c   : > { %12280 = vst [vmem:[#allocation85_spill] sm:$0xff] %v9184_v62  ;;  %v9199_v11 = vpop.trf.xlu0 }
 0x38d   : > { %12281 = vst [vmem:[#allocation86_spill] sm:$0xff] %v9186_v49  ;;  %1632 = vmatprep.mubr.bf16.mxu1 %v9186_v49 }
 0x38e   : > { %v2112_v37 = vpop.trf.xlu1 }
 0x38f   : > { %v7353_v17 = vpop.eup %7352 }
 0x390   : > { %v7355_v15 = vpop.eup %7354  ;;  %1633 = vmatmul.mubr.bf16.gmra.mrb[104].mxu1 %v9184_v62  ;;  %v9203_v50 = vpop.trf.xlu0 }
 0x391   : > { %v7357_v21 = vpop.eup %7356 }
 0x392   : > { %v7359_v20 = vpop.eup %7358  ;;  %v9190_v27 = vpack.c.bf16 %v7357_v21, %v7353_v17  ;;  %v2113_v46 = vpop.trf.xlu1  ;;  %v12291_v17 = vld [vmem:[#allocation24_spill] sm:$0xff] }
 0x393   : > { %v9192_v2 = vpack.c.bf16 %v7359_v20, %v7355_v15  ;;  %v12293_v15 = vld [vmem:[#allocation27_spill] sm:$0xff]  ;;  %v12295_v20 = vld [vmem:[#allocation17_spill] sm:$0xff] }
 0x394   : > { %12282 = vst [vmem:[#allocation87_spill] sm:$0xff] %v9190_v27  ;;  %v9206_v39 = vpop.trf.xlu0 }
 0x395   : > { %12283 = vst [vmem:[#allocation88_spill] sm:$0xff] %v9192_v2  ;;  %1640 = vmatprep.mubr.bf16.mxu1 %v9192_v2 }
 0x396   : > { %v2114_v56 = vpop.trf.xlu1 }
 0x398   : > { %1641 = vmatmul.mubr.bf16.gmra.mrb[108].mxu1 %v9190_v27  ;;  %v9209_v31 = vpop.trf.xlu0 }
 0x399   : > { %2214 = vmatprep.mubr.bf16.mxu1 %v12284_v35 }
 0x39a   : > { %v2115_v41 = vpop.trf.xlu1 }
 0x39c   : > { %v9215_v61 = vpop.trf.xlu0 }
 0x39e   : > { %v9213_v32 = vpop.trf.xlu1 }
 0x3a0   : > { %6437 = vmatmul.mubr.msk.bf16.vlgmr.msra.gmra.mrb[112].mxu1 %vm926_vm1, %v2110_v59  ;;  %v9221_v36 = vpop.trf.xlu0 }
 0x3a1   : > { %2224 = vmatprep.mubr.bf16.mxu1 %v12284_v35 }
 0x3a2   : > { %v9218_v10 = vpop.trf.xlu1 }
 0x3a4   : > { %v9224_v25 = vpop.trf.xlu0 }
 0x3a5   : > { %12285 = vst [vmem:[#allocation89_spill] sm:$0xff] %v9224_v25 }
 0x3a8   : > { %6438 = vmatmul.mubr.msk.bf16.gmra.mrb[116].mxu1 %vm926_vm1, %v2111_v14 }
 0x3a9   : > { %2234 = vmatprep.mubr.bf16.mxu1 %v12284_v35 }
 0x3b0   : > { %6439 = vmatmul.mubr.msk.bf16.gmra.mrb[120].mxu1 %vm926_vm1, %v2112_v37  ;;  %v12296_v37 = vld [vmem:[#allocation20_spill] sm:$0xff] }
 0x3b1   : > { %2244 = vmatprep.mubr.bf16.mxu1 %v12284_v35 }
 0x3b8   : > { %6440 = vmatmul.mubr.msk.bf16.gmra.mrb[124].mxu1 %vm926_vm1, %v2113_v46 }
 0x3b9   : > { %2254 = vmatprep.mubr.bf16.mxu1 %v12284_v35 }
 0x3bf   : > { %v368_v60 = vpop.permute.xlu1 %367 }
 0x3c0   : > { %6441 = vmatmul.mubr.msk.bf16.gmra.mrb[128].mxu1 %vm926_vm1, %v2114_v56  ;;  %v511_v4 = vadd.f32 %v12286_v22, %v368_v60  ;;  %v604_v23 = vadd.f32 %v12287_v33, %v368_v60  ;;  %v509_v24 = vadd.f32 %v12288_v29, %v368_v60  ;;  %v602_v19 = vadd.f32 %v12289_v52, %v368_v60  ;;  %v12297_v56 = vld [vmem:[#allocation16_spill] sm:$0xff]  ;;  %v12298_v33 = vld [vmem:[#allocation25_spill] sm:$0xff]  ;;  %v12300_v52 = vld [vmem:[#allocation18_spill] sm:$0xff] }
 0x3c1   : > { %2264 = vmatprep.mubr.bf16.mxu1 %v12284_v35  ;;  %v9232_v1 = vadd.f32 %v12290_v13, %v368_v60  ;;  %v9235_v59 = vadd.f32 %v12291_v17, %v368_v60  ;;  %v9238_v21 = vadd.f32 %v12293_v15, %v368_v60  ;;  %v9244_v27 = vadd.f32 %v12298_v33, %v368_v60  ;;  %v12301_v13 = vld [vmem:[#allocation34_spill] sm:$0xff]  ;;  %v12303_v17 = vld [vmem:[#allocation32_spill] sm:$0xff]  ;;  %v12305_v15 = vld [vmem:[#allocation35_spill] sm:$0xff] }
 0x3c2   : > { %v12310_v33 = vld [vmem:[#allocation14_spill] sm:$0xff] }
 0x3c3   : > { %v378_v3 = vpop.permute.xlu1 %377  ;;  %12292 = vst [vmem:[#allocation90_spill] sm:$0xff] %v9235_v59  ;;  %12294 = vst [vmem:[#allocation91_spill] sm:$0xff] %v9238_v21 }
 0x3c4   : > { %v521_v14 = vadd.f32 %v12295_v20, %v378_v3  ;;  %v614_v46 = vadd.f32 %v12296_v37, %v378_v3  ;;  %v519_v22 = vadd.f32 %v12297_v56, %v378_v3  ;;  %12299 = vst [vmem:[#allocation92_spill] sm:$0xff] %v9244_v27  ;;  %v612_v2 = vadd.f32 %v12300_v52, %v378_v3  ;;  %v12311_v52 = vld [vmem:[#allocation21_spill] sm:$0xff] }
 0x3c5   : > { %v9248_v62 = vadd.f32 %v12301_v13, %v378_v3  ;;  %v9251_v49 = vadd.f32 %v12303_v17, %v378_v3  ;;  %v9254_v26 = vadd.f32 %v12305_v15, %v378_v3  ;;  %v12313_v17 = vld [vmem:[#allocation19_spill] sm:$0xff] }
 0x3c6   : > { %v373_v29 = vpop.permute.xlu0 %372 }
 0x3c7   : > { %12302 = vst [vmem:[#allocation93_spill] sm:$0xff] %v9248_v62  ;;  %12304 = vst [vmem:[#allocation94_spill] sm:$0xff] %v9251_v49  ;;  %v383_v20 = vpop.permute.xlu1 %382  ;;  %v515_v37 = vadd.f32 %v12307_v6, %v373_v29  ;;  %v608_v56 = vadd.f32 %v12308_v18, %v373_v29  ;;  %v513_v60 = vadd.f32 %v12309_v38, %v373_v29 }
 0x3c8   : > { %12306 = vst [vmem:[#allocation95_spill] sm:$0xff] %v9254_v26  ;;  %v606_v57 = vadd.f32 %v12310_v33, %v373_v29  ;;  %6442 = vmatmul.mubr.msk.bf16.gmra.mrb[132].mxu1 %vm926_vm1, %v2115_v41  ;;  %v525_v13 = vadd.f32 %v12311_v52, %v383_v20  ;;  %v618_v55 = vadd.f32 %v12312_v63, %v383_v20  ;;  %v12315_v41 = vld [vmem:[#allocation30_spill] sm:$0xff]  ;;  %v12316_v63 = vld [vmem:[#allocation28_spill] sm:$0xff] }
 0x3c9   : > { %v523_v40 = vadd.f32 %v12313_v17, %v383_v20  ;;  %v616_v15 = vadd.f32 %v12314_v16, %v383_v20  ;;  %v847_v30 = vpack.c.bf16 %v515_v37, %v511_v4  ;;  %v849_v42 = vpack.c.bf16 %v608_v56, %v604_v23  ;;  %2274 = vmatprep.mubr.bf16.mxu1 %v12284_v35  ;;  %v12318_v17 = vld [vmem:[#allocation38_spill] sm:$0xff]  ;;  %v12322_v23 = vld [vmem:[#allocation31_spill] sm:$0xff]  ;;  %v12330_v56 = vld [vmem:[#allocation37_spill] sm:$0xff] }
 0x3ca   : > { %v846_v25 = vpack.c.bf16 %v513_v60, %v509_v24  ;;  %v848_v6 = vpack.c.bf16 %v606_v57, %v602_v19  ;;  %v855_v18 = vpack.c.bf16 %v525_v13, %v521_v14  ;;  %v857_v38 = vpack.c.bf16 %v618_v55, %v614_v46  ;;  %v12320_v57 = vld [vmem:[#allocation36_spill] sm:$0xff]  ;;  %v12326_v46 = vld [vmem:[#allocation39_spill] sm:$0xff] }
 0x3cb   : > { %v854_v7 = vpack.c.bf16 %v523_v40, %v519_v22  ;;  %v856_v33 = vpack.c.bf16 %v616_v15, %v612_v2  ;;  %1681 = vmatprep.subr.bf16.mxu0 %v847_v30  ;;  %2888 = vmatprep.subr.bf16.mxu1 %v849_v42  ;;  %v9267_v52 = vadd.f32 %v12315_v41, %v373_v29  ;;  %v12324_v40 = vld [vmem:[#allocation29_spill] sm:$0xff] }
 0x3cc   : > { %v9270_v44 = vadd.f32 %v12316_v63, %v373_v29  ;;  %v9273_v16 = vadd.f32 %v12318_v17, %v383_v20  ;;  %1682 = vmatpush1.bf16.xpose.msra.mxu0 %v846_v25  ;;  %2889 = vmatpush1.bf16.xpose.msra.mxu1 %v848_v6  ;;  %v9276_v4 = vadd.f32 %v12320_v57, %v383_v20  ;;  %v12332_v6 = vmov 1065369472   ;;  %v12344_v17 = vld [vmem:[#allocation72_spill] sm:$0xff] }
 0x3cd   : > { %v9279_v55 = vadd.f32 %v12322_v23, %v373_v29  ;;  %v9282_v30 = vadd.f32 %v12324_v40, %v373_v29  ;;  %1683 = vmatprep.subr.bf16.mxu0 %v855_v18  ;;  %2890 = vmatprep.subr.bf16.mxu1 %v857_v38  ;;  %v9297_v22 = vadd.f32 %v12326_v46, %v383_v20  ;;  %v12328_v29 = vld [vmem:[#allocation33_spill] sm:$0xff]  ;;  %v12345_v23 = vld [vmem:[#allocation74_spill] sm:$0xff] }
 0x3ce   : > { %12317 = vst [vmem:[#allocation96_spill] sm:$0xff] %v9270_v44  ;;  %12319 = vst [vmem:[#allocation97_spill] sm:$0xff] %v9273_v16  ;;  %v9300_v37 = vadd.f32 %v12328_v29, %v378_v3  ;;  %v9303_v60 = vadd.f32 %v12330_v56, %v383_v20  ;;  %v12348_v29 = vld [vmem:[#allocation89_spill] sm:$0xff] }
 0x3cf   : > { %12321 = vst [vmem:[#allocation98_spill] sm:$0xff] %v9276_v4  ;;  %12323 = vst [vmem:[#allocation9_spill] sm:$0xff] %v9279_v55 }
 0x3d0   : > { %12325 = vst [vmem:[#allocation12_spill] sm:$0xff] %v9282_v30  ;;  %12327 = vst [vmem:[#allocation8_spill] sm:$0xff] %v9297_v22  ;;  %6443 = vmatmul.mubr.msk.bf16.gmra.mrb[136].mxu1 %vm926_vm1, %v9213_v32 }
 0x3d1   : > { %12329 = vst [vmem:[#allocation10_spill] sm:$0xff] %v9300_v37  ;;  %12331 = vst [vmem:[#allocation26_spill] sm:$0xff] %v9303_v60  ;;  %2284 = vmatprep.mubr.bf16.mxu1 %v12284_v35 }
 0x3d4   : > { %1684 = vmatpush1.bf16.xpose.msra.mxu0 %v854_v7  ;;  %2891 = vmatpush1.bf16.xpose.msra.mxu1 %v856_v33  ;;  %v12335_v7 = vld [vmem:[#allocation61_spill] sm:$0xff] }
 0x3d5   : > { %6624 = vmatprep.subr.bf16.mxu0 %v12332_v6  ;;  %6736 = vmatprep.subr.bf16.mxu1 %v12332_v6 }
 0x3d8   : > { %6444 = vmatmul.mubr.msk.bf16.gmra.mrb[140].mxu1 %vm926_vm1, %v9218_v10 }
 0x3d9   : > { %2294 = vmatprep.mubr.bf16.mxu1 %v12284_v35 }
 0x3db   : > { %1714 = vmatmul.mubr.bf16.vlgmr.msra.gmra.mrb[112].mxu0 %v9016_v28 }
 0x3dc   : > { %1721 = vmatprep.mubr.bf16.mxu0 %v9045_v58  ;;  %6625 = vmatpush3.bf16.msra.mxu0 %v12332_v6 }
 0x3dd   : > { %6626 = vmatprep.subr.bf16.mxu0 %v12332_v6 }
 0x3e0   : > { %6445 = vmatmul.mubr.msk.bf16.gmra.mrb[144].mxu1 %vm926_vm1, %v9195_v9  ;;  %6627 = vmatpush3.bf16.msra.mxu0 %v12332_v6  ;;  %v12336_v9 = vld [vmem:[#allocation59_spill] sm:$0xff] }
 0x3e1   : > { %6628 = vmatprep.subr.bf16.mxu0 %v12332_v6  ;;  %2304 = vmatprep.mubr.bf16.mxu1 %v12284_v35 }
 0x3e3   : > { %1722 = vmatmul.mubr.bf16.gmra.mrb[116].mxu0 %v9043_v0 }
 0x3e4   : > { %1729 = vmatprep.mubr.bf16.mxu0 %v9058_v34  ;;  %6629 = vmatpush3.bf16.msra.mxu0 %v12332_v6 }
 0x3e5   : > { %6630 = vmatprep.subr.bf16.mxu0 %v12332_v6 }
 0x3e8   : > { %6446 = vmatmul.mubr.msk.bf16.gmra.mrb[148].mxu1 %vm926_vm1, %v9199_v11  ;;  %6631 = vmatpush3.bf16.msra.mxu0 %v12332_v6 }
 0x3e9   : > { %6632 = vmatprep.subr.bf16.mxu0 %v12332_v6  ;;  %2314 = vmatprep.mubr.bf16.mxu1 %v12284_v35 }
 0x3eb   : > { %1730 = vmatmul.mubr.bf16.gmra.mrb[120].mxu0 %v9054_v5 }
 0x3ec   : > { %1737 = vmatprep.mubr.bf16.mxu0 %v9068_v51  ;;  %6633 = vmatpush3.bf16.msra.mxu0 %v12332_v6 }
 0x3ed   : > { %6634 = vmatprep.subr.bf16.mxu0 %v12332_v6 }
 0x3f0   : > { %6447 = vmatmul.mubr.msk.bf16.gmra.mrb[152].mxu1 %vm926_vm1, %v9203_v50  ;;  %6635 = vmatpush3.bf16.msra.mxu0 %v12332_v6 }
 0x3f1   : > { %6636 = vmatprep.subr.bf16.mxu0 %v12332_v6  ;;  %2324 = vmatprep.mubr.bf16.mxu1 %v12284_v35 }
 0x3f2   : > { %v6528_v28 = vpop.f32.mrb[48].mxu1 }
 0x3f3   : > { %v6529_v0 = vpop.f32.mrb[49].mxu1  ;;  %1738 = vmatmul.mubr.bf16.gmra.mrb[124].mxu0 %v9064_v48  ;;  %v12337_v48 = vpack.c.bf16 %v12335_v7, %v12336_v9 }
 0x3f4   : > { %v9345_v58 = vadd.f32 %v6529_v0, %v6528_v28  ;;  %v6531_v5 = vpop.f32.mrb[50].mxu1  ;;  %1745 = vmatprep.mubr.bf16.mxu0 %v9078_v12  ;;  %6637 = vmatpush3.bf16.msra.mxu0 %v12332_v6  ;;  %v12349_v28 = vld [vmem:[#allocation73_spill] sm:$0xff]  ;;  %v12350_v0 = vld [vmem:[#allocation76_spill] sm:$0xff] }
 0x3f5   : > { %v6532_v34 = vpop.f32.mrb[51].mxu1  ;;  %6638 = vmatprep.subr.bf16.mxu0 %v12332_v6 }
 0x3f6   : > { %12333 = vst [vmem:[#allocation24_spill] sm:$0xff] %v9345_v58  ;;  %v9350_v51 = vadd.f32 %v6532_v34, %v6531_v5 }
 0x3f8   : > { %12334 = vst [vmem:[#allocation27_spill] sm:$0xff] %v9350_v51  ;;  %6448 = vmatmul.mubr.msk.bf16.gmra.mrb[156].mxu1 %vm926_vm1, %v9206_v39  ;;  %6639 = vmatpush3.bf16.msra.mxu0 %v12332_v6 }
 0x3f9   : > { %3389 = vmatprep.subr.bf16.mxu0 %v12337_v48  ;;  %2334 = vmatprep.mubr.bf16.mxu1 %v12284_v35 }
 0x3fb   : > { %v6534_v11 = vpop.f32.mrb[52].mxu1  ;;  %1746 = vmatmul.mubr.bf16.gmra.mrb[128].mxu0 %v9074_v8 }
 0x3fc   : > { %v6535_v12 = vpop.f32.mrb[53].mxu1  ;;  %1753 = vmatprep.mubr.bf16.mxu0 %v9094_v47 }
 0x3fd   : > { %v9361_v50 = vadd.f32 %v6535_v12, %v6534_v11  ;;  %v6537_v32 = vpop.f32.mrb[54].mxu1  ;;  %v12353_v11 = vld [vmem:[#allocation75_spill] sm:$0xff] }
 0x3fe   : > { %v6538_v10 = vpop.f32.mrb[55].mxu1 }
 0x3ff   : > { %12338 = vst [vmem:[#allocation17_spill] sm:$0xff] %v9361_v50  ;;  %v9363_v3 = vadd.f32 %v6538_v10, %v6537_v32  ;;  %v12354_v32 = vld [vmem:[#allocation78_spill] sm:$0xff] }
 0x400   : > { %6449 = vmatmul.mubr.msk.bf16.gmra.mrb[160].mxu1 %vm926_vm1, %v9209_v31 }
 0x401   : > { %12339 = vst [vmem:[#allocation20_spill] sm:$0xff] %v9363_v3  ;;  %2344 = vmatprep.mubr.bf16.mxu1 %v12284_v35 }
 0x403   : > { %v6540_v39 = vpop.f32.mrb[56].mxu1  ;;  %1754 = vmatmul.mubr.bf16.gmra.mrb[132].mxu0 %v9090_v54 }
 0x404   : > { %v6541_v20 = vpop.f32.mrb[57].mxu1  ;;  %1761 = vmatprep.mubr.bf16.mxu0 %v9110_v53 }
 0x405   : > { %v9370_v8 = vadd.f32 %v6541_v20, %v6540_v39  ;;  %v6543_v47 = vpop.f32.mrb[58].mxu1 }
 0x406   : > { %v6544_v18 = vpop.f32.mrb[59].mxu1 }
 0x407   : > { %12340 = vst [vmem:[#allocation16_spill] sm:$0xff] %v9370_v8  ;;  %v9372_v38 = vadd.f32 %v6544_v18, %v6543_v47 }
 0x408   : > { %6450 = vmatmul.mubr.msk.bf16.gmra.mrb[164].mxu1 %vm926_vm1, %v9215_v61 }
 0x409   : > { %12341 = vst [vmem:[#allocation25_spill] sm:$0xff] %v9372_v38  ;;  %2354 = vmatprep.mubr.bf16.mxu1 %v12284_v35 }
 0x40b   : > { %v6546_v31 = vpop.f32.mrb[60].mxu1  ;;  %1762 = vmatmul.mubr.bf16.gmra.mrb[136].mxu0 %v9106_v45 }
 0x40c   : > { %v6547_v33 = vpop.f32.mrb[61].mxu1  ;;  %1769 = vmatprep.mubr.bf16.mxu0 %v9120_v43 }
 0x40d   : > { %v9379_v54 = vadd.f32 %v6547_v33, %v6546_v31  ;;  %v6549_v53 = vpop.f32.mrb[62].mxu1  ;;  %v12357_v31 = vld [vmem:[#allocation77_spill] sm:$0xff] }
 0x40e   : > { %v6550_v41 = vpop.f32.mrb[63].mxu1 }
 0x40f   : > { %12342 = vst [vmem:[#allocation18_spill] sm:$0xff] %v9379_v54  ;;  %v9381_v63 = vadd.f32 %v6550_v41, %v6549_v53  ;;  %v12358_v53 = vld [vmem:[#allocation80_spill] sm:$0xff] }
 0x410   : > { %6451 = vmatmul.mubr.msk.bf16.gmra.mrb[168].mxu1 %vm926_vm1, %v9221_v36 }
 0x411   : > { %12343 = vst [vmem:[#allocation34_spill] sm:$0xff] %v9381_v63  ;;  %2364 = vmatprep.mubr.bf16.mxu1 %v12284_v35 }
 0x413   : > { %v6552_v61 = vpop.f32.mrb[64].mxu1  ;;  %1770 = vmatmul.mubr.bf16.gmra.mrb[140].mxu0 %v12344_v17 }
 0x414   : > { %v6553_v57 = vpop.f32.mrb[65].mxu1  ;;  %1777 = vmatprep.mubr.bf16.mxu0 %v12345_v23 }
 0x415   : > { %v9388_v45 = vadd.f32 %v6553_v57, %v6552_v61  ;;  %v6555_v43 = vpop.f32.mrb[66].mxu1 }
 0x416   : > { %v6556_v40 = vpop.f32.mrb[67].mxu1 }
 0x417   : > { %12346 = vst [vmem:[#allocation32_spill] sm:$0xff] %v9388_v45  ;;  %v9390_v46 = vadd.f32 %v6556_v40, %v6555_v43  ;;  %v12361_v43 = vld [vmem:[#allocation79_spill] sm:$0xff] }
 0x418   : > { %6452 = vmatmul.mubr.msk.bf16.gmra.mrb[172].mxu1 %vm926_vm1, %v12348_v29  ;;  %v12362_v29 = vld [vmem:[#allocation82_spill] sm:$0xff] }
 0x419   : > { %12347 = vst [vmem:[#allocation35_spill] sm:$0xff] %v9390_v46 }
 0x41b   : > { %v6558_v56 = vpop.f32.mrb[68].mxu1  ;;  %1778 = vmatmul.mubr.bf16.gmra.mrb[144].mxu0 %v12349_v28 }
 0x41c   : > { %v6559_v36 = vpop.f32.mrb[69].mxu1  ;;  %1785 = vmatprep.mubr.bf16.mxu0 %v12350_v0 }
 0x41d   : > { %v9396_v5 = vadd.f32 %v6559_v36, %v6558_v56  ;;  %v6561_v34 = vpop.f32.mrb[70].mxu1 }
 0x41e   : > { %v6562_v7 = vpop.f32.mrb[71].mxu1 }
 0x41f   : > { %12351 = vst [vmem:[#allocation13_spill] sm:$0xff] %v9396_v5  ;;  %v9398_v9 = vadd.f32 %v6562_v7, %v6561_v34  ;;  %v12365_v7 = vld [vmem:[#allocation81_spill] sm:$0xff] }
 0x421   : > { %12352 = vst [vmem:[#allocation15_spill] sm:$0xff] %v9398_v9 }
 0x423   : > { %v6564_v48 = vpop.f32.mrb[72].mxu1  ;;  %1786 = vmatmul.mubr.bf16.gmra.mrb[148].mxu0 %v12353_v11  ;;  %v12366_v11 = vld [vmem:[#allocation84_spill] sm:$0xff] }
 0x424   : > { %v6565_v12 = vpop.f32.mrb[73].mxu1  ;;  %1793 = vmatprep.mubr.bf16.mxu0 %v12354_v32 }
 0x425   : > { %v9402_v10 = vadd.f32 %v6565_v12, %v6564_v48  ;;  %v6567_v39 = vpop.f32.mrb[74].mxu1 }
 0x426   : > { %v6568_v20 = vpop.f32.mrb[75].mxu1 }
 0x427   : > { %12355 = vst [vmem:[#allocation11_spill] sm:$0xff] %v9402_v10  ;;  %v9404_v47 = vadd.f32 %v6568_v20, %v6567_v39 }
 0x429   : > { %12356 = vst [vmem:[#allocation14_spill] sm:$0xff] %v9404_v47 }
 0x42b   : > { %v6570_v18 = vpop.f32.mrb[76].mxu1  ;;  %1794 = vmatmul.mubr.bf16.gmra.mrb[152].mxu0 %v12357_v31  ;;  %v12369_v31 = vld [vmem:[#allocation83_spill] sm:$0xff] }
 0x42c   : > { %v6571_v33 = vpop.f32.mrb[77].mxu1  ;;  %1801 = vmatprep.mubr.bf16.mxu0 %v12358_v53  ;;  %v12370_v53 = vld [vmem:[#allocation86_spill] sm:$0xff] }
 0x42d   : > { %v9408_v41 = vadd.f32 %v6571_v33, %v6570_v18  ;;  %v6573_v61 = vpop.f32.mrb[78].mxu1 }
 0x42e   : > { %v6574_v17 = vpop.f32.mrb[79].mxu1 }
 0x42f   : > { %12359 = vst [vmem:[#allocation21_spill] sm:$0xff] %v9408_v41  ;;  %v9410_v57 = vadd.f32 %v6574_v17, %v6573_v61 }
 0x431   : > { %12360 = vst [vmem:[#allocation23_spill] sm:$0xff] %v9410_v57 }
 0x433   : > { %v6576_v23 = vpop.f32.mrb[80].mxu1  ;;  %1802 = vmatmul.mubr.bf16.gmra.mrb[156].mxu0 %v12361_v43 }
 0x434   : > { %v6577_v40 = vpop.f32.mrb[81].mxu1  ;;  %1809 = vmatprep.mubr.bf16.mxu0 %v12362_v29  ;;  %v12373_v29 = vld [vmem:[#allocation85_spill] sm:$0xff] }
 0x435   : > { %v9414_v56 = vadd.f32 %v6577_v40, %v6576_v23  ;;  %v6579_v28 = vpop.f32.mrb[82].mxu1 }
 0x436   : > { %v6580_v36 = vpop.f32.mrb[83].mxu1 }
 0x437   : > { %12363 = vst [vmem:[#allocation19_spill] sm:$0xff] %v9414_v56  ;;  %v9416_v0 = vadd.f32 %v6580_v36, %v6579_v28  ;;  %v12374_v36 = vld [vmem:[#allocation88_spill] sm:$0xff] }
 0x439   : > { %12364 = vst [vmem:[#allocation22_spill] sm:$0xff] %v9416_v0 }
 0x43b   : > { %v6582_v34 = vpop.f32.mrb[84].mxu1  ;;  %1810 = vmatmul.mubr.bf16.gmra.mrb[160].mxu0 %v12365_v7 }
 0x43c   : > { %v6583_v48 = vpop.f32.mrb[85].mxu1  ;;  %1817 = vmatprep.mubr.bf16.mxu0 %v12366_v11 }
 0x43d   : > { %v9420_v12 = vadd.f32 %v6583_v48, %v6582_v34  ;;  %v6585_v32 = vpop.f32.mrb[86].mxu1 }
 0x43e   : > { %v6586_v39 = vpop.f32.mrb[87].mxu1 }
 0x43f   : > { %12367 = vst [vmem:[#allocation30_spill] sm:$0xff] %v9420_v12  ;;  %v9422_v20 = vadd.f32 %v6586_v39, %v6585_v32  ;;  %v12377_v39 = vld [vmem:[#allocation87_spill] sm:$0xff] }
 0x441   : > { %12368 = vst [vmem:[#allocation28_spill] sm:$0xff] %v9422_v20 }
 0x443   : > { %v6588_v18 = vpop.f32.mrb[88].mxu1  ;;  %1818 = vmatmul.mubr.bf16.gmra.mrb[164].mxu0 %v12369_v31 }
 0x444   : > { %v6589_v33 = vpop.f32.mrb[89].mxu1  ;;  %1825 = vmatprep.mubr.bf16.mxu0 %v12370_v53 }
 0x445   : > { %v9426_v61 = vadd.f32 %v6589_v33, %v6588_v18  ;;  %v6591_v17 = vpop.f32.mrb[90].mxu1 }
 0x446   : > { %v6592_v23 = vpop.f32.mrb[91].mxu1 }
 0x447   : > { %12371 = vst [vmem:[#allocation38_spill] sm:$0xff] %v9426_v61  ;;  %v9428_v43 = vadd.f32 %v6592_v23, %v6591_v17 }
 0x449   : > { %12372 = vst [vmem:[#allocation36_spill] sm:$0xff] %v9428_v43 }
 0x44b   : > { %v6594_v40 = vpop.f32.mrb[92].mxu1  ;;  %1826 = vmatmul.mubr.bf16.gmra.mrb[168].mxu0 %v12373_v29 }
 0x44c   : > { %v6595_v28 = vpop.f32.mrb[93].mxu1  ;;  %1833 = vmatprep.mubr.bf16.mxu0 %v12374_v36 }
 0x44d   : > { %v9432_v34 = vadd.f32 %v6595_v28, %v6594_v40  ;;  %v6597_v7 = vpop.f32.mrb[94].mxu1 }
 0x44e   : > { %v6598_v48 = vpop.f32.mrb[95].mxu1 }
 0x44f   : > { %12375 = vst [vmem:[#allocation31_spill] sm:$0xff] %v9432_v34  ;;  %v9434_v11 = vadd.f32 %v6598_v48, %v6597_v7 }
 0x451   : > { %12376 = vst [vmem:[#allocation29_spill] sm:$0xff] %v9434_v11 }
 0x453   : > { %v6600_v32 = vpop.f32.mrb[96].mxu1  ;;  %1834 = vmatmul.mubr.bf16.gmra.mrb[172].mxu0 %v12377_v39 }
 0x454   : > { %v6601_v18 = vpop.f32.mrb[97].mxu1 }
 0x455   : > { %v9437_v31 = vadd.f32 %v6601_v18, %v6600_v32  ;;  %v6603_v33 = vpop.f32.mrb[98].mxu1 }
 0x456   : > { %v6604_v53 = vpop.f32.mrb[99].mxu1 }
 0x457   : > { %12378 = vst [vmem:[#allocation39_spill] sm:$0xff] %v9437_v31  ;;  %v9439_v17 = vadd.f32 %v6604_v53, %v6603_v33 }
 0x459   : > { %12379 = vst [vmem:[#allocation33_spill] sm:$0xff] %v9439_v17 }
 0x45b   : > { %v6606_v23 = vpop.f32.mrb[100].mxu1 }
 0x45c   : > { %v6607_v29 = vpop.f32.mrb[101].mxu1 }
 0x45d   : > { %v9441_v15 = vadd.f32 %v6607_v29, %v6606_v23  ;;  %v6609_v40 = vpop.f32.mrb[102].mxu1 }
 0x45e   : > { %v6610_v28 = vpop.f32.mrb[103].mxu1 }
 0x45f   : > { %12380 = vst [vmem:[#allocation37_spill] sm:$0xff] %v9441_v15  ;;  %v9443_v36 = vadd.f32 %v6610_v28, %v6609_v40 }
 0x461   : > { %12381 = vst [vmem:[#allocation61_spill] sm:$0xff] %v9443_v36 }
 0x463   : > { %v6612_v7 = vpop.f32.mrb[104].mxu1 }
 0x464   : > { %v6613_v48 = vpop.f32.mrb[105].mxu1 }
 0x465   : > { %v9445_v13 = vadd.f32 %v6613_v48, %v6612_v7  ;;  %v6615_v39 = vpop.f32.mrb[106].mxu1 }
 0x466   : > { %v6616_v14 = vpop.f32.mrb[107].mxu1 }
 0x467   : > { %12382 = vst [vmem:[#allocation59_spill] sm:$0xff] %v9445_v13  ;;  %v9447_v32 = vadd.f32 %v6616_v14, %v6615_v39 }
 0x469   : > { %12383 = vst [vmem:[#allocation72_spill] sm:$0xff] %v9447_v32 }
 0x46b   : > { %v6618_v18 = vpop.f32.mrb[108].mxu1 }
 0x46c   : > { %v6619_v19 = vpop.f32.mrb[109].mxu1 }
 0x46d   : > { %v9449_v33 = vadd.f32 %v6619_v19, %v6618_v18  ;;  %v6621_v53 = vpop.f32.mrb[110].mxu1 }
 0x46e   : > { %v6622_v24 = vpop.f32.mrb[111].mxu1 }
 0x46f   : > { %12384 = vst [vmem:[#allocation74_spill] sm:$0xff] %v9449_v33  ;;  %v9451_v23 = vadd.f32 %v6622_v24, %v6621_v53 }
 0x471   : > { %12385 = vst [vmem:[#allocation89_spill] sm:$0xff] %v9451_v23 }
 0x473   : > { %v9453_v29 = vpop.f32.mrb[112].mxu1 }
 0x474   : > { %v9455_v40 = vpop.f32.mrb[113].mxu1 }
 0x475   : > { %v9457_v28 = vpop.f32.mrb[114].mxu1  ;;  %v2375_v7 = vmax.f32 %v9453_v29, %v9455_v40 }
 0x476   : > { %v9461_v48 = vpop.f32.mrb[115].mxu1 }
 0x477   : > { %2376 = vmax.xlane.f32.xlu0 %v2375_v7  ;;  %v2378_v19 = vmax.f32 %v9457_v28, %v9461_v48 }
 0x479   : > { %2379 = vmax.xlane.f32.xlu1 %v2378_v19 }
 0x47b   : > { %v9465_v14 = vpop.f32.mrb[116].mxu1 }
 0x47c   : > { %v9467_v24 = vpop.f32.mrb[117].mxu1 }
 0x47d   : > { %v9469_v39 = vpop.f32.mrb[118].mxu1  ;;  %v2381_v18 = vmax.f32 %v9465_v14, %v9467_v24 }
 0x47e   : > { %v9473_v53 = vpop.f32.mrb[119].mxu1 }
 0x47f   : > { %2382 = vmax.xlane.f32.xlu0 %v2381_v18  ;;  %v2384_v25 = vmax.f32 %v9469_v39, %v9473_v53 }
 0x483   : > { %2385 = vmax.xlane.f32.xlu0 %v2384_v25  ;;  %v9477_v7 = vpop.f32.mrb[120].mxu1 }
 0x484   : > { %v9479_v2 = vpop.f32.mrb[121].mxu1 }
 0x485   : > { %v9481_v19 = vpop.f32.mrb[122].mxu1  ;;  %v2387_v42 = vmax.f32 %v9477_v7, %v9479_v2 }
 0x486   : > { %v9485_v23 = vpop.f32.mrb[123].mxu1 }
 0x487   : > { %2388 = vmax.xlane.f32.xlu1 %v2387_v42  ;;  %v2390_v32 = vmax.f32 %v9481_v19, %v9485_v23 }
 0x489   : > { %2391 = vmax.xlane.f32.xlu0 %v2390_v32 }
 0x48b   : > { %v9489_v18 = vpop.f32.mrb[124].mxu1 }
 0x48c   : > { %v9491_v36 = vpop.f32.mrb[125].mxu1 }
 0x48d   : > { %v9493_v25 = vpop.f32.mrb[126].mxu1  ;;  %v2393_v17 = vmax.f32 %v9489_v18, %v9491_v36 }
 0x48e   : > { %v9497_v37 = vpop.f32.mrb[127].mxu1 }
 0x48f   : > { %2394 = vmax.xlane.f32.xlu1 %v2393_v17  ;;  %v2396_v60 = vmax.f32 %v9493_v25, %v9497_v37 }
 0x491   : > { %2397 = vmax.xlane.f32.xlu0 %v2396_v60 }
 0x493   : > { %v9501_v42 = vpop.f32.mrb[128].mxu1 }
 0x494   : > { %v9503_v26 = vpop.f32.mrb[129].mxu1 }
 0x495   : > { %v9505_v32 = vpop.f32.mrb[130].mxu1  ;;  %v2399_v22 = vmax.f32 %v9501_v42, %v9503_v26 }
 0x496   : > { %v9509_v27 = vpop.f32.mrb[131].mxu1 }
 0x497   : > { %2400 = vmax.xlane.f32.xlu1 %v2399_v22  ;;  %v2402_v30 = vmax.f32 %v9505_v32, %v9509_v27 }
 0x499   : > { %2403 = vmax.xlane.f32.xlu0 %v2402_v30 }
 0x49b   : > { %v9513_v17 = vpop.f32.mrb[132].mxu1 }
 0x49c   : > { %v9515_v33 = vpop.f32.mrb[133].mxu1 }
 0x49d   : > { %v9517_v60 = vpop.f32.mrb[134].mxu1  ;;  %v2405_v13 = vmax.f32 %v9513_v17, %v9515_v33 }
 0x49e   : > { %v9521_v15 = vpop.f32.mrb[135].mxu1 }
 0x49f   : > { %2406 = vmax.xlane.f32.xlu1 %v2405_v13  ;;  %v2408_v31 = vmax.f32 %v9517_v60, %v9521_v15 }
 0x4a1   : > { %2409 = vmax.xlane.f32.xlu0 %v2408_v31 }
 0x4a3   : > { %v9525_v22 = vpop.f32.mrb[136].mxu1 }
 0x4a4   : > { %v9527_v11 = vpop.f32.mrb[137].mxu1 }
 0x4a5   : > { %v9529_v30 = vpop.f32.mrb[138].mxu1  ;;  %v2411_v34 = vmax.f32 %v9525_v22, %v9527_v11 }
 0x4a6   : > { %v9533_v43 = vpop.f32.mrb[139].mxu1 }
 0x4a7   : > { %2412 = vmax.xlane.f32.xlu1 %v2411_v34  ;;  %v2414_v61 = vmax.f32 %v9529_v30, %v9533_v43 }
 0x4a9   : > { %2415 = vmax.xlane.f32.xlu0 %v2414_v61 }
 0x4ab   : > { %v9537_v13 = vpop.f32.mrb[140].mxu1 }
 0x4ac   : > { %v9539_v20 = vpop.f32.mrb[141].mxu1 }
 0x4ad   : > { %v9541_v31 = vpop.f32.mrb[142].mxu1  ;;  %v2417_v12 = vmax.f32 %v9537_v13, %v9539_v20 }
 0x4ae   : > { %v9545_v0 = vpop.f32.mrb[143].mxu1  ;;  %v9547_v56 = vpop.f32.mrb[112].mxu0 }
 0x4af   : > { %12386 = vst [vmem:[#allocation73_spill] sm:$0xff] %v9547_v56  ;;  %2418 = vmax.xlane.f32.xlu1 %v2417_v12  ;;  %v1717_v57 = vpop.f32.mrb[113].mxu0  ;;  %v2420_v34 = vmax.f32 %v9541_v31, %v9545_v0 }
 0x4b0   : > { %v9551_v41 = vpop.f32.mrb[114].mxu0 }
 0x4b1   : > { %12387 = vst [vmem:[#allocation76_spill] sm:$0xff] %v9551_v41  ;;  %2421 = vmax.xlane.f32.xlu0 %v2420_v34  ;;  %v1720_v61 = vpop.f32.mrb[115].mxu0 }
 0x4b3   : > { %v9553_v47 = vpop.f32.mrb[144].mxu1 }
 0x4b4   : > { %v9555_v10 = vpop.f32.mrb[145].mxu1 }
 0x4b5   : > { %v9557_v9 = vpop.f32.mrb[146].mxu1  ;;  %v2423_v5 = vmax.f32 %v9553_v47, %v9555_v10 }
 0x4b6   : > { %v9561_v8 = vpop.f32.mrb[147].mxu1  ;;  %v9563_v12 = vpop.f32.mrb[116].mxu0 }
 0x4b7   : > { %12388 = vst [vmem:[#allocation75_spill] sm:$0xff] %v9563_v12  ;;  %2424 = vmax.xlane.f32.xlu1 %v2423_v5  ;;  %v1725_v57 = vpop.f32.mrb[117].mxu0  ;;  %v2426_v41 = vmax.f32 %v9557_v9, %v9561_v8 }
 0x4b8   : > { %v9567_v34 = vpop.f32.mrb[118].mxu0 }
 0x4b9   : > { %12389 = vst [vmem:[#allocation78_spill] sm:$0xff] %v9567_v34  ;;  %2427 = vmax.xlane.f32.xlu0 %v2426_v41  ;;  %v1728_v61 = vpop.f32.mrb[119].mxu0 }
 0x4bb   : > { %v9569_v56 = vpop.f32.mrb[148].mxu1 }
 0x4bc   : > { %v9571_v46 = vpop.f32.mrb[149].mxu1 }
 0x4bd   : > { %v9573_v45 = vpop.f32.mrb[150].mxu1  ;;  %v2429_v50 = vmax.f32 %v9569_v56, %v9571_v46 }
 0x4be   : > { %v9577_v51 = vpop.f32.mrb[151].mxu1  ;;  %v9579_v5 = vpop.f32.mrb[120].mxu0 }
 0x4bf   : > { %12390 = vst [vmem:[#allocation77_spill] sm:$0xff] %v9579_v5  ;;  %2430 = vmax.xlane.f32.xlu1 %v2429_v50  ;;  %v1733_v57 = vpop.f32.mrb[121].mxu0  ;;  %v2432_v34 = vmax.f32 %v9573_v45, %v9577_v51 }
 0x4c0   : > { %v9583_v41 = vpop.f32.mrb[122].mxu0 }
 0x4c1   : > { %12391 = vst [vmem:[#allocation80_spill] sm:$0xff] %v9583_v41  ;;  %2433 = vmax.xlane.f32.xlu0 %v2432_v34  ;;  %v1736_v61 = vpop.f32.mrb[123].mxu0 }
 0x4c3   : > { %v9585_v12 = vpop.f32.mrb[152].mxu1 }
 0x4c4   : > { %v9587_v63 = vpop.f32.mrb[153].mxu1 }
 0x4c5   : > { %v9589_v54 = vpop.f32.mrb[154].mxu1  ;;  %v2435_v58 = vmax.f32 %v9585_v12, %v9587_v63 }
 0x4c6   : > { %v9593_v38 = vpop.f32.mrb[155].mxu1  ;;  %v9595_v50 = vpop.f32.mrb[124].mxu0 }
 0x4c7   : > { %12392 = vst [vmem:[#allocation79_spill] sm:$0xff] %v9595_v50  ;;  %2436 = vmax.xlane.f32.xlu1 %v2435_v58  ;;  %v1741_v57 = vpop.f32.mrb[125].mxu0  ;;  %v2438_v41 = vmax.f32 %v9589_v54, %v9593_v38 }
 0x4c8   : > { %v9599_v34 = vpop.f32.mrb[126].mxu0 }
 0x4c9   : > { %12393 = vst [vmem:[#allocation82_spill] sm:$0xff] %v9599_v34  ;;  %2439 = vmax.xlane.f32.xlu0 %v2438_v41  ;;  %v1744_v61 = vpop.f32.mrb[127].mxu0 }
 0x4cb   : > { %v9601_v5 = vpop.f32.mrb[156].mxu1 }
 0x4cc   : > { %v9603_v3 = vpop.f32.mrb[157].mxu1 }
 0x4cd   : > { %v9605_v21 = vpop.f32.mrb[158].mxu1  ;;  %v2441_v55 = vmax.f32 %v9601_v5, %v9603_v3 }
 0x4ce   : > { %12394 = vst [vmem:[#allocation81_spill] sm:$0xff] %v9605_v21  ;;  %v9609_v49 = vpop.f32.mrb[159].mxu1  ;;  %v9611_v58 = vpop.f32.mrb[128].mxu0 }
 0x4cf   : > { %12395 = vst [vmem:[#allocation84_spill] sm:$0xff] %v9609_v49  ;;  %12396 = vst [vmem:[#allocation83_spill] sm:$0xff] %v9611_v58  ;;  %2442 = vmax.xlane.f32.xlu1 %v2441_v55  ;;  %v1749_v57 = vpop.f32.mrb[129].mxu0  ;;  %v2444_v34 = vmax.f32 %v9605_v21, %v9609_v49 }
 0x4d0   : > { %v9615_v41 = vpop.f32.mrb[130].mxu0 }
 0x4d1   : > { %12397 = vst [vmem:[#allocation86_spill] sm:$0xff] %v9615_v41  ;;  %2445 = vmax.xlane.f32.xlu0 %v2444_v34  ;;  %v1752_v61 = vpop.f32.mrb[131].mxu0 }
 0x4d3   : > { %v9617_v50 = vpop.f32.mrb[160].mxu1 }
 0x4d4   : > { %12398 = vst [vmem:[#allocation85_spill] sm:$0xff] %v9617_v50  ;;  %v9619_v4 = vpop.f32.mrb[161].mxu1 }
 0x4d5   : > { %12399 = vst [vmem:[#allocation88_spill] sm:$0xff] %v9619_v4  ;;  %v9621_v62 = vpop.f32.mrb[162].mxu1  ;;  %v2447_v16 = vmax.f32 %v9617_v50, %v9619_v4 }
 0x4d6   : > { %12400 = vst [vmem:[#allocation87_spill] sm:$0xff] %v9621_v62  ;;  %v9625_v59 = vpop.f32.mrb[163].mxu1  ;;  %v9627_v55 = vpop.f32.mrb[132].mxu0 }
 0x4d7   : > { %12401 = vst [vmem:[#allocation99_spill] sm:$0xff] %v9625_v59  ;;  %12402 = vst [vmem:[#allocation100_spill] sm:$0xff] %v9627_v55  ;;  %2448 = vmax.xlane.f32.xlu1 %v2447_v16  ;;  %v1757_v57 = vpop.f32.mrb[133].mxu0  ;;  %v2450_v41 = vmax.f32 %v9621_v62, %v9625_v59 }
 0x4d8   : > { %v9631_v34 = vpop.f32.mrb[134].mxu0 }
 0x4d9   : > { %12403 = vst [vmem:[#allocation101_spill] sm:$0xff] %v9631_v34  ;;  %2451 = vmax.xlane.f32.xlu0 %v2450_v41  ;;  %v1760_v61 = vpop.f32.mrb[135].mxu0 }
 0x4db   : > { %v9633_v58 = vpop.f32.mrb[164].mxu1 }
 0x4dc   : > { %12404 = vst [vmem:[#allocation102_spill] sm:$0xff] %v9633_v58  ;;  %v9635_v44 = vpop.f32.mrb[165].mxu1 }
 0x4dd   : > { %12405 = vst [vmem:[#allocation103_spill] sm:$0xff] %v9635_v44  ;;  %v9637_v35 = vpop.f32.mrb[166].mxu1  ;;  %v2453_v4 = vmax.f32 %v9633_v58, %v9635_v44 }
 0x4de   : > { %12406 = vst [vmem:[#allocation104_spill] sm:$0xff] %v9637_v35  ;;  %v9641_v50 = vpop.f32.mrb[167].mxu1  ;;  %v9643_v16 = vpop.f32.mrb[136].mxu0 }
 0x4df   : > { %12407 = vst [vmem:[#allocation105_spill] sm:$0xff] %v9641_v50  ;;  %12408 = vst [vmem:[#allocation106_spill] sm:$0xff] %v9643_v16  ;;  %2454 = vmax.xlane.f32.xlu1 %v2453_v4  ;;  %v1765_v57 = vpop.f32.mrb[137].mxu0  ;;  %v2456_v34 = vmax.f32 %v9637_v35, %v9641_v50 }
 0x4e0   : > { %v9647_v41 = vpop.f32.mrb[138].mxu0 }
 0x4e1   : > { %12409 = vst [vmem:[#allocation107_spill] sm:$0xff] %v9647_v41  ;;  %2457 = vmax.xlane.f32.xlu0 %v2456_v34  ;;  %v1768_v61 = vpop.f32.mrb[139].mxu0 }
 0x4e3   : > { %v9649_v55 = vpop.f32.mrb[168].mxu1 }
 0x4e4   : > { %12410 = vst [vmem:[#allocation108_spill] sm:$0xff] %v9649_v55  ;;  %v9651_v59 = vpop.f32.mrb[169].mxu1 }
 0x4e5   : > { %12411 = vst [vmem:[#allocation109_spill] sm:$0xff] %v9651_v59  ;;  %v9653_v62 = vpop.f32.mrb[170].mxu1  ;;  %v2459_v44 = vmax.f32 %v9649_v55, %v9651_v59 }
 0x4e6   : > { %12412 = vst [vmem:[#allocation110_spill] sm:$0xff] %v9653_v62  ;;  %v9657_v58 = vpop.f32.mrb[171].mxu1  ;;  %v9659_v4 = vpop.f32.mrb[140].mxu0 }
 0x4e7   : > { %12413 = vst [vmem:[#allocation111_spill] sm:$0xff] %v9657_v58  ;;  %12414 = vst [vmem:[#allocation112_spill] sm:$0xff] %v9659_v4  ;;  %2460 = vmax.xlane.f32.xlu1 %v2459_v44  ;;  %v1773_v57 = vpop.f32.mrb[141].mxu0  ;;  %v2462_v41 = vmax.f32 %v9653_v62, %v9657_v58 }
 0x4e8   : > { %v9663_v34 = vpop.f32.mrb[142].mxu0 }
 0x4e9   : > { %12415 = vst [vmem:[#allocation113_spill] sm:$0xff] %v9663_v34  ;;  %2463 = vmax.xlane.f32.xlu0 %v2462_v41  ;;  %v1776_v61 = vpop.f32.mrb[143].mxu0 }
 0x4eb   : > { %v9665_v16 = vpop.f32.mrb[172].mxu1 }
 0x4ec   : > { %12416 = vst [vmem:[#allocation114_spill] sm:$0xff] %v9665_v16  ;;  %v9667_v50 = vpop.f32.mrb[173].mxu1 }
 0x4ed   : > { %12417 = vst [vmem:[#allocation115_spill] sm:$0xff] %v9667_v50  ;;  %v9669_v35 = vpop.f32.mrb[174].mxu1  ;;  %v2465_v59 = vmax.f32 %v9665_v16, %v9667_v50 }
 0x4ee   : > { %v9673_v55 = vpop.f32.mrb[175].mxu1  ;;  %v9675_v44 = vpop.f32.mrb[144].mxu0 }
 0x4ef   : > { %12418 = vst [vmem:[#allocation116_spill] sm:$0xff] %v9673_v55  ;;  %12419 = vst [vmem:[#allocation117_spill] sm:$0xff] %v9675_v44  ;;  %2466 = vmax.xlane.f32.xlu1 %v2465_v59  ;;  %v1781_v57 = vpop.f32.mrb[145].mxu0  ;;  %v2468_v34 = vmax.f32 %v9669_v35, %v9673_v55 }
 0x4f0   : > { %v9679_v41 = vpop.f32.mrb[146].mxu0 }
 0x4f1   : > { %12420 = vst [vmem:[#allocation118_spill] sm:$0xff] %v9679_v41  ;;  %2469 = vmax.xlane.f32.xlu0 %v2468_v34  ;;  %v1784_v61 = vpop.f32.mrb[147].mxu0 }
 0x4f6   : > { %v9681_v4 = vpop.f32.mrb[148].mxu0 }
 0x4f7   : > { %12421 = vst [vmem:[#allocation119_spill] sm:$0xff] %v9681_v4  ;;  %v1789_v58 = vpop.f32.mrb[149].mxu0 }
 0x4f8   : > { %v9683_v62 = vpop.f32.mrb[150].mxu0 }
 0x4f9   : > { %12422 = vst [vmem:[#allocation120_spill] sm:$0xff] %v9683_v62  ;;  %v1792_v49 = vpop.f32.mrb[151].mxu0 }
 0x4fe   : > { %v9685_v50 = vpop.f32.mrb[152].mxu0 }
 0x4ff   : > { %12423 = vst [vmem:[#allocation121_spill] sm:$0xff] %v9685_v50  ;;  %v1797_v16 = vpop.f32.mrb[153].mxu0 }
 0x500   : > { %v9687_v21 = vpop.f32.mrb[154].mxu0 }
 0x501   : > { %12424 = vst [vmem:[#allocation122_spill] sm:$0xff] %v9687_v21  ;;  %v1800_v59 = vpop.f32.mrb[155].mxu0 }
 0x504   : > { %v2377_v57 = vpop.xlane.xlu0 %2376 }
 0x505   : > { %v2471_v44 = vsub.f32 %v9453_v29, %v2377_v57  ;;  %v2472_v55 = vsub.f32 %v9455_v40, %v2377_v57 }
 0x506   : > { %v2380_v41 = vpop.xlane.xlu1 %2379  ;;  %v9691_v34 = vpop.f32.mrb[156].mxu0 }
 0x507   : > { %12425 = vst [vmem:[#allocation123_spill] sm:$0xff] %v9691_v34  ;;  %v2535_v61 = vmul.f32 1.442695, %v2471_v44  ;;  %v2473_v58 = vsub.f32 %v9457_v28, %v2380_v41  ;;  %v2474_v62 = vsub.f32 %v9461_v48, %v2380_v41  ;;  %v1805_v49 = vpop.f32.mrb[157].mxu0  ;;  %v2537_v4 = vmul.f32 1.442695, %v2472_v55 }
 0x508   : > { %v9695_v50 = vpop.f32.mrb[158].mxu0 }
 0x509   : > { %12426 = vst [vmem:[#allocation124_spill] sm:$0xff] %v9695_v50  ;;  %v2539_v16 = vmul.f32 1.442695, %v2473_v58  ;;  %v2541_v21 = vmul.f32 1.442695, %v2474_v62  ;;  %v1808_v59 = vpop.f32.mrb[159].mxu0  ;;  %7360 = vpow2.f32 %v2535_v61 }
 0x50b   : > { %7362 = vpow2.f32 %v2539_v16 }
 0x50c   : > { %7364 = vpow2.f32 %v2541_v21  ;;  %v2383_v29 = vpop.xlane.xlu0 %2382 }
 0x50d   : > { %7366 = vpow2.f32 %v2537_v4  ;;  %v2475_v40 = vsub.f32 %v9465_v14, %v2383_v29  ;;  %v2476_v44 = vsub.f32 %v9467_v24, %v2383_v29 }
 0x50e   : > { %v9699_v57 = vpop.f32.mrb[160].mxu0 }
 0x50f   : > { %12427 = vst [vmem:[#allocation125_spill] sm:$0xff] %v9699_v57  ;;  %v2543_v28 = vmul.f32 1.442695, %v2475_v40  ;;  %v1813_v48 = vpop.f32.mrb[161].mxu0  ;;  %v2545_v41 = vmul.f32 1.442695, %v2476_v44 }
 0x510   : > { %v2386_v55 = vpop.xlane.xlu0 %2385  ;;  %v9701_v49 = vpop.f32.mrb[162].mxu0 }
 0x511   : > { %12428 = vst [vmem:[#allocation126_spill] sm:$0xff] %v9701_v49  ;;  %v2477_v62 = vsub.f32 %v9469_v39, %v2386_v55  ;;  %v2478_v61 = vsub.f32 %v9473_v53, %v2386_v55  ;;  %v1816_v58 = vpop.f32.mrb[163].mxu0  ;;  %7368 = vpow2.f32 %v2543_v28 }
 0x512   : > { %7370 = vpow2.f32 %v2545_v41 }
 0x513   : > { %v2547_v21 = vmul.f32 1.442695, %v2477_v62  ;;  %v2549_v4 = vmul.f32 1.442695, %v2478_v61  ;;  %v7361_v16 = vpop.eup %7360 }
 0x514   : > { %v2389_v14 = vpop.xlane.xlu1 %2388 }
 0x515   : > { %v7363_v24 = vpop.eup %7362  ;;  %7372 = vpow2.f32 %v2547_v21  ;;  %v2479_v59 = vsub.f32 %v9477_v7, %v2389_v14  ;;  %v2480_v29 = vsub.f32 %v9479_v2, %v2389_v14 }
 0x516   : > { %v7365_v40 = vpop.eup %7364  ;;  %7374 = vpow2.f32 %v2549_v4  ;;  %v2392_v44 = vpop.xlane.xlu0 %2391  ;;  %v2663_v39 = vpack.c.bf16 %v7363_v24, %v7361_v16  ;;  %v12431_v4 = vld [vmem:[#allocation57_spill] sm:$0xff]  ;;  %v12432_v16 = vld [vmem:[#allocation56_spill] sm:$0xff] }
 0x517   : > { %v9707_v48 = vpop.f32.mrb[164].mxu0  ;;  %v7367_v53 = vpop.eup %7366  ;;  %v2551_v55 = vmul.f32 1.442695, %v2479_v59  ;;  %v2481_v28 = vsub.f32 %v9481_v19, %v2392_v44  ;;  %v2482_v62 = vsub.f32 %v9485_v23, %v2392_v44  ;;  %v2553_v61 = vmul.f32 1.442695, %v2480_v29  ;;  %v12434_v24 = vld [vmem:[#allocation69_spill] sm:$0xff] }
 0x518   : > { %12429 = vst [vmem:[#allocation127_spill] sm:$0xff] %v9707_v48  ;;  %v1821_v41 = vpop.f32.mrb[165].mxu0  ;;  %v2664_v58 = vpack.c.bf16 %v7365_v40, %v7367_v53  ;;  %v12433_v19 = vpack.c.bf16 %v12431_v4, %v12432_v16  ;;  %v12435_v59 = vld [vmem:[#allocation67_spill] sm:$0xff]  ;;  %v12437_v53 = vld [vmem:[#allocation41_spill] sm:$0xff] }
 0x519   : > { %v9711_v21 = vpop.f32.mrb[166].mxu0  ;;  %v2555_v7 = vmul.f32 1.442695, %v2481_v28  ;;  %v2557_v49 = vmul.f32 1.442695, %v2482_v62  ;;  %7376 = vpow2.f32 %v2551_v55  ;;  %v12436_v29 = vpack.c.bf16 %v12434_v24, %v12435_v59  ;;  %v12440_v28 = vld [vmem:[#allocation45_spill] sm:$0xff] }
 0x51a   : > { %12430 = vst [vmem:[#allocation128_spill] sm:$0xff] %v9711_v21  ;;  %v1824_v2 = vpop.f32.mrb[167].mxu0  ;;  %2727 = vmatprep.mubr.bf16.mxu0 %v2664_v58  ;;  %2920 = vmatprep.mubr.bf16.mxu1 %v2664_v58  ;;  %v12441_v62 = vld [vmem:[#allocation43_spill] sm:$0xff]  ;;  %v12445_v24 = vld [vmem:[#allocation64_spill] sm:$0xff] }
 0x51b   : > { %7378 = vpow2.f32 %v2555_v7  ;;  %2728 = vmatmul.mubr.bf16.vlgmr.msra.gmra.mrb[176].mxu0 %v2663_v39  ;;  %2921 = vmatmul.mubr.bf16.vlgmr.msra.gmra.mrb[176].mxu1 %v2663_v39  ;;  %v7369_v14 = vpop.eup %7368  ;;  %v12438_v39 = vld [vmem:[#allocation40_spill] sm:$0xff]  ;;  %v12442_v41 = vpack.c.bf16 %v12440_v28, %v12441_v62 }
 0x51c   : > { %7380 = vpow2.f32 %v2557_v49  ;;  %3390 = vmatpush1.bf16.msra.mxu0 %v12433_v19  ;;  %6737 = vmatpush3.bf16.msra.mxu1 %v12332_v6  ;;  %v2395_v23 = vpop.xlane.xlu1 %2394  ;;  %v12439_v49 = vpack.c.bf16 %v12437_v53, %v12438_v39  ;;  %v7371_v55 = vpop.eup %7370  ;;  %v12448_v39 = vpack.c.bf16 %v9267_v52, %v9232_v1 }
 0x51d   : > { %7382 = vpow2.f32 %v2553_v61  ;;  %3391 = vmatprep.subr.bf16.mxu0 %v12436_v29  ;;  %v2483_v40 = vsub.f32 %v9489_v18, %v2395_v23  ;;  %v2484_v44 = vsub.f32 %v9491_v36, %v2395_v23  ;;  %6738 = vmatprep.subr.bf16.mxu1 %v12332_v6  ;;  %v12444_v23 = vld [vmem:[#allocation65_spill] sm:$0xff] }
 0x51e   : > { %3309 = vxpose.xlu1.c.b16.start [1/2] (short) %v12439_v49, 128  ;;  %3325 = vxpose.xlu0.c.b16.start [1/2] (short) %v12442_v41, 128  ;;  %v2398_v61 = vpop.xlane.xlu0 %2397  ;;  %v9729_v58 = vpop.f32.mrb[168].mxu0  ;;  %v12446_v59 = vpack.c.bf16 %v12444_v23, %v12445_v24  ;;  %v12449_v49 = vld [vmem:[#allocation49_spill] sm:$0xff] }
 0x51f   : > { %12443 = vst [vmem:[#allocation57_spill] sm:$0xff] %v9729_v58  ;;  %v7373_v7 = vpop.eup %7372  ;;  %v2559_v2 = vmul.f32 1.442695, %v2483_v40  ;;  %v2485_v18 = vsub.f32 %v9493_v25, %v2398_v61  ;;  %v2486_v36 = vsub.f32 %v9497_v37, %v2398_v61  ;;  %v1829_v4 = vpop.f32.mrb[169].mxu0  ;;  %v2561_v19 = vmul.f32 1.442695, %v2484_v44 }
 0x520   : > { %v7375_v16 = vpop.eup %7374  ;;  %3392 = vmatpush1.bf16.msra.mxu0 %v12446_v59  ;;  %6739 = vmatpush3.bf16.msra.mxu1 %v12332_v6  ;;  %v9737_v29 = vpop.f32.mrb[170].mxu0  ;;  %v2665_v53 = vpack.c.bf16 %v7373_v7, %v7369_v14  ;;  %v12450_v37 = vld [vmem:[#allocation48_spill] sm:$0xff]  ;;  %v12452_v41 = vld [vmem:[#allocation53_spill] sm:$0xff]  ;;  %v12453_v61 = vld [vmem:[#allocation51_spill] sm:$0xff] }
 0x521   : > { %12447 = vst [vmem:[#allocation56_spill] sm:$0xff] %v9737_v29  ;;  %4095 = vmatprep.subr.bf16.mxu0 %v12448_v39  ;;  %v2563_v40 = vmul.f32 1.442695, %v2485_v18  ;;  %v2565_v25 = vmul.f32 1.442695, %v2486_v36  ;;  %v12451_v28 = vpack.c.bf16 %v12449_v49, %v12450_v37  ;;  %v1832_v44 = vpop.f32.mrb[171].mxu0  ;;  %v2666_v62 = vpack.c.bf16 %v7375_v16, %v7371_v55  ;;  %6740 = vmatprep.subr.bf16.mxu1 %v12332_v6 }
 0x522   : > { %7384 = vpow2.f32 %v2559_v2  ;;  %v12454_v4 = vpack.c.bf16 %v12452_v41, %v12453_v61 }
 0x523   : > { %3310 = vxpose.xlu1.c.b16.end [2/2] (short) %v12451_v28, 128  ;;  %7386 = vpow2.f32 %v2563_v40  ;;  %2735 = vmatprep.mubr.bf16.mxu0 %v2666_v62  ;;  %v7377_v1 = vpop.eup %7376 }
 0x524   : > { %3326 = vxpose.xlu0.c.b16.end [2/2] (short) %v12454_v4, 128  ;;  %2928 = vmatprep.mubr.bf16.mxu1 %v2666_v62  ;;  %7388 = vpow2.f32 %v2565_v25  ;;  %v2401_v52 = vpop.xlane.xlu1 %2400 }
 0x525   : > { %6741 = vmatpush3.bf16.msra.mxu1 %v12332_v6  ;;  %2736 = vmatmul.mubr.bf16.gmra.mrb[180].mxu0 %v2665_v53  ;;  %v7379_v14 = vpop.eup %7378  ;;  %7390 = vpow2.f32 %v2561_v19  ;;  %v2487_v55 = vsub.f32 %v9501_v42, %v2401_v52  ;;  %v2488_v7 = vsub.f32 %v9503_v26, %v2401_v52 }
 0x526   : > { %2929 = vmatmul.mubr.bf16.gmra.mrb[180].mxu1 %v2665_v53  ;;  %6742 = vmatprep.subr.bf16.mxu1 %v12332_v6  ;;  %v7381_v2 = vpop.eup %7380  ;;  %v2404_v18 = vpop.xlane.xlu0 %2403  ;;  %v2667_v16 = vpack.c.bf16 %v7379_v14, %v7377_v1 }
 0x527   : > { %v9753_v36 = vpop.f32.mrb[172].mxu0  ;;  %v7383_v23 = vpop.eup %7382  ;;  %v2567_v24 = vmul.f32 1.442695, %v2487_v55  ;;  %v2489_v59 = vsub.f32 %v9505_v32, %v2404_v18  ;;  %v2490_v39 = vsub.f32 %v9509_v27, %v2404_v18  ;;  %v2569_v19 = vmul.f32 1.442695, %v2488_v7 }
 0x528   : > { %12455 = vst [vmem:[#allocation69_spill] sm:$0xff] %v9753_v36  ;;  %v1837_v40 = vpop.f32.mrb[173].mxu0  ;;  %v2668_v42 = vpack.c.bf16 %v7381_v2, %v7383_v23 }
 0x529   : > { %6743 = vmatpush3.bf16.msra.mxu1 %v12332_v6  ;;  %v9758_v53 = vpop.f32.mrb[174].mxu0  ;;  %v2571_v26 = vmul.f32 1.442695, %v2489_v59  ;;  %v2573_v25 = vmul.f32 1.442695, %v2490_v39  ;;  %7392 = vpow2.f32 %v2567_v24 }
 0x52a   : > { %12456 = vst [vmem:[#allocation67_spill] sm:$0xff] %v9758_v53  ;;  %6744 = vmatprep.subr.bf16.mxu1 %v12332_v6  ;;  %v1840_v49 = vpop.f32.mrb[175].mxu0  ;;  %2743 = vmatprep.mubr.bf16.mxu0 %v2668_v42 }
 0x52b   : > { %2936 = vmatprep.mubr.bf16.mxu1 %v2668_v42  ;;  %7394 = vpow2.f32 %v2571_v26  ;;  %v12457_v49 = vld [vmem:[#allocation63_spill] sm:$0xff] }
 0x52c   : > { %v7385_v37 = vpop.eup %7384  ;;  %7396 = vpow2.f32 %v2573_v25  ;;  %v2407_v27 = vpop.xlane.xlu1 %2406 }
 0x52d   : > { %6745 = vmatpush3.bf16.msra.mxu1 %v12332_v6  ;;  %2744 = vmatmul.mubr.bf16.gmra.mrb[184].mxu0 %v2667_v16  ;;  %v7387_v32 = vpop.eup %7386  ;;  %7398 = vpow2.f32 %v2569_v19  ;;  %v2491_v28 = vsub.f32 %v9513_v17, %v2407_v27  ;;  %v2492_v44 = vsub.f32 %v9515_v33, %v2407_v27 }
 0x52e   : > { %2937 = vmatmul.mubr.bf16.gmra.mrb[184].mxu1 %v2667_v16  ;;  %6746 = vmatprep.subr.bf16.mxu1 %v12332_v6  ;;  %v7389_v62 = vpop.eup %7388  ;;  %v2410_v41 = vpop.xlane.xlu0 %2409  ;;  %v2669_v61 = vpack.c.bf16 %v7387_v32, %v7385_v37  ;;  %v12458_v37 = vld [vmem:[#allocation62_spill] sm:$0xff] }
 0x52f   : > { %v7391_v4 = vpop.eup %7390  ;;  %v2575_v1 = vmul.f32 1.442695, %v2491_v28  ;;  %v2493_v52 = vsub.f32 %v9517_v60, %v2410_v41  ;;  %v2494_v14 = vsub.f32 %v9521_v15, %v2410_v41  ;;  %v2577_v7 = vmul.f32 1.442695, %v2492_v44 }
 0x530   : > { %v2670_v55 = vpack.c.bf16 %v7389_v62, %v7391_v4 }
 0x531   : > { %6747 = vmatpush3.bf16.msra.mxu1 %v12332_v6  ;;  %v2579_v2 = vmul.f32 1.442695, %v2493_v52  ;;  %v2581_v18 = vmul.f32 1.442695, %v2494_v14  ;;  %7400 = vpow2.f32 %v2575_v1 }
 0x532   : > { %6748 = vmatprep.subr.bf16.mxu1 %v12332_v6  ;;  %2751 = vmatprep.mubr.bf16.mxu0 %v2670_v55 }
 0x533   : > { %2944 = vmatprep.mubr.bf16.mxu1 %v2670_v55  ;;  %7402 = vpow2.f32 %v2579_v2  ;;  %v7393_v33 = vpop.eup %7392 }
 0x534   : > { %7404 = vpow2.f32 %v2581_v18  ;;  %v2413_v17 = vpop.xlane.xlu1 %2412 }
 0x535   : > { %6749 = vmatpush3.bf16.msra.mxu1 %v12332_v6  ;;  %2752 = vmatmul.mubr.bf16.gmra.mrb[188].mxu0 %v2669_v61  ;;  %v7395_v60 = vpop.eup %7394  ;;  %7406 = vpow2.f32 %v2577_v7  ;;  %v2495_v15 = vsub.f32 %v9525_v22, %v2413_v17  ;;  %v2496_v16 = vsub.f32 %v9527_v11, %v2413_v17  ;;  %v12459_v22 = vpack.c.bf16 %v12457_v49, %v12458_v37 }
 0x536   : > { %2945 = vmatmul.mubr.bf16.gmra.mrb[188].mxu1 %v2669_v61  ;;  %6750 = vmatprep.subr.bf16.mxu1 %v12332_v6  ;;  %v7397_v23 = vpop.eup %7396  ;;  %v2416_v24 = vpop.xlane.xlu0 %2415  ;;  %v2671_v59 = vpack.c.bf16 %v7395_v60, %v7393_v33 }
 0x537   : > { %v7399_v39 = vpop.eup %7398  ;;  %v2583_v40 = vmul.f32 1.442695, %v2495_v15  ;;  %v2497_v19 = vsub.f32 %v9529_v30, %v2416_v24  ;;  %v2498_v42 = vsub.f32 %v9533_v43, %v2416_v24  ;;  %v2585_v25 = vmul.f32 1.442695, %v2496_v16 }
 0x538   : > { %v2672_v26 = vpack.c.bf16 %v7397_v23, %v7399_v39 }
 0x539   : > { %6751 = vmatpush3.bf16.msra.mxu1 %v12332_v6  ;;  %v2587_v11 = vmul.f32 1.442695, %v2497_v19  ;;  %v2589_v27 = vmul.f32 1.442695, %v2498_v42  ;;  %7408 = vpow2.f32 %v2583_v40 }
 0x53a   : > { %4596 = vmatprep.subr.bf16.mxu1 %v12459_v22  ;;  %2759 = vmatprep.mubr.bf16.mxu0 %v2672_v26 }
 0x53b   : > { %2952 = vmatprep.mubr.bf16.mxu1 %v2672_v26  ;;  %7410 = vpow2.f32 %v2587_v11  ;;  %v7401_v32 = vpop.eup %7400 }
 0x53c   : > { %7412 = vpow2.f32 %v2589_v27  ;;  %v2419_v30 = vpop.xlane.xlu1 %2418 }
 0x53d   : > { %2760 = vmatmul.mubr.bf16.gmra.mrb[192].mxu0 %v2671_v59  ;;  %v7403_v28 = vpop.eup %7402  ;;  %7414 = vpow2.f32 %v2585_v25  ;;  %v2499_v43 = vsub.f32 %v9537_v13, %v2419_v30  ;;  %v2500_v44 = vsub.f32 %v9539_v20, %v2419_v30 }
 0x53e   : > { %2953 = vmatmul.mubr.bf16.gmra.mrb[192].mxu1 %v2671_v59  ;;  %v7405_v62 = vpop.eup %7404  ;;  %v2422_v41 = vpop.xlane.xlu0 %2421  ;;  %v2673_v61 = vpack.c.bf16 %v7403_v28, %v7401_v32 }
 0x53f   : > { %v7407_v4 = vpop.eup %7406  ;;  %v2591_v1 = vmul.f32 1.442695, %v2499_v43  ;;  %v2501_v52 = vsub.f32 %v9541_v31, %v2422_v41  ;;  %v2502_v14 = vsub.f32 %v9545_v0, %v2422_v41  ;;  %v2593_v7 = vmul.f32 1.442695, %v2500_v44 }
 0x540   : > { %v2674_v55 = vpack.c.bf16 %v7405_v62, %v7407_v4 }
 0x541   : > { %v2595_v2 = vmul.f32 1.442695, %v2501_v52  ;;  %v2597_v18 = vmul.f32 1.442695, %v2502_v14  ;;  %7416 = vpow2.f32 %v2591_v1 }
 0x542   : > { %2767 = vmatprep.mubr.bf16.mxu0 %v2674_v55  ;;  %2960 = vmatprep.mubr.bf16.mxu1 %v2674_v55 }
 0x543   : > { %7418 = vpow2.f32 %v2595_v2  ;;  %v7409_v13 = vpop.eup %7408 }
 0x544   : > { %7420 = vpow2.f32 %v2597_v18  ;;  %v2425_v20 = vpop.xlane.xlu1 %2424 }
 0x545   : > { %2768 = vmatmul.mubr.bf16.gmra.mrb[196].mxu0 %v2673_v61  ;;  %v7411_v33 = vpop.eup %7410  ;;  %7422 = vpow2.f32 %v2593_v7  ;;  %v2503_v17 = vsub.f32 %v9553_v47, %v2425_v20  ;;  %v2504_v31 = vsub.f32 %v9555_v10, %v2425_v20 }
 0x546   : > { %2961 = vmatmul.mubr.bf16.gmra.mrb[196].mxu1 %v2673_v61  ;;  %v7413_v0 = vpop.eup %7412  ;;  %v2428_v60 = vpop.xlane.xlu0 %2427  ;;  %v2675_v15 = vpack.c.bf16 %v7411_v33, %v7409_v13 }
 0x547   : > { %v7415_v16 = vpop.eup %7414  ;;  %v2599_v23 = vmul.f32 1.442695, %v2503_v17  ;;  %v2505_v24 = vsub.f32 %v9557_v9, %v2428_v60  ;;  %v2506_v59 = vsub.f32 %v9561_v8, %v2428_v60  ;;  %v2601_v40 = vmul.f32 1.442695, %v2504_v31 }
 0x548   : > { %v2676_v39 = vpack.c.bf16 %v7413_v0, %v7415_v16 }
 0x549   : > { %v2603_v19 = vmul.f32 1.442695, %v2505_v24  ;;  %v2605_v42 = vmul.f32 1.442695, %v2506_v59  ;;  %7424 = vpow2.f32 %v2599_v23  ;;  %v12461_v23 = vld [vmem:[#allocation84_spill] sm:$0xff] }
 0x54a   : > { %2775 = vmatprep.mubr.bf16.mxu0 %v2676_v39  ;;  %2968 = vmatprep.mubr.bf16.mxu1 %v2676_v39 }
 0x54b   : > { %7426 = vpow2.f32 %v2603_v19  ;;  %v7417_v47 = vpop.eup %7416 }
 0x54c   : > { %7428 = vpow2.f32 %v2605_v42  ;;  %v2431_v10 = vpop.xlane.xlu1 %2430 }
 0x54d   : > { %2776 = vmatmul.mubr.bf16.gmra.mrb[200].mxu0 %v2675_v15  ;;  %v7419_v26 = vpop.eup %7418  ;;  %7430 = vpow2.f32 %v2601_v40  ;;  %v2507_v25 = vsub.f32 %v9569_v56, %v2431_v10  ;;  %v2508_v9 = vsub.f32 %v9571_v46, %v2431_v10 }
 0x54e   : > { %2969 = vmatmul.mubr.bf16.gmra.mrb[200].mxu1 %v2675_v15  ;;  %v7421_v8 = vpop.eup %7420  ;;  %v2434_v49 = vpop.xlane.xlu0 %2433  ;;  %v2677_v37 = vpack.c.bf16 %v7419_v26, %v7417_v47  ;;  %v12460_v15 = vld [vmem:[#allocation81_spill] sm:$0xff]  ;;  %v12463_v26 = vld [vmem:[#allocation88_spill] sm:$0xff] }
 0x54f   : > { %v7423_v22 = vpop.eup %7422  ;;  %v2607_v11 = vmul.f32 1.442695, %v2507_v25  ;;  %v2509_v27 = vsub.f32 %v9573_v45, %v2434_v49  ;;  %v2510_v32 = vsub.f32 %v9577_v51, %v2434_v49  ;;  %v2609_v28 = vmul.f32 1.442695, %v2508_v9  ;;  %v12462_v47 = vld [vmem:[#allocation85_spill] sm:$0xff] }
 0x550   : > { %v2678_v30 = vpack.c.bf16 %v7421_v8, %v7423_v22 }
 0x551   : > { %v2611_v43 = vmul.f32 1.442695, %v2509_v27  ;;  %v2613_v44 = vmul.f32 1.442695, %v2510_v32  ;;  %7432 = vpow2.f32 %v2607_v11  ;;  %v12464_v11 = vld [vmem:[#allocation87_spill] sm:$0xff] }
 0x552   : > { %2783 = vmatprep.mubr.bf16.mxu0 %v2678_v30  ;;  %2976 = vmatprep.mubr.bf16.mxu1 %v2678_v30  ;;  %v12465_v32 = vld [vmem:[#allocation99_spill] sm:$0xff] }
 0x553   : > { %7434 = vpow2.f32 %v2611_v43  ;;  %v7425_v56 = vpop.eup %7424 }
 0x554   : > { %7436 = vpow2.f32 %v2613_v44  ;;  %v2437_v46 = vpop.xlane.xlu1 %2436 }
 0x555   : > { %2784 = vmatmul.mubr.bf16.gmra.mrb[204].mxu0 %v2677_v37  ;;  %v7427_v62 = vpop.eup %7426  ;;  %7438 = vpow2.f32 %v2609_v28  ;;  %v2511_v41 = vsub.f32 %v9585_v12, %v2437_v46  ;;  %v2512_v45 = vsub.f32 %v9587_v63, %v2437_v46 }
 0x556   : > { %2977 = vmatmul.mubr.bf16.gmra.mrb[204].mxu1 %v2677_v37  ;;  %v7429_v51 = vpop.eup %7428  ;;  %v2440_v61 = vpop.xlane.xlu0 %2439  ;;  %v2679_v4 = vpack.c.bf16 %v7427_v62, %v7425_v56 }
 0x557   : > { %v7431_v1 = vpop.eup %7430  ;;  %v2615_v52 = vmul.f32 1.442695, %v2511_v41  ;;  %v2513_v14 = vsub.f32 %v9589_v54, %v2440_v61  ;;  %v2514_v55 = vsub.f32 %v9593_v38, %v2440_v61  ;;  %v2617_v2 = vmul.f32 1.442695, %v2512_v45  ;;  %v12466_v45 = vld [vmem:[#allocation102_spill] sm:$0xff]  ;;  %v12467_v61 = vld [vmem:[#allocation103_spill] sm:$0xff] }
 0x558   : > { %v2680_v7 = vpack.c.bf16 %v7429_v51, %v7431_v1 }
 0x559   : > { %v2619_v18 = vmul.f32 1.442695, %v2513_v14  ;;  %v2621_v13 = vmul.f32 1.442695, %v2514_v55  ;;  %7440 = vpow2.f32 %v2615_v52 }
 0x55a   : > { %2791 = vmatprep.mubr.bf16.mxu0 %v2680_v7  ;;  %2984 = vmatprep.mubr.bf16.mxu1 %v2680_v7 }
 0x55b   : > { %7442 = vpow2.f32 %v2619_v18  ;;  %v7433_v12 = vpop.eup %7432 }
 0x55c   : > { %7444 = vpow2.f32 %v2621_v13  ;;  %v2443_v63 = vpop.xlane.xlu1 %2442  ;;  %v12469_v13 = vld [vmem:[#allocation105_spill] sm:$0xff] }
 0x55d   : > { %2792 = vmatmul.mubr.bf16.gmra.mrb[208].mxu0 %v2679_v4  ;;  %v7435_v20 = vpop.eup %7434  ;;  %7446 = vpow2.f32 %v2617_v2  ;;  %v2515_v33 = vsub.f32 %v9601_v5, %v2443_v63  ;;  %v2516_v54 = vsub.f32 %v9603_v3, %v2443_v63  ;;  %v12468_v2 = vld [vmem:[#allocation104_spill] sm:$0xff] }
 0x55e   : > { %2985 = vmatmul.mubr.bf16.gmra.mrb[208].mxu1 %v2679_v4  ;;  %v7437_v38 = vpop.eup %7436  ;;  %v2446_v17 = vpop.xlane.xlu0 %2445  ;;  %v2681_v31 = vpack.c.bf16 %v7435_v20, %v7433_v12 }
 0x55f   : > { %v7439_v0 = vpop.eup %7438  ;;  %v2623_v60 = vmul.f32 1.442695, %v2515_v33  ;;  %v2517_v16 = vsub.f32 %v12460_v15, %v2446_v17  ;;  %v2518_v24 = vsub.f32 %v12461_v23, %v2446_v17  ;;  %v2625_v39 = vmul.f32 1.442695, %v2516_v54  ;;  %v12471_v15 = vld [vmem:[#allocation109_spill] sm:$0xff] }
 0x560   : > { %v2682_v59 = vpack.c.bf16 %v7437_v38, %v7439_v0  ;;  %v12470_v0 = vld [vmem:[#allocation108_spill] sm:$0xff] }
 0x561   : > { %v2627_v40 = vmul.f32 1.442695, %v2517_v16  ;;  %v2629_v19 = vmul.f32 1.442695, %v2518_v24  ;;  %7448 = vpow2.f32 %v2623_v60 }
 0x562   : > { %2799 = vmatprep.mubr.bf16.mxu0 %v2682_v59  ;;  %2992 = vmatprep.mubr.bf16.mxu1 %v2682_v59 }
 0x563   : > { %7450 = vpow2.f32 %v2627_v40  ;;  %v7441_v5 = vpop.eup %7440 }
 0x564   : > { %7452 = vpow2.f32 %v2629_v19  ;;  %v2449_v3 = vpop.xlane.xlu1 %2448 }
 0x565   : > { %2800 = vmatmul.mubr.bf16.gmra.mrb[212].mxu0 %v2681_v31  ;;  %v7443_v42 = vpop.eup %7442  ;;  %7454 = vpow2.f32 %v2625_v39  ;;  %v2519_v10 = vsub.f32 %v12462_v47, %v2449_v3  ;;  %v2520_v25 = vsub.f32 %v12463_v26, %v2449_v3 }
 0x566   : > { %2993 = vmatmul.mubr.bf16.gmra.mrb[212].mxu1 %v2681_v31  ;;  %v7445_v9 = vpop.eup %7444  ;;  %v2452_v8 = vpop.xlane.xlu0 %2451  ;;  %v2683_v49 = vpack.c.bf16 %v7443_v42, %v7441_v5  ;;  %v12472_v5 = vld [vmem:[#allocation110_spill] sm:$0xff]  ;;  %v12473_v42 = vld [vmem:[#allocation111_spill] sm:$0xff] }
 0x567   : > { %v7447_v37 = vpop.eup %7446  ;;  %v2631_v22 = vmul.f32 1.442695, %v2519_v10  ;;  %v2521_v27 = vsub.f32 %v12464_v11, %v2452_v8  ;;  %v2522_v30 = vsub.f32 %v12465_v32, %v2452_v8  ;;  %v2633_v43 = vmul.f32 1.442695, %v2520_v25  ;;  %v12475_v11 = vld [vmem:[#allocation115_spill] sm:$0xff] }
 0x568   : > { %v2684_v28 = vpack.c.bf16 %v7445_v9, %v7447_v37  ;;  %v12474_v37 = vld [vmem:[#allocation114_spill] sm:$0xff] }
 0x569   : > { %v2635_v44 = vmul.f32 1.442695, %v2521_v27  ;;  %v2637_v56 = vmul.f32 1.442695, %v2522_v30  ;;  %7456 = vpow2.f32 %v2631_v22 }
 0x56a   : > { %2807 = vmatprep.mubr.bf16.mxu0 %v2684_v28  ;;  %3000 = vmatprep.mubr.bf16.mxu1 %v2684_v28 }
 0x56b   : > { %7458 = vpow2.f32 %v2635_v44  ;;  %v7449_v46 = vpop.eup %7448 }
 0x56c   : > { %7460 = vpow2.f32 %v2637_v56  ;;  %v2455_v62 = vpop.xlane.xlu1 %2454 }
 0x56d   : > { %2808 = vmatmul.mubr.bf16.gmra.mrb[216].mxu0 %v2683_v49  ;;  %v7451_v41 = vpop.eup %7450  ;;  %7462 = vpow2.f32 %v2633_v43  ;;  %v2523_v51 = vsub.f32 %v12466_v45, %v2455_v62  ;;  %v2524_v4 = vsub.f32 %v12467_v61, %v2455_v62  ;;  %v12476_v62 = vld [vmem:[#allocation116_spill] sm:$0xff] }
 0x56e   : > { %3001 = vmatmul.mubr.bf16.gmra.mrb[216].mxu1 %v2683_v49  ;;  %v7453_v1 = vpop.eup %7452  ;;  %v2458_v52 = vpop.xlane.xlu0 %2457  ;;  %v2685_v14 = vpack.c.bf16 %v7451_v41, %v7449_v46 }
 0x56f   : > { %v7455_v55 = vpop.eup %7454  ;;  %v2639_v7 = vmul.f32 1.442695, %v2523_v51  ;;  %v2525_v18 = vsub.f32 %v12468_v2, %v2458_v52  ;;  %v2526_v12 = vsub.f32 %v12469_v13, %v2458_v52  ;;  %v2641_v20 = vmul.f32 1.442695, %v2524_v4 }
 0x570   : > { %v2686_v63 = vpack.c.bf16 %v7453_v1, %v7455_v55 }
 0x571   : > { %v2643_v33 = vmul.f32 1.442695, %v2525_v18  ;;  %v2645_v54 = vmul.f32 1.442695, %v2526_v12  ;;  %7464 = vpow2.f32 %v2639_v7 }
 0x572   : > { %2815 = vmatprep.mubr.bf16.mxu0 %v2686_v63  ;;  %3008 = vmatprep.mubr.bf16.mxu1 %v2686_v63 }
 0x573   : > { %7466 = vpow2.f32 %v2643_v33  ;;  %v7457_v38 = vpop.eup %7456 }
 0x574   : > { %7468 = vpow2.f32 %v2645_v54  ;;  %v2461_v17 = vpop.xlane.xlu1 %2460  ;;  %v12478_v54 = vld [vmem:[#allocation96_spill] sm:$0xff] }
 0x575   : > { %2816 = vmatmul.mubr.bf16.gmra.mrb[220].mxu0 %v2685_v14  ;;  %v7459_v31 = vpop.eup %7458  ;;  %7470 = vpow2.f32 %v2641_v20  ;;  %v2527_v60 = vsub.f32 %v12470_v0, %v2461_v17  ;;  %v2528_v16 = vsub.f32 %v12471_v15, %v2461_v17  ;;  %v12477_v20 = vmov 0   ;;  %v12482_v0 = vld [vmem:[#allocation93_spill] sm:$0xff] }
 0x576   : > { %3009 = vmatmul.mubr.bf16.gmra.mrb[220].mxu1 %v2685_v14  ;;  %v7461_v23 = vpop.eup %7460  ;;  %v2464_v24 = vpop.xlane.xlu0 %2463  ;;  %v2687_v59 = vpack.c.bf16 %v7459_v31, %v7457_v38  ;;  %v12479_v38 = vld [vmem:[#allocation90_spill] sm:$0xff]  ;;  %v12481_v31 = vld [vmem:[#allocation97_spill] sm:$0xff] }
 0x577   : > { %v7463_v39 = vpop.eup %7462  ;;  %v2647_v40 = vmul.f32 1.442695, %v2527_v60  ;;  %v2649_v19 = vmul.f32 1.442695, %v2528_v16  ;;  %v2529_v3 = vsub.f32 %v12472_v5, %v2464_v24  ;;  %v2530_v47 = vsub.f32 %v12473_v42, %v2464_v24  ;;  %v12484_v16 = vld [vmem:[#allocation98_spill] sm:$0xff] }
 0x578   : > { %v2688_v10 = vpack.c.bf16 %v7461_v23, %v7463_v39  ;;  %v12480_v17 = vpack.c.bf16 %v12478_v54, %v12479_v38  ;;  %v12483_v60 = vpack.c.bf16 %v12481_v31, %v12482_v0  ;;  %v12485_v23 = vld [vmem:[#allocation94_spill] sm:$0xff] }
 0x579   : > { %7472 = vpow2.f32 %v2647_v40  ;;  %v2651_v26 = vmul.f32 1.442695, %v2529_v3  ;;  %v2653_v25 = vmul.f32 1.442695, %v2530_v47  ;;  %v12486_v24 = vpack.c.bf16 %v12484_v16, %v12485_v23 }
 0x57a   : > { %7474 = vpow2.f32 %v2649_v19  ;;  %2823 = vmatprep.mubr.bf16.mxu0 %v2688_v10  ;;  %3016 = vmatprep.mubr.bf16.mxu1 %v2688_v10 }
 0x57b   : > { %7476 = vpow2.f32 %v2651_v26  ;;  %v7465_v9 = vpop.eup %7464 }
 0x57c   : > { %7478 = vpow2.f32 %v2653_v25  ;;  %v2467_v8 = vpop.xlane.xlu1 %2466 }
 0x57d   : > { %2824 = vmatmul.mubr.bf16.gmra.mrb[224].mxu0 %v2687_v59  ;;  %v7467_v49 = vpop.eup %7466  ;;  %v2531_v22 = vsub.f32 %v12474_v37, %v2467_v8  ;;  %v2532_v27 = vsub.f32 %v12475_v11, %v2467_v8 }
 0x57e   : > { %3017 = vmatmul.mubr.bf16.gmra.mrb[224].mxu1 %v2687_v59  ;;  %v7469_v32 = vpop.eup %7468  ;;  %v2470_v30 = vpop.xlane.xlu0 %2469  ;;  %v2689_v28 = vpack.c.bf16 %v7467_v49, %v7465_v9 }
 0x57f   : > { %v7471_v43 = vpop.eup %7470  ;;  %v2655_v44 = vmul.f32 1.442695, %v2531_v22  ;;  %v2657_v56 = vmul.f32 1.442695, %v2532_v27  ;;  %v2533_v46 = vsub.f32 %v9669_v35, %v2470_v30  ;;  %v2534_v41 = vsub.f32 %v12476_v62, %v2470_v30 }
 0x580   : > { %v2690_v45 = vpack.c.bf16 %v7469_v32, %v7471_v43 }
 0x581   : > { %7480 = vpow2.f32 %v2655_v44  ;;  %v2659_v51 = vmul.f32 1.442695, %v2533_v46  ;;  %v2661_v61 = vmul.f32 1.442695, %v2534_v41 }
 0x582   : > { %7482 = vpow2.f32 %v2657_v56  ;;  %2831 = vmatprep.mubr.bf16.mxu0 %v2690_v45  ;;  %3024 = vmatprep.mubr.bf16.mxu1 %v2690_v45 }
 0x583   : > { %v7473_v4 = vpop.eup %7472  ;;  %7484 = vpow2.f32 %v2659_v51 }
 0x584   : > { %v7475_v1 = vpop.eup %7474  ;;  %7486 = vpow2.f32 %v2661_v61 }
 0x585   : > { %2832 = vmatmul.mubr.bf16.gmra.mrb[228].mxu0 %v2689_v28  ;;  %v7477_v52 = vpop.eup %7476  ;;  %v3317_v33 = vpop.trf.xlu1 }
 0x586   : > { %3025 = vmatmul.mubr.bf16.gmra.mrb[228].mxu1 %v2689_v28  ;;  %v7479_v14 = vpop.eup %7478  ;;  %v2691_v55 = vpack.c.bf16 %v7477_v52, %v7473_v4  ;;  %v3333_v42 = vpop.trf.xlu0 }
 0x587   : > { %v2692_v7 = vpack.c.bf16 %v7479_v14, %v7475_v1 }
 0x589   : > { %2839 = vmatprep.mubr.bf16.mxu0 %v2692_v7  ;;  %3032 = vmatprep.mubr.bf16.mxu1 %v2692_v7  ;;  %v3318_v15 = vpop.trf.xlu1 }
 0x58a   : > { %v3334_v47 = vpop.trf.xlu0 }
 0x58b   : > { %v7481_v35 = vpop.eup %7480 }
 0x58c   : > { %v7483_v2 = vpop.eup %7482 }
 0x58d   : > { %2840 = vmatmul.mubr.bf16.gmra.mrb[232].mxu0 %v2691_v55  ;;  %v7485_v18 = vpop.eup %7484  ;;  %v3319_v59 = vpop.trf.xlu1 }
 0x58e   : > { %3033 = vmatmul.mubr.bf16.gmra.mrb[232].mxu1 %v2691_v55  ;;  %v7487_v13 = vpop.eup %7486  ;;  %v2693_v12 = vpack.c.bf16 %v7485_v18, %v7481_v35  ;;  %v3335_v10 = vpop.trf.xlu0 }
 0x58f   : > { %v2694_v63 = vpack.c.bf16 %v7487_v13, %v7483_v2 }
 0x591   : > { %2847 = vmatprep.mubr.bf16.mxu0 %v2694_v63  ;;  %3040 = vmatprep.mubr.bf16.mxu1 %v2694_v63  ;;  %v3320_v39 = vpop.trf.xlu1 }
 0x592   : > { %v3336_v26 = vpop.trf.xlu0 }
 0x595   : > { %2848 = vmatmul.mubr.bf16.gmra.mrb[236].mxu0 %v2693_v12  ;;  %v3321_v40 = vpop.trf.xlu1 }
 0x596   : > { %3041 = vmatmul.mubr.bf16.gmra.mrb[236].mxu1 %v2693_v12  ;;  %3421 = vmatprep.mubr.bf16.mxu0 %v12477_v20  ;;  %v3337_v43 = vpop.trf.xlu0 }
 0x599   : > { %v3322_v19 = vpop.trf.xlu1 }
 0x59a   : > { %v3338_v52 = vpop.trf.xlu0 }
 0x59d   : > { %6453 = vmatmul.mubr.msk.bf16.vlgmr.msra.gmra.mrb[240].mxu0 %vm926_vm1, %v3317_v33  ;;  %v3323_v5 = vpop.trf.xlu1 }
 0x59e   : > { %4096 = vmatpush1.bf16.xpose.msra.mxu0 %v12480_v17  ;;  %3431 = vmatprep.mubr.bf16.mxu0 %v12477_v20  ;;  %v3339_v54 = vpop.trf.xlu0 }
 0x59f   : > { %4097 = vmatprep.subr.bf16.mxu0 %v12483_v60 }
 0x5a1   : > { %v3324_v3 = vpop.trf.xlu1 }
 0x5a5   : > { %6454 = vmatmul.mubr.msk.bf16.gmra.mrb[244].mxu0 %vm926_vm1, %v3318_v15 }
 0x5a6   : > { %4098 = vmatpush1.bf16.xpose.msra.mxu0 %v12486_v24  ;;  %3441 = vmatprep.mubr.bf16.mxu0 %v12477_v20 }
 0x5a7   : > { %6848 = vmatprep.subr.bf16.mxu0 %v12332_v6 }
 0x5ad   : > { %6455 = vmatmul.mubr.msk.bf16.gmra.mrb[248].mxu0 %vm926_vm1, %v3319_v59 }
 0x5ae   : > { %3451 = vmatprep.mubr.bf16.mxu0 %v12477_v20 }
 0x5b5   : > { %6456 = vmatmul.mubr.msk.bf16.gmra.mrb[252].mxu0 %vm926_vm1, %v3320_v39  ;;  %v3340_v39 = vpop.trf.xlu0 }
 0x5b6   : > { %3461 = vmatprep.mubr.bf16.mxu0 %v12477_v20 }
 0x5bd   : > { %6457 = vmatmul.mubr.msk.bf16.gmra.mrb[0].mxu0 %vm926_vm1, %v3321_v40 }
 0x5be   : > { %3471 = vmatprep.mubr.bf16.mxu0 %v12477_v20 }
 0x5c5   : > { %6458 = vmatmul.mubr.msk.bf16.gmra.mrb[4].mxu0 %vm926_vm1, %v3322_v19 }
 0x5c6   : > { %3481 = vmatprep.mubr.bf16.mxu0 %v12477_v20 }
 0x5cd   : > { %6459 = vmatmul.mubr.msk.bf16.gmra.mrb[8].mxu0 %vm926_vm1, %v3323_v5 }
 0x5ce   : > { %3491 = vmatprep.mubr.bf16.mxu0 %v12477_v20 }
 0x5d5   : > { %6460 = vmatmul.mubr.msk.bf16.gmra.mrb[12].mxu0 %vm926_vm1, %v3324_v3 }
 0x5d6   : > { %3501 = vmatprep.mubr.bf16.mxu0 %v12477_v20 }
 0x5dd   : > { %6461 = vmatmul.mubr.msk.bf16.gmra.mrb[16].mxu0 %vm926_vm1, %v3333_v42 }
 0x5de   : > { %3511 = vmatprep.mubr.bf16.mxu0 %v12477_v20 }
 0x5e5   : > { %6462 = vmatmul.mubr.msk.bf16.gmra.mrb[20].mxu0 %vm926_vm1, %v3334_v47 }
 0x5e6   : > { %3521 = vmatprep.mubr.bf16.mxu0 %v12477_v20 }
 0x5ed   : > { %6463 = vmatmul.mubr.msk.bf16.gmra.mrb[24].mxu0 %vm926_vm1, %v3335_v10 }
 0x5ee   : > { %3531 = vmatprep.mubr.bf16.mxu0 %v12477_v20  ;;  %v6640_v25 = vpop.f32.mrb[176].mxu0  ;;  %v9848_v9 = vpop.f32.mrb[176].mxu1 }
 0x5ef   : > { %12487 = vst [vmem:[#allocation41_spill] sm:$0xff] %v9848_v9  ;;  %v6641_v8 = vpop.f32.mrb[177].mxu0  ;;  %v2924_v49 = vpop.f32.mrb[177].mxu1 }
 0x5f0   : > { %v9850_v37 = vadd.f32 %v6641_v8, %v6640_v25  ;;  %v6643_v22 = vpop.f32.mrb[178].mxu0  ;;  %v9852_v11 = vpop.f32.mrb[178].mxu1 }
 0x5f1   : > { %12489 = vst [vmem:[#allocation45_spill] sm:$0xff] %v9852_v11  ;;  %v6644_v27 = vpop.f32.mrb[179].mxu0  ;;  %v2927_v32 = vpop.f32.mrb[179].mxu1 }
 0x5f2   : > { %12488 = vst [vmem:[#allocation40_spill] sm:$0xff] %v9850_v37  ;;  %v9854_v30 = vadd.f32 %v6644_v27, %v6643_v22 }
 0x5f4   : > { %12490 = vst [vmem:[#allocation43_spill] sm:$0xff] %v9854_v30 }
 0x5f5   : > { %6464 = vmatmul.mubr.msk.bf16.gmra.mrb[28].mxu0 %vm926_vm1, %v3336_v26 }
 0x5f6   : > { %3541 = vmatprep.mubr.bf16.mxu0 %v12477_v20 }
 0x5f8   : > { %v6646_v28 = vpop.f32.mrb[180].mxu0 }
 0x5f9   : > { %v9858_v44 = vpop.f32.mrb[180].mxu1  ;;  %v6647_v56 = vpop.f32.mrb[181].mxu0 }
 0x5fa   : > { %12491 = vst [vmem:[#allocation65_spill] sm:$0xff] %v9858_v44  ;;  %v9860_v46 = vadd.f32 %v6647_v56, %v6646_v28  ;;  %v2932_v62 = vpop.f32.mrb[181].mxu1  ;;  %v6649_v41 = vpop.f32.mrb[182].mxu0 }
 0x5fb   : > { %v9862_v45 = vpop.f32.mrb[182].mxu1  ;;  %v6650_v51 = vpop.f32.mrb[183].mxu0 }
 0x5fc   : > { %12492 = vst [vmem:[#allocation64_spill] sm:$0xff] %v9860_v46  ;;  %12493 = vst [vmem:[#allocation49_spill] sm:$0xff] %v9862_v45  ;;  %v9864_v61 = vadd.f32 %v6650_v51, %v6649_v41  ;;  %v2935_v4 = vpop.f32.mrb[183].mxu1 }
 0x5fd   : > { %6465 = vmatmul.mubr.msk.bf16.gmra.mrb[32].mxu0 %vm926_vm1, %v3337_v43 }
 0x5fe   : > { %12494 = vst [vmem:[#allocation48_spill] sm:$0xff] %v9864_v61  ;;  %3551 = vmatprep.mubr.bf16.mxu0 %v12477_v20 }
 0x600   : > { %v6652_v1 = vpop.f32.mrb[184].mxu0 }
 0x601   : > { %v9868_v14 = vpop.f32.mrb[184].mxu1  ;;  %v6653_v55 = vpop.f32.mrb[185].mxu0 }
 0x602   : > { %12495 = vst [vmem:[#allocation53_spill] sm:$0xff] %v9868_v14  ;;  %v9870_v7 = vadd.f32 %v6653_v55, %v6652_v1  ;;  %v2940_v35 = vpop.f32.mrb[185].mxu1  ;;  %v6655_v2 = vpop.f32.mrb[186].mxu0 }
 0x603   : > { %v9872_v18 = vpop.f32.mrb[186].mxu1  ;;  %v6656_v13 = vpop.f32.mrb[187].mxu0 }
 0x604   : > { %12496 = vst [vmem:[#allocation51_spill] sm:$0xff] %v9870_v7  ;;  %12497 = vst [vmem:[#allocation63_spill] sm:$0xff] %v9872_v18  ;;  %v9874_v12 = vadd.f32 %v6656_v13, %v6655_v2  ;;  %v2943_v63 = vpop.f32.mrb[187].mxu1 }
 0x605   : > { %6466 = vmatmul.mubr.msk.bf16.gmra.mrb[36].mxu0 %vm926_vm1, %v3338_v52 }
 0x606   : > { %12498 = vst [vmem:[#allocation62_spill] sm:$0xff] %v9874_v12  ;;  %3561 = vmatprep.mubr.bf16.mxu0 %v12477_v20 }
 0x608   : > { %v6658_v33 = vpop.f32.mrb[188].mxu0 }
 0x609   : > { %v9878_v38 = vpop.f32.mrb[188].mxu1  ;;  %v6659_v17 = vpop.f32.mrb[189].mxu0 }
 0x60a   : > { %12499 = vst [vmem:[#allocation81_spill] sm:$0xff] %v9878_v38  ;;  %v9880_v31 = vadd.f32 %v6659_v17, %v6658_v33  ;;  %v2948_v0 = vpop.f32.mrb[189].mxu1  ;;  %v6661_v60 = vpop.f32.mrb[190].mxu0 }
 0x60b   : > { %v9882_v15 = vpop.f32.mrb[190].mxu1  ;;  %v6662_v16 = vpop.f32.mrb[191].mxu0 }
 0x60c   : > { %12500 = vst [vmem:[#allocation84_spill] sm:$0xff] %v9880_v31  ;;  %12501 = vst [vmem:[#allocation85_spill] sm:$0xff] %v9882_v15  ;;  %v9884_v23 = vadd.f32 %v6662_v16, %v6661_v60  ;;  %v2951_v24 = vpop.f32.mrb[191].mxu1 }
 0x60d   : > { %6467 = vmatmul.mubr.msk.bf16.gmra.mrb[40].mxu0 %vm926_vm1, %v3339_v54 }
 0x60e   : > { %12502 = vst [vmem:[#allocation88_spill] sm:$0xff] %v9884_v23  ;;  %3571 = vmatprep.mubr.bf16.mxu0 %v12477_v20 }
 0x610   : > { %v6664_v59 = vpop.f32.mrb[192].mxu0 }
 0x611   : > { %v9888_v40 = vpop.f32.mrb[192].mxu1  ;;  %v6665_v19 = vpop.f32.mrb[193].mxu0 }
 0x612   : > { %12503 = vst [vmem:[#allocation87_spill] sm:$0xff] %v9888_v40  ;;  %v9890_v5 = vadd.f32 %v6665_v19, %v6664_v59  ;;  %v2956_v3 = vpop.f32.mrb[193].mxu1  ;;  %v6667_v42 = vpop.f32.mrb[194].mxu0 }
 0x613   : > { %v9892_v47 = vpop.f32.mrb[194].mxu1  ;;  %v6668_v10 = vpop.f32.mrb[195].mxu0 }
 0x614   : > { %12504 = vst [vmem:[#allocation99_spill] sm:$0xff] %v9890_v5  ;;  %12505 = vst [vmem:[#allocation102_spill] sm:$0xff] %v9892_v47  ;;  %v9894_v26 = vadd.f32 %v6668_v10, %v6667_v42  ;;  %v2959_v25 = vpop.f32.mrb[195].mxu1 }
 0x615   : > { %6468 = vmatmul.mubr.msk.bf16.gmra.mrb[44].mxu0 %vm926_vm1, %v3340_v39 }
 0x616   : > { %12506 = vst [vmem:[#allocation103_spill] sm:$0xff] %v9894_v26 }
 0x618   : > { %v6670_v8 = vpop.f32.mrb[196].mxu0 }
 0x619   : > { %v9897_v49 = vpop.f32.mrb[196].mxu1  ;;  %v6671_v22 = vpop.f32.mrb[197].mxu0 }
 0x61a   : > { %12507 = vst [vmem:[#allocation104_spill] sm:$0xff] %v9897_v49  ;;  %v9899_v27 = vadd.f32 %v6671_v22, %v6670_v8  ;;  %v2964_v32 = vpop.f32.mrb[197].mxu1  ;;  %v6673_v28 = vpop.f32.mrb[198].mxu0 }
 0x61b   : > { %v9901_v43 = vpop.f32.mrb[198].mxu1  ;;  %v6674_v56 = vpop.f32.mrb[199].mxu0 }
 0x61c   : > { %12508 = vst [vmem:[#allocation105_spill] sm:$0xff] %v9899_v27  ;;  %12509 = vst [vmem:[#allocation108_spill] sm:$0xff] %v9901_v43  ;;  %v9903_v62 = vadd.f32 %v6674_v56, %v6673_v28  ;;  %v2967_v41 = vpop.f32.mrb[199].mxu1 }
 0x61e   : > { %12510 = vst [vmem:[#allocation109_spill] sm:$0xff] %v9903_v62 }
 0x620   : > { %v6676_v51 = vpop.f32.mrb[200].mxu0 }
 0x621   : > { %v9905_v4 = vpop.f32.mrb[200].mxu1  ;;  %v6677_v1 = vpop.f32.mrb[201].mxu0 }
 0x622   : > { %12511 = vst [vmem:[#allocation110_spill] sm:$0xff] %v9905_v4  ;;  %v9907_v52 = vadd.f32 %v6677_v1, %v6676_v51  ;;  %v2972_v55 = vpop.f32.mrb[201].mxu1  ;;  %v6679_v35 = vpop.f32.mrb[202].mxu0 }
 0x623   : > { %v9909_v2 = vpop.f32.mrb[202].mxu1  ;;  %v6680_v13 = vpop.f32.mrb[203].mxu0 }
 0x624   : > { %12512 = vst [vmem:[#allocation111_spill] sm:$0xff] %v9907_v52  ;;  %12513 = vst [vmem:[#allocation114_spill] sm:$0xff] %v9909_v2  ;;  %v9911_v63 = vadd.f32 %v6680_v13, %v6679_v35  ;;  %v2975_v33 = vpop.f32.mrb[203].mxu1 }
 0x626   : > { %12514 = vst [vmem:[#allocation115_spill] sm:$0xff] %v9911_v63 }
 0x628   : > { %v6682_v54 = vpop.f32.mrb[204].mxu0 }
 0x629   : > { %v9913_v17 = vpop.f32.mrb[204].mxu1  ;;  %v6683_v0 = vpop.f32.mrb[205].mxu0 }
 0x62a   : > { %12515 = vst [vmem:[#allocation116_spill] sm:$0xff] %v9913_v17  ;;  %v9915_v60 = vadd.f32 %v6683_v0, %v6682_v54  ;;  %v2980_v16 = vpop.f32.mrb[205].mxu1  ;;  %v6685_v24 = vpop.f32.mrb[206].mxu0 }
 0x62b   : > { %v9917_v59 = vpop.f32.mrb[206].mxu1  ;;  %v6686_v39 = vpop.f32.mrb[207].mxu0 }
 0x62c   : > { %12516 = vst [vmem:[#allocation96_spill] sm:$0xff] %v9915_v60  ;;  %12517 = vst [vmem:[#allocation90_spill] sm:$0xff] %v9917_v59  ;;  %v9919_v19 = vadd.f32 %v6686_v39, %v6685_v24  ;;  %v2983_v3 = vpop.f32.mrb[207].mxu1 }
 0x62e   : > { %12518 = vst [vmem:[#allocation97_spill] sm:$0xff] %v9919_v19 }
 0x630   : > { %v6688_v42 = vpop.f32.mrb[208].mxu0 }
 0x631   : > { %v9921_v10 = vpop.f32.mrb[208].mxu1  ;;  %v6689_v25 = vpop.f32.mrb[209].mxu0 }
 0x632   : > { %12519 = vst [vmem:[#allocation93_spill] sm:$0xff] %v9921_v10  ;;  %v9923_v8 = vadd.f32 %v6689_v25, %v6688_v42  ;;  %v2988_v22 = vpop.f32.mrb[209].mxu1  ;;  %v6691_v32 = vpop.f32.mrb[210].mxu0 }
 0x633   : > { %v9925_v28 = vpop.f32.mrb[210].mxu1  ;;  %v6692_v56 = vpop.f32.mrb[211].mxu0 }
 0x634   : > { %12520 = vst [vmem:[#allocation98_spill] sm:$0xff] %v9923_v8  ;;  %12521 = vst [vmem:[#allocation94_spill] sm:$0xff] %v9925_v28  ;;  %v9927_v41 = vadd.f32 %v6692_v56, %v6691_v32  ;;  %v2991_v51 = vpop.f32.mrb[211].mxu1 }
 0x636   : > { %12522 = vst [vmem:[#allocation129_spill] sm:$0xff] %v9927_v41 }
 0x638   : > { %v6694_v1 = vpop.f32.mrb[212].mxu0 }
 0x639   : > { %v9929_v55 = vpop.f32.mrb[212].mxu1  ;;  %v6695_v35 = vpop.f32.mrb[213].mxu0 }
 0x63a   : > { %12523 = vst [vmem:[#allocation130_spill] sm:$0xff] %v9929_v55  ;;  %v9931_v13 = vadd.f32 %v6695_v35, %v6694_v1  ;;  %v2996_v33 = vpop.f32.mrb[213].mxu1  ;;  %v6697_v54 = vpop.f32.mrb[214].mxu0 }
 0x63b   : > { %v9933_v0 = vpop.f32.mrb[214].mxu1  ;;  %v6698_v16 = vpop.f32.mrb[215].mxu0 }
 0x63c   : > { %12524 = vst [vmem:[#allocation131_spill] sm:$0xff] %v9931_v13  ;;  %12525 = vst [vmem:[#allocation132_spill] sm:$0xff] %v9933_v0  ;;  %v9935_v24 = vadd.f32 %v6698_v16, %v6697_v54  ;;  %v2999_v39 = vpop.f32.mrb[215].mxu1 }
 0x63e   : > { %12526 = vst [vmem:[#allocation133_spill] sm:$0xff] %v9935_v24 }
 0x640   : > { %v6700_v3 = vpop.f32.mrb[216].mxu0 }
 0x641   : > { %v9937_v42 = vpop.f32.mrb[216].mxu1  ;;  %v6701_v25 = vpop.f32.mrb[217].mxu0 }
 0x642   : > { %12527 = vst [vmem:[#allocation134_spill] sm:$0xff] %v9937_v42  ;;  %v9939_v22 = vadd.f32 %v6701_v25, %v6700_v3  ;;  %v3004_v32 = vpop.f32.mrb[217].mxu1  ;;  %v6703_v56 = vpop.f32.mrb[218].mxu0 }
 0x643   : > { %v9941_v51 = vpop.f32.mrb[218].mxu1  ;;  %v6704_v1 = vpop.f32.mrb[219].mxu0 }
 0x644   : > { %12528 = vst [vmem:[#allocation135_spill] sm:$0xff] %v9939_v22  ;;  %12529 = vst [vmem:[#allocation136_spill] sm:$0xff] %v9941_v51  ;;  %v9943_v35 = vadd.f32 %v6704_v1, %v6703_v56  ;;  %v3007_v33 = vpop.f32.mrb[219].mxu1 }
 0x646   : > { %12530 = vst [vmem:[#allocation137_spill] sm:$0xff] %v9943_v35 }
 0x648   : > { %v6706_v17 = vpop.f32.mrb[220].mxu0 }
 0x649   : > { %v9945_v59 = vpop.f32.mrb[220].mxu1  ;;  %v6707_v54 = vpop.f32.mrb[221].mxu0 }
 0x64a   : > { %12531 = vst [vmem:[#allocation138_spill] sm:$0xff] %v9945_v59  ;;  %v9947_v16 = vadd.f32 %v6707_v54, %v6706_v17  ;;  %v3012_v39 = vpop.f32.mrb[221].mxu1  ;;  %v6709_v2 = vpop.f32.mrb[222].mxu0 }
 0x64b   : > { %v9949_v43 = vpop.f32.mrb[222].mxu1  ;;  %v6710_v3 = vpop.f32.mrb[223].mxu0 }
 0x64c   : > { %12532 = vst [vmem:[#allocation139_spill] sm:$0xff] %v9947_v16  ;;  %12533 = vst [vmem:[#allocation140_spill] sm:$0xff] %v9949_v43  ;;  %v9951_v25 = vadd.f32 %v6710_v3, %v6709_v2  ;;  %v3015_v32 = vpop.f32.mrb[223].mxu1 }
 0x64e   : > { %12534 = vst [vmem:[#allocation141_spill] sm:$0xff] %v9951_v25 }
 0x650   : > { %v6712_v47 = vpop.f32.mrb[224].mxu0 }
 0x651   : > { %v9953_v15 = vpop.f32.mrb[224].mxu1  ;;  %v6713_v56 = vpop.f32.mrb[225].mxu0 }
 0x652   : > { %12535 = vst [vmem:[#allocation142_spill] sm:$0xff] %v9953_v15  ;;  %v9955_v1 = vadd.f32 %v6713_v56, %v6712_v47  ;;  %v3020_v33 = vpop.f32.mrb[225].mxu1  ;;  %v6715_v51 = vpop.f32.mrb[226].mxu0 }
 0x653   : > { %v9957_v18 = vpop.f32.mrb[226].mxu1  ;;  %v6716_v17 = vpop.f32.mrb[227].mxu0 }
 0x654   : > { %12536 = vst [vmem:[#allocation143_spill] sm:$0xff] %v9955_v1  ;;  %12537 = vst [vmem:[#allocation144_spill] sm:$0xff] %v9957_v18  ;;  %v9959_v54 = vadd.f32 %v6716_v17, %v6715_v51  ;;  %v3023_v39 = vpop.f32.mrb[227].mxu1 }
 0x656   : > { %12538 = vst [vmem:[#allocation145_spill] sm:$0xff] %v9959_v54 }
 0x658   : > { %v6718_v0 = vpop.f32.mrb[228].mxu0 }
 0x659   : > { %v9961_v43 = vpop.f32.mrb[228].mxu1  ;;  %v6719_v2 = vpop.f32.mrb[229].mxu0 }
 0x65a   : > { %12539 = vst [vmem:[#allocation146_spill] sm:$0xff] %v9961_v43  ;;  %v9963_v3 = vadd.f32 %v6719_v2, %v6718_v0  ;;  %v3028_v32 = vpop.f32.mrb[229].mxu1  ;;  %v6721_v45 = vpop.f32.mrb[230].mxu0 }
 0x65b   : > { %v9965_v28 = vpop.f32.mrb[230].mxu1  ;;  %v6722_v47 = vpop.f32.mrb[231].mxu0 }
 0x65c   : > { %12540 = vst [vmem:[#allocation147_spill] sm:$0xff] %v9963_v3  ;;  %12541 = vst [vmem:[#allocation148_spill] sm:$0xff] %v9965_v28  ;;  %v9967_v56 = vadd.f32 %v6722_v47, %v6721_v45  ;;  %v3031_v33 = vpop.f32.mrb[231].mxu1 }
 0x65e   : > { %12542 = vst [vmem:[#allocation149_spill] sm:$0xff] %v9967_v56 }
 0x660   : > { %v6724_v11 = vpop.f32.mrb[232].mxu0 }
 0x661   : > { %v9969_v18 = vpop.f32.mrb[232].mxu1  ;;  %v6725_v51 = vpop.f32.mrb[233].mxu0 }
 0x662   : > { %12543 = vst [vmem:[#allocation150_spill] sm:$0xff] %v9969_v18  ;;  %v9971_v17 = vadd.f32 %v6725_v51, %v6724_v11  ;;  %v3036_v39 = vpop.f32.mrb[233].mxu1  ;;  %v6727_v4 = vpop.f32.mrb[234].mxu0 }
 0x663   : > { %v9973_v43 = vpop.f32.mrb[234].mxu1  ;;  %v6728_v0 = vpop.f32.mrb[235].mxu0 }
 0x664   : > { %12544 = vst [vmem:[#allocation151_spill] sm:$0xff] %v9971_v17  ;;  %12545 = vst [vmem:[#allocation152_spill] sm:$0xff] %v9973_v43  ;;  %v9975_v2 = vadd.f32 %v6728_v0, %v6727_v4  ;;  %v3039_v32 = vpop.f32.mrb[235].mxu1 }
 0x666   : > { %12546 = vst [vmem:[#allocation153_spill] sm:$0xff] %v9975_v2 }
 0x668   : > { %v6730_v49 = vpop.f32.mrb[236].mxu0 }
 0x669   : > { %v9977_v28 = vpop.f32.mrb[236].mxu1  ;;  %v6731_v45 = vpop.f32.mrb[237].mxu0 }
 0x66a   : > { %12547 = vst [vmem:[#allocation154_spill] sm:$0xff] %v9977_v28  ;;  %v9979_v47 = vadd.f32 %v6731_v45, %v6730_v49  ;;  %v3044_v33 = vpop.f32.mrb[237].mxu1  ;;  %v6733_v15 = vpop.f32.mrb[238].mxu0 }
 0x66b   : > { %v9981_v18 = vpop.f32.mrb[238].mxu1  ;;  %v6734_v11 = vpop.f32.mrb[239].mxu0 }
 0x66c   : > { %12548 = vst [vmem:[#allocation155_spill] sm:$0xff] %v9979_v47  ;;  %12549 = vst [vmem:[#allocation156_spill] sm:$0xff] %v9981_v18  ;;  %v9983_v51 = vadd.f32 %v6734_v11, %v6733_v15  ;;  %v3047_v39 = vpop.f32.mrb[239].mxu1 }
 0x66e   : > { %12550 = vst [vmem:[#allocation157_spill] sm:$0xff] %v9983_v51 }
 0x670   : > { %v9985_v40 = vpop.f32.mrb[240].mxu0 }
 0x671   : > { %v9987_v43 = vpop.f32.mrb[241].mxu0 }
 0x672   : > { %v3582_v4 = vmax.f32 %v9985_v40, %v9987_v43  ;;  %v9991_v0 = vpop.f32.mrb[242].mxu0 }
 0x673   : > { %v9993_v32 = vpop.f32.mrb[243].mxu0 }
 0x674   : > { %v3585_v49 = vmax.f32 %v9991_v0, %v9993_v32  ;;  %3583 = vmax.xlane.f32.xlu1 %v3582_v4 }
 0x676   : > { %3586 = vmax.xlane.f32.xlu0 %v3585_v49 }
 0x678   : > { %v9997_v45 = vpop.f32.mrb[244].mxu0 }
 0x679   : > { %v9999_v15 = vpop.f32.mrb[245].mxu0 }
 0x67a   : > { %v3588_v33 = vmax.f32 %v9997_v45, %v9999_v15  ;;  %v10003_v11 = vpop.f32.mrb[246].mxu0 }
 0x67b   : > { %v10005_v39 = vpop.f32.mrb[247].mxu0 }
 0x67c   : > { %v3591_v28 = vmax.f32 %v10003_v11, %v10005_v39  ;;  %3589 = vmax.xlane.f32.xlu1 %v3588_v33 }
 0x67e   : > { %3592 = vmax.xlane.f32.xlu0 %v3591_v28 }
 0x680   : > { %v10009_v18 = vpop.f32.mrb[248].mxu0 }
 0x681   : > { %v10011_v4 = vpop.f32.mrb[249].mxu0 }
 0x682   : > { %v3594_v49 = vmax.f32 %v10009_v18, %v10011_v4  ;;  %v10015_v59 = vpop.f32.mrb[250].mxu0 }
 0x683   : > { %v10017_v38 = vpop.f32.mrb[251].mxu0 }
 0x684   : > { %v3597_v42 = vmax.f32 %v10015_v59, %v10017_v38  ;;  %3595 = vmax.xlane.f32.xlu1 %v3594_v49 }
 0x686   : > { %3598 = vmax.xlane.f32.xlu0 %v3597_v42 }
 0x688   : > { %v10021_v14 = vpop.f32.mrb[252].mxu0 }
 0x689   : > { %v10023_v33 = vpop.f32.mrb[253].mxu0 }
 0x68a   : > { %v3600_v28 = vmax.f32 %v10021_v14, %v10023_v33  ;;  %v10027_v55 = vpop.f32.mrb[254].mxu0 }
 0x68b   : > { %v10029_v44 = vpop.f32.mrb[255].mxu0 }
 0x68c   : > { %v3603_v10 = vmax.f32 %v10027_v55, %v10029_v44  ;;  %3601 = vmax.xlane.f32.xlu1 %v3600_v28 }
 0x68e   : > { %3604 = vmax.xlane.f32.xlu0 %v3603_v10 }
 0x690   : > { %v10033_v9 = vpop.f32.mrb[0].mxu0 }
 0x691   : > { %v10035_v49 = vpop.f32.mrb[1].mxu0 }
 0x692   : > { %v3606_v42 = vmax.f32 %v10033_v9, %v10035_v49  ;;  %v10039_v53 = vpop.f32.mrb[2].mxu0 }
 0x693   : > { %v10041_v29 = vpop.f32.mrb[3].mxu0 }
 0x694   : > { %v3609_v21 = vmax.f32 %v10039_v53, %v10041_v29  ;;  %3607 = vmax.xlane.f32.xlu1 %v3606_v42 }
 0x696   : > { %3610 = vmax.xlane.f32.xlu0 %v3609_v21 }
 0x698   : > { %v10045_v47 = vpop.f32.mrb[4].mxu0 }
 0x699   : > { %v10047_v28 = vpop.f32.mrb[5].mxu0 }
 0x69a   : > { %v3612_v10 = vmax.f32 %v10045_v47, %v10047_v28  ;;  %v10051_v51 = vpop.f32.mrb[6].mxu0 }
 0x69b   : > { %v10053_v2 = vpop.f32.mrb[7].mxu0 }
 0x69c   : > { %v3615_v56 = vmax.f32 %v10051_v51, %v10053_v2  ;;  %3613 = vmax.xlane.f32.xlu1 %v3612_v10 }
 0x69e   : > { %3616 = vmax.xlane.f32.xlu0 %v3615_v56 }
 0x6a0   : > { %v10057_v54 = vpop.f32.mrb[8].mxu0 }
 0x6a1   : > { %v10059_v42 = vpop.f32.mrb[9].mxu0 }
 0x6a2   : > { %v3618_v21 = vmax.f32 %v10057_v54, %v10059_v42  ;;  %v10063_v25 = vpop.f32.mrb[10].mxu0 }
 0x6a3   : > { %v10065_v35 = vpop.f32.mrb[11].mxu0 }
 0x6a4   : > { %v3621_v24 = vmax.f32 %v10063_v25, %v10065_v35  ;;  %3619 = vmax.xlane.f32.xlu1 %v3618_v21 }
 0x6a6   : > { %3622 = vmax.xlane.f32.xlu0 %v3621_v24 }
 0x6a8   : > { %v10069_v41 = vpop.f32.mrb[12].mxu0 }
 0x6a9   : > { %v10071_v10 = vpop.f32.mrb[13].mxu0 }
 0x6aa   : > { %v3624_v56 = vmax.f32 %v10069_v41, %v10071_v10  ;;  %v10075_v17 = vpop.f32.mrb[14].mxu0 }
 0x6ab   : > { %v10077_v3 = vpop.f32.mrb[15].mxu0 }
 0x6ac   : > { %v3627_v19 = vmax.f32 %v10075_v17, %v10077_v3  ;;  %3625 = vmax.xlane.f32.xlu1 %v3624_v56 }
 0x6ae   : > { %3628 = vmax.xlane.f32.xlu0 %v3627_v19 }
 0x6b0   : > { %v10081_v63 = vpop.f32.mrb[16].mxu0 }
 0x6b1   : > { %v10083_v21 = vpop.f32.mrb[17].mxu0 }
 0x6b2   : > { %v3630_v24 = vmax.f32 %v10081_v63, %v10083_v21  ;;  %v10087_v1 = vpop.f32.mrb[18].mxu0 }
 0x6b3   : > { %v10089_v16 = vpop.f32.mrb[19].mxu0 }
 0x6b4   : > { %v3633_v62 = vmax.f32 %v10087_v1, %v10089_v16  ;;  %3631 = vmax.xlane.f32.xlu1 %v3630_v24 }
 0x6b6   : > { %3634 = vmax.xlane.f32.xlu0 %v3633_v62 }
 0x6b8   : > { %v10093_v26 = vpop.f32.mrb[20].mxu0 }
 0x6b9   : > { %v10095_v56 = vpop.f32.mrb[21].mxu0 }
 0x6ba   : > { %v3636_v19 = vmax.f32 %v10093_v26, %v10095_v56  ;;  %v10099_v22 = vpop.f32.mrb[22].mxu0 }
 0x6bb   : > { %v10101_v13 = vpop.f32.mrb[23].mxu0 }
 0x6bc   : > { %v3639_v23 = vmax.f32 %v10099_v22, %v10101_v13  ;;  %3637 = vmax.xlane.f32.xlu1 %v3636_v19 }
 0x6be   : > { %3640 = vmax.xlane.f32.xlu0 %v3639_v23 }
 0x6c0   : > { %v10105_v12 = vpop.f32.mrb[24].mxu0 }
 0x6c1   : > { %v10107_v24 = vpop.f32.mrb[25].mxu0 }
 0x6c2   : > { %v3642_v62 = vmax.f32 %v10105_v12, %v10107_v24  ;;  %v10111_v8 = vpop.f32.mrb[26].mxu0 }
 0x6c3   : > { %v10113_v60 = vpop.f32.mrb[27].mxu0 }
 0x6c4   : > { %v3645_v61 = vmax.f32 %v10111_v8, %v10113_v60  ;;  %3643 = vmax.xlane.f32.xlu1 %v3642_v62 }
 0x6c6   : > { %3646 = vmax.xlane.f32.xlu0 %v3645_v61 }
 0x6c8   : > { %v10117_v37 = vpop.f32.mrb[28].mxu0 }
 0x6c9   : > { %v10119_v19 = vpop.f32.mrb[29].mxu0 }
 0x6ca   : > { %v3648_v23 = vmax.f32 %v10117_v37, %v10119_v19  ;;  %v10123_v52 = vpop.f32.mrb[30].mxu0 }
 0x6cb   : > { %v10125_v27 = vpop.f32.mrb[31].mxu0 }
 0x6cc   : > { %v3651_v5 = vmax.f32 %v10123_v52, %v10125_v27  ;;  %3649 = vmax.xlane.f32.xlu1 %v3648_v23 }
 0x6ce   : > { %3652 = vmax.xlane.f32.xlu0 %v3651_v5 }
 0x6d0   : > { %v10129_v31 = vpop.f32.mrb[32].mxu0 }
 0x6d1   : > { %v10131_v62 = vpop.f32.mrb[33].mxu0 }
 0x6d2   : > { %12551 = vst [vmem:[#allocation158_spill] sm:$0xff] %v10131_v62  ;;  %v3654_v61 = vmax.f32 %v10129_v31, %v10131_v62  ;;  %v10135_v7 = vpop.f32.mrb[34].mxu0 }
 0x6d3   : > { %12552 = vst [vmem:[#allocation159_spill] sm:$0xff] %v10135_v7  ;;  %v10137_v46 = vpop.f32.mrb[35].mxu0 }
 0x6d4   : > { %12553 = vst [vmem:[#allocation160_spill] sm:$0xff] %v10137_v46  ;;  %v3657_v30 = vmax.f32 %v10135_v7, %v10137_v46  ;;  %3655 = vmax.xlane.f32.xlu1 %v3654_v61 }
 0x6d6   : > { %3658 = vmax.xlane.f32.xlu0 %v3657_v30 }
 0x6d8   : > { %v10141_v36 = vpop.f32.mrb[36].mxu0 }
 0x6d9   : > { %12554 = vst [vmem:[#allocation161_spill] sm:$0xff] %v10141_v36  ;;  %v10143_v23 = vpop.f32.mrb[37].mxu0 }
 0x6da   : > { %12555 = vst [vmem:[#allocation162_spill] sm:$0xff] %v10143_v23  ;;  %v3660_v5 = vmax.f32 %v10141_v36, %v10143_v23  ;;  %v10147_v58 = vpop.f32.mrb[38].mxu0 }
 0x6db   : > { %12556 = vst [vmem:[#allocation163_spill] sm:$0xff] %v10147_v58  ;;  %v10149_v48 = vpop.f32.mrb[39].mxu0 }
 0x6dc   : > { %12557 = vst [vmem:[#allocation164_spill] sm:$0xff] %v10149_v48  ;;  %v3663_v57 = vmax.f32 %v10147_v58, %v10149_v48  ;;  %3661 = vmax.xlane.f32.xlu1 %v3660_v5 }
 0x6de   : > { %3664 = vmax.xlane.f32.xlu0 %v3663_v57 }
 0x6e0   : > { %v10153_v50 = vpop.f32.mrb[40].mxu0 }
 0x6e1   : > { %12558 = vst [vmem:[#allocation165_spill] sm:$0xff] %v10153_v50  ;;  %v10155_v61 = vpop.f32.mrb[41].mxu0 }
 0x6e2   : > { %12559 = vst [vmem:[#allocation166_spill] sm:$0xff] %v10155_v61  ;;  %v3666_v30 = vmax.f32 %v10153_v50, %v10155_v61  ;;  %v10159_v34 = vpop.f32.mrb[42].mxu0 }
 0x6e3   : > { %12560 = vst [vmem:[#allocation167_spill] sm:$0xff] %v10159_v34  ;;  %v10161_v20 = vpop.f32.mrb[43].mxu0 }
 0x6e4   : > { %12561 = vst [vmem:[#allocation168_spill] sm:$0xff] %v10161_v20  ;;  %v3669_v23 = vmax.f32 %v10159_v34, %v10161_v20  ;;  %3667 = vmax.xlane.f32.xlu1 %v3666_v30 }
 0x6e6   : > { %3670 = vmax.xlane.f32.xlu0 %v3669_v23 }
 0x6e8   : > { %v10165_v36 = vpop.f32.mrb[44].mxu0 }
 0x6e9   : > { %12562 = vst [vmem:[#allocation169_spill] sm:$0xff] %v10165_v36  ;;  %v10167_v5 = vpop.f32.mrb[45].mxu0 }
 0x6ea   : > { %12563 = vst [vmem:[#allocation170_spill] sm:$0xff] %v10167_v5  ;;  %v3672_v57 = vmax.f32 %v10165_v36, %v10167_v5  ;;  %v10171_v48 = vpop.f32.mrb[46].mxu0 }
 0x6eb   : > { %v10173_v58 = vpop.f32.mrb[47].mxu0 }
 0x6ec   : > { %12564 = vst [vmem:[#allocation171_spill] sm:$0xff] %v10173_v58  ;;  %v3675_v61 = vmax.f32 %v10171_v48, %v10173_v58  ;;  %3673 = vmax.xlane.f32.xlu1 %v3672_v57 }
 0x6ee   : > { %3676 = vmax.xlane.f32.xlu0 %v3675_v61 }
 0x701   : > { %v3584_v50 = vpop.xlane.xlu1 %3583 }
 0x702   : > { %v3678_v30 = vsub.f32 %v9985_v40, %v3584_v50  ;;  %v3679_v23 = vsub.f32 %v9987_v43, %v3584_v50 }
 0x703   : > { %v3587_v20 = vpop.xlane.xlu0 %3586 }
 0x704   : > { %v3742_v34 = vmul.f32 1.442695, %v3678_v30  ;;  %v3680_v46 = vsub.f32 %v9991_v0, %v3587_v20  ;;  %v3681_v5 = vsub.f32 %v9993_v32, %v3587_v20  ;;  %v3744_v36 = vmul.f32 1.442695, %v3679_v23 }
 0x706   : > { %v3746_v7 = vmul.f32 1.442695, %v3680_v46  ;;  %v3748_v62 = vmul.f32 1.442695, %v3681_v5  ;;  %7488 = vpow2.f32 %v3742_v34 }
 0x708   : > { %7490 = vpow2.f32 %v3746_v7 }
 0x709   : > { %7492 = vpow2.f32 %v3748_v62  ;;  %v3590_v58 = vpop.xlane.xlu1 %3589 }
 0x70a   : > { %7494 = vpow2.f32 %v3744_v36  ;;  %v3682_v61 = vsub.f32 %v9997_v45, %v3590_v58  ;;  %v3683_v40 = vsub.f32 %v9999_v15, %v3590_v58 }
 0x70b   : > { %v3593_v57 = vpop.xlane.xlu0 %3592 }
 0x70c   : > { %v3750_v50 = vmul.f32 1.442695, %v3682_v61  ;;  %v3684_v43 = vsub.f32 %v10003_v11, %v3593_v57  ;;  %v3685_v0 = vsub.f32 %v10005_v39, %v3593_v57  ;;  %v3752_v30 = vmul.f32 1.442695, %v3683_v40 }
 0x70e   : > { %v3754_v20 = vmul.f32 1.442695, %v3684_v43  ;;  %v3756_v32 = vmul.f32 1.442695, %v3685_v0  ;;  %7496 = vpow2.f32 %v3750_v50  ;;  %v12566_v43 = vld [vmem:[#allocation58_spill] sm:$0xff] }
 0x710   : > { %7498 = vpow2.f32 %v3754_v20  ;;  %v7489_v34 = vpop.eup %7488  ;;  %v12569_v20 = vld [vmem:[#allocation42_spill] sm:$0xff] }
 0x711   : > { %7500 = vpow2.f32 %v3756_v32  ;;  %v3596_v46 = vpop.xlane.xlu1 %3595 }
 0x712   : > { %v7491_v7 = vpop.eup %7490  ;;  %7502 = vpow2.f32 %v3752_v30  ;;  %v3686_v36 = vsub.f32 %v10009_v18, %v3596_v46  ;;  %v3687_v58 = vsub.f32 %v10011_v4, %v3596_v46  ;;  %v12565_v4 = vld [vmem:[#allocation60_spill] sm:$0xff]  ;;  %v12572_v46 = vld [vmem:[#allocation70_spill] sm:$0xff] }
 0x713   : > { %v7493_v45 = vpop.eup %7492  ;;  %v3599_v15 = vpop.xlane.xlu0 %3598  ;;  %v3870_v62 = vpack.c.bf16 %v7491_v7, %v7489_v34  ;;  %v12567_v0 = vpack.c.bf16 %v12565_v4, %v12566_v43  ;;  %v12571_v34 = vld [vmem:[#allocation71_spill] sm:$0xff]  ;;  %v12580_v4 = vld [vmem:[#allocation52_spill] sm:$0xff]  ;;  %v12581_v43 = vld [vmem:[#allocation50_spill] sm:$0xff] }
 0x714   : > { %v7495_v11 = vpop.eup %7494  ;;  %v3758_v5 = vmul.f32 1.442695, %v3686_v36  ;;  %v3688_v39 = vsub.f32 %v10015_v59, %v3599_v15  ;;  %v3689_v23 = vsub.f32 %v10017_v38, %v3599_v15  ;;  %v3760_v40 = vmul.f32 1.442695, %v3687_v58  ;;  %v12568_v59 = vld [vmem:[#allocation44_spill] sm:$0xff]  ;;  %v12574_v15 = vld [vmem:[#allocation47_spill] sm:$0xff] }
 0x715   : > { %v3871_v61 = vpack.c.bf16 %v7493_v45, %v7495_v11  ;;  %v12570_v38 = vpack.c.bf16 %v12568_v59, %v12569_v20  ;;  %v12573_v7 = vpack.c.bf16 %v12571_v34, %v12572_v46  ;;  %v12583_v20 = vld [vmem:[#allocation9_spill] sm:$0xff]  ;;  %v12587_v46 = vld [vmem:[#allocation54_spill] sm:$0xff] }
 0x716   : > { %v3762_v57 = vmul.f32 1.442695, %v3688_v39  ;;  %v3764_v50 = vmul.f32 1.442695, %v3689_v23  ;;  %7504 = vpow2.f32 %v3758_v5 }
 0x717   : > { %3934 = vmatprep.mubr.bf16.mxu1 %v3871_v61  ;;  %4127 = vmatprep.mubr.bf16.mxu0 %v3871_v61 }
 0x718   : > { %7506 = vpow2.f32 %v3762_v57  ;;  %3935 = vmatmul.mubr.bf16.vlgmr.msra.gmra.mrb[240].mxu1 %v3870_v62  ;;  %4128 = vmatmul.mubr.bf16.vlgmr.msra.gmra.mrb[48].mxu0 %v3870_v62  ;;  %v7497_v18 = vpop.eup %7496  ;;  %v12575_v62 = vld [vmem:[#allocation46_spill] sm:$0xff] }
 0x719   : > { %7508 = vpow2.f32 %v3764_v50  ;;  %4597 = vmatpush1.bf16.msra.mxu1 %v12567_v0  ;;  %v3602_v30 = vpop.xlane.xlu1 %3601  ;;  %4516 = vxpose.xlu1.c.b16.start [1/2] (short) %v12570_v38, 128  ;;  %v12576_v11 = vpack.c.bf16 %v12574_v15, %v12575_v62  ;;  %v12578_v50 = vld [vmem:[#allocation66_spill] sm:$0xff]  ;;  %v12582_v0 = vpack.c.bf16 %v12580_v4, %v12581_v43 }
 0x71a   : > { %v7499_v32 = vpop.eup %7498  ;;  %7510 = vpow2.f32 %v3760_v40  ;;  %4598 = vmatprep.subr.bf16.mxu1 %v12573_v7  ;;  %v3690_v36 = vsub.f32 %v10021_v14, %v3602_v30  ;;  %v3691_v58 = vsub.f32 %v10023_v33, %v3602_v30  ;;  %6849 = vmatpush3.bf16.msra.mxu0 %v12332_v6  ;;  %v12577_v14 = vld [vmem:[#allocation68_spill] sm:$0xff] }
 0x71b   : > { %v7501_v45 = vpop.eup %7500  ;;  %4532 = vxpose.xlu0.c.b16.start [1/2] (short) %v12576_v11, 128  ;;  %v3605_v5 = vpop.xlane.xlu0 %3604  ;;  %v3872_v39 = vpack.c.bf16 %v7499_v32, %v7497_v18  ;;  %6850 = vmatprep.subr.bf16.mxu0 %v12332_v6  ;;  %v12579_v33 = vpack.c.bf16 %v12577_v14, %v12578_v50  ;;  %v12584_v18 = vld [vmem:[#allocation91_spill] sm:$0xff] }
 0x71c   : > { %v7503_v23 = vpop.eup %7502  ;;  %v3766_v61 = vmul.f32 1.442695, %v3690_v36  ;;  %v3692_v40 = vsub.f32 %v10027_v55, %v3605_v5  ;;  %v3693_v57 = vsub.f32 %v10029_v44, %v3605_v5  ;;  %v3768_v59 = vmul.f32 1.442695, %v3691_v58  ;;  %v12586_v55 = vld [vmem:[#allocation55_spill] sm:$0xff] }
 0x71d   : > { %4599 = vmatpush1.bf16.msra.mxu1 %v12579_v33  ;;  %4517 = vxpose.xlu1.c.b16.end [2/2] (short) %v12582_v0, 128  ;;  %v3873_v30 = vpack.c.bf16 %v7501_v45, %v7503_v23  ;;  %v12585_v38 = vpack.c.bf16 %v12583_v20, %v12584_v18  ;;  %v12588_v7 = vpack.c.bf16 %v12586_v55, %v12587_v46 }
 0x71e   : > { %v3770_v32 = vmul.f32 1.442695, %v3692_v40  ;;  %v3772_v34 = vmul.f32 1.442695, %v3693_v57  ;;  %6851 = vmatpush3.bf16.msra.mxu0 %v12332_v6  ;;  %7512 = vpow2.f32 %v3766_v61 }
 0x71f   : > { %5302 = vmatprep.subr.bf16.mxu1 %v12585_v38  ;;  %3942 = vmatprep.mubr.bf16.mxu1 %v3873_v30 }
 0x720   : > { %4135 = vmatprep.mubr.bf16.mxu0 %v3873_v30  ;;  %7514 = vpow2.f32 %v3770_v32  ;;  %3943 = vmatmul.mubr.bf16.gmra.mrb[244].mxu1 %v3872_v39  ;;  %v7505_v44 = vpop.eup %7504  ;;  %v12589_v32 = vld [vmem:[#allocation20_spill] sm:$0xff] }
 0x721   : > { %4136 = vmatmul.mubr.bf16.gmra.mrb[52].mxu0 %v3872_v39  ;;  %7516 = vpow2.f32 %v3772_v34  ;;  %4533 = vxpose.xlu0.c.b16.end [2/2] (short) %v12588_v7, 128  ;;  %v3608_v36 = vpop.xlane.xlu1 %3607 }
 0x722   : > { %6852 = vmatprep.subr.bf16.mxu0 %v12332_v6  ;;  %v7507_v58 = vpop.eup %7506  ;;  %7518 = vpow2.f32 %v3768_v59  ;;  %v3694_v45 = vsub.f32 %v10033_v9, %v3608_v36  ;;  %v3695_v15 = vsub.f32 %v10035_v49, %v3608_v36 }
 0x723   : > { %6853 = vmatpush3.bf16.msra.mxu0 %v12332_v6  ;;  %v7509_v62 = vpop.eup %7508  ;;  %v3611_v11 = vpop.xlane.xlu0 %3610  ;;  %v3874_v5 = vpack.c.bf16 %v7507_v58, %v7505_v44  ;;  %v12590_v44 = vld [vmem:[#allocation25_spill] sm:$0xff] }
 0x724   : > { %6854 = vmatprep.subr.bf16.mxu0 %v12332_v6  ;;  %v7511_v39 = vpop.eup %7510  ;;  %v3774_v23 = vmul.f32 1.442695, %v3694_v45  ;;  %v3696_v61 = vsub.f32 %v10039_v53, %v3611_v11  ;;  %v3697_v40 = vsub.f32 %v10041_v29, %v3611_v11  ;;  %v3776_v14 = vmul.f32 1.442695, %v3695_v15  ;;  %v12591_v11 = vld [vmem:[#allocation24_spill] sm:$0xff] }
 0x725   : > { %v3875_v57 = vpack.c.bf16 %v7509_v62, %v7511_v39 }
 0x726   : > { %v3778_v50 = vmul.f32 1.442695, %v3696_v61  ;;  %v3780_v33 = vmul.f32 1.442695, %v3697_v40  ;;  %7520 = vpow2.f32 %v3774_v23  ;;  %v12592_v61 = vld [vmem:[#allocation18_spill] sm:$0xff] }
 0x727   : > { %6855 = vmatpush3.bf16.msra.mxu0 %v12332_v6  ;;  %3950 = vmatprep.mubr.bf16.mxu1 %v3875_v57  ;;  %v12593_v40 = vld [vmem:[#allocation34_spill] sm:$0xff] }
 0x728   : > { %4143 = vmatprep.mubr.bf16.mxu0 %v3875_v57  ;;  %7522 = vpow2.f32 %v3778_v50  ;;  %3951 = vmatmul.mubr.bf16.gmra.mrb[248].mxu1 %v3874_v5  ;;  %v7513_v9 = vpop.eup %7512 }
 0x729   : > { %4144 = vmatmul.mubr.bf16.gmra.mrb[56].mxu0 %v3874_v5  ;;  %7524 = vpow2.f32 %v3780_v33  ;;  %v3614_v49 = vpop.xlane.xlu1 %3613  ;;  %6856 = vmatprep.subr.bf16.mxu0 %v12332_v6 }
 0x72a   : > { %v7515_v53 = vpop.eup %7514  ;;  %7526 = vpow2.f32 %v3776_v14  ;;  %v3698_v29 = vsub.f32 %v10045_v47, %v3614_v49  ;;  %v3699_v4 = vsub.f32 %v10047_v28, %v3614_v49 }
 0x72b   : > { %6857 = vmatpush3.bf16.msra.mxu0 %v12332_v6  ;;  %v7517_v43 = vpop.eup %7516  ;;  %v3617_v0 = vpop.xlane.xlu0 %3616  ;;  %v3876_v30 = vpack.c.bf16 %v7515_v53, %v7513_v9  ;;  %7528 = vrcp.f32 %v12589_v32 }
 0x72c   : > { %6858 = vmatprep.subr.bf16.mxu0 %v12332_v6  ;;  %v7519_v59 = vpop.eup %7518  ;;  %v3782_v20 = vmul.f32 1.442695, %v3698_v29  ;;  %v3700_v18 = vsub.f32 %v10051_v51, %v3617_v0  ;;  %v3701_v38 = vsub.f32 %v10053_v2, %v3617_v0  ;;  %7530 = vrcp.f32 %v12590_v44 }
 0x72d   : > { %v3877_v34 = vpack.c.bf16 %v7517_v43, %v7519_v59  ;;  %v3784_v47 = vmul.f32 1.442695, %v3699_v4 }
 0x72e   : > { %v3786_v28 = vmul.f32 1.442695, %v3700_v18  ;;  %v3788_v55 = vmul.f32 1.442695, %v3701_v38  ;;  %7532 = vpow2.f32 %v3782_v20  ;;  %v12596_v38 = vld [vmem:[#allocation32_spill] sm:$0xff] }
 0x72f   : > { %6859 = vmatpush3.bf16.msra.mxu0 %v12332_v6  ;;  %3958 = vmatprep.mubr.bf16.mxu1 %v3877_v34 }
 0x730   : > { %4151 = vmatprep.mubr.bf16.mxu0 %v3877_v34  ;;  %7534 = vpow2.f32 %v3786_v28  ;;  %3959 = vmatmul.mubr.bf16.gmra.mrb[252].mxu1 %v3876_v30  ;;  %v7521_v46 = vpop.eup %7520  ;;  %v12597_v34 = vld [vmem:[#allocation35_spill] sm:$0xff] }
 0x731   : > { %4152 = vmatmul.mubr.bf16.gmra.mrb[60].mxu0 %v3876_v30  ;;  %7536 = vpow2.f32 %v3788_v55  ;;  %v3620_v51 = vpop.xlane.xlu1 %3619  ;;  %6860 = vmatprep.subr.bf16.mxu0 %v12332_v6  ;;  %v12595_v30 = vld [vmem:[#allocation17_spill] sm:$0xff] }
 0x732   : > { %v7523_v2 = vpop.eup %7522  ;;  %7538 = vpow2.f32 %v3784_v47  ;;  %v3702_v7 = vsub.f32 %v10057_v54, %v3620_v51  ;;  %v3703_v36 = vsub.f32 %v10059_v42, %v3620_v51 }
 0x733   : > { %6861 = vmatpush3.bf16.msra.mxu0 %v12332_v6  ;;  %v7525_v58 = vpop.eup %7524  ;;  %v3878_v45 = vpack.c.bf16 %v7523_v2, %v7521_v46  ;;  %v3623_v15 = vpop.xlane.xlu0 %3622  ;;  %7540 = vrcp.f32 %v12591_v11 }
 0x734   : > { %6862 = vmatprep.subr.bf16.mxu0 %v12332_v6  ;;  %v7527_v62 = vpop.eup %7526  ;;  %v3790_v5 = vmul.f32 1.442695, %v3702_v7  ;;  %v3704_v39 = vsub.f32 %v10063_v25, %v3623_v15  ;;  %v3705_v23 = vsub.f32 %v10065_v35, %v3623_v15  ;;  %7542 = vrcp.f32 %v12592_v61  ;;  %v12600_v61 = vld [vmem:[#allocation15_spill] sm:$0xff] }
 0x735   : > { %v3879_v54 = vpack.c.bf16 %v7525_v58, %v7527_v62  ;;  %7544 = vrcp.f32 %v12593_v40  ;;  %v3792_v42 = vmul.f32 1.442695, %v3703_v36  ;;  %v7529_v50 = vpop.eup %7528  ;;  %v12598_v36 = vld [vmem:[#allocation16_spill] sm:$0xff]  ;;  %v12599_v62 = vld [vmem:[#allocation13_spill] sm:$0xff] }
 0x736   : > { %v3794_v57 = vmul.f32 1.442695, %v3704_v39  ;;  %v3796_v14 = vmul.f32 1.442695, %v3705_v23  ;;  %7546 = vpow2.f32 %v3790_v5  ;;  %v7531_v33 = vpop.eup %7530 }
 0x737   : > { %6863 = vmatpush3.bf16.msra.mxu0 %v12332_v6  ;;  %3966 = vmatprep.mubr.bf16.mxu1 %v3879_v54  ;;  %v12594_v6 = vld [vmem:[#allocation27_spill] sm:$0xff] }
 0x738   : > { %4159 = vmatprep.mubr.bf16.mxu0 %v3879_v54  ;;  %7548 = vpow2.f32 %v3794_v57  ;;  %3967 = vmatmul.mubr.bf16.gmra.mrb[0].mxu1 %v3878_v45  ;;  %v7533_v25 = vpop.eup %7532 }
 0x739   : > { %4160 = vmatmul.mubr.bf16.gmra.mrb[64].mxu0 %v3878_v45  ;;  %7550 = vpow2.f32 %v3796_v14  ;;  %v3626_v35 = vpop.xlane.xlu1 %3625  ;;  %1859 = vperm.xlu1 %7013, %v7529_v50  }
 0x73a   : > { %v7535_v9 = vpop.eup %7534  ;;  %7552 = vpow2.f32 %v3792_v42  ;;  %v3706_v49 = vsub.f32 %v10069_v41, %v3626_v35  ;;  %v3707_v53 = vsub.f32 %v10071_v10, %v3626_v35 }
 0x73b   : > { %v7537_v29 = vpop.eup %7536  ;;  %7554 = vrcp.f32 %v12594_v6  ;;  %v3880_v4 = vpack.c.bf16 %v7535_v9, %v7533_v25  ;;  %v3629_v43 = vpop.xlane.xlu0 %3628 }
 0x73c   : > { %v7539_v0 = vpop.eup %7538  ;;  %7556 = vrcp.f32 %v12595_v30  ;;  %v3798_v59 = vmul.f32 1.442695, %v3706_v49  ;;  %v3708_v20 = vsub.f32 %v10075_v17, %v3629_v43  ;;  %v3709_v18 = vsub.f32 %v10077_v3, %v3629_v43  ;;  %v12602_v49 = vld [vmem:[#allocation14_spill] sm:$0xff] }
 0x73d   : > { %7558 = vrcp.f32 %v12596_v38  ;;  %1869 = vperm.xlu1 %7013, %v7531_v33   ;;  %v3881_v32 = vpack.c.bf16 %v7537_v29, %v7539_v0  ;;  %v7541_v41 = vpop.eup %7540  ;;  %v3800_v10 = vmul.f32 1.442695, %v3707_v53 }
 0x73e   : > { %7560 = vrcp.f32 %v12597_v34  ;;  %v3802_v44 = vmul.f32 1.442695, %v3708_v20  ;;  %v3804_v47 = vmul.f32 1.442695, %v3709_v18  ;;  %v7543_v28 = vpop.eup %7542  ;;  %v12604_v20 = vld [vmem:[#allocation23_spill] sm:$0xff] }
 0x73f   : > { %7562 = vpow2.f32 %v3798_v59  ;;  %3974 = vmatprep.mubr.bf16.mxu1 %v3881_v32  ;;  %4167 = vmatprep.mubr.bf16.mxu0 %v3881_v32  ;;  %v7545_v55 = vpop.eup %7544 }
 0x740   : > { %7564 = vpow2.f32 %v3802_v44  ;;  %3975 = vmatmul.mubr.bf16.gmra.mrb[4].mxu1 %v3880_v4  ;;  %v7547_v17 = vpop.eup %7546 }
 0x741   : > { %4168 = vmatmul.mubr.bf16.gmra.mrb[68].mxu0 %v3880_v4  ;;  %7566 = vpow2.f32 %v3804_v47  ;;  %v3632_v3 = vpop.xlane.xlu1 %3631  ;;  %1874 = vperm.xlu1 %7013, %v7543_v28   ;;  %v12603_v4 = vld [vmem:[#allocation21_spill] sm:$0xff] }
 0x742   : > { %v7549_v46 = vpop.eup %7548  ;;  %7568 = vpow2.f32 %v3800_v10  ;;  %1844 = vperm.xlu0 %7012, %v7541_v41   ;;  %v3710_v51 = vsub.f32 %v10081_v63, %v3632_v3  ;;  %v3711_v2 = vsub.f32 %v10083_v21, %v3632_v3  ;;  %v12601_v21 = vld [vmem:[#allocation11_spill] sm:$0xff] }
 0x743   : > { %v7551_v7 = vpop.eup %7550  ;;  %7570 = vrcp.f32 %v12598_v36  ;;  %v3882_v58 = vpack.c.bf16 %v7549_v46, %v7547_v17  ;;  %v3635_v45 = vpop.xlane.xlu0 %3634  ;;  %v12606_v17 = vld [vmem:[#allocation22_spill] sm:$0xff] }
 0x744   : > { %v7553_v15 = vpop.eup %7552  ;;  %7572 = vrcp.f32 %v12599_v62  ;;  %v3806_v11 = vmul.f32 1.442695, %v3710_v51  ;;  %v3712_v5 = vsub.f32 %v10087_v1, %v3635_v45  ;;  %v3713_v39 = vsub.f32 %v10089_v16, %v3635_v45 }
 0x745   : > { %v7555_v23 = vpop.eup %7554  ;;  %7574 = vrcp.f32 %v12600_v61  ;;  %1879 = vperm.xlu1 %7013, %v7545_v55   ;;  %v3883_v63 = vpack.c.bf16 %v7551_v7, %v7553_v15  ;;  %v3808_v40 = vmul.f32 1.442695, %v3711_v2  ;;  %v12607_v2 = vld [vmem:[#allocation30_spill] sm:$0xff]  ;;  %v12608_v15 = vld [vmem:[#allocation28_spill] sm:$0xff] }
 0x746   : > { %v7557_v54 = vpop.eup %7556  ;;  %7576 = vrcp.f32 %v12601_v21  ;;  %v3810_v42 = vmul.f32 1.442695, %v3712_v5  ;;  %v3812_v57 = vmul.f32 1.442695, %v3713_v39  ;;  %1849 = vperm.xlu0 %7012, %v7555_v23  }
 0x747   : > { %v7559_v14 = vpop.eup %7558  ;;  %7578 = vpow2.f32 %v3806_v11  ;;  %3982 = vmatprep.mubr.bf16.mxu1 %v3883_v63  ;;  %4175 = vmatprep.mubr.bf16.mxu0 %v3883_v63 }
 0x748   : > { %v7561_v50 = vpop.eup %7560  ;;  %7580 = vpow2.f32 %v3810_v42  ;;  %3983 = vmatmul.mubr.bf16.gmra.mrb[8].mxu1 %v3882_v58  ;;  %v12610_v42 = vld [vmem:[#allocation36_spill] sm:$0xff] }
 0x749   : > { %4176 = vmatmul.mubr.bf16.gmra.mrb[72].mxu0 %v3882_v58  ;;  %v7563_v16 = vpop.eup %7562  ;;  %7582 = vpow2.f32 %v3812_v57  ;;  %v3638_v1 = vpop.xlane.xlu1 %3637  ;;  %1884 = vperm.xlu1 %7013, %v7559_v14  }
 0x74a   : > { %v7565_v33 = vpop.eup %7564  ;;  %7584 = vpow2.f32 %v3808_v40  ;;  %1854 = vperm.xlu0 %7012, %v7557_v54   ;;  %v3714_v25 = vsub.f32 %v10093_v26, %v3638_v1  ;;  %v3715_v35 = vsub.f32 %v10095_v56, %v3638_v1  ;;  %v12605_v56 = vld [vmem:[#allocation19_spill] sm:$0xff] }
 0x74b   : > { %v7567_v9 = vpop.eup %7566  ;;  %7586 = vrcp.f32 %v12602_v49  ;;  %v3884_v53 = vpack.c.bf16 %v7565_v33, %v7563_v16  ;;  %v3641_v29 = vpop.xlane.xlu0 %3640  ;;  %v12611_v16 = vld [vmem:[#allocation31_spill] sm:$0xff] }
 0x74c   : > { %v7569_v6 = vpop.eup %7568  ;;  %7588 = vrcp.f32 %v12603_v4  ;;  %v3814_v43 = vmul.f32 1.442695, %v3714_v25  ;;  %v3716_v0 = vsub.f32 %v10099_v22, %v3641_v29  ;;  %v3717_v30 = vsub.f32 %v10101_v13, %v3641_v29 }
 0x74d   : > { %v7571_v59 = vpop.eup %7570  ;;  %7590 = vrcp.f32 %v12604_v20  ;;  %1889 = vperm.xlu1 %7013, %v7561_v50   ;;  %v3885_v26 = vpack.c.bf16 %v7567_v9, %v7569_v6  ;;  %v3816_v38 = vmul.f32 1.442695, %v3715_v35  ;;  %v12612_v9 = vld [vmem:[#allocation29_spill] sm:$0xff] }
 0x74e   : > { %v7573_v18 = vpop.eup %7572  ;;  %7592 = vrcp.f32 %v12605_v56  ;;  %v3818_v32 = vmul.f32 1.442695, %v3716_v0  ;;  %v3820_v41 = vmul.f32 1.442695, %v3717_v30  ;;  %1864 = vperm.xlu0 %7012, %v7571_v59   ;;  %v12614_v59 = vld [vmem:[#allocation158_spill] sm:$0xff] }
 0x74f   : > { %v7575_v34 = vpop.eup %7574  ;;  %7594 = vpow2.f32 %v3814_v43  ;;  %3990 = vmatprep.mubr.bf16.mxu1 %v3885_v26  ;;  %4183 = vmatprep.mubr.bf16.mxu0 %v3885_v26 }
 0x750   : > { %v7577_v10 = vpop.eup %7576  ;;  %7596 = vpow2.f32 %v3818_v32  ;;  %3991 = vmatmul.mubr.bf16.gmra.mrb[12].mxu1 %v3884_v53 }
 0x751   : > { %4184 = vmatmul.mubr.bf16.gmra.mrb[76].mxu0 %v3884_v53  ;;  %v7579_v13 = vpop.eup %7578  ;;  %7598 = vpow2.f32 %v3820_v41  ;;  %v3644_v22 = vpop.xlane.xlu1 %3643  ;;  %1894 = vperm.xlu1 %7013, %v7573_v18   ;;  %v12615_v41 = vld [vmem:[#allocation159_spill] sm:$0xff] }
 0x752   : > { %v7581_v44 = vpop.eup %7580  ;;  %7600 = vpow2.f32 %v3816_v38  ;;  %1899 = vperm.xlu0 %7012, %v7575_v34   ;;  %v3718_v47 = vsub.f32 %v10105_v12, %v3644_v22  ;;  %v3719_v28 = vsub.f32 %v10107_v24, %v3644_v22  ;;  %v12609_v24 = vld [vmem:[#allocation38_spill] sm:$0xff] }
 0x753   : > { %v7583_v55 = vpop.eup %7582  ;;  %7602 = vrcp.f32 %v12606_v17  ;;  %v3886_v3 = vpack.c.bf16 %v7581_v44, %v7579_v13  ;;  %v3647_v46 = vpop.xlane.xlu0 %3646  ;;  %v12617_v44 = vld [vmem:[#allocation37_spill] sm:$0xff] }
 0x754   : > { %v7585_v51 = vpop.eup %7584  ;;  %7604 = vrcp.f32 %v12607_v2  ;;  %v3822_v7 = vmul.f32 1.442695, %v3718_v47  ;;  %v3720_v36 = vsub.f32 %v10111_v8, %v3647_v46  ;;  %v3721_v58 = vsub.f32 %v10113_v60, %v3647_v46 }
 0x755   : > { %v7587_v45 = vpop.eup %7586  ;;  %7606 = vrcp.f32 %v12608_v15  ;;  %1904 = vperm.xlu1 %7013, %v7577_v10   ;;  %v3887_v12 = vpack.c.bf16 %v7583_v55, %v7585_v51  ;;  %v3824_v11 = vmul.f32 1.442695, %v3719_v28  ;;  %v12616_v10 = vld [vmem:[#allocation160_spill] sm:$0xff]  ;;  %v12618_v55 = vld [vmem:[#allocation59_spill] sm:$0xff]  ;;  %v12620_v15 = vld [vmem:[#allocation162_spill] sm:$0xff] }
 0x756   : > { %v7589_v62 = vpop.eup %7588  ;;  %7608 = vrcp.f32 %v12609_v24  ;;  %v3826_v5 = vmul.f32 1.442695, %v3720_v36  ;;  %v3828_v39 = vmul.f32 1.442695, %v3721_v58  ;;  %1909 = vperm.xlu0 %7012, %v7587_v45   ;;  %v12619_v58 = vld [vmem:[#allocation161_spill] sm:$0xff] }
 0x757   : > { %v7591_v23 = vpop.eup %7590  ;;  %7610 = vpow2.f32 %v3822_v7  ;;  %3998 = vmatprep.mubr.bf16.mxu1 %v3887_v12  ;;  %4191 = vmatprep.mubr.bf16.mxu0 %v3887_v12 }
 0x758   : > { %v7593_v61 = vpop.eup %7592  ;;  %7612 = vpow2.f32 %v3826_v5  ;;  %3999 = vmatmul.mubr.bf16.gmra.mrb[16].mxu1 %v3886_v3 }
 0x759   : > { %4192 = vmatmul.mubr.bf16.gmra.mrb[80].mxu0 %v3886_v3  ;;  %v7595_v60 = vpop.eup %7594  ;;  %7614 = vpow2.f32 %v3828_v39  ;;  %v3650_v8 = vpop.xlane.xlu1 %3649  ;;  %1914 = vperm.xlu1 %7013, %v7589_v62  }
 0x75a   : > { %v7597_v63 = vpop.eup %7596  ;;  %7616 = vpow2.f32 %v3824_v11  ;;  %1919 = vperm.xlu0 %7012, %v7591_v23   ;;  %v3722_v54 = vsub.f32 %v10117_v37, %v3650_v8  ;;  %v3723_v21 = vsub.f32 %v10119_v19, %v3650_v8  ;;  %v12613_v19 = vld [vmem:[#allocation39_spill] sm:$0xff] }
 0x75b   : > { %v7599_v40 = vpop.eup %7598  ;;  %7618 = vrcp.f32 %v12610_v42  ;;  %v3888_v57 = vpack.c.bf16 %v7597_v63, %v7595_v60  ;;  %v3653_v14 = vpop.xlane.xlu0 %3652  ;;  %v12621_v23 = vld [vmem:[#allocation163_spill] sm:$0xff]  ;;  %v12622_v60 = vld [vmem:[#allocation164_spill] sm:$0xff] }
 0x75c   : > { %v7601_v50 = vpop.eup %7600  ;;  %7620 = vrcp.f32 %v12611_v16  ;;  %v3830_v1 = vmul.f32 1.442695, %v3722_v54  ;;  %v3724_v33 = vsub.f32 %v10123_v52, %v3653_v14  ;;  %v3725_v25 = vsub.f32 %v10125_v27, %v3653_v14  ;;  %v12623_v54 = vld [vmem:[#allocation74_spill] sm:$0xff] }
 0x75d   : > { %v7603_v35 = vpop.eup %7602  ;;  %7622 = vrcp.f32 %v12612_v9  ;;  %1924 = vperm.xlu1 %7013, %v7593_v61   ;;  %v3889_v37 = vpack.c.bf16 %v7599_v40, %v7601_v50  ;;  %v3832_v53 = vmul.f32 1.442695, %v3723_v21 }
 0x75e   : > { %v7605_v49 = vpop.eup %7604  ;;  %7624 = vrcp.f32 %v12613_v19  ;;  %v3834_v29 = vmul.f32 1.442695, %v3724_v33  ;;  %v3836_v6 = vmul.f32 1.442695, %v3725_v25  ;;  %1929 = vperm.xlu0 %7012, %v7603_v35   ;;  %v12624_v33 = vld [vmem:[#allocation165_spill] sm:$0xff]  ;;  %v12625_v35 = vld [vmem:[#allocation166_spill] sm:$0xff] }
 0x75f   : > { %v7607_v4 = vpop.eup %7606  ;;  %7626 = vpow2.f32 %v3830_v1  ;;  %4006 = vmatprep.mubr.bf16.mxu1 %v3889_v37  ;;  %4199 = vmatprep.mubr.bf16.mxu0 %v3889_v37 }
 0x760   : > { %v7609_v43 = vpop.eup %7608  ;;  %7628 = vpow2.f32 %v3834_v29  ;;  %4007 = vmatmul.mubr.bf16.gmra.mrb[20].mxu1 %v3888_v57 }
 0x761   : > { %4200 = vmatmul.mubr.bf16.gmra.mrb[84].mxu0 %v3888_v57  ;;  %v7611_v27 = vpop.eup %7610  ;;  %7630 = vpow2.f32 %v3836_v6  ;;  %v3656_v52 = vpop.xlane.xlu1 %3655  ;;  %1934 = vperm.xlu1 %7013, %v7605_v49  }
 0x762   : > { %v7613_v0 = vpop.eup %7612  ;;  %7632 = vpow2.f32 %v3832_v53  ;;  %1939 = vperm.xlu0 %7012, %v7607_v4   ;;  %v3726_v30 = vsub.f32 %v10129_v31, %v3656_v52  ;;  %v3727_v20 = vsub.f32 %v12614_v59, %v3656_v52  ;;  %v12626_v4 = vld [vmem:[#allocation167_spill] sm:$0xff] }
 0x763   : > { %v7615_v26 = vpop.eup %7614  ;;  %v3890_v18 = vpack.c.bf16 %v7613_v0, %v7611_v27  ;;  %v3659_v56 = vpop.xlane.xlu0 %3658  ;;  %7634 = vrcp.f32 %v12617_v44  ;;  %v12627_v27 = vld [vmem:[#allocation168_spill] sm:$0xff] }
 0x764   : > { %v7617_v38 = vpop.eup %7616  ;;  %v3838_v32 = vmul.f32 1.442695, %v3726_v30  ;;  %v3728_v34 = vsub.f32 %v12615_v41, %v3659_v56  ;;  %v3729_v13 = vsub.f32 %v12616_v10, %v3659_v56  ;;  %7636 = vrcp.f32 %v12618_v55  ;;  %v12629_v41 = vld [vmem:[#allocation170_spill] sm:$0xff] }
 0x765   : > { %v7619_v22 = vpop.eup %7618  ;;  %1944 = vperm.xlu1 %7013, %v7609_v43   ;;  %v3891_v47 = vpack.c.bf16 %v7615_v26, %v7617_v38  ;;  %v3840_v31 = vmul.f32 1.442695, %v3727_v20  ;;  %v12628_v38 = vld [vmem:[#allocation169_spill] sm:$0xff] }
 0x766   : > { %v7621_v28 = vpop.eup %7620  ;;  %v3842_v17 = vmul.f32 1.442695, %v3728_v34  ;;  %v3844_v3 = vmul.f32 1.442695, %v3729_v13  ;;  %1949 = vperm.xlu0 %7012, %v7619_v22   ;;  %7638 = vpow2.f32 %v3838_v32 }
 0x767   : > { %v7623_v46 = vpop.eup %7622  ;;  %4014 = vmatprep.mubr.bf16.mxu1 %v3891_v47  ;;  %4207 = vmatprep.mubr.bf16.mxu0 %v3891_v47 }
 0x768   : > { %v7625_v51 = vpop.eup %7624  ;;  %7640 = vpow2.f32 %v3842_v17  ;;  %4015 = vmatmul.mubr.bf16.gmra.mrb[24].mxu1 %v3890_v18 }
 0x769   : > { %4208 = vmatmul.mubr.bf16.gmra.mrb[88].mxu0 %v3890_v18  ;;  %v7627_v2 = vpop.eup %7626  ;;  %7642 = vpow2.f32 %v3844_v3  ;;  %v3662_v7 = vpop.xlane.xlu1 %3661  ;;  %1954 = vperm.xlu1 %7013, %v7621_v28  }
 0x76a   : > { %v7629_v36 = vpop.eup %7628  ;;  %7644 = vpow2.f32 %v3840_v31  ;;  %1959 = vperm.xlu0 %7012, %v7623_v46   ;;  %v3730_v45 = vsub.f32 %v12619_v58, %v3662_v7  ;;  %v3731_v12 = vsub.f32 %v12620_v15, %v3662_v7  ;;  %v12630_v31 = vld [vmem:[#allocation171_spill] sm:$0xff] }
 0x76b   : > { %v7631_v62 = vpop.eup %7630  ;;  %v3892_v24 = vpack.c.bf16 %v7629_v36, %v7627_v2  ;;  %v3665_v11 = vpop.xlane.xlu0 %3664  ;;  %7646 = vrcp.f32 %v12623_v54  ;;  %v12632_v54 = vld [vmem:[#allocation12_spill] sm:$0xff] }
 0x76c   : > { %v7633_v5 = vpop.eup %7632  ;;  %v3846_v39 = vmul.f32 1.442695, %v3730_v45  ;;  %v3732_v61 = vsub.f32 %v12621_v23, %v3665_v11  ;;  %v3733_v8 = vsub.f32 %v12622_v60, %v3665_v11  ;;  %v3848_v21 = vmul.f32 1.442695, %v3731_v12 }
 0x76d   : > { %1964 = vperm.xlu1 %7013, %v7625_v51   ;;  %v3893_v63 = vpack.c.bf16 %v7631_v62, %v7633_v5  ;;  %v7635_v57 = vpop.eup %7634 }
 0x76e   : > { %v3850_v40 = vmul.f32 1.442695, %v3732_v61  ;;  %v3852_v42 = vmul.f32 1.442695, %v3733_v8  ;;  %7648 = vpow2.f32 %v3846_v39  ;;  %v7637_v14 = vpop.eup %7636  ;;  %v12631_v61 = vmov 0  }
 0x76f   : > { %4022 = vmatprep.mubr.bf16.mxu1 %v3893_v63  ;;  %4215 = vmatprep.mubr.bf16.mxu0 %v3893_v63 }
 0x770   : > { %7650 = vpow2.f32 %v3850_v40  ;;  %4023 = vmatmul.mubr.bf16.gmra.mrb[28].mxu1 %v3892_v24  ;;  %v7639_v50 = vpop.eup %7638 }
 0x771   : > { %4216 = vmatmul.mubr.bf16.gmra.mrb[92].mxu0 %v3892_v24  ;;  %7652 = vpow2.f32 %v3852_v42  ;;  %v3668_v16 = vpop.xlane.xlu1 %3667  ;;  %1974 = vperm.xlu1 %7013, %v7635_v57   ;;  %v12635_v42 = vld [vmem:[#allocation8_spill] sm:$0xff]  ;;  %v12636_v57 = vld [vmem:[#allocation95_spill] sm:$0xff] }
 0x772   : > { %v7641_v1 = vpop.eup %7640  ;;  %7654 = vpow2.f32 %v3848_v21  ;;  %v3734_v25 = vsub.f32 %v12624_v33, %v3668_v16  ;;  %v3735_v9 = vsub.f32 %v12625_v35, %v3668_v16  ;;  %v12633_v21 = vld [vmem:[#allocation92_spill] sm:$0xff]  ;;  %v12638_v33 = vld [vmem:[#allocation26_spill] sm:$0xff] }
 0x773   : > { %v7643_v37 = vpop.eup %7642  ;;  %v3894_v49 = vpack.c.bf16 %v7641_v1, %v7639_v50  ;;  %v3671_v19 = vpop.xlane.xlu0 %3670  ;;  %v12634_v40 = vpack.c.bf16 %v12632_v54, %v12633_v21  ;;  %v12663_v21 = vld [vmem:[#allocation121_spill] sm:$0xff] }
 0x774   : > { %v7645_v53 = vpop.eup %7644  ;;  %v3854_v29 = vmul.f32 1.442695, %v3734_v25  ;;  %v3856_v6 = vmul.f32 1.442695, %v3735_v9  ;;  %v3736_v43 = vsub.f32 %v12626_v4, %v3671_v19  ;;  %v3737_v52 = vsub.f32 %v12627_v27, %v3671_v19  ;;  %v12639_v25 = vld [vmem:[#allocation10_spill] sm:$0xff] }
 0x775   : > { %1984 = vperm.xlu1 %7013, %v7637_v14   ;;  %v3895_v0 = vpack.c.bf16 %v7643_v37, %v7645_v53  ;;  %v7647_v20 = vpop.eup %7646  ;;  %v12637_v14 = vpack.c.bf16 %v12635_v42, %v12636_v57  ;;  %v12640_v35 = vpack.c.bf16 %v12638_v33, %v12639_v25  ;;  %v12665_v42 = vld [vmem:[#allocation80_spill] sm:$0xff] }
 0x776   : > { %7656 = vpow2.f32 %v3854_v29  ;;  %v3858_v30 = vmul.f32 1.442695, %v3736_v43  ;;  %v3860_v59 = vmul.f32 1.442695, %v3737_v52 }
 0x777   : > { %7658 = vpow2.f32 %v3856_v6  ;;  %4030 = vmatprep.mubr.bf16.mxu1 %v3895_v0  ;;  %4223 = vmatprep.mubr.bf16.mxu0 %v3895_v0 }
 0x778   : > { %7660 = vpow2.f32 %v3858_v30  ;;  %4031 = vmatmul.mubr.bf16.gmra.mrb[32].mxu1 %v3894_v49  ;;  %v7649_v26 = vpop.eup %7648 }
 0x779   : > { %4224 = vmatmul.mubr.bf16.gmra.mrb[96].mxu0 %v3894_v49  ;;  %7662 = vpow2.f32 %v3860_v59  ;;  %1994 = vperm.xlu1 %7013, %v7647_v20   ;;  %v3674_v18 = vpop.xlane.xlu1 %3673 }
 0x77a   : > { %v7651_v56 = vpop.eup %7650  ;;  %v3738_v32 = vsub.f32 %v12628_v38, %v3674_v18  ;;  %v3739_v34 = vsub.f32 %v12629_v41, %v3674_v18 }
 0x77b   : > { %v7653_v10 = vpop.eup %7652  ;;  %v3896_v13 = vpack.c.bf16 %v7651_v56, %v7649_v26  ;;  %v3677_v22 = vpop.xlane.xlu0 %3676 }
 0x77c   : > { %v7655_v44 = vpop.eup %7654  ;;  %v3862_v47 = vmul.f32 1.442695, %v3738_v32  ;;  %v3864_v28 = vmul.f32 1.442695, %v3739_v34  ;;  %v3740_v55 = vsub.f32 %v10171_v48, %v3677_v22  ;;  %v3741_v17 = vsub.f32 %v12630_v31, %v3677_v22 }
 0x77d   : > { %v3897_v3 = vpack.c.bf16 %v7653_v10, %v7655_v44  ;;  %v12645_v44 = vld [vmem:[#allocation73_spill] sm:$0xff] }
 0x77e   : > { %7664 = vpow2.f32 %v3862_v47  ;;  %v3866_v46 = vmul.f32 1.442695, %v3740_v55  ;;  %v3868_v51 = vmul.f32 1.442695, %v3741_v17  ;;  %v12647_v55 = vld [vmem:[#allocation117_spill] sm:$0xff]  ;;  %v12649_v17 = vld [vmem:[#allocation76_spill] sm:$0xff] }
 0x77f   : > { %7666 = vpow2.f32 %v3864_v28  ;;  %4038 = vmatprep.mubr.bf16.mxu1 %v3897_v3  ;;  %4231 = vmatprep.mubr.bf16.mxu0 %v3897_v3  ;;  %v4524_v24 = vpop.trf.xlu1 }
 0x780   : > { %v7657_v2 = vpop.eup %7656  ;;  %7668 = vpow2.f32 %v3866_v46  ;;  %4039 = vmatmul.mubr.bf16.gmra.mrb[36].mxu1 %v3896_v13  ;;  %v12651_v46 = vld [vmem:[#allocation118_spill] sm:$0xff] }
 0x781   : > { %4232 = vmatmul.mubr.bf16.gmra.mrb[100].mxu0 %v3896_v13  ;;  %v7659_v7 = vpop.eup %7658  ;;  %7670 = vpow2.f32 %v3868_v51 }
 0x782   : > { %v7661_v36 = vpop.eup %7660 }
 0x783   : > { %v7663_v58 = vpop.eup %7662  ;;  %v3898_v45 = vpack.c.bf16 %v7661_v36, %v7657_v2  ;;  %v4525_v23 = vpop.trf.xlu1 }
 0x784   : > { %v3899_v15 = vpack.c.bf16 %v7663_v58, %v7659_v7  ;;  %v4540_v60 = vpop.trf.xlu0  ;;  %v12653_v58 = vld [vmem:[#allocation75_spill] sm:$0xff] }
 0x786   : > { %4046 = vmatprep.mubr.bf16.mxu1 %v3899_v15  ;;  %4239 = vmatprep.mubr.bf16.mxu0 %v3899_v15 }
 0x787   : > { %v4526_v8 = vpop.trf.xlu1 }
 0x788   : > { %v7665_v48 = vpop.eup %7664  ;;  %4047 = vmatmul.mubr.bf16.gmra.mrb[40].mxu1 %v3898_v45  ;;  %v4541_v63 = vpop.trf.xlu0 }
 0x789   : > { %4240 = vmatmul.mubr.bf16.gmra.mrb[104].mxu0 %v3898_v45  ;;  %v7667_v12 = vpop.eup %7666 }
 0x78a   : > { %v7669_v62 = vpop.eup %7668 }
 0x78b   : > { %v7671_v11 = vpop.eup %7670  ;;  %v3900_v5 = vpack.c.bf16 %v7669_v62, %v7665_v48  ;;  %v4527_v50 = vpop.trf.xlu1  ;;  %v12655_v48 = vld [vmem:[#allocation119_spill] sm:$0xff]  ;;  %v12657_v62 = vld [vmem:[#allocation78_spill] sm:$0xff] }
 0x78c   : > { %v3901_v39 = vpack.c.bf16 %v7671_v11, %v7667_v12  ;;  %v10317_v16 = vpop.trf.xlu0  ;;  %v12659_v11 = vld [vmem:[#allocation120_spill] sm:$0xff] }
 0x78e   : > { %4054 = vmatprep.mubr.bf16.mxu1 %v3901_v39  ;;  %4247 = vmatprep.mubr.bf16.mxu0 %v3901_v39 }
 0x78f   : > { %v4528_v1 = vpop.trf.xlu1 }
 0x790   : > { %4055 = vmatmul.mubr.bf16.gmra.mrb[44].mxu1 %v3900_v5  ;;  %v10324_v9 = vpop.trf.xlu0 }
 0x791   : > { %4248 = vmatmul.mubr.bf16.gmra.mrb[108].mxu0 %v3900_v5  ;;  %4628 = vmatprep.mubr.bf16.mxu1 %v12631_v61 }
 0x793   : > { %v4529_v37 = vpop.trf.xlu1 }
 0x794   : > { %v10328_v49 = vpop.trf.xlu0 }
 0x797   : > { %v4530_v19 = vpop.trf.xlu1 }
 0x798   : > { %6469 = vmatmul.mubr.msk.bf16.vlgmr.msra.gmra.mrb[48].mxu1 %vm926_vm1, %v4524_v24  ;;  %v10330_v53 = vpop.trf.xlu0 }
 0x799   : > { %5303 = vmatpush1.bf16.xpose.msra.mxu1 %v12634_v40  ;;  %4638 = vmatprep.mubr.bf16.mxu1 %v12631_v61 }
 0x79a   : > { %5304 = vmatprep.subr.bf16.mxu1 %v12637_v14  ;;  %v12667_v14 = vld [vmem:[#allocation122_spill] sm:$0xff] }
 0x79b   : > { %v4531_v29 = vpop.trf.xlu1 }
 0x79c   : > { %v10334_v6 = vpop.trf.xlu0 }
 0x7a0   : > { %6470 = vmatmul.mubr.msk.bf16.gmra.mrb[52].mxu1 %vm926_vm1, %v4525_v23  ;;  %v10338_v43 = vpop.trf.xlu0 }
 0x7a1   : > { %5305 = vmatpush1.bf16.xpose.msra.mxu1 %v12640_v35  ;;  %4648 = vmatprep.mubr.bf16.mxu1 %v12631_v61  ;;  %v12669_v35 = vld [vmem:[#allocation79_spill] sm:$0xff] }
 0x7a8   : > { %6471 = vmatmul.mubr.msk.bf16.gmra.mrb[56].mxu1 %vm926_vm1, %v4526_v8  ;;  %v12661_v8 = vld [vmem:[#allocation77_spill] sm:$0xff] }
 0x7a9   : > { %4658 = vmatprep.mubr.bf16.mxu1 %v12631_v61 }
 0x7b0   : > { %6472 = vmatmul.mubr.msk.bf16.gmra.mrb[60].mxu1 %vm926_vm1, %v4527_v50 }
 0x7b1   : > { %4668 = vmatprep.mubr.bf16.mxu1 %v12631_v61 }
 0x7b8   : > { %6473 = vmatmul.mubr.msk.bf16.gmra.mrb[64].mxu1 %vm926_vm1, %v4528_v1  ;;  %v1860_v4 = vpop.permute.xlu1 %1859 }
 0x7b9   : > { %4678 = vmatprep.mubr.bf16.mxu1 %v12631_v61  ;;  %v10385_v24 = vmul.f32 %v1860_v4, %v12657_v62 }
 0x7bb   : > { %12658 = vst [vmem:[#allocation52_spill] sm:$0xff] %v10385_v24 }
 0x7bc   : > { %v1870_v27 = vpop.permute.xlu1 %1869 }
 0x7bd   : > { %v10401_v57 = vmul.f32 %v1870_v27, %v12665_v42  ;;  %v12673_v27 = vld [vmem:[#allocation82_spill] sm:$0xff] }
 0x7bf   : > { %12666 = vst [vmem:[#allocation55_spill] sm:$0xff] %v10401_v57 }
 0x7c0   : > { %6474 = vmatmul.mubr.msk.bf16.gmra.mrb[68].mxu1 %vm926_vm1, %v4529_v37  ;;  %v1875_v52 = vpop.permute.xlu1 %1874 }
 0x7c1   : > { %v1845_v0 = vpop.permute.xlu0 %1844  ;;  %4688 = vmatprep.mubr.bf16.mxu1 %v12631_v61  ;;  %v10413_v37 = vmul.f32 %v1875_v52, %v12669_v35 }
 0x7c2   : > { %v10361_v47 = vmul.f32 %v1845_v0, %v12645_v44 }
 0x7c3   : > { %12670 = vst [vmem:[#allocation20_spill] sm:$0xff] %v10413_v37 }
 0x7c4   : > { %v1880_v30 = vpop.permute.xlu1 %1879  ;;  %12646 = vst [vmem:[#allocation71_spill] sm:$0xff] %v10361_v47 }
 0x7c5   : > { %v1850_v59 = vpop.permute.xlu0 %1849  ;;  %v10420_v0 = vmul.f32 %v1880_v30, %v12673_v27 }
 0x7c6   : > { %v10367_v3 = vmul.f32 %v1850_v59, %v12649_v17  ;;  %v12675_v59 = vld [vmem:[#allocation124_spill] sm:$0xff] }
 0x7c7   : > { %12674 = vst [vmem:[#allocation24_spill] sm:$0xff] %v10420_v0 }
 0x7c8   : > { %6475 = vmatmul.mubr.msk.bf16.gmra.mrb[72].mxu1 %vm926_vm1, %v4530_v19  ;;  %v1885_v20 = vpop.permute.xlu1 %1884  ;;  %12650 = vst [vmem:[#allocation47_spill] sm:$0xff] %v10367_v3 }
 0x7c9   : > { %v1855_v26 = vpop.permute.xlu0 %1854  ;;  %4698 = vmatprep.mubr.bf16.mxu1 %v12631_v61 }
 0x7ca   : > { %v10378_v45 = vmul.f32 %v1855_v26, %v12653_v58  ;;  %v12679_v58 = vld [vmem:[#allocation83_spill] sm:$0xff] }
 0x7cc   : > { %v10344_v18 = vpop.permute.xlu1 %1889  ;;  %12654 = vst [vmem:[#allocation68_spill] sm:$0xff] %v10378_v45 }
 0x7cd   : > { %12641 = vst [vmem:[#allocation60_spill] sm:$0xff] %v10344_v18  ;;  %v1865_v56 = vpop.permute.xlu0 %1864 }
 0x7d0   : > { %6476 = vmatmul.mubr.msk.bf16.gmra.mrb[76].mxu1 %vm926_vm1, %v4531_v29  ;;  %v1895_v38 = vpop.permute.xlu1 %1894  ;;  %v12671_v29 = vld [vmem:[#allocation123_spill] sm:$0xff] }
 0x7d1   : > { %v10347_v32 = vpop.permute.xlu0 %1899  ;;  %4708 = vmatprep.mubr.bf16.mxu1 %v12631_v61 }
 0x7d2   : > { %12642 = vst [vmem:[#allocation58_spill] sm:$0xff] %v10347_v32 }
 0x7d4   : > { %v10350_v41 = vpop.permute.xlu1 %1904 }
 0x7d5   : > { %v10352_v34 = vpop.permute.xlu0 %1909 }
 0x7d6   : > { %12643 = vst [vmem:[#allocation44_spill] sm:$0xff] %v10352_v34 }
 0x7d8   : > { %6477 = vmatmul.mubr.msk.bf16.gmra.mrb[80].mxu1 %vm926_vm1, %v4540_v60  ;;  %v10355_v10 = vpop.permute.xlu1 %1914 }
 0x7d9   : > { %v10357_v13 = vpop.permute.xlu0 %1919  ;;  %4718 = vmatprep.mubr.bf16.mxu1 %v12631_v61 }
 0x7da   : > { %12644 = vst [vmem:[#allocation42_spill] sm:$0xff] %v10357_v13 }
 0x7dc   : > { %v1925_v22 = vpop.permute.xlu1 %1924 }
 0x7dd   : > { %v1930_v28 = vpop.permute.xlu0 %1929  ;;  %v10364_v31 = vmul.f32 %v1925_v22, %v12647_v55 }
 0x7de   : > { %v10370_v51 = vmul.f32 %v1930_v28, %v12651_v46 }
 0x7df   : > { %12648 = vst [vmem:[#allocation70_spill] sm:$0xff] %v10364_v31 }
 0x7e0   : > { %12652 = vst [vmem:[#allocation46_spill] sm:$0xff] %v10370_v51  ;;  %6478 = vmatmul.mubr.msk.bf16.gmra.mrb[84].mxu1 %vm926_vm1, %v4541_v63  ;;  %v1935_v36 = vpop.permute.xlu1 %1934  ;;  %v10395_v63 = vmul.f32 %v1865_v56, %v12661_v8 }
 0x7e1   : > { %v1940_v15 = vpop.permute.xlu0 %1939  ;;  %v10381_v12 = vmul.f32 %v1935_v36, %v12655_v48  ;;  %4728 = vmatprep.mubr.bf16.mxu1 %v12631_v61  ;;  %v12681_v48 = vld [vmem:[#allocation125_spill] sm:$0xff] }
 0x7e2   : > { %v10388_v5 = vmul.f32 %v1940_v15, %v12659_v11  ;;  %12662 = vst [vmem:[#allocation9_spill] sm:$0xff] %v10395_v63  ;;  %v10436_v15 = vmul.f32 %v1885_v20, %v12679_v58  ;;  %v12685_v20 = vld [vmem:[#allocation127_spill] sm:$0xff] }
 0x7e3   : > { %12656 = vst [vmem:[#allocation66_spill] sm:$0xff] %v10381_v12 }
 0x7e4   : > { %12660 = vst [vmem:[#allocation50_spill] sm:$0xff] %v10388_v5  ;;  %v1945_v60 = vpop.permute.xlu1 %1944  ;;  %12680 = vst [vmem:[#allocation17_spill] sm:$0xff] %v10436_v15 }
 0x7e5   : > { %v1950_v54 = vpop.permute.xlu0 %1949  ;;  %v10398_v40 = vmul.f32 %v1945_v60, %v12663_v21  ;;  %v12683_v21 = vld [vmem:[#allocation100_spill] sm:$0xff] }
 0x7e6   : > { %v10404_v50 = vmul.f32 %v1950_v54, %v12667_v14  ;;  %v10449_v42 = vmul.f32 %v1895_v38, %v12683_v21  ;;  %v12689_v38 = vld [vmem:[#allocation106_spill] sm:$0xff]  ;;  %v12694_v21 = vld [vmem:[#allocation112_spill] sm:$0xff] }
 0x7e7   : > { %12664 = vst [vmem:[#allocation91_spill] sm:$0xff] %v10398_v40 }
 0x7e8   : > { %12668 = vst [vmem:[#allocation54_spill] sm:$0xff] %v10404_v50  ;;  %6479 = vmatmul.mubr.msk.bf16.gmra.mrb[88].mxu1 %vm926_vm1, %v10317_v16  ;;  %v1955_v25 = vpop.permute.xlu1 %1954  ;;  %12684 = vst [vmem:[#allocation35_spill] sm:$0xff] %v10449_v42 }
 0x7e9   : > { %v1960_v19 = vpop.permute.xlu0 %1959  ;;  %v10416_v4 = vmul.f32 %v1955_v25, %v12671_v29  ;;  %4738 = vmatprep.mubr.bf16.mxu1 %v12631_v61 }
 0x7ea   : > { %v10423_v26 = vmul.f32 %v1960_v19, %v12675_v59 }
 0x7eb   : > { %12672 = vst [vmem:[#allocation25_spill] sm:$0xff] %v10416_v4  ;;  %v6752_v16 = vpop.f32.mrb[240].mxu1  ;;  %v10427_v22 = vpop.f32.mrb[48].mxu0 }
 0x7ec   : > { %12676 = vst [vmem:[#allocation18_spill] sm:$0xff] %v10423_v26  ;;  %12677 = vst [vmem:[#allocation34_spill] sm:$0xff] %v10427_v22  ;;  %v6753_v44 = vpop.f32.mrb[241].mxu1  ;;  %v4131_v28 = vpop.f32.mrb[49].mxu0 }
 0x7ed   : > { %v10431_v55 = vadd.f32 %v6753_v44, %v6752_v16  ;;  %v6755_v17 = vpop.f32.mrb[242].mxu1  ;;  %v10433_v46 = vpop.f32.mrb[50].mxu0 }
 0x7ee   : > { %12678 = vst [vmem:[#allocation27_spill] sm:$0xff] %v10433_v46  ;;  %v1965_v30 = vpop.permute.xlu1 %1964  ;;  %v6756_v36 = vpop.f32.mrb[243].mxu1 }
 0x7ef   : > { %v10439_v62 = vmul.f32 %v1965_v30, %v12681_v48  ;;  %v10441_v11 = vadd.f32 %v6756_v36, %v6755_v17  ;;  %v4134_v60 = vpop.f32.mrb[51].mxu0  ;;  %v10464_v17 = vmul.f32 %v10350_v41, %v12689_v38  ;;  %v12691_v30 = vld [vmem:[#allocation57_spill] sm:$0xff] }
 0x7f0   : > { %6480 = vmatmul.mubr.msk.bf16.gmra.mrb[92].mxu1 %vm926_vm1, %v10324_v9  ;;  %v12696_v41 = vld [vmem:[#allocation69_spill] sm:$0xff] }
 0x7f1   : > { %12682 = vst [vmem:[#allocation32_spill] sm:$0xff] %v10439_v62  ;;  %4748 = vmatprep.mubr.bf16.mxu1 %v12631_v61  ;;  %12690 = vst [vmem:[#allocation11_spill] sm:$0xff] %v10464_v17 }
 0x7f2   : > { %v1975_v54 = vpop.permute.xlu1 %1974 }
 0x7f3   : > { %v10452_v14 = vmul.f32 %v1975_v54, %v12685_v20  ;;  %v6758_v25 = vpop.f32.mrb[244].mxu1  ;;  %v10478_v20 = vmul.f32 %v10355_v10, %v12694_v21 }
 0x7f4   : > { %v10454_v35 = vpop.f32.mrb[52].mxu0  ;;  %v6759_v19 = vpop.f32.mrb[245].mxu1 }
 0x7f5   : > { %12686 = vst [vmem:[#allocation16_spill] sm:$0xff] %v10452_v14  ;;  %12687 = vst [vmem:[#allocation13_spill] sm:$0xff] %v10454_v35  ;;  %v4139_v29 = vpop.f32.mrb[53].mxu0  ;;  %v10458_v27 = vadd.f32 %v6759_v19, %v6758_v25  ;;  %v6761_v59 = vpop.f32.mrb[246].mxu1 }
 0x7f6   : > { %v10460_v16 = vpop.f32.mrb[54].mxu0  ;;  %v1985_v44 = vpop.permute.xlu1 %1984  ;;  %12695 = vst [vmem:[#allocation23_spill] sm:$0xff] %v10478_v20 }
 0x7f7   : > { %12688 = vst [vmem:[#allocation15_spill] sm:$0xff] %v10460_v16  ;;  %v6762_v28 = vpop.f32.mrb[247].mxu1  ;;  %v10467_v36 = vmul.f32 %v1985_v44, %v12691_v30  ;;  %v4142_v48 = vpop.f32.mrb[55].mxu0 }
 0x7f8   : > { %v10469_v58 = vadd.f32 %v6762_v28, %v6761_v59  ;;  %6481 = vmatmul.mubr.msk.bf16.gmra.mrb[96].mxu1 %vm926_vm1, %v10328_v49 }
 0x7f9   : > { %12692 = vst [vmem:[#allocation14_spill] sm:$0xff] %v10467_v36  ;;  %4758 = vmatprep.mubr.bf16.mxu1 %v12631_v61 }
 0x7fa   : > { %12693 = vst [vmem:[#allocation21_spill] sm:$0xff] %v10469_v58  ;;  %v1995_v54 = vpop.permute.xlu1 %1994 }
 0x7fb   : > { %v10481_v25 = vmul.f32 %v1995_v54, %v12696_v41  ;;  %v6764_v19 = vpop.f32.mrb[248].mxu1 }
 0x7fc   : > { %v10483_v29 = vpop.f32.mrb[56].mxu0  ;;  %v6765_v59 = vpop.f32.mrb[249].mxu1 }
 0x7fd   : > { %12697 = vst [vmem:[#allocation19_spill] sm:$0xff] %v10481_v25  ;;  %12698 = vst [vmem:[#allocation22_spill] sm:$0xff] %v10483_v29  ;;  %v4147_v44 = vpop.f32.mrb[57].mxu0  ;;  %v10487_v28 = vadd.f32 %v6765_v59, %v6764_v19  ;;  %v6767_v38 = vpop.f32.mrb[250].mxu1 }
 0x7fe   : > { %v10489_v30 = vpop.f32.mrb[58].mxu0  ;;  %v6768_v48 = vpop.f32.mrb[251].mxu1 }
 0x7ff   : > { %12699 = vst [vmem:[#allocation30_spill] sm:$0xff] %v10487_v28  ;;  %12700 = vst [vmem:[#allocation28_spill] sm:$0xff] %v10489_v30  ;;  %v4150_v60 = vpop.f32.mrb[59].mxu0  ;;  %v10491_v10 = vadd.f32 %v6768_v48, %v6767_v38 }
 0x800   : > { %6482 = vmatmul.mubr.msk.bf16.gmra.mrb[100].mxu1 %vm926_vm1, %v10330_v53 }
 0x801   : > { %12701 = vst [vmem:[#allocation38_spill] sm:$0xff] %v10491_v10  ;;  %4768 = vmatprep.mubr.bf16.mxu1 %v12631_v61 }
 0x803   : > { %v6770_v54 = vpop.f32.mrb[252].mxu1 }
 0x804   : > { %v10496_v21 = vpop.f32.mrb[60].mxu0  ;;  %v6771_v41 = vpop.f32.mrb[253].mxu1 }
 0x805   : > { %12702 = vst [vmem:[#allocation36_spill] sm:$0xff] %v10496_v21  ;;  %v4155_v44 = vpop.f32.mrb[61].mxu0  ;;  %v10498_v49 = vadd.f32 %v6771_v41, %v6770_v54  ;;  %v6773_v19 = vpop.f32.mrb[254].mxu1 }
 0x806   : > { %v10500_v59 = vpop.f32.mrb[62].mxu0  ;;  %v6774_v9 = vpop.f32.mrb[255].mxu1 }
 0x807   : > { %12703 = vst [vmem:[#allocation31_spill] sm:$0xff] %v10498_v49  ;;  %12704 = vst [vmem:[#allocation29_spill] sm:$0xff] %v10500_v59  ;;  %v4158_v8 = vpop.f32.mrb[63].mxu0  ;;  %v10502_v60 = vadd.f32 %v6774_v9, %v6773_v19 }
 0x808   : > { %6483 = vmatmul.mubr.msk.bf16.gmra.mrb[104].mxu1 %vm926_vm1, %v10334_v6 }
 0x809   : > { %12705 = vst [vmem:[#allocation39_spill] sm:$0xff] %v10502_v60  ;;  %4778 = vmatprep.mubr.bf16.mxu1 %v12631_v61 }
 0x80b   : > { %v6776_v53 = vpop.f32.mrb[0].mxu1 }
 0x80c   : > { %v10507_v38 = vpop.f32.mrb[64].mxu0  ;;  %v6777_v48 = vpop.f32.mrb[1].mxu1 }
 0x80d   : > { %12706 = vst [vmem:[#allocation158_spill] sm:$0xff] %v10507_v38  ;;  %v4163_v52 = vpop.f32.mrb[65].mxu0  ;;  %v10509_v44 = vadd.f32 %v6777_v48, %v6776_v53  ;;  %v6779_v54 = vpop.f32.mrb[2].mxu1 }
 0x80e   : > { %v10511_v41 = vpop.f32.mrb[66].mxu0  ;;  %v6780_v56 = vpop.f32.mrb[3].mxu1 }
 0x80f   : > { %12707 = vst [vmem:[#allocation159_spill] sm:$0xff] %v10509_v44  ;;  %12708 = vst [vmem:[#allocation160_spill] sm:$0xff] %v10511_v41  ;;  %v4166_v33 = vpop.f32.mrb[67].mxu0  ;;  %v10513_v8 = vadd.f32 %v6780_v56, %v6779_v54 }
 0x810   : > { %6484 = vmatmul.mubr.msk.bf16.gmra.mrb[108].mxu1 %vm926_vm1, %v10338_v43 }
 0x811   : > { %12709 = vst [vmem:[#allocation37_spill] sm:$0xff] %v10513_v8 }
 0x813   : > { %v6782_v6 = vpop.f32.mrb[4].mxu1 }
 0x814   : > { %v10517_v9 = vpop.f32.mrb[68].mxu0  ;;  %v6783_v19 = vpop.f32.mrb[5].mxu1 }
 0x815   : > { %12710 = vst [vmem:[#allocation59_spill] sm:$0xff] %v10517_v9  ;;  %v4171_v1 = vpop.f32.mrb[69].mxu0  ;;  %v10519_v23 = vadd.f32 %v6783_v19, %v6782_v6  ;;  %v6785_v52 = vpop.f32.mrb[6].mxu1 }
 0x816   : > { %v10521_v53 = vpop.f32.mrb[70].mxu0  ;;  %v6786_v48 = vpop.f32.mrb[7].mxu1 }
 0x817   : > { %12711 = vst [vmem:[#allocation161_spill] sm:$0xff] %v10519_v23  ;;  %12712 = vst [vmem:[#allocation162_spill] sm:$0xff] %v10521_v53  ;;  %v4174_v39 = vpop.f32.mrb[71].mxu0  ;;  %v10523_v7 = vadd.f32 %v6786_v48, %v6785_v52 }
 0x819   : > { %12713 = vst [vmem:[#allocation163_spill] sm:$0xff] %v10523_v7 }
 0x81b   : > { %v6788_v33 = vpop.f32.mrb[8].mxu1 }
 0x81c   : > { %v10525_v56 = vpop.f32.mrb[72].mxu0  ;;  %v6789_v54 = vpop.f32.mrb[9].mxu1 }
 0x81d   : > { %12714 = vst [vmem:[#allocation164_spill] sm:$0xff] %v10525_v56  ;;  %v4179_v2 = vpop.f32.mrb[73].mxu0  ;;  %v10527_v43 = vadd.f32 %v6789_v54, %v6788_v33  ;;  %v6791_v41 = vpop.f32.mrb[10].mxu1 }
 0x81e   : > { %v10529_v9 = vpop.f32.mrb[74].mxu0  ;;  %v6792_v1 = vpop.f32.mrb[11].mxu1 }
 0x81f   : > { %12715 = vst [vmem:[#allocation74_spill] sm:$0xff] %v10527_v43  ;;  %12716 = vst [vmem:[#allocation165_spill] sm:$0xff] %v10529_v9  ;;  %v4182_v6 = vpop.f32.mrb[75].mxu0  ;;  %v10531_v19 = vadd.f32 %v6792_v1, %v6791_v41 }
 0x821   : > { %12717 = vst [vmem:[#allocation166_spill] sm:$0xff] %v10531_v19 }
 0x823   : > { %v6794_v38 = vpop.f32.mrb[12].mxu1 }
 0x824   : > { %v10533_v53 = vpop.f32.mrb[76].mxu0  ;;  %v6795_v39 = vpop.f32.mrb[13].mxu1 }
 0x825   : > { %12718 = vst [vmem:[#allocation167_spill] sm:$0xff] %v10533_v53  ;;  %v4187_v52 = vpop.f32.mrb[77].mxu0  ;;  %v10535_v48 = vadd.f32 %v6795_v39, %v6794_v38  ;;  %v6797_v35 = vpop.f32.mrb[14].mxu1 }
 0x826   : > { %v10537_v56 = vpop.f32.mrb[78].mxu0  ;;  %v6798_v2 = vpop.f32.mrb[15].mxu1 }
 0x827   : > { %12719 = vst [vmem:[#allocation168_spill] sm:$0xff] %v10535_v48  ;;  %12720 = vst [vmem:[#allocation169_spill] sm:$0xff] %v10537_v56  ;;  %v4190_v33 = vpop.f32.mrb[79].mxu0  ;;  %v10539_v54 = vadd.f32 %v6798_v2, %v6797_v35 }
 0x829   : > { %12721 = vst [vmem:[#allocation170_spill] sm:$0xff] %v10539_v54 }
 0x82b   : > { %v6800_v43 = vpop.f32.mrb[16].mxu1 }
 0x82c   : > { %v10541_v9 = vpop.f32.mrb[80].mxu0  ;;  %v6801_v6 = vpop.f32.mrb[17].mxu1 }
 0x82d   : > { %12722 = vst [vmem:[#allocation171_spill] sm:$0xff] %v10541_v9  ;;  %v4195_v41 = vpop.f32.mrb[81].mxu0  ;;  %v10543_v1 = vadd.f32 %v6801_v6, %v6800_v43  ;;  %v6803_v19 = vpop.f32.mrb[18].mxu1 }
 0x82e   : > { %v10545_v53 = vpop.f32.mrb[82].mxu0  ;;  %v6804_v52 = vpop.f32.mrb[19].mxu1 }
 0x82f   : > { %12723 = vst [vmem:[#allocation12_spill] sm:$0xff] %v10545_v53  ;;  %v4198_v38 = vpop.f32.mrb[83].mxu0  ;;  %v10547_v39 = vadd.f32 %v6804_v52, %v6803_v19 }
 0x831   : > { %12724 = vst [vmem:[#allocation92_spill] sm:$0xff] %v10547_v39  ;;  %v12784_v39 = vld [vmem:[#allocation48_spill] sm:$0xff] }
 0x833   : > { %v6806_v48 = vpop.f32.mrb[20].mxu1 }
 0x834   : > { %v10549_v56 = vpop.f32.mrb[84].mxu0  ;;  %v6807_v33 = vpop.f32.mrb[21].mxu1 }
 0x835   : > { %12725 = vst [vmem:[#allocation8_spill] sm:$0xff] %v10549_v56  ;;  %v4203_v35 = vpop.f32.mrb[85].mxu0  ;;  %v10551_v2 = vadd.f32 %v6807_v33, %v6806_v48  ;;  %v6809_v54 = vpop.f32.mrb[22].mxu1 }
 0x836   : > { %v10553_v9 = vpop.f32.mrb[86].mxu0  ;;  %v6810_v41 = vpop.f32.mrb[23].mxu1 }
 0x837   : > { %12726 = vst [vmem:[#allocation95_spill] sm:$0xff] %v10551_v2  ;;  %12727 = vst [vmem:[#allocation26_spill] sm:$0xff] %v10553_v9  ;;  %v4206_v43 = vpop.f32.mrb[87].mxu0  ;;  %v10555_v6 = vadd.f32 %v6810_v41, %v6809_v54  ;;  %v12778_v2 = vld [vmem:[#allocation99_spill] sm:$0xff] }
 0x839   : > { %12728 = vst [vmem:[#allocation10_spill] sm:$0xff] %v10555_v6 }
 0x83b   : > { %v6812_v7 = vpop.f32.mrb[24].mxu1 }
 0x83c   : > { %v10557_v53 = vpop.f32.mrb[88].mxu0  ;;  %v6813_v38 = vpop.f32.mrb[25].mxu1 }
 0x83d   : > { %12729 = vst [vmem:[#allocation73_spill] sm:$0xff] %v10557_v53  ;;  %v4211_v19 = vpop.f32.mrb[89].mxu0  ;;  %v10559_v52 = vadd.f32 %v6813_v38, %v6812_v7  ;;  %v6815_v23 = vpop.f32.mrb[26].mxu1 }
 0x83e   : > { %v10561_v56 = vpop.f32.mrb[90].mxu0  ;;  %v6816_v35 = vpop.f32.mrb[27].mxu1 }
 0x83f   : > { %12730 = vst [vmem:[#allocation117_spill] sm:$0xff] %v10559_v52  ;;  %12731 = vst [vmem:[#allocation76_spill] sm:$0xff] %v10561_v56  ;;  %v4214_v48 = vpop.f32.mrb[91].mxu0  ;;  %v10563_v33 = vadd.f32 %v6816_v35, %v6815_v23 }
 0x841   : > { %12732 = vst [vmem:[#allocation118_spill] sm:$0xff] %v10563_v33 }
 0x843   : > { %v6818_v8 = vpop.f32.mrb[28].mxu1 }
 0x844   : > { %v10565_v9 = vpop.f32.mrb[92].mxu0  ;;  %v6819_v43 = vpop.f32.mrb[29].mxu1 }
 0x845   : > { %12733 = vst [vmem:[#allocation75_spill] sm:$0xff] %v10565_v9  ;;  %v4219_v54 = vpop.f32.mrb[93].mxu0  ;;  %v10567_v41 = vadd.f32 %v6819_v43, %v6818_v8  ;;  %v6821_v44 = vpop.f32.mrb[30].mxu1 }
 0x846   : > { %v10569_v59 = vpop.f32.mrb[94].mxu0  ;;  %v6822_v19 = vpop.f32.mrb[31].mxu1 }
 0x847   : > { %12734 = vst [vmem:[#allocation119_spill] sm:$0xff] %v10567_v41  ;;  %12735 = vst [vmem:[#allocation78_spill] sm:$0xff] %v10569_v59  ;;  %v4222_v7 = vpop.f32.mrb[95].mxu0  ;;  %v10571_v38 = vadd.f32 %v6822_v19, %v6821_v44 }
 0x849   : > { %12736 = vst [vmem:[#allocation120_spill] sm:$0xff] %v10571_v38 }
 0x84b   : > { %v6824_v21 = vpop.f32.mrb[32].mxu1 }
 0x84c   : > { %v10573_v30 = vpop.f32.mrb[96].mxu0  ;;  %v6825_v48 = vpop.f32.mrb[33].mxu1 }
 0x84d   : > { %12737 = vst [vmem:[#allocation77_spill] sm:$0xff] %v10573_v30  ;;  %v4227_v23 = vpop.f32.mrb[97].mxu0  ;;  %v10575_v35 = vadd.f32 %v6825_v48, %v6824_v21  ;;  %v6827_v56 = vpop.f32.mrb[34].mxu1 }
 0x84e   : > { %v10577_v9 = vpop.f32.mrb[98].mxu0  ;;  %v6828_v54 = vpop.f32.mrb[35].mxu1 }
 0x84f   : > { %12738 = vst [vmem:[#allocation121_spill] sm:$0xff] %v10575_v35  ;;  %12739 = vst [vmem:[#allocation80_spill] sm:$0xff] %v10577_v9  ;;  %v4230_v8 = vpop.f32.mrb[99].mxu0  ;;  %v10579_v43 = vadd.f32 %v6828_v54, %v6827_v56 }
 0x851   : > { %12740 = vst [vmem:[#allocation122_spill] sm:$0xff] %v10579_v43 }
 0x853   : > { %v6830_v29 = vpop.f32.mrb[36].mxu1 }
 0x854   : > { %v10581_v59 = vpop.f32.mrb[100].mxu0  ;;  %v6831_v7 = vpop.f32.mrb[37].mxu1 }
 0x855   : > { %12741 = vst [vmem:[#allocation79_spill] sm:$0xff] %v10581_v59  ;;  %v4235_v44 = vpop.f32.mrb[101].mxu0  ;;  %v10583_v19 = vadd.f32 %v6831_v7, %v6830_v29  ;;  %v6833_v61 = vpop.f32.mrb[38].mxu1 }
 0x856   : > { %v10585_v30 = vpop.f32.mrb[102].mxu0  ;;  %v6834_v23 = vpop.f32.mrb[39].mxu1 }
 0x857   : > { %12742 = vst [vmem:[#allocation123_spill] sm:$0xff] %v10583_v19  ;;  %12743 = vst [vmem:[#allocation82_spill] sm:$0xff] %v10585_v30  ;;  %v4238_v21 = vpop.f32.mrb[103].mxu0  ;;  %v10587_v48 = vadd.f32 %v6834_v23, %v6833_v61 }
 0x859   : > { %12744 = vst [vmem:[#allocation124_spill] sm:$0xff] %v10587_v48 }
 0x85b   : > { %v6836_v53 = vpop.f32.mrb[40].mxu1 }
 0x85c   : > { %v10589_v9 = vpop.f32.mrb[104].mxu0  ;;  %v6837_v8 = vpop.f32.mrb[41].mxu1 }
 0x85d   : > { %12745 = vst [vmem:[#allocation83_spill] sm:$0xff] %v10589_v9  ;;  %v4243_v56 = vpop.f32.mrb[105].mxu0  ;;  %v10591_v54 = vadd.f32 %v6837_v8, %v6836_v53  ;;  %v6839_v43 = vpop.f32.mrb[42].mxu1 }
 0x85e   : > { %v10593_v59 = vpop.f32.mrb[106].mxu0  ;;  %v6840_v44 = vpop.f32.mrb[43].mxu1 }
 0x85f   : > { %12746 = vst [vmem:[#allocation125_spill] sm:$0xff] %v10591_v54  ;;  %12747 = vst [vmem:[#allocation100_spill] sm:$0xff] %v10593_v59  ;;  %v4246_v29 = vpop.f32.mrb[107].mxu0  ;;  %v10595_v7 = vadd.f32 %v6840_v44, %v6839_v43 }
 0x861   : > { %12748 = vst [vmem:[#allocation127_spill] sm:$0xff] %v10595_v7 }
 0x863   : > { %v6842_v19 = vpop.f32.mrb[44].mxu1 }
 0x864   : > { %v10597_v30 = vpop.f32.mrb[108].mxu0  ;;  %v6843_v21 = vpop.f32.mrb[45].mxu1 }
 0x865   : > { %12749 = vst [vmem:[#allocation106_spill] sm:$0xff] %v10597_v30  ;;  %v4251_v61 = vpop.f32.mrb[109].mxu0  ;;  %v10599_v23 = vadd.f32 %v6843_v21, %v6842_v19  ;;  %v6845_v48 = vpop.f32.mrb[46].mxu1 }
 0x866   : > { %v10601_v9 = vpop.f32.mrb[110].mxu0  ;;  %v6846_v56 = vpop.f32.mrb[47].mxu1 }
 0x867   : > { %12750 = vst [vmem:[#allocation57_spill] sm:$0xff] %v10599_v23  ;;  %12751 = vst [vmem:[#allocation112_spill] sm:$0xff] %v10601_v9  ;;  %v4254_v53 = vpop.f32.mrb[111].mxu0  ;;  %v10603_v8 = vadd.f32 %v6846_v56, %v6845_v48 }
 0x869   : > { %12752 = vst [vmem:[#allocation69_spill] sm:$0xff] %v10603_v8 }
 0x86b   : > { %v10605_v54 = vpop.f32.mrb[48].mxu1 }
 0x86c   : > { %v10607_v59 = vpop.f32.mrb[49].mxu1 }
 0x86d   : > { %v4789_v43 = vmax.f32 %v10605_v54, %v10607_v59  ;;  %v10611_v44 = vpop.f32.mrb[50].mxu1 }
 0x86e   : > { %v10613_v29 = vpop.f32.mrb[51].mxu1 }
 0x86f   : > { %v4792_v19 = vmax.f32 %v10611_v44, %v10613_v29  ;;  %4790 = vmax.xlane.f32.xlu0 %v4789_v43 }
 0x873   : > { %4793 = vmax.xlane.f32.xlu0 %v4792_v19  ;;  %v10617_v21 = vpop.f32.mrb[52].mxu1 }
 0x874   : > { %v10619_v48 = vpop.f32.mrb[53].mxu1 }
 0x875   : > { %v4795_v61 = vmax.f32 %v10617_v21, %v10619_v48  ;;  %v10623_v56 = vpop.f32.mrb[54].mxu1 }
 0x876   : > { %v10625_v53 = vpop.f32.mrb[55].mxu1 }
 0x877   : > { %v4798_v9 = vmax.f32 %v10623_v56, %v10625_v53  ;;  %4796 = vmax.xlane.f32.xlu0 %v4795_v61 }
 0x87b   : > { %4799 = vmax.xlane.f32.xlu0 %v4798_v9  ;;  %v10629_v30 = vpop.f32.mrb[56].mxu1 }
 0x87c   : > { %v10631_v43 = vpop.f32.mrb[57].mxu1 }
 0x87d   : > { %v4801_v19 = vmax.f32 %v10629_v30, %v10631_v43  ;;  %v10635_v8 = vpop.f32.mrb[58].mxu1 }
 0x87e   : > { %v10637_v23 = vpop.f32.mrb[59].mxu1 }
 0x87f   : > { %v4804_v7 = vmax.f32 %v10635_v8, %v10637_v23  ;;  %4802 = vmax.xlane.f32.xlu0 %v4801_v19 }
 0x883   : > { %4805 = vmax.xlane.f32.xlu0 %v4804_v7  ;;  %v10641_v16 = vpop.f32.mrb[60].mxu1 }
 0x884   : > { %v10643_v61 = vpop.f32.mrb[61].mxu1 }
 0x885   : > { %v4807_v9 = vmax.f32 %v10641_v16, %v10643_v61  ;;  %v10647_v46 = vpop.f32.mrb[62].mxu1 }
 0x886   : > { %v10649_v22 = vpop.f32.mrb[63].mxu1 }
 0x887   : > { %v4810_v20 = vmax.f32 %v10647_v46, %v10649_v22  ;;  %4808 = vmax.xlane.f32.xlu0 %v4807_v9 }
 0x88b   : > { %4811 = vmax.xlane.f32.xlu0 %v4810_v20  ;;  %v10653_v25 = vpop.f32.mrb[64].mxu1 }
 0x88c   : > { %v10655_v19 = vpop.f32.mrb[65].mxu1 }
 0x88d   : > { %v4813_v7 = vmax.f32 %v10653_v25, %v10655_v19  ;;  %v10659_v17 = vpop.f32.mrb[66].mxu1 }
 0x88e   : > { %v10661_v36 = vpop.f32.mrb[67].mxu1 }
 0x88f   : > { %v4816_v42 = vmax.f32 %v10659_v17, %v10661_v36  ;;  %4814 = vmax.xlane.f32.xlu0 %v4813_v7 }
 0x893   : > { %4817 = vmax.xlane.f32.xlu0 %v4816_v42  ;;  %v10665_v14 = vpop.f32.mrb[68].mxu1 }
 0x894   : > { %v10667_v9 = vpop.f32.mrb[69].mxu1 }
 0x895   : > { %v4819_v20 = vmax.f32 %v10665_v14, %v10667_v9  ;;  %v10671_v15 = vpop.f32.mrb[70].mxu1 }
 0x896   : > { %v10673_v62 = vpop.f32.mrb[71].mxu1 }
 0x897   : > { %v4822_v0 = vmax.f32 %v10671_v15, %v10673_v62  ;;  %4820 = vmax.xlane.f32.xlu0 %v4819_v20 }
 0x89b   : > { %4823 = vmax.xlane.f32.xlu0 %v4822_v0  ;;  %v10677_v26 = vpop.f32.mrb[72].mxu1 }
 0x89c   : > { %v10679_v7 = vpop.f32.mrb[73].mxu1 }
 0x89d   : > { %v4825_v42 = vmax.f32 %v10677_v26, %v10679_v7  ;;  %v10683_v37 = vpop.f32.mrb[74].mxu1 }
 0x89e   : > { %v10685_v4 = vpop.f32.mrb[75].mxu1 }
 0x89f   : > { %v4828_v57 = vmax.f32 %v10683_v37, %v10685_v4  ;;  %4826 = vmax.xlane.f32.xlu0 %v4825_v42 }
 0x8a3   : > { %4829 = vmax.xlane.f32.xlu0 %v4828_v57  ;;  %v10689_v50 = vpop.f32.mrb[76].mxu1 }
 0x8a4   : > { %v10691_v20 = vpop.f32.mrb[77].mxu1 }
 0x8a5   : > { %v4831_v0 = vmax.f32 %v10689_v50, %v10691_v20  ;;  %v10695_v63 = vpop.f32.mrb[78].mxu1 }
 0x8a6   : > { %v10697_v40 = vpop.f32.mrb[79].mxu1 }
 0x8a7   : > { %v4834_v24 = vmax.f32 %v10695_v63, %v10697_v40  ;;  %4832 = vmax.xlane.f32.xlu0 %v4831_v0 }
 0x8ab   : > { %4835 = vmax.xlane.f32.xlu0 %v4834_v24  ;;  %v10701_v5 = vpop.f32.mrb[80].mxu1 }
 0x8ac   : > { %v10703_v42 = vpop.f32.mrb[81].mxu1 }
 0x8ad   : > { %v4837_v57 = vmax.f32 %v10701_v5, %v10703_v42  ;;  %v10707_v45 = vpop.f32.mrb[82].mxu1 }
 0x8ae   : > { %v10709_v12 = vpop.f32.mrb[83].mxu1 }
 0x8af   : > { %v4840_v3 = vmax.f32 %v10707_v45, %v10709_v12  ;;  %4838 = vmax.xlane.f32.xlu0 %v4837_v57 }
 0x8b3   : > { %4841 = vmax.xlane.f32.xlu0 %v4840_v3  ;;  %v10713_v51 = vpop.f32.mrb[84].mxu1 }
 0x8b4   : > { %v10715_v0 = vpop.f32.mrb[85].mxu1 }
 0x8b5   : > { %v4843_v24 = vmax.f32 %v10713_v51, %v10715_v0  ;;  %v10719_v13 = vpop.f32.mrb[86].mxu1 }
 0x8b6   : > { %v10721_v47 = vpop.f32.mrb[87].mxu1 }
 0x8b7   : > { %v4846_v31 = vmax.f32 %v10719_v13, %v10721_v47  ;;  %4844 = vmax.xlane.f32.xlu1 %v4843_v24 }
 0x8b9   : > { %4847 = vmax.xlane.f32.xlu0 %v4846_v31 }
 0x8bb   : > { %v10725_v34 = vpop.f32.mrb[88].mxu1 }
 0x8bc   : > { %v10727_v57 = vpop.f32.mrb[89].mxu1 }
 0x8bd   : > { %v4849_v3 = vmax.f32 %v10725_v34, %v10727_v57  ;;  %v10731_v35 = vpop.f32.mrb[90].mxu1 }
 0x8be   : > { %v10733_v32 = vpop.f32.mrb[91].mxu1 }
 0x8bf   : > { %12753 = vst [vmem:[#allocation172_spill] sm:$0xff] %v10733_v32  ;;  %v4852_v60 = vmax.f32 %v10731_v35, %v10733_v32  ;;  %4850 = vmax.xlane.f32.xlu0 %v4849_v3 }
 0x8c3   : > { %4853 = vmax.xlane.f32.xlu0 %v4852_v60  ;;  %v10737_v18 = vpop.f32.mrb[92].mxu1 }
 0x8c4   : > { %12754 = vst [vmem:[#allocation173_spill] sm:$0xff] %v10737_v18  ;;  %v10739_v24 = vpop.f32.mrb[93].mxu1 }
 0x8c5   : > { %12755 = vst [vmem:[#allocation174_spill] sm:$0xff] %v10739_v24  ;;  %v4855_v31 = vmax.f32 %v10737_v18, %v10739_v24  ;;  %v10743_v38 = vpop.f32.mrb[94].mxu1  ;;  %v12783_v18 = vld [vmem:[#allocation40_spill] sm:$0xff] }
 0x8c6   : > { %12756 = vst [vmem:[#allocation175_spill] sm:$0xff] %v10743_v38  ;;  %v10745_v49 = vpop.f32.mrb[95].mxu1 }
 0x8c7   : > { %12757 = vst [vmem:[#allocation176_spill] sm:$0xff] %v10745_v49  ;;  %v4858_v41 = vmax.f32 %v10743_v38, %v10745_v49  ;;  %4856 = vmax.xlane.f32.xlu0 %v4855_v31  ;;  %v12776_v38 = vld [vmem:[#allocation84_spill] sm:$0xff] }
 0x8cb   : > { %4859 = vmax.xlane.f32.xlu0 %v4858_v41  ;;  %v10749_v33 = vpop.f32.mrb[96].mxu1 }
 0x8cc   : > { %12758 = vst [vmem:[#allocation177_spill] sm:$0xff] %v10749_v33  ;;  %v10751_v3 = vpop.f32.mrb[97].mxu1 }
 0x8cd   : > { %12759 = vst [vmem:[#allocation178_spill] sm:$0xff] %v10751_v3  ;;  %v4861_v60 = vmax.f32 %v10749_v33, %v10751_v3  ;;  %v10755_v10 = vpop.f32.mrb[98].mxu1 }
 0x8ce   : > { %12760 = vst [vmem:[#allocation179_spill] sm:$0xff] %v10755_v10  ;;  %v10757_v28 = vpop.f32.mrb[99].mxu1 }
 0x8cf   : > { %12761 = vst [vmem:[#allocation180_spill] sm:$0xff] %v10757_v28  ;;  %v4864_v52 = vmax.f32 %v10755_v10, %v10757_v28  ;;  %4862 = vmax.xlane.f32.xlu0 %v4861_v60 }
 0x8d3   : > { %4865 = vmax.xlane.f32.xlu0 %v4864_v52  ;;  %v10761_v58 = vpop.f32.mrb[100].mxu1 }
 0x8d4   : > { %12762 = vst [vmem:[#allocation181_spill] sm:$0xff] %v10761_v58  ;;  %v10763_v31 = vpop.f32.mrb[101].mxu1 }
 0x8d5   : > { %12763 = vst [vmem:[#allocation182_spill] sm:$0xff] %v10763_v31  ;;  %v4867_v41 = vmax.f32 %v10761_v58, %v10763_v31  ;;  %v10767_v6 = vpop.f32.mrb[102].mxu1 }
 0x8d6   : > { %12764 = vst [vmem:[#allocation183_spill] sm:$0xff] %v10767_v6  ;;  %v10769_v49 = vpop.f32.mrb[103].mxu1 }
 0x8d7   : > { %12765 = vst [vmem:[#allocation184_spill] sm:$0xff] %v10769_v49  ;;  %v4870_v3 = vmax.f32 %v10767_v6, %v10769_v49  ;;  %4868 = vmax.xlane.f32.xlu0 %v4867_v41 }
 0x8db   : > { %4871 = vmax.xlane.f32.xlu0 %v4870_v3  ;;  %v10773_v33 = vpop.f32.mrb[104].mxu1 }
 0x8dc   : > { %12766 = vst [vmem:[#allocation185_spill] sm:$0xff] %v10773_v33  ;;  %v10775_v60 = vpop.f32.mrb[105].mxu1 }
 0x8dd   : > { %12767 = vst [vmem:[#allocation186_spill] sm:$0xff] %v10775_v60  ;;  %v4873_v52 = vmax.f32 %v10773_v33, %v10775_v60  ;;  %v10779_v28 = vpop.f32.mrb[106].mxu1  ;;  %v12772_v60 = vld [vmem:[#allocation43_spill] sm:$0xff]  ;;  %v12780_v33 = vld [vmem:[#allocation105_spill] sm:$0xff] }
 0x8de   : > { %12768 = vst [vmem:[#allocation187_spill] sm:$0xff] %v10779_v28  ;;  %v10781_v10 = vpop.f32.mrb[107].mxu1  ;;  %7672 = vrcp.f32 %v12772_v60 }
 0x8df   : > { %12769 = vst [vmem:[#allocation188_spill] sm:$0xff] %v10781_v10  ;;  %v4876_v31 = vmax.f32 %v10779_v28, %v10781_v10  ;;  %4874 = vmax.xlane.f32.xlu0 %v4873_v52  ;;  %v12773_v10 = vld [vmem:[#allocation64_spill] sm:$0xff]  ;;  %v12775_v28 = vld [vmem:[#allocation33_spill] sm:$0xff] }
 0x8e0   : > { %7674 = vrcp.f32 %v12773_v10 }
 0x8e1   : > { %4877 = vmax.xlane.f32.xlu1 %v4876_v31  ;;  %v12774_v31 = vld [vmem:[#allocation51_spill] sm:$0xff] }
 0x8e2   : > { %7676 = vrcp.f32 %v12774_v31 }
 0x8e3   : > { %v10785_v58 = vpop.f32.mrb[108].mxu1  ;;  %7678 = vrcp.f32 %v12775_v28 }
 0x8e4   : > { %12770 = vst [vmem:[#allocation189_spill] sm:$0xff] %v10785_v58  ;;  %v10787_v41 = vpop.f32.mrb[109].mxu1  ;;  %7680 = vrcp.f32 %v12776_v38  ;;  %v12781_v38 = vld [vmem:[#allocation89_spill] sm:$0xff] }
 0x8e5   : > { %12771 = vst [vmem:[#allocation190_spill] sm:$0xff] %v10787_v41  ;;  %v4879_v3 = vmax.f32 %v10785_v58, %v10787_v41  ;;  %v10791_v49 = vpop.f32.mrb[110].mxu1  ;;  %v12777_v58 = vld [vmem:[#allocation61_spill] sm:$0xff] }
 0x8e6   : > { %v10793_v6 = vpop.f32.mrb[111].mxu1  ;;  %7682 = vrcp.f32 %v12777_v58  ;;  %v12782_v58 = vld [vmem:[#allocation111_spill] sm:$0xff] }
 0x8e7   : > { %4880 = vmax.xlane.f32.xlu0 %v4879_v3  ;;  %7684 = vrcp.f32 %v12778_v2  ;;  %v12779_v3 = vld [vmem:[#allocation72_spill] sm:$0xff] }
 0x8e8   : > { %v7673_v52 = vpop.eup %7672  ;;  %7686 = vrcp.f32 %v12779_v3 }
 0x8e9   : > { %7688 = vrcp.f32 %v12780_v33 }
 0x8ea   : > { %v7675_v41 = vpop.eup %7674  ;;  %7690 = vrcp.f32 %v12781_v38 }
 0x8eb   : > { %7692 = vrcp.f32 %v12782_v58  ;;  %v12787_v58 = vld [vmem:[#allocation62_spill] sm:$0xff] }
 0x8ec   : > { %v7677_v60 = vpop.eup %7676  ;;  %7694 = vrcp.f32 %v12783_v18 }
 0x8ed   : > { %v7679_v10 = vpop.eup %7678  ;;  %7696 = vrcp.f32 %v12784_v39 }
 0x8ee   : > { %v7681_v24 = vpop.eup %7680 }
 0x8f2   : > { %3056 = vperm.xlu1 %7013, %v7673_v52  }
 0x8f6   : > { %3061 = vperm.xlu1 %7013, %v7675_v41   ;;  %v7683_v41 = vpop.eup %7682 }
 0x8f7   : > { %v7685_v33 = vpop.eup %7684 }
 0x8fa   : > { %3071 = vperm.xlu1 %7013, %v7677_v60  }
 0x8fc   : > { %v4791_v31 = vpop.xlane.xlu0 %4790 }
 0x8fd   : > { %v4885_v28 = vsub.f32 %v10605_v54, %v4791_v31  ;;  %v4886_v52 = vsub.f32 %v10607_v59, %v4791_v31  ;;  %1969 = vperm.xlu0 %7012, %v7679_v10   ;;  %v12785_v59 = vld [vmem:[#allocation96_spill] sm:$0xff]  ;;  %v7687_v31 = vpop.eup %7686 }
 0x8fe   : > { %3081 = vperm.xlu1 %7013, %v7681_v24   ;;  %7698 = vrcp.f32 %v12785_v59  ;;  %v7689_v18 = vpop.eup %7688 }
 0x8ff   : > { %v4949_v2 = vmul.f32 1.442695, %v4885_v28  ;;  %v4951_v60 = vmul.f32 1.442695, %v4886_v52  ;;  %v7691_v38 = vpop.eup %7690 }
 0x900   : > { %v4794_v3 = vpop.xlane.xlu0 %4793 }
 0x901   : > { %v4887_v32 = vsub.f32 %v10611_v44, %v4794_v3  ;;  %v4888_v54 = vsub.f32 %v10613_v29, %v4794_v3  ;;  %1979 = vperm.xlu0 %7012, %v7683_v41   ;;  %7700 = vpow2.f32 %v4949_v2  ;;  %v12786_v44 = vld [vmem:[#allocation98_spill] sm:$0xff]  ;;  %v7693_v41 = vpop.eup %7692 }
 0x902   : > { %3091 = vperm.xlu1 %7013, %v7685_v33   ;;  %7702 = vpow2.f32 %v4951_v60  ;;  %v12788_v60 = vld [vmem:[#allocation88_spill] sm:$0xff]  ;;  %v12789_v33 = vld [vmem:[#allocation131_spill] sm:$0xff] }
 0x903   : > { %v4953_v24 = vmul.f32 1.442695, %v4887_v32  ;;  %v4955_v10 = vmul.f32 1.442695, %v4888_v54 }
 0x904   : > { %v4797_v28 = vpop.xlane.xlu0 %4796 }
 0x905   : > { %7704 = vpow2.f32 %v4953_v24  ;;  %v4889_v52 = vsub.f32 %v10617_v21, %v4797_v28  ;;  %v4890_v39 = vsub.f32 %v10619_v48, %v4797_v28  ;;  %1989 = vperm.xlu0 %7012, %v7687_v31   ;;  %v7695_v48 = vpop.eup %7694 }
 0x906   : > { %7706 = vpow2.f32 %v4955_v10  ;;  %3101 = vperm.xlu1 %7013, %v7689_v18   ;;  %v7697_v54 = vpop.eup %7696 }
 0x907   : > { %7708 = vrcp.f32 %v12786_v44  ;;  %v4957_v29 = vmul.f32 1.442695, %v4889_v52  ;;  %v4959_v32 = vmul.f32 1.442695, %v4890_v39  ;;  %v12790_v39 = vld [vmem:[#allocation135_spill] sm:$0xff] }
 0x908   : > { %7710 = vrcp.f32 %v12787_v58  ;;  %v4800_v2 = vpop.xlane.xlu0 %4799  ;;  %v7699_v10 = vpop.eup %7698 }
 0x909   : > { %7712 = vrcp.f32 %v12788_v60  ;;  %v4891_v3 = vsub.f32 %v10623_v56, %v4800_v2  ;;  %v4892_v21 = vsub.f32 %v10625_v53, %v4800_v2  ;;  %1999 = vperm.xlu0 %7012, %v7691_v38   ;;  %v12791_v38 = vld [vmem:[#allocation103_spill] sm:$0xff]  ;;  %v12792_v60 = vld [vmem:[#allocation109_spill] sm:$0xff] }
 0x90a   : > { %7714 = vrcp.f32 %v12789_v33  ;;  %3111 = vperm.xlu1 %7013, %v7693_v41  }
 0x90b   : > { %7716 = vpow2.f32 %v4957_v29  ;;  %v4961_v59 = vmul.f32 1.442695, %v4891_v3  ;;  %v4963_v24 = vmul.f32 1.442695, %v4892_v21  ;;  %v7701_v28 = vpop.eup %7700 }
 0x90c   : > { %7718 = vpow2.f32 %v4959_v32  ;;  %v4803_v31 = vpop.xlane.xlu0 %4802  ;;  %v7703_v53 = vpop.eup %7702 }
 0x90d   : > { %7720 = vpow2.f32 %v4961_v59  ;;  %v4893_v18 = vsub.f32 %v10629_v30, %v4803_v31  ;;  %v4894_v56 = vsub.f32 %v10631_v43, %v4803_v31  ;;  %3051 = vperm.xlu0 %7012, %v7695_v48   ;;  %v12793_v48 = vld [vmem:[#allocation139_spill] sm:$0xff] }
 0x90e   : > { %7722 = vpow2.f32 %v4963_v24  ;;  %3121 = vperm.xlu1 %7013, %v7699_v10  }
 0x90f   : > { %v7705_v52 = vpop.eup %7704  ;;  %7724 = vrcp.f32 %v12790_v39  ;;  %v4965_v44 = vmul.f32 1.442695, %v4893_v18  ;;  %v4967_v32 = vmul.f32 1.442695, %v4894_v56  ;;  %v12794_v56 = vld [vmem:[#allocation143_spill] sm:$0xff] }
 0x910   : > { %v7707_v29 = vpop.eup %7706  ;;  %7726 = vrcp.f32 %v12791_v38  ;;  %v5077_v58 = vpack.c.bf16 %v7705_v52, %v7701_v28  ;;  %v4806_v2 = vpop.xlane.xlu0 %4805  ;;  %v12795_v39 = vld [vmem:[#allocation115_spill] sm:$0xff] }
 0x911   : > { %v7709_v41 = vpop.eup %7708  ;;  %7728 = vrcp.f32 %v12792_v60  ;;  %v4895_v30 = vsub.f32 %v10635_v8, %v4806_v2  ;;  %v4896_v43 = vsub.f32 %v10637_v23, %v4806_v2  ;;  %3066 = vperm.xlu0 %7012, %v7697_v54   ;;  %v5078_v3 = vpack.c.bf16 %v7707_v29, %v7703_v53  ;;  %v12797_v60 = vld [vmem:[#allocation147_spill] sm:$0xff] }
 0x912   : > { %v7711_v21 = vpop.eup %7710  ;;  %7730 = vrcp.f32 %v12793_v48  ;;  %3131 = vperm.xlu1 %7013, %v7709_v41  }
 0x913   : > { %v7713_v33 = vpop.eup %7712  ;;  %7732 = vpow2.f32 %v4965_v44  ;;  %v4969_v59 = vmul.f32 1.442695, %v4895_v30  ;;  %v4971_v24 = vmul.f32 1.442695, %v4896_v43  ;;  %5141 = vmatprep.mubr.bf16.mxu0 %v5078_v3  ;;  %5334 = vmatprep.mubr.bf16.mxu1 %v5078_v3 }
 0x914   : > { %v7715_v10 = vpop.eup %7714  ;;  %7734 = vpow2.f32 %v4967_v32  ;;  %5142 = vmatmul.mubr.bf16.vlgmr.msra.gmra.mrb[112].mxu0 %v5077_v58  ;;  %5335 = vmatmul.mubr.bf16.vlgmr.msra.gmra.mrb[112].mxu1 %v5077_v58  ;;  %v4809_v31 = vpop.xlane.xlu0 %4808  ;;  %v12796_v32 = vld [vmem:[#allocation97_spill] sm:$0xff] }
 0x915   : > { %v7717_v8 = vpop.eup %7716  ;;  %7736 = vpow2.f32 %v4969_v59  ;;  %v4897_v23 = vsub.f32 %v10641_v16, %v4809_v31  ;;  %v4898_v54 = vsub.f32 %v10643_v61, %v4809_v31  ;;  %3076 = vperm.xlu0 %7012, %v7711_v21  }
 0x916   : > { %v7719_v28 = vpop.eup %7718  ;;  %7738 = vpow2.f32 %v4971_v24  ;;  %3141 = vperm.xlu1 %7013, %v7715_v10   ;;  %v12798_v10 = vld [vmem:[#allocation151_spill] sm:$0xff] }
 0x917   : > { %v7721_v18 = vpop.eup %7720  ;;  %7740 = vrcp.f32 %v12794_v56  ;;  %v4973_v53 = vmul.f32 1.442695, %v4897_v23  ;;  %v4975_v29 = vmul.f32 1.442695, %v4898_v54  ;;  %v12799_v56 = vld [vmem:[#allocation129_spill] sm:$0xff] }
 0x918   : > { %v7723_v52 = vpop.eup %7722  ;;  %7742 = vrcp.f32 %v12795_v39  ;;  %v5079_v44 = vpack.c.bf16 %v7721_v18, %v7717_v8  ;;  %v4812_v38 = vpop.xlane.xlu0 %4811  ;;  %v12800_v39 = vld [vmem:[#allocation133_spill] sm:$0xff] }
 0x919   : > { %v7725_v58 = vpop.eup %7724  ;;  %7744 = vrcp.f32 %v12796_v32  ;;  %v4899_v16 = vsub.f32 %v10647_v46, %v4812_v38  ;;  %v4900_v61 = vsub.f32 %v10649_v22, %v4812_v38  ;;  %3086 = vperm.xlu0 %7012, %v7713_v33   ;;  %v5080_v2 = vpack.c.bf16 %v7723_v52, %v7719_v28 }
 0x91a   : > { %v7727_v41 = vpop.eup %7726  ;;  %7746 = vrcp.f32 %v12797_v60  ;;  %3151 = vperm.xlu1 %7013, %v7725_v58  }
 0x91b   : > { %v7729_v30 = vpop.eup %7728  ;;  %7748 = vpow2.f32 %v4973_v53  ;;  %v4977_v43 = vmul.f32 1.442695, %v4899_v16  ;;  %v4979_v3 = vmul.f32 1.442695, %v4900_v61  ;;  %5149 = vmatprep.mubr.bf16.mxu0 %v5080_v2  ;;  %5342 = vmatprep.mubr.bf16.mxu1 %v5080_v2 }
 0x91c   : > { %v7731_v21 = vpop.eup %7730  ;;  %7750 = vpow2.f32 %v4975_v29  ;;  %5150 = vmatmul.mubr.bf16.gmra.mrb[116].mxu0 %v5079_v44  ;;  %5343 = vmatmul.mubr.bf16.gmra.mrb[116].mxu1 %v5079_v44  ;;  %v4815_v48 = vpop.xlane.xlu0 %4814 }
 0x91d   : > { %v7733_v46 = vpop.eup %7732  ;;  %7752 = vpow2.f32 %v4977_v43  ;;  %v4901_v22 = vsub.f32 %v10653_v25, %v4815_v48  ;;  %v4902_v33 = vsub.f32 %v10655_v19, %v4815_v48  ;;  %3096 = vperm.xlu0 %7012, %v7727_v41   ;;  %v12801_v48 = vld [vmem:[#allocation137_spill] sm:$0xff] }
 0x91e   : > { %v7735_v59 = vpop.eup %7734  ;;  %7754 = vpow2.f32 %v4979_v3  ;;  %3161 = vperm.xlu1 %7013, %v7731_v21  }
 0x91f   : > { %v7737_v24 = vpop.eup %7736  ;;  %7756 = vrcp.f32 %v12798_v10  ;;  %v4981_v31 = vmul.f32 1.442695, %v4901_v22  ;;  %v4983_v54 = vmul.f32 1.442695, %v4902_v33 }
 0x920   : > { %v7739_v8 = vpop.eup %7738  ;;  %v5081_v23 = vpack.c.bf16 %v7737_v24, %v7733_v46  ;;  %v4818_v28 = vpop.xlane.xlu0 %4817  ;;  %7758 = vrcp.f32 %v12799_v56 }
 0x921   : > { %v7741_v18 = vpop.eup %7740  ;;  %v4903_v53 = vsub.f32 %v10659_v17, %v4818_v28  ;;  %v4904_v25 = vsub.f32 %v10661_v36, %v4818_v28  ;;  %3106 = vperm.xlu0 %7012, %v7729_v30   ;;  %v5082_v19 = vpack.c.bf16 %v7739_v8, %v7735_v59  ;;  %7760 = vrcp.f32 %v12800_v39 }
 0x922   : > { %v7743_v52 = vpop.eup %7742  ;;  %3171 = vperm.xlu1 %7013, %v7741_v18   ;;  %7762 = vpow2.f32 %v4981_v31 }
 0x923   : > { %v7745_v44 = vpop.eup %7744  ;;  %v4985_v29 = vmul.f32 1.442695, %v4903_v53  ;;  %v4987_v38 = vmul.f32 1.442695, %v4904_v25  ;;  %5157 = vmatprep.mubr.bf16.mxu0 %v5082_v19  ;;  %5350 = vmatprep.mubr.bf16.mxu1 %v5082_v19  ;;  %7764 = vpow2.f32 %v4983_v54  ;;  %v12803_v19 = vld [vmem:[#allocation145_spill] sm:$0xff] }
 0x924   : > { %v7747_v58 = vpop.eup %7746  ;;  %5158 = vmatmul.mubr.bf16.gmra.mrb[120].mxu0 %v5081_v23  ;;  %5351 = vmatmul.mubr.bf16.gmra.mrb[120].mxu1 %v5081_v23  ;;  %v4821_v32 = vpop.xlane.xlu0 %4820 }
 0x925   : > { %v7749_v17 = vpop.eup %7748  ;;  %7766 = vpow2.f32 %v4985_v29  ;;  %v4905_v36 = vsub.f32 %v10665_v14, %v4821_v32  ;;  %v4906_v16 = vsub.f32 %v10667_v9, %v4821_v32  ;;  %3116 = vperm.xlu0 %7012, %v7743_v52   ;;  %v12802_v9 = vld [vmem:[#allocation141_spill] sm:$0xff] }
 0x926   : > { %v7751_v61 = vpop.eup %7750  ;;  %7768 = vpow2.f32 %v4987_v38  ;;  %3181 = vperm.xlu1 %7013, %v7747_v58  }
 0x927   : > { %v7753_v2 = vpop.eup %7752  ;;  %v4989_v41 = vmul.f32 1.442695, %v4905_v36  ;;  %v4991_v43 = vmul.f32 1.442695, %v4906_v16  ;;  %7770 = vrcp.f32 %v12801_v48 }
 0x928   : > { %v7755_v60 = vpop.eup %7754  ;;  %v5083_v30 = vpack.c.bf16 %v7753_v2, %v7749_v17  ;;  %v4824_v3 = vpop.xlane.xlu0 %4823  ;;  %7772 = vrcp.f32 %v12802_v9 }
 0x929   : > { %v7757_v21 = vpop.eup %7756  ;;  %v4907_v46 = vsub.f32 %v10671_v15, %v4824_v3  ;;  %v4908_v22 = vsub.f32 %v10673_v62, %v4824_v3  ;;  %3126 = vperm.xlu0 %7012, %v7745_v44   ;;  %v5084_v14 = vpack.c.bf16 %v7755_v60, %v7751_v61  ;;  %7774 = vpow2.f32 %v4989_v41 }
 0x92a   : > { %3191 = vperm.xlu1 %7013, %v7757_v21   ;;  %v7759_v33 = vpop.eup %7758  ;;  %7776 = vpow2.f32 %v4991_v43  ;;  %v12805_v43 = vld [vmem:[#allocation153_spill] sm:$0xff] }
 0x92b   : > { %v4993_v59 = vmul.f32 1.442695, %v4907_v46  ;;  %v4995_v24 = vmul.f32 1.442695, %v4908_v22  ;;  %5165 = vmatprep.mubr.bf16.mxu0 %v5084_v14  ;;  %5358 = vmatprep.mubr.bf16.mxu1 %v5084_v14  ;;  %v7761_v10 = vpop.eup %7760 }
 0x92c   : > { %5166 = vmatmul.mubr.bf16.gmra.mrb[124].mxu0 %v5083_v30  ;;  %5359 = vmatmul.mubr.bf16.gmra.mrb[124].mxu1 %v5083_v30  ;;  %v4827_v31 = vpop.xlane.xlu0 %4826  ;;  %v7763_v8 = vpop.eup %7762 }
 0x92d   : > { %7778 = vpow2.f32 %v4993_v59  ;;  %v4909_v15 = vsub.f32 %v10677_v26, %v4827_v31  ;;  %v4910_v62 = vsub.f32 %v10679_v7, %v4827_v31  ;;  %3136 = vperm.xlu0 %7012, %v7759_v33   ;;  %v7765_v23 = vpop.eup %7764  ;;  %v12804_v26 = vld [vmem:[#allocation149_spill] sm:$0xff] }
 0x92e   : > { %7780 = vpow2.f32 %v4995_v24 }
 0x92f   : > { %v7767_v54 = vpop.eup %7766  ;;  %v4997_v28 = vmul.f32 1.442695, %v4909_v15  ;;  %v4999_v53 = vmul.f32 1.442695, %v4910_v62  ;;  %7782 = vrcp.f32 %v12803_v19 }
 0x930   : > { %v7769_v18 = vpop.eup %7768  ;;  %v5085_v56 = vpack.c.bf16 %v7767_v54, %v7763_v8  ;;  %v4830_v25 = vpop.xlane.xlu0 %4829  ;;  %7784 = vrcp.f32 %v12804_v26 }
 0x931   : > { %v4911_v52 = vsub.f32 %v10683_v37, %v4830_v25  ;;  %v4912_v39 = vsub.f32 %v10685_v4, %v4830_v25  ;;  %3146 = vperm.xlu0 %7012, %v7761_v10   ;;  %v5086_v44 = vpack.c.bf16 %v7769_v18, %v7765_v23  ;;  %v7771_v7 = vpop.eup %7770  ;;  %7786 = vpow2.f32 %v4997_v28 }
 0x932   : > { %v7773_v58 = vpop.eup %7772  ;;  %7788 = vpow2.f32 %v4999_v53 }
 0x933   : > { %v5001_v29 = vmul.f32 1.442695, %v4911_v52  ;;  %v5003_v38 = vmul.f32 1.442695, %v4912_v39  ;;  %5173 = vmatprep.mubr.bf16.mxu0 %v5086_v44  ;;  %5366 = vmatprep.mubr.bf16.mxu1 %v5086_v44  ;;  %v7775_v17 = vpop.eup %7774 }
 0x934   : > { %5174 = vmatmul.mubr.bf16.gmra.mrb[128].mxu0 %v5085_v56  ;;  %5367 = vmatmul.mubr.bf16.gmra.mrb[128].mxu1 %v5085_v56  ;;  %v4833_v32 = vpop.xlane.xlu0 %4832  ;;  %v7777_v36 = vpop.eup %7776 }
 0x935   : > { %7790 = vpow2.f32 %v5001_v29  ;;  %v4913_v37 = vsub.f32 %v10689_v50, %v4833_v32  ;;  %v4914_v4 = vsub.f32 %v10691_v20, %v4833_v32  ;;  %3156 = vperm.xlu0 %7012, %v7771_v7   ;;  %v12806_v50 = vld [vmem:[#allocation157_spill] sm:$0xff] }
 0x936   : > { %7792 = vpow2.f32 %v5003_v38 }
 0x937   : > { %v7779_v16 = vpop.eup %7778  ;;  %v5005_v61 = vmul.f32 1.442695, %v4913_v37  ;;  %v5007_v60 = vmul.f32 1.442695, %v4914_v4  ;;  %7794 = vrcp.f32 %v12805_v43  ;;  %v12807_v4 = vmax.f32 %v10791_v49, %v10793_v6  ;;  %v12809_v43 = vld [vmem:[#allocation172_spill] sm:$0xff] }
 0x938   : > { %v7781_v2 = vpop.eup %7780  ;;  %v5087_v41 = vpack.c.bf16 %v7779_v16, %v7775_v17  ;;  %v4836_v30 = vpop.xlane.xlu0 %4835  ;;  %7796 = vrcp.f32 %v12806_v50 }
 0x939   : > { %v4915_v3 = vsub.f32 %v10695_v63, %v4836_v30  ;;  %v4916_v21 = vsub.f32 %v10697_v40, %v4836_v30  ;;  %3166 = vperm.xlu0 %7012, %v7773_v58   ;;  %v5088_v48 = vpack.c.bf16 %v7781_v2, %v7777_v36  ;;  %v7783_v20 = vpop.eup %7782  ;;  %7798 = vpow2.f32 %v5005_v61  ;;  %v12808_v30 = vld [vmem:[#allocation155_spill] sm:$0xff] }
 0x93a   : > { %v7785_v14 = vpop.eup %7784  ;;  %7800 = vpow2.f32 %v5007_v60 }
 0x93b   : > { %v5009_v46 = vmul.f32 1.442695, %v4915_v3  ;;  %v5011_v22 = vmul.f32 1.442695, %v4916_v21  ;;  %5181 = vmatprep.mubr.bf16.mxu0 %v5088_v48  ;;  %5374 = vmatprep.mubr.bf16.mxu1 %v5088_v48  ;;  %v7787_v33 = vpop.eup %7786  ;;  %v12810_v48 = vld [vmem:[#allocation92_spill] sm:$0xff] }
 0x93c   : > { %5182 = vmatmul.mubr.bf16.gmra.mrb[132].mxu0 %v5087_v41  ;;  %5375 = vmatmul.mubr.bf16.gmra.mrb[132].mxu1 %v5087_v41  ;;  %v4839_v9 = vpop.xlane.xlu0 %4838  ;;  %v7789_v59 = vpop.eup %7788 }
 0x93d   : > { %7802 = vpow2.f32 %v5009_v46  ;;  %v4917_v63 = vsub.f32 %v10701_v5, %v4839_v9  ;;  %v4918_v40 = vsub.f32 %v10703_v42, %v4839_v9  ;;  %3176 = vperm.xlu0 %7012, %v7783_v20  }
 0x93e   : > { %7804 = vpow2.f32 %v5011_v22 }
 0x93f   : > { %v7791_v24 = vpop.eup %7790  ;;  %v5013_v10 = vmul.f32 1.442695, %v4917_v63  ;;  %v5015_v15 = vmul.f32 1.442695, %v4918_v40  ;;  %7806 = vrcp.f32 %v10431_v55 }
 0x940   : > { %v7793_v31 = vpop.eup %7792  ;;  %v5089_v8 = vpack.c.bf16 %v7791_v24, %v7787_v33  ;;  %v4842_v62 = vpop.xlane.xlu0 %4841  ;;  %7808 = vrcp.f32 %v10441_v11  ;;  %v12812_v33 = vld [vmem:[#allocation174_spill] sm:$0xff]  ;;  %v12813_v24 = vld [vmem:[#allocation95_spill] sm:$0xff] }
 0x941   : > { %v4919_v23 = vsub.f32 %v10707_v45, %v4842_v62  ;;  %v4920_v54 = vsub.f32 %v10709_v12, %v4842_v62  ;;  %3186 = vperm.xlu0 %7012, %v7785_v14   ;;  %v5090_v28 = vpack.c.bf16 %v7793_v31, %v7789_v59  ;;  %v7795_v5 = vpop.eup %7794  ;;  %7810 = vpow2.f32 %v5013_v10 }
 0x942   : > { %v7797_v56 = vpop.eup %7796  ;;  %7812 = vpow2.f32 %v5015_v15 }
 0x943   : > { %v5017_v42 = vmul.f32 1.442695, %v4919_v23  ;;  %v5019_v18 = vmul.f32 1.442695, %v4920_v54  ;;  %5189 = vmatprep.mubr.bf16.mxu0 %v5090_v28  ;;  %5382 = vmatprep.mubr.bf16.mxu1 %v5090_v28  ;;  %v7799_v55 = vpop.eup %7798  ;;  %v12814_v23 = vld [vmem:[#allocation175_spill] sm:$0xff]  ;;  %v12815_v28 = vld [vmem:[#allocation176_spill] sm:$0xff] }
 0x944   : > { %5190 = vmatmul.mubr.bf16.gmra.mrb[136].mxu0 %v5089_v8  ;;  %5383 = vmatmul.mubr.bf16.gmra.mrb[136].mxu1 %v5089_v8  ;;  %v4845_v53 = vpop.xlane.xlu1 %4844  ;;  %v7801_v25 = vpop.eup %7800 }
 0x945   : > { %7814 = vpow2.f32 %v5017_v42  ;;  %v4921_v45 = vsub.f32 %v10713_v51, %v4845_v53  ;;  %v4922_v12 = vsub.f32 %v10715_v0, %v4845_v53  ;;  %3196 = vperm.xlu0 %7012, %v7795_v5   ;;  %v12816_v42 = vld [vmem:[#allocation10_spill] sm:$0xff] }
 0x946   : > { %7816 = vpow2.f32 %v5019_v18  ;;  %v4848_v11 = vpop.xlane.xlu0 %4847 }
 0x947   : > { %v7803_v19 = vpop.eup %7802  ;;  %v5021_v52 = vmul.f32 1.442695, %v4921_v45  ;;  %v5023_v39 = vmul.f32 1.442695, %v4922_v12  ;;  %v4923_v44 = vsub.f32 %v10719_v13, %v4848_v11  ;;  %v4924_v26 = vsub.f32 %v10721_v47, %v4848_v11 }
 0x948   : > { %v7805_v7 = vpop.eup %7804  ;;  %7818 = vrcp.f32 %v10458_v27  ;;  %v5091_v29 = vpack.c.bf16 %v7803_v19, %v7799_v55  ;;  %v12818_v19 = vld [vmem:[#allocation178_spill] sm:$0xff] }
 0x949   : > { %7820 = vpow2.f32 %v5021_v52  ;;  %v5025_v38 = vmul.f32 1.442695, %v4923_v44  ;;  %v5027_v51 = vmul.f32 1.442695, %v4924_v26  ;;  %3206 = vperm.xlu0 %7012, %v7797_v56   ;;  %v5092_v0 = vpack.c.bf16 %v7805_v7, %v7801_v25  ;;  %v7807_v58 = vpop.eup %7806  ;;  %v12817_v25 = vld [vmem:[#allocation177_spill] sm:$0xff] }
 0x94a   : > { %7822 = vpow2.f32 %v5023_v39  ;;  %v7809_v32 = vpop.eup %7808  ;;  %v12819_v26 = vld [vmem:[#allocation21_spill] sm:$0xff] }
 0x94b   : > { %7824 = vpow2.f32 %v5025_v38  ;;  %5197 = vmatprep.mubr.bf16.mxu0 %v5092_v0  ;;  %5390 = vmatprep.mubr.bf16.mxu1 %v5092_v0  ;;  %v7811_v47 = vpop.eup %7810 }
 0x94c   : > { %7826 = vpow2.f32 %v5027_v51  ;;  %5198 = vmatmul.mubr.bf16.gmra.mrb[140].mxu0 %v5091_v29  ;;  %5391 = vmatmul.mubr.bf16.gmra.mrb[140].mxu1 %v5091_v29  ;;  %v4851_v13 = vpop.xlane.xlu0 %4850  ;;  %v7813_v37 = vpop.eup %7812 }
 0x94d   : > { %v4925_v17 = vsub.f32 %v10725_v34, %v4851_v13  ;;  %v4926_v27 = vsub.f32 %v10727_v57, %v4851_v13  ;;  %4258 = vperm.xlu0 %7012, %v7807_v58   ;;  %7828 = vrcp.f32 %v10543_v1 }
 0x94e   : > { %4883 = vmax.xlane.f32.xlu1 %v12807_v4  ;;  %7830 = vrcp.f32 %v12808_v30  ;;  %v12824_v30 = vld [vmem:[#allocation182_spill] sm:$0xff] }
 0x94f   : > { %v7815_v36 = vpop.eup %7814  ;;  %v5029_v16 = vmul.f32 1.442695, %v4925_v17  ;;  %v5031_v41 = vmul.f32 1.442695, %v4926_v27  ;;  %7832 = vrcp.f32 %v12810_v48 }
 0x950   : > { %v7817_v61 = vpop.eup %7816  ;;  %v5093_v2 = vpack.c.bf16 %v7815_v36, %v7811_v47  ;;  %v4854_v60 = vpop.xlane.xlu0 %4853  ;;  %v12821_v47 = vld [vmem:[#allocation180_spill] sm:$0xff] }
 0x951   : > { %v4927_v34 = vsub.f32 %v10731_v35, %v4854_v60  ;;  %v4928_v57 = vsub.f32 %v12809_v43, %v4854_v60  ;;  %4263 = vperm.xlu0 %7012, %v7809_v32   ;;  %v5094_v3 = vpack.c.bf16 %v7817_v61, %v7813_v37  ;;  %7834 = vpow2.f32 %v5029_v16  ;;  %v12811_v35 = vld [vmem:[#allocation173_spill] sm:$0xff]  ;;  %v12820_v32 = vld [vmem:[#allocation179_spill] sm:$0xff] }
 0x952   : > { %v7819_v21 = vpop.eup %7818  ;;  %7836 = vpow2.f32 %v5031_v41  ;;  %v12822_v37 = vld [vmem:[#allocation117_spill] sm:$0xff] }
 0x953   : > { %v7821_v50 = vpop.eup %7820  ;;  %v5033_v20 = vmul.f32 1.442695, %v4927_v34  ;;  %v5035_v1 = vmul.f32 1.442695, %v4928_v57  ;;  %5205 = vmatprep.mubr.bf16.mxu0 %v5094_v3  ;;  %5398 = vmatprep.mubr.bf16.mxu1 %v5094_v3  ;;  %v12823_v41 = vld [vmem:[#allocation181_spill] sm:$0xff]  ;;  %v12825_v3 = vld [vmem:[#allocation30_spill] sm:$0xff] }
 0x954   : > { %v7823_v46 = vpop.eup %7822  ;;  %5206 = vmatmul.mubr.bf16.gmra.mrb[144].mxu0 %v5093_v2  ;;  %5399 = vmatmul.mubr.bf16.gmra.mrb[144].mxu1 %v5093_v2  ;;  %v4857_v22 = vpop.xlane.xlu0 %4856 }
 0x955   : > { %v7825_v14 = vpop.eup %7824  ;;  %7838 = vpow2.f32 %v5033_v20  ;;  %v4929_v9 = vsub.f32 %v12811_v35, %v4857_v22  ;;  %v4930_v63 = vsub.f32 %v12812_v33, %v4857_v22  ;;  %4268 = vperm.xlu0 %7012, %v7819_v21   ;;  %v12826_v22 = vld [vmem:[#allocation38_spill] sm:$0xff] }
 0x956   : > { %v7827_v40 = vpop.eup %7826  ;;  %v5095_v59 = vpack.c.bf16 %v7825_v14, %v7821_v50  ;;  %7840 = vpow2.f32 %v5035_v1  ;;  %v12827_v14 = vld [vmem:[#allocation183_spill] sm:$0xff] }
 0x957   : > { %7842 = vrcp.f32 %v12813_v24  ;;  %v5037_v10 = vmul.f32 1.442695, %v4929_v9  ;;  %v5096_v31 = vpack.c.bf16 %v7827_v40, %v7823_v46  ;;  %v5039_v8 = vmul.f32 1.442695, %v4930_v63  ;;  %v7829_v62 = vpop.eup %7828  ;;  %v12828_v9 = vld [vmem:[#allocation184_spill] sm:$0xff]  ;;  %v12829_v40 = vld [vmem:[#allocation118_spill] sm:$0xff] }
 0x958   : > { %v4860_v15 = vpop.xlane.xlu0 %4859  ;;  %7844 = vrcp.f32 %v12816_v42  ;;  %v7831_v18 = vpop.eup %7830 }
 0x959   : > { %5213 = vmatprep.mubr.bf16.mxu0 %v5096_v31  ;;  %5406 = vmatprep.mubr.bf16.mxu1 %v5096_v31  ;;  %v4931_v54 = vsub.f32 %v12814_v23, %v4860_v15  ;;  %v4932_v5 = vsub.f32 %v12815_v28, %v4860_v15  ;;  %7846 = vpow2.f32 %v5037_v10  ;;  %v7833_v55 = vpop.eup %7832  ;;  %v12830_v15 = vld [vmem:[#allocation185_spill] sm:$0xff]  ;;  %v12831_v23 = vld [vmem:[#allocation186_spill] sm:$0xff] }
 0x95a   : > { %4338 = vperm.xlu0 %7012, %v7829_v62   ;;  %7848 = vpow2.f32 %v5039_v8 }
 0x95b   : > { %v5041_v56 = vmul.f32 1.442695, %v4931_v54  ;;  %v5043_v53 = vmul.f32 1.442695, %v4932_v5  ;;  %v7835_v12 = vpop.eup %7834 }
 0x95c   : > { %5214 = vmatmul.mubr.bf16.gmra.mrb[148].mxu0 %v5095_v59  ;;  %5407 = vmatmul.mubr.bf16.gmra.mrb[148].mxu1 %v5095_v59  ;;  %v4863_v45 = vpop.xlane.xlu0 %4862  ;;  %v7837_v39 = vpop.eup %7836 }
 0x95d   : > { %7850 = vpow2.f32 %v5041_v56  ;;  %v4933_v11 = vsub.f32 %v12817_v25, %v4863_v45  ;;  %v4934_v52 = vsub.f32 %v12818_v19, %v4863_v45  ;;  %v12833_v45 = vld [vmem:[#allocation188_spill] sm:$0xff] }
 0x95e   : > { %7852 = vpow2.f32 %v5043_v53  ;;  %4343 = vperm.xlu0 %7012, %v7833_v55   ;;  %v12832_v53 = vld [vmem:[#allocation187_spill] sm:$0xff] }
 0x95f   : > { %v7839_v44 = vpop.eup %7838  ;;  %7854 = vrcp.f32 %v12819_v26  ;;  %v5045_v7 = vmul.f32 1.442695, %v4933_v11  ;;  %3201 = vperm.xlu1 %7013, %v7831_v18   ;;  %v5047_v51 = vmul.f32 1.442695, %v4934_v52  ;;  %v12834_v11 = vld [vmem:[#allocation119_spill] sm:$0xff] }
 0x960   : > { %v7841_v29 = vpop.eup %7840  ;;  %v5097_v38 = vpack.c.bf16 %v7839_v44, %v7835_v12  ;;  %v4866_v0 = vpop.xlane.xlu0 %4865  ;;  %7856 = vrcp.f32 %v12822_v37 }
 0x961   : > { %v7843_v58 = vpop.eup %7842  ;;  %v4935_v13 = vsub.f32 %v12820_v32, %v4866_v0  ;;  %v4936_v17 = vsub.f32 %v12821_v47, %v4866_v0  ;;  %v5098_v27 = vpack.c.bf16 %v7841_v29, %v7837_v39  ;;  %7858 = vpow2.f32 %v5045_v7 }
 0x962   : > { %4348 = vperm.xlu0 %7012, %v7843_v58   ;;  %v7845_v16 = vpop.eup %7844  ;;  %7860 = vpow2.f32 %v5047_v51 }
 0x963   : > { %v5049_v4 = vmul.f32 1.442695, %v4935_v13  ;;  %v5051_v36 = vmul.f32 1.442695, %v4936_v17  ;;  %5221 = vmatprep.mubr.bf16.mxu0 %v5098_v27  ;;  %5414 = vmatprep.mubr.bf16.mxu1 %v5098_v27  ;;  %v7847_v2 = vpop.eup %7846  ;;  %v12835_v13 = vld [vmem:[#allocation31_spill] sm:$0xff] }
 0x964   : > { %5222 = vmatmul.mubr.bf16.gmra.mrb[152].mxu0 %v5097_v38  ;;  %5415 = vmatmul.mubr.bf16.gmra.mrb[152].mxu1 %v5097_v38  ;;  %v4869_v61 = vpop.xlane.xlu0 %4868  ;;  %v7849_v43 = vpop.eup %7848 }
 0x965   : > { %7862 = vpow2.f32 %v5049_v4  ;;  %v4937_v60 = vsub.f32 %v12823_v41, %v4869_v61  ;;  %v4938_v34 = vsub.f32 %v12824_v30, %v4869_v61  ;;  %v12836_v61 = vld [vmem:[#allocation120_spill] sm:$0xff]  ;;  %v12837_v30 = vld [vmem:[#allocation86_spill] sm:$0xff] }
 0x966   : > { %7864 = vpow2.f32 %v5051_v36  ;;  %4353 = vperm.xlu0 %7012, %v7845_v16  }
 0x967   : > { %v7851_v57 = vpop.eup %7850  ;;  %7866 = vrcp.f32 %v12825_v3  ;;  %v5053_v21 = vmul.f32 1.442695, %v4937_v60  ;;  %v5055_v20 = vmul.f32 1.442695, %v4938_v34  ;;  %v12838_v34 = vld [vmem:[#allocation60_spill] sm:$0xff] }
 0x968   : > { %v7853_v48 = vpop.eup %7852  ;;  %v5099_v50 = vpack.c.bf16 %v7851_v57, %v7847_v2  ;;  %v4872_v1 = vpop.xlane.xlu0 %4871  ;;  %7868 = vrcp.f32 %v12826_v22  ;;  %v12839_v57 = vld [vmem:[#allocation126_spill] sm:$0xff] }
 0x969   : > { %v7855_v46 = vpop.eup %7854  ;;  %v4939_v35 = vsub.f32 %v12827_v14, %v4872_v1  ;;  %v4940_v33 = vsub.f32 %v12828_v9, %v4872_v1  ;;  %v5100_v63 = vpack.c.bf16 %v7853_v48, %v7849_v43  ;;  %7870 = vrcp.f32 %v12829_v40  ;;  %v12842_v9 = vld [vmem:[#allocation58_spill] sm:$0xff] }
 0x96a   : > { %4273 = vperm.xlu0 %7012, %v7855_v46   ;;  %7872 = vpow2.f32 %v5053_v21  ;;  %v7857_v10 = vpop.eup %7856  ;;  %v10921_v43 = vmul.f32 %v12838_v34, %v12837_v30  ;;  %v12863_v30 = vld [vmem:[#allocation52_spill] sm:$0xff] }
 0x96b   : > { %v5057_v59 = vmul.f32 1.442695, %v4939_v35  ;;  %v5059_v24 = vmul.f32 1.442695, %v4940_v33  ;;  %5229 = vmatprep.mubr.bf16.mxu0 %v5100_v63  ;;  %5422 = vmatprep.mubr.bf16.mxu1 %v5100_v63  ;;  %7874 = vpow2.f32 %v5055_v20  ;;  %v7859_v8 = vpop.eup %7858  ;;  %v12840_v20 = vld [vmem:[#allocation39_spill] sm:$0xff]  ;;  %v12841_v35 = vld [vmem:[#allocation101_spill] sm:$0xff] }
 0x96c   : > { %5230 = vmatmul.mubr.bf16.gmra.mrb[156].mxu0 %v5099_v50  ;;  %5423 = vmatmul.mubr.bf16.gmra.mrb[156].mxu1 %v5099_v50  ;;  %v4875_v31 = vpop.xlane.xlu0 %4874  ;;  %v7861_v28 = vpop.eup %7860  ;;  %v10931_v33 = vmul.f32 %v12842_v9, %v12841_v35  ;;  %v12843_v63 = vld [vmem:[#allocation128_spill] sm:$0xff]  ;;  %v12867_v35 = vld [vmem:[#allocation91_spill] sm:$0xff]  ;;  %v12868_v9 = vld [vmem:[#allocation9_spill] sm:$0xff] }
 0x96d   : > { %7876 = vpow2.f32 %v5057_v59  ;;  %v4941_v62 = vsub.f32 %v12830_v15, %v4875_v31  ;;  %v4942_v54 = vsub.f32 %v12831_v23, %v4875_v31  ;;  %v12845_v15 = vld [vmem:[#allocation107_spill] sm:$0xff] }
 0x96e   : > { %7878 = vpow2.f32 %v5059_v24  ;;  %4358 = vperm.xlu0 %7012, %v7857_v10   ;;  %v4878_v5 = vpop.xlane.xlu1 %4877  ;;  %v12844_v24 = vld [vmem:[#allocation121_spill] sm:$0xff] }
 0x96f   : > { %v7863_v42 = vpop.eup %7862  ;;  %v5061_v18 = vmul.f32 1.442695, %v4941_v62  ;;  %v5063_v56 = vmul.f32 1.442695, %v4942_v54  ;;  %v4943_v55 = vsub.f32 %v12832_v53, %v4878_v5  ;;  %v4944_v12 = vsub.f32 %v12833_v45, %v4878_v5  ;;  %v12846_v62 = vld [vmem:[#allocation44_spill] sm:$0xff] }
 0x970   : > { %v7865_v25 = vpop.eup %7864  ;;  %7880 = vrcp.f32 %v12834_v11  ;;  %v5101_v19 = vpack.c.bf16 %v7863_v42, %v7859_v8  ;;  %v10941_v23 = vmul.f32 %v12846_v62, %v12845_v15  ;;  %v12847_v54 = vld [vmem:[#allocation56_spill] sm:$0xff]  ;;  %v12870_v15 = vld [vmem:[#allocation53_spill] sm:$0xff] }
 0x971   : > { %v7867_v52 = vpop.eup %7866  ;;  %7882 = vpow2.f32 %v5061_v18  ;;  %v5065_v39 = vmul.f32 1.442695, %v4943_v55  ;;  %v5067_v44 = vmul.f32 1.442695, %v4944_v12  ;;  %v5102_v26 = vpack.c.bf16 %v7865_v25, %v7861_v28  ;;  %v12848_v18 = vld [vmem:[#allocation70_spill] sm:$0xff]  ;;  %v12851_v12 = vld [vmem:[#allocation113_spill] sm:$0xff] }
 0x972   : > { %7884 = vpow2.f32 %v5063_v56  ;;  %4278 = vperm.xlu0 %7012, %v7867_v52   ;;  %v10909_v7 = vpop.permute.xlu1 %3056  ;;  %v7869_v29 = vpop.eup %7868  ;;  %v12849_v56 = vld [vmem:[#allocation71_spill] sm:$0xff]  ;;  %v12852_v25 = vld [vmem:[#allocation42_spill] sm:$0xff] }
 0x973   : > { %7886 = vpow2.f32 %v5065_v39  ;;  %5237 = vmatprep.mubr.bf16.mxu0 %v5102_v26  ;;  %5430 = vmatprep.mubr.bf16.mxu1 %v5102_v26  ;;  %v7871_v38 = vpop.eup %7870  ;;  %v12850_v53 = vpack.i.bf16 %v12848_v18, %v12849_v56  ;;  %v10953_v11 = vmul.f32 %v12852_v25, %v12851_v12  ;;  %v12854_v26 = vld [vmem:[#allocation46_spill] sm:$0xff]  ;;  %v12873_v56 = vld [vmem:[#allocation55_spill] sm:$0xff]  ;;  %v12875_v25 = vld [vmem:[#allocation81_spill] sm:$0xff] }
 0x974   : > { %7888 = vpow2.f32 %v5067_v44  ;;  %5238 = vmatmul.mubr.bf16.gmra.mrb[160].mxu0 %v5101_v19  ;;  %5431 = vmatmul.mubr.bf16.gmra.mrb[160].mxu1 %v5101_v19  ;;  %v7873_v51 = vpop.eup %7872  ;;  %v10914_v27 = vpop.xlane.xlu0 %4880  ;;  %v12853_v19 = vld [vmem:[#allocation67_spill] sm:$0xff] }
 0x975   : > { %v7875_v0 = vpop.eup %7874  ;;  %7890 = vrcp.f32 %v12835_v13  ;;  %v12857_v13 = vld [vmem:[#allocation66_spill] sm:$0xff] }
 0x976   : > { %4363 = vperm.xlu0 %7012, %v7871_v38   ;;  %v10911_v58 = vpop.permute.xlu1 %3061  ;;  %7892 = vrcp.f32 %v12836_v61 }
 0x977   : > { %v7877_v32 = vpop.eup %7876  ;;  %7894 = vrcp.f32 %v12840_v20  ;;  %v12865_v20 = vld [vmem:[#allocation65_spill] sm:$0xff] }
 0x978   : > { %v7879_v47 = vpop.eup %7878  ;;  %v5103_v17 = vpack.c.bf16 %v7877_v32, %v7873_v51  ;;  %7896 = vrcp.f32 %v12844_v24 }
 0x979   : > { %v5104_v37 = vpack.c.bf16 %v7879_v47, %v7875_v0  ;;  %v12858_v47 = vld [vmem:[#allocation68_spill] sm:$0xff] }
 0x97a   : > { %v7881_v4 = vpop.eup %7880  ;;  %4283 = vperm.xlu0 %7012, %v7869_v29   ;;  %v10916_v36 = vpop.permute.xlu1 %3071  ;;  %v12855_v29 = vld [vmem:[#allocation47_spill] sm:$0xff] }
 0x97b   : > { %v7883_v16 = vpop.eup %7882  ;;  %5245 = vmatprep.mubr.bf16.mxu0 %v5104_v37  ;;  %5438 = vmatprep.mubr.bf16.mxu1 %v5104_v37  ;;  %v12856_v38 = vpack.i.bf16 %v12854_v26, %v12855_v29  ;;  %v10993_v62 = vmul.f32 %v10916_v36, %v12870_v15  ;;  %v12876_v26 = vld [vmem:[#allocation138_spill] sm:$0xff]  ;;  %v12877_v36 = vld [vmem:[#allocation25_spill] sm:$0xff] }
 0x97c   : > { %v7885_v2 = vpop.eup %7884  ;;  %5246 = vmatmul.mubr.bf16.gmra.mrb[164].mxu0 %v5103_v17  ;;  %5439 = vmatmul.mubr.bf16.gmra.mrb[164].mxu1 %v5103_v17  ;;  %v1970_v41 = vpop.permute.xlu0 %1969  ;;  %v12859_v17 = vpack.i.bf16 %v12857_v13, %v12858_v47 }
 0x97d   : > { %v7887_v60 = vpop.eup %7886  ;;  %v10924_v3 = vmul.f32 %v1970_v41, %v12839_v57 }
 0x97e   : > { %v7889_v21 = vpop.eup %7888  ;;  %v5105_v48 = vpack.c.bf16 %v7887_v60, %v7883_v16  ;;  %4368 = vperm.xlu0 %7012, %v7881_v4   ;;  %v3082_v50 = vpop.permute.xlu1 %3081  ;;  %v12860_v16 = vld [vmem:[#allocation41_spill] sm:$0xff]  ;;  %v12862_v60 = vld [vmem:[#allocation50_spill] sm:$0xff] }
 0x97f   : > { %v7032_v1 = vpack.i.bf16 %v10924_v3, %v10921_v43  ;;  %v5106_v46 = vpack.c.bf16 %v7889_v21, %v7885_v2  ;;  %v7891_v14 = vpop.eup %7890  ;;  %v12861_v2 = vld [vmem:[#allocation93_spill] sm:$0xff]  ;;  %v12864_v34 = vpack.i.bf16 %v12862_v60, %v12863_v30  ;;  %v12883_v60 = vld [vmem:[#allocation24_spill] sm:$0xff] }
 0x980   : > { %v1980_v22 = vpop.permute.xlu0 %1979  ;;  %v7893_v8 = vpop.eup %7892 }
 0x981   : > { %5253 = vmatprep.mubr.bf16.mxu0 %v5106_v46  ;;  %5446 = vmatprep.mubr.bf16.mxu1 %v5106_v46  ;;  %v10934_v40 = vmul.f32 %v1980_v22, %v12843_v63  ;;  %v7895_v45 = vpop.eup %7894  ;;  %v10981_v46 = vmul.f32 %v10911_v58, %v12865_v20  ;;  %v12866_v22 = vld [vmem:[#allocation130_spill] sm:$0xff]  ;;  %v12869_v63 = vpack.i.bf16 %v12867_v35, %v12868_v9 }
 0x982   : > { %4288 = vperm.xlu0 %7012, %v7891_v14   ;;  %v3092_v59 = vpop.permute.xlu1 %3091  ;;  %v7897_v0 = vpop.eup %7896  ;;  %v12872_v58 = vld [vmem:[#allocation54_spill] sm:$0xff] }
 0x983   : > { %v7036_v10 = vpack.i.bf16 %v10934_v40, %v10931_v33  ;;  %v12886_v9 = vld [vmem:[#allocation146_spill] sm:$0xff] }
 0x984   : > { %5254 = vmatmul.mubr.bf16.gmra.mrb[168].mxu0 %v5105_v48  ;;  %5447 = vmatmul.mubr.bf16.gmra.mrb[168].mxu1 %v5105_v48  ;;  %v1990_v31 = vpop.permute.xlu0 %1989  ;;  %v12906_v40 = vld [vmem:[#allocation102_spill] sm:$0xff] }
 0x985   : > { %v10944_v28 = vmul.f32 %v1990_v31, %v12847_v54  ;;  %v12871_v54 = vld [vmem:[#allocation134_spill] sm:$0xff] }
 0x986   : > { %4373 = vperm.xlu0 %7012, %v7893_v8   ;;  %v3102_v5 = vpop.permute.xlu1 %3101 }
 0x987   : > { %v7040_v42 = vpack.i.bf16 %v10944_v28, %v10941_v23  ;;  %v12912_v23 = vld [vmem:[#allocation148_spill] sm:$0xff] }
 0x988   : > { %7015 = vxpose.xlu1.b32.start [1/16] (narrow) %v12850_v53, 32  ;;  %v2000_v55 = vpop.permute.xlu0 %1999  ;;  %v12874_v53 = vpack.i.bf16 %v12872_v58, %v12873_v56 }
 0x989   : > { %v10956_v52 = vmul.f32 %v2000_v55, %v12853_v19  ;;  %v11004_v19 = vmul.f32 %v3082_v50, %v12875_v25  ;;  %v12882_v50 = vld [vmem:[#allocation18_spill] sm:$0xff] }
 0x98a   : > { %4293 = vperm.xlu0 %7012, %v7895_v45   ;;  %v3112_v39 = vpop.permute.xlu1 %3111  ;;  %v12884_v30 = vpack.i.bf16 %v12882_v50, %v12883_v60  ;;  %v12891_v25 = vld [vmem:[#allocation150_spill] sm:$0xff]  ;;  %v12894_v50 = vld [vmem:[#allocation16_spill] sm:$0xff] }
 0x98b   : > { %v7044_v44 = vpack.i.bf16 %v10956_v52, %v10953_v11  ;;  %v12916_v11 = vld [vmem:[#allocation156_spill] sm:$0xff] }
 0x98c   : > { %7017 = vxpose.xlu1.b32.cont [2/16] (narrow) %v12856_v38, 32  ;;  %v3052_v51 = vpop.permute.xlu0 %3051  ;;  %v12878_v38 = vld [vmem:[#allocation20_spill] sm:$0xff] }
 0x98d   : > { %v10969_v61 = vmul.f32 %v3052_v51, %v12860_v16  ;;  %v12879_v51 = vpack.i.bf16 %v12877_v36, %v12878_v38  ;;  %v12881_v16 = vld [vmem:[#allocation142_spill] sm:$0xff]  ;;  %v12892_v36 = vld [vmem:[#allocation45_spill] sm:$0xff] }
 0x98e   : > { %4378 = vperm.xlu0 %7012, %v7897_v0   ;;  %v10963_v32 = vpop.permute.xlu1 %3121  ;;  %v3210_v38 = vmul.f32 %v10909_v7, %v12892_v36 }
 0x990   : > { %7019 = vxpose.xlu1.b32.cont [3/16] (narrow) %v12859_v17, 32  ;;  %v3067_v37 = vpop.permute.xlu0 %3066  ;;  %v12880_v17 = vld [vmem:[#allocation87_spill] sm:$0xff] }
 0x992   : > { %v3132_v4 = vpop.permute.xlu1 %3131 }
 0x993   : > { %v10972_v41 = vmul.f32 %v3132_v4, %v12861_v2  ;;  %v11015_v4 = vmul.f32 %v3092_v59, %v12880_v17  ;;  %v12887_v59 = vld [vmem:[#allocation32_spill] sm:$0xff] }
 0x994   : > { %7021 = vxpose.xlu1.b32.cont [4/16] (narrow) %v12864_v34, 32  ;;  %v3077_v57 = vpop.permute.xlu0 %3076 }
 0x995   : > { %v7066_v21 = vpack.i.bf16 %v10972_v41, %v10969_v61  ;;  %v12918_v41 = vld [vmem:[#allocation27_spill] sm:$0xff] }
 0x996   : > { %v3142_v48 = vpop.permute.xlu1 %3141 }
 0x997   : > { %v10984_v14 = vmul.f32 %v3142_v48, %v12866_v22  ;;  %v12885_v22 = vld [vmem:[#allocation104_spill] sm:$0xff] }
 0x998   : > { %7023 = vxpose.xlu1.b32.cont [5/16] (narrow) %v12869_v63, 32  ;;  %v3087_v24 = vpop.permute.xlu0 %3086  ;;  %v11026_v35 = vmul.f32 %v3102_v5, %v12885_v22 }
 0x999   : > { %v7070_v31 = vpack.i.bf16 %v10984_v14, %v10981_v46 }
 0x99a   : > { %v3152_v8 = vpop.permute.xlu1 %3151 }
 0x99b   : > { %v10996_v18 = vmul.f32 %v3152_v8, %v12871_v54  ;;  %v12888_v8 = vld [vmem:[#allocation17_spill] sm:$0xff] }
 0x99c   : > { %7025 = vxpose.xlu1.b32.cont [6/16] (narrow) %v12874_v53, 32  ;;  %v3097_v55 = vpop.permute.xlu0 %3096  ;;  %v12889_v15 = vpack.i.bf16 %v12887_v59, %v12888_v8  ;;  %v12890_v53 = vld [vmem:[#allocation110_spill] sm:$0xff]  ;;  %v12900_v8 = vld [vmem:[#allocation136_spill] sm:$0xff] }
 0x99d   : > { %v7074_v45 = vpack.i.bf16 %v10996_v18, %v10993_v62  ;;  %v12922_v18 = vld [vmem:[#allocation154_spill] sm:$0xff] }
 0x99e   : > { %v3162_v12 = vpop.permute.xlu1 %3161 }
 0x99f   : > { %v11007_v29 = vmul.f32 %v3162_v12, %v12876_v26  ;;  %v11037_v12 = vmul.f32 %v3112_v39, %v12890_v53  ;;  %v12895_v39 = vld [vmem:[#allocation35_spill] sm:$0xff]  ;;  %v12901_v53 = vld [vmem:[#allocation14_spill] sm:$0xff] }
 0x9a0   : > { %7027 = vxpose.xlu1.b32.cont [7/16] (narrow) %v12879_v51, 32  ;;  %v3107_v0 = vpop.permute.xlu0 %3106  ;;  %v12896_v60 = vpack.i.bf16 %v12894_v50, %v12895_v39 }
 0x9a1   : > { %v7078_v13 = vpack.i.bf16 %v11007_v29, %v11004_v19 }
 0x9a2   : > { %v3172_v47 = vpop.permute.xlu1 %3171 }
 0x9a3   : > { %v11018_v2 = vmul.f32 %v3172_v47, %v12881_v16  ;;  %v12893_v47 = vld [vmem:[#allocation94_spill] sm:$0xff] }
 0x9a4   : > { %7029 = vxpose.xlu1.b32.cont [8/16] (narrow) %v12884_v30, 32  ;;  %v3117_v34 = vpop.permute.xlu0 %3116 }
 0x9a5   : > { %v7082_v48 = vpack.i.bf16 %v11018_v2, %v11015_v4 }
 0x9a6   : > { %v3182_v20 = vpop.permute.xlu1 %3181 }
 0x9a7   : > { %v11029_v63 = vmul.f32 %v3182_v20, %v12886_v9  ;;  %v12897_v20 = vld [vmem:[#allocation49_spill] sm:$0xff]  ;;  %v12898_v9 = vld [vmem:[#allocation132_spill] sm:$0xff] }
 0x9a8   : > { %7031 = vxpose.xlu1.b32.cont [9/16] (narrow) %v12889_v15, 32  ;;  %v3127_v54 = vpop.permute.xlu0 %3126  ;;  %v3212_v22 = vmul.f32 %v3067_v37, %v12897_v20  ;;  %v12909_v20 = vld [vmem:[#allocation23_spill] sm:$0xff] }
 0x9a9   : > { %v7086_v58 = vpack.i.bf16 %v11029_v63, %v11026_v35 }
 0x9aa   : > { %v3192_v56 = vpop.permute.xlu1 %3191 }
 0x9ab   : > { %v11040_v26 = vmul.f32 %v3192_v56, %v12891_v25  ;;  %v12902_v25 = vld [vmem:[#allocation11_spill] sm:$0xff] }
 0x9ac   : > { %7033 = vxpose.xlu1.b32.cont [10/16] (narrow) %v7032_v1, 32  ;;  %v3137_v5 = vpop.permute.xlu0 %3136  ;;  %v12899_v1 = vld [vmem:[#allocation63_spill] sm:$0xff] }
 0x9ad   : > { %v7090_v51 = vpack.i.bf16 %v11040_v26, %v11037_v12  ;;  %v3226_v17 = vmul.f32 %v3137_v5, %v12893_v47  ;;  %v3214_v59 = vmul.f32 %v3077_v57, %v12899_v1  ;;  %v12903_v5 = vpack.i.bf16 %v12901_v53, %v12902_v25  ;;  %v12905_v47 = vld [vmem:[#allocation140_spill] sm:$0xff]  ;;  %v12915_v53 = vld [vmem:[#allocation90_spill] sm:$0xff] }
 0x9ae   : > { %v12907_v57 = vld [vmem:[#allocation144_spill] sm:$0xff]  ;;  %v11102_v25 = vmul.f32 %v3127_v54, %v12915_v53 }
 0x9af   : > { %v7068_v16 = vpack.i.bf16 %v3226_v17, %v3210_v38  ;;  %v12904_v38 = vld [vmem:[#allocation85_spill] sm:$0xff] }
 0x9b0   : > { %7035 = vxpose.xlu1.b32.cont [11/16] (narrow) %v12896_v60, 32  ;;  %v3147_v30 = vpop.permute.xlu0 %3146  ;;  %v3216_v37 = vmul.f32 %v3087_v24, %v12904_v38  ;;  %v12919_v38 = vld [vmem:[#allocation189_spill] sm:$0xff] }
 0x9b1   : > { %v3228_v43 = vmul.f32 %v3147_v30, %v12898_v9  ;;  %v12908_v30 = vld [vmem:[#allocation19_spill] sm:$0xff]  ;;  %v12911_v9 = vld [vmem:[#allocation108_spill] sm:$0xff] }
 0x9b2   : > { %v12910_v24 = vpack.i.bf16 %v12908_v30, %v12909_v20  ;;  %v12921_v20 = vld [vmem:[#allocation116_spill] sm:$0xff] }
 0x9b3   : > { %v7072_v3 = vpack.i.bf16 %v3228_v43, %v3212_v22  ;;  %v11080_v43 = vmul.f32 %v3107_v0, %v12911_v9  ;;  %v11135_v62 = vmul.f32 %v10963_v32, %v12921_v20 }
 0x9b4   : > { %7037 = vxpose.xlu1.b32.cont [12/16] (narrow) %v7036_v10, 32  ;;  %v3157_v7 = vpop.permute.xlu0 %3156  ;;  %v11069_v10 = vmul.f32 %v3097_v55, %v12906_v40 }
 0x9b5   : > { %v3230_v15 = vmul.f32 %v3157_v7, %v12900_v8  ;;  %v12913_v7 = vld [vmem:[#allocation114_spill] sm:$0xff] }
 0x9b6   : > { %v11091_v1 = vmul.f32 %v3117_v34, %v12913_v7 }
 0x9b7   : > { %v7076_v56 = vpack.i.bf16 %v3230_v15, %v3214_v59  ;;  %v12914_v59 = vld [vmem:[#allocation152_spill] sm:$0xff] }
 0x9b8   : > { %7039 = vxpose.xlu1.b32.cont [13/16] (narrow) %v12903_v5, 32  ;;  %v3167_v36 = vpop.permute.xlu0 %3166  ;;  %v12917_v5 = vld [vmem:[#allocation34_spill] sm:$0xff] }
 0x9b9   : > { %v3232_v17 = vmul.f32 %v3167_v36, %v12905_v47 }
 0x9bb   : > { %v7080_v50 = vpack.i.bf16 %v3232_v17, %v3216_v37  ;;  %v4945_v37 = vsub.f32 %v12919_v38, %v10914_v27 }
 0x9bc   : > { %7041 = vxpose.xlu1.b32.cont [14/16] (narrow) %v7040_v42, 32  ;;  %v3177_v33 = vpop.permute.xlu0 %3176 }
 0x9bd   : > { %v11072_v39 = vmul.f32 %v3177_v33, %v12907_v57  ;;  %v5069_v46 = vmul.f32 1.442695, %v4945_v37 }
 0x9bf   : > { %v7084_v60 = vpack.i.bf16 %v11072_v39, %v11069_v10  ;;  %7898 = vpow2.f32 %v5069_v46  ;;  %v12925_v10 = vmov 0  }
 0x9c0   : > { %7043 = vxpose.xlu1.b32.cont [15/16] (narrow) %v12910_v24, 32  ;;  %v3187_v22 = vpop.permute.xlu0 %3186 }
 0x9c1   : > { %v11083_v28 = vmul.f32 %v3187_v22, %v12912_v23 }
 0x9c3   : > { %v7088_v42 = vpack.i.bf16 %v11083_v28, %v11080_v43 }
 0x9c4   : > { %7045 = vxpose.xlu1.b32.end [16/16] (narrow) %v7044_v44, 32  ;;  %v3197_v55 = vpop.permute.xlu0 %3196 }
 0x9c5   : > { %v11094_v8 = vmul.f32 %v3197_v55, %v12914_v59 }
 0x9c7   : > { %v7092_v0 = vpack.i.bf16 %v11094_v8, %v11091_v1 }
 0x9c8   : > { %7067 = vxpose.xlu1.b32.start [1/16] (narrow) %v7066_v21, 32  ;;  %v3207_v15 = vpop.permute.xlu0 %3206 }
 0x9c9   : > { %v11105_v52 = vmul.f32 %v3207_v15, %v12916_v11  ;;  %v7899_v22 = vpop.eup %7898  ;;  %v12923_v11 = vld [vmem:[#allocation15_spill] sm:$0xff] }
 0x9cb   : > { %v7096_v44 = vpack.i.bf16 %v11105_v52, %v11102_v25  ;;  %v12933_v52 = vld [vmem:[#allocation29_spill] sm:$0xff] }
 0x9cc   : > { %7069 = vxpose.xlu1.b32.cont [2/16] (narrow) %v7068_v16, 32  ;;  %v4259_v34 = vpop.permute.xlu0 %4258  ;;  %v12920_v16 = vld [vmem:[#allocation190_spill] sm:$0xff] }
 0x9cd   : > { %v11110_v36 = vmul.f32 %v4259_v34, %v12917_v5  ;;  %v4946_v47 = vsub.f32 %v12920_v16, %v10914_v27 }
 0x9cf   : > { %v5071_v14 = vmul.f32 1.442695, %v4946_v47 }
 0x9d0   : > { %7071 = vxpose.xlu1.b32.cont [3/16] (narrow) %v7070_v31, 32  ;;  %v4264_v61 = vpop.permute.xlu0 %4263 }
 0x9d1   : > { %v11116_v21 = vmul.f32 %v4264_v61, %v12918_v41  ;;  %7900 = vpow2.f32 %v5071_v14 }
 0x9d4   : > { %7073 = vxpose.xlu1.b32.cont [4/16] (narrow) %v7072_v3, 32  ;;  %v11118_v54 = vpop.permute.xlu0 %4268 }
 0x9d8   : > { %7075 = vxpose.xlu1.b32.cont [5/16] (narrow) %v7074_v45, 32 }
 0x9d9   : > { %v11127_v17 = vpop.permute.xlu0 %4338 }
 0x9db   : > { %v4884_v31 = vpop.xlane.xlu1 %4883  ;;  %v7901_v19 = vpop.eup %7900 }
 0x9dc   : > { %v4947_v33 = vsub.f32 %v10791_v49, %v4884_v31  ;;  %v4948_v3 = vsub.f32 %v10793_v6, %v4884_v31  ;;  %7077 = vxpose.xlu1.b32.cont [6/16] (narrow) %v7076_v56, 32 }
 0x9dd   : > { %v11131_v40 = vpop.permute.xlu0 %4343 }
 0x9de   : > { %v5073_v57 = vmul.f32 1.442695, %v4947_v33  ;;  %v5075_v30 = vmul.f32 1.442695, %v4948_v3  ;;  %v12926_v33 = vld [vmem:[#allocation22_spill] sm:$0xff] }
 0x9df   : > { %v3202_v27 = vpop.permute.xlu1 %3201 }
 0x9e0   : > { %7902 = vpow2.f32 %v5073_v57  ;;  %v11138_v45 = vmul.f32 %v3202_v27, %v12922_v18  ;;  %7079 = vxpose.xlu1.b32.cont [7/16] (narrow) %v7078_v13, 32 }
 0x9e1   : > { %7904 = vpow2.f32 %v5075_v30  ;;  %v11143_v49 = vpop.permute.xlu0 %4348 }
 0x9e2   : > { %v7094_v6 = vpack.i.bf16 %v11138_v45, %v11135_v62 }
 0x9e4   : > { %7081 = vxpose.xlu1.b32.cont [8/16] (narrow) %v7080_v50, 32 }
 0x9e5   : > { %v11147_v56 = vpop.permute.xlu0 %4353 }
 0x9e7   : > { %v6864_v24 = vpop.f32.mrb[112].mxu0  ;;  %v11149_v32 = vpop.f32.mrb[112].mxu1 }
 0x9e8   : > { %v6865_v9 = vpop.f32.mrb[113].mxu0  ;;  %v5338_v23 = vpop.f32.mrb[113].mxu1  ;;  %7083 = vxpose.xlu1.b32.cont [9/16] (narrow) %v7082_v48, 32  ;;  %v12924_v48 = vld [vmem:[#allocation73_spill] sm:$0xff] }
 0x9e9   : > { %v6866_v29 = vadd.f32 %v6865_v9, %v6864_v24  ;;  %v6867_v13 = vpop.f32.mrb[114].mxu0  ;;  %v11154_v55 = vpop.f32.mrb[114].mxu1 }
 0x9ea   : > { %v7903_v7 = vpop.eup %7902  ;;  %v4274_v59 = vpop.permute.xlu0 %4273 }
 0x9eb   : > { %v6868_v50 = vpop.f32.mrb[115].mxu0  ;;  %v7905_v15 = vpop.eup %7904  ;;  %v5107_v53 = vpack.c.bf16 %v7903_v7, %v7899_v22  ;;  %7906 = vrcp.f32 %v6866_v29  ;;  %v11157_v34 = vmul.f32 %v4274_v59, %v12923_v11  ;;  %v12928_v29 = vld [vmem:[#allocation28_spill] sm:$0xff] }
 0x9ec   : > { %v6869_v5 = vadd.f32 %v6868_v50, %v6867_v13  ;;  %v5341_v61 = vpop.f32.mrb[115].mxu1  ;;  %7085 = vxpose.xlu1.b32.cont [10/16] (narrow) %v7084_v60, 32  ;;  %v5108_v4 = vpack.c.bf16 %v7905_v15, %v7901_v19 }
 0x9ee   : > { %v4359_v2 = vpop.permute.xlu0 %4358  ;;  %5261 = vmatprep.mubr.bf16.mxu0 %v5108_v4  ;;  %5454 = vmatprep.mubr.bf16.mxu1 %v5108_v4  ;;  %7908 = vrcp.f32 %v6869_v5 }
 0x9ef   : > { %v11163_v41 = vmul.f32 %v4359_v2, %v12924_v48  ;;  %v6870_v38 = vpop.f32.mrb[116].mxu0  ;;  %5262 = vmatmul.mubr.bf16.gmra.mrb[172].mxu0 %v5107_v53  ;;  %v11165_v37 = vpop.f32.mrb[116].mxu1  ;;  %5455 = vmatmul.mubr.bf16.gmra.mrb[172].mxu1 %v5107_v53  ;;  %v12931_v48 = vld [vmem:[#allocation36_spill] sm:$0xff] }
 0x9f0   : > { %v6871_v16 = vpop.f32.mrb[117].mxu0  ;;  %v5346_v47 = vpop.f32.mrb[117].mxu1  ;;  %7087 = vxpose.xlu1.b32.cont [11/16] (narrow) %v7086_v58, 32  ;;  %5795 = vmatprep.mubr.bf16.mxu0 %v12925_v10  ;;  %v12927_v58 = vld [vmem:[#allocation76_spill] sm:$0xff] }
 0x9f1   : > { %v6872_v39 = vadd.f32 %v6871_v16, %v6870_v38  ;;  %v6873_v60 = vpop.f32.mrb[118].mxu0  ;;  %v11171_v46 = vpop.f32.mrb[118].mxu1  ;;  %5868 = vmatprep.mubr.bf16.mxu1 %v12925_v10 }
 0x9f2   : > { %v4279_v14 = vpop.permute.xlu0 %4278  ;;  %v6874_v31 = vpop.f32.mrb[119].mxu0 }
 0x9f3   : > { %7910 = vrcp.f32 %v6872_v39  ;;  %v11175_v3 = vmul.f32 %v4279_v14, %v12926_v33  ;;  %v6875_v57 = vadd.f32 %v6874_v31, %v6873_v60  ;;  %v5349_v30 = vpop.f32.mrb[119].mxu1 }
 0x9f4   : > { %7089 = vxpose.xlu1.b32.cont [12/16] (narrow) %v7088_v42, 32 }
 0x9f5   : > { %v7907_v35 = vpop.eup %7906  ;;  %7912 = vrcp.f32 %v6875_v57 }
 0x9f6   : > { %v4364_v63 = vpop.permute.xlu0 %4363  ;;  %5465 = vperm.xlu0 %7012, %v7907_v35  }
 0x9f7   : > { %v11181_v27 = vmul.f32 %v4364_v63, %v12927_v58  ;;  %v6876_v20 = vpop.f32.mrb[120].mxu0  ;;  %v11183_v18 = vpop.f32.mrb[120].mxu1 }
 0x9f8   : > { %v6877_v24 = vpop.f32.mrb[121].mxu0  ;;  %v5354_v22 = vpop.f32.mrb[121].mxu1  ;;  %7091 = vxpose.xlu1.b32.cont [13/16] (narrow) %v7090_v51, 32  ;;  %v12929_v51 = vld [vmem:[#allocation75_spill] sm:$0xff] }
 0x9f9   : > { %v7909_v9 = vpop.eup %7908  ;;  %v6878_v23 = vadd.f32 %v6877_v24, %v6876_v20  ;;  %v6879_v43 = vpop.f32.mrb[122].mxu0 }
 0x9fa   : > { %v11188_v28 = vpop.f32.mrb[122].mxu1  ;;  %v4284_v42 = vpop.permute.xlu0 %4283  ;;  %5470 = vperm.xlu0 %7012, %v7909_v9  }
 0x9fb   : > { %v6880_v19 = vpop.f32.mrb[123].mxu0  ;;  %7914 = vrcp.f32 %v6878_v23  ;;  %v11191_v13 = vmul.f32 %v4284_v42, %v12928_v29  ;;  %v5357_v59 = vpop.f32.mrb[123].mxu1 }
 0x9fc   : > { %v6881_v7 = vadd.f32 %v6880_v19, %v6879_v43  ;;  %7093 = vxpose.xlu1.b32.cont [14/16] (narrow) %v7092_v0, 32 }
 0x9fd   : > { %v7911_v12 = vpop.eup %7910 }
 0x9fe   : > { %v4369_v26 = vpop.permute.xlu0 %4368  ;;  %5475 = vperm.xlu0 %7012, %v7911_v12   ;;  %7916 = vrcp.f32 %v6881_v7 }
 0x9ff   : > { %v11197_v50 = vmul.f32 %v4369_v26, %v12929_v51  ;;  %v6882_v15 = vpop.f32.mrb[124].mxu0  ;;  %v11199_v53 = vpop.f32.mrb[124].mxu1 }
 0xa00   : > { %v6883_v11 = vpop.f32.mrb[125].mxu0  ;;  %v5362_v5 = vpop.f32.mrb[125].mxu1  ;;  %7095 = vxpose.xlu1.b32.cont [15/16] (narrow) %v7094_v6, 32  ;;  %v12932_v6 = vld [vmem:[#allocation78_spill] sm:$0xff] }
 0xa01   : > { %12930 = vst [vmem:[#allocation43_spill] sm:$0xff] %v11197_v50  ;;  %v7913_v61 = vpop.eup %7912  ;;  %v6884_v4 = vadd.f32 %v6883_v11, %v6882_v15  ;;  %v6885_v1 = vpop.f32.mrb[126].mxu0 }
 0xa02   : > { %v11204_v8 = vpop.f32.mrb[126].mxu1  ;;  %v4289_v0 = vpop.permute.xlu0 %4288  ;;  %5480 = vperm.xlu0 %7012, %v7913_v61   ;;  %v12934_v61 = vld [vmem:[#allocation159_spill] sm:$0xff] }
 0xa03   : > { %v6886_v2 = vpop.f32.mrb[127].mxu0  ;;  %7918 = vrcp.f32 %v6884_v4  ;;  %v11207_v38 = vmul.f32 %v4289_v0, %v12931_v48  ;;  %v5365_v47 = vpop.f32.mrb[127].mxu1 }
 0xa04   : > { %v6887_v16 = vadd.f32 %v6886_v2, %v6885_v1  ;;  %7097 = vxpose.xlu1.b32.end [16/16] (narrow) %v7096_v44, 32 }
 0xa05   : > { %v7915_v62 = vpop.eup %7914 }
 0xa06   : > { %v4374_v45 = vpop.permute.xlu0 %4373  ;;  %5485 = vperm.xlu0 %7012, %v7915_v62   ;;  %7920 = vrcp.f32 %v6887_v16 }
 0xa07   : > { %v11213_v39 = vmul.f32 %v4374_v45, %v12932_v6  ;;  %v6888_v60 = vpop.f32.mrb[128].mxu0  ;;  %v11215_v14 = vpop.f32.mrb[128].mxu1  ;;  %v12935_v45 = vld [vmem:[#allocation122_spill] sm:$0xff] }
 0xa08   : > { %v6889_v31 = vpop.f32.mrb[129].mxu0  ;;  %v5370_v33 = vpop.f32.mrb[129].mxu1 }
 0xa09   : > { %v7917_v57 = vpop.eup %7916  ;;  %v6890_v30 = vadd.f32 %v6889_v31, %v6888_v60  ;;  %v6891_v35 = vpop.f32.mrb[130].mxu0 }
 0xa0a   : > { %v11217_v63 = vpop.f32.mrb[130].mxu1  ;;  %v4294_v58 = vpop.permute.xlu0 %4293  ;;  %5490 = vperm.xlu0 %7012, %v7917_v57  }
 0xa0b   : > { %v6892_v25 = vpop.f32.mrb[131].mxu0  ;;  %7922 = vrcp.f32 %v6890_v30  ;;  %v11220_v44 = vmul.f32 %v4294_v58, %v12933_v52  ;;  %v5373_v24 = vpop.f32.mrb[131].mxu1  ;;  %v12936_v30 = vld [vmem:[#allocation37_spill] sm:$0xff] }
 0xa0c   : > { %v6893_v20 = vadd.f32 %v6892_v25, %v6891_v35  ;;  %v11222_v22 = vpop.trf.xlu1 }
 0xa0d   : > { %v7919_v9 = vpop.eup %7918 }
 0xa0e   : > { %5495 = vperm.xlu0 %7012, %v7919_v9   ;;  %7924 = vrcp.f32 %v6893_v20 }
 0xa0f   : > { %v6894_v23 = vpop.f32.mrb[132].mxu0  ;;  %v11224_v43 = vpop.f32.mrb[132].mxu1 }
 0xa10   : > { %v6895_v42 = vpop.f32.mrb[133].mxu0  ;;  %v5378_v19 = vpop.f32.mrb[133].mxu1 }
 0xa11   : > { %v7921_v29 = vpop.eup %7920  ;;  %v6896_v7 = vadd.f32 %v6895_v42, %v6894_v23  ;;  %v6897_v59 = vpop.f32.mrb[134].mxu0  ;;  %v12937_v19 = vld [vmem:[#allocation123_spill] sm:$0xff] }
 0xa12   : > { %v11226_v12 = vpop.f32.mrb[134].mxu1  ;;  %v6898_v26 = vpop.f32.mrb[135].mxu0  ;;  %5500 = vperm.xlu0 %7012, %v7921_v29  }
 0xa13   : > { %v5381_v51 = vpop.f32.mrb[135].mxu1  ;;  %7926 = vrcp.f32 %v6896_v7  ;;  %v6899_v15 = vadd.f32 %v6898_v26, %v6897_v59  ;;  %v11228_v11 = vpop.trf.xlu1 }
 0xa14   : > { %7928 = vrcp.f32 %v12934_v61 }
 0xa15   : > { %v7923_v5 = vpop.eup %7922  ;;  %7930 = vrcp.f32 %v6899_v15 }
 0xa16   : > { %5505 = vperm.xlu0 %7012, %v7923_v5   ;;  %7932 = vrcp.f32 %v12935_v45  ;;  %v12938_v5 = vld [vmem:[#allocation161_spill] sm:$0xff] }
 0xa17   : > { %v6900_v4 = vpop.f32.mrb[136].mxu0  ;;  %v11231_v1 = vpop.f32.mrb[136].mxu1 }
 0xa18   : > { %v6901_v0 = vpop.f32.mrb[137].mxu0  ;;  %v5386_v2 = vpop.f32.mrb[137].mxu1 }
 0xa19   : > { %v7925_v48 = vpop.eup %7924  ;;  %v6902_v16 = vadd.f32 %v6901_v0, %v6900_v4  ;;  %v6903_v47 = vpop.f32.mrb[138].mxu0 }
 0xa1a   : > { %v11233_v62 = vpop.f32.mrb[138].mxu1  ;;  %v6904_v6 = vpop.f32.mrb[139].mxu0  ;;  %5510 = vperm.xlu0 %7012, %v7925_v48  }
 0xa1b   : > { %v5389_v60 = vpop.f32.mrb[139].mxu1  ;;  %7934 = vrcp.f32 %v6902_v16  ;;  %v6905_v31 = vadd.f32 %v6904_v6, %v6903_v47  ;;  %v11236_v33 = vpop.trf.xlu1 }
 0xa1c   : > { %7936 = vrcp.f32 %v12936_v30  ;;  %v12939_v60 = vld [vmem:[#allocation124_spill] sm:$0xff] }
 0xa1d   : > { %v7927_v57 = vpop.eup %7926  ;;  %7938 = vrcp.f32 %v6905_v31 }
 0xa1e   : > { %5515 = vperm.xlu0 %7012, %v7927_v57   ;;  %v7929_v25 = vpop.eup %7928  ;;  %7940 = vrcp.f32 %v12937_v19 }
 0xa1f   : > { %v6906_v35 = vpop.f32.mrb[140].mxu0  ;;  %v11239_v58 = vpop.f32.mrb[140].mxu1 }
 0xa20   : > { %v6907_v52 = vpop.f32.mrb[141].mxu0  ;;  %v5394_v20 = vpop.f32.mrb[141].mxu1 }
 0xa21   : > { %v7931_v24 = vpop.eup %7930  ;;  %v6908_v9 = vadd.f32 %v6907_v52, %v6906_v35  ;;  %v6909_v23 = vpop.f32.mrb[142].mxu0  ;;  %v12940_v52 = vld [vmem:[#allocation163_spill] sm:$0xff] }
 0xa22   : > { %v11241_v42 = vpop.f32.mrb[142].mxu1  ;;  %v6910_v29 = vpop.f32.mrb[143].mxu0  ;;  %5520 = vperm.xlu0 %7012, %v7931_v24   ;;  %4298 = vperm.xlu1 %7013, %v7929_v25  }
 0xa23   : > { %v5397_v7 = vpop.f32.mrb[143].mxu1  ;;  %7942 = vrcp.f32 %v6908_v9  ;;  %v6911_v59 = vadd.f32 %v6910_v29, %v6909_v23  ;;  %v11244_v26 = vpop.trf.xlu1 }
 0xa24   : > { %v7933_v51 = vpop.eup %7932  ;;  %7944 = vrcp.f32 %v12938_v5 }
 0xa25   : > { %v7935_v15 = vpop.eup %7934  ;;  %7946 = vrcp.f32 %v6911_v59 }
 0xa26   : > { %5525 = vperm.xlu0 %7012, %v7935_v15   ;;  %4383 = vperm.xlu1 %7013, %v7933_v51   ;;  %v7937_v0 = vpop.eup %7936  ;;  %7948 = vrcp.f32 %v12939_v60  ;;  %v12941_v15 = vld [vmem:[#allocation125_spill] sm:$0xff] }
 0xa27   : > { %v6912_v61 = vpop.f32.mrb[144].mxu0  ;;  %v11247_v4 = vpop.f32.mrb[144].mxu1 }
 0xa28   : > { %v6913_v2 = vpop.f32.mrb[145].mxu0  ;;  %v5402_v48 = vpop.f32.mrb[145].mxu1 }
 0xa29   : > { %v7939_v16 = vpop.eup %7938  ;;  %v6914_v47 = vadd.f32 %v6913_v2, %v6912_v61  ;;  %v6915_v45 = vpop.f32.mrb[146].mxu0 }
 0xa2a   : > { %v11249_v6 = vpop.f32.mrb[146].mxu1  ;;  %v6916_v31 = vpop.f32.mrb[147].mxu0  ;;  %5530 = vperm.xlu0 %7012, %v7939_v16   ;;  %4303 = vperm.xlu1 %7013, %v7937_v0   ;;  %v12942_v16 = vld [vmem:[#allocation74_spill] sm:$0xff] }
 0xa2b   : > { %v5405_v57 = vpop.f32.mrb[147].mxu1  ;;  %7950 = vrcp.f32 %v6914_v47  ;;  %v6917_v30 = vadd.f32 %v6916_v31, %v6915_v45  ;;  %v7941_v35 = vpop.eup %7940 }
 0xa2c   : > { %7952 = vrcp.f32 %v12940_v52 }
 0xa2d   : > { %v7943_v25 = vpop.eup %7942  ;;  %7954 = vrcp.f32 %v6917_v30 }
 0xa2e   : > { %5535 = vperm.xlu0 %7012, %v7943_v25   ;;  %4388 = vperm.xlu1 %7013, %v7941_v35   ;;  %v7945_v9 = vpop.eup %7944  ;;  %7956 = vrcp.f32 %v12941_v15 }
 0xa2f   : > { %v6918_v20 = vpop.f32.mrb[148].mxu0  ;;  %v11253_v24 = vpop.f32.mrb[148].mxu1 }
 0xa30   : > { %v6919_v23 = vpop.f32.mrb[149].mxu0  ;;  %v5410_v19 = vpop.f32.mrb[149].mxu1 }
 0xa31   : > { %v7947_v29 = vpop.eup %7946  ;;  %v6920_v7 = vadd.f32 %v6919_v23, %v6918_v20  ;;  %v6921_v59 = vpop.f32.mrb[150].mxu0  ;;  %v12943_v20 = vld [vmem:[#allocation127_spill] sm:$0xff] }
 0xa32   : > { %v11255_v51 = vpop.f32.mrb[150].mxu1  ;;  %v6922_v5 = vpop.f32.mrb[151].mxu0  ;;  %5540 = vperm.xlu0 %7012, %v7947_v29   ;;  %4308 = vperm.xlu1 %7013, %v7945_v9  }
 0xa33   : > { %v5413_v61 = vpop.f32.mrb[151].mxu1  ;;  %7958 = vrcp.f32 %v6920_v7  ;;  %v6923_v0 = vadd.f32 %v6922_v5, %v6921_v59  ;;  %v7949_v2 = vpop.eup %7948  ;;  %v12944_v59 = vld [vmem:[#allocation166_spill] sm:$0xff] }
 0xa34   : > { %7960 = vrcp.f32 %v12942_v16 }
 0xa35   : > { %v7951_v48 = vpop.eup %7950  ;;  %7962 = vrcp.f32 %v6923_v0 }
 0xa36   : > { %5545 = vperm.xlu0 %7012, %v7951_v48   ;;  %4393 = vperm.xlu1 %7013, %v7949_v2   ;;  %v7953_v60 = vpop.eup %7952  ;;  %7964 = vrcp.f32 %v12943_v20 }
 0xa37   : > { %v6924_v47 = vpop.f32.mrb[152].mxu0  ;;  %v11259_v45 = vpop.f32.mrb[152].mxu1 }
 0xa38   : > { %v6925_v31 = vpop.f32.mrb[153].mxu0  ;;  %v5418_v57 = vpop.f32.mrb[153].mxu1 }
 0xa39   : > { %v7955_v30 = vpop.eup %7954  ;;  %v6926_v35 = vadd.f32 %v6925_v31, %v6924_v47  ;;  %v6927_v25 = vpop.f32.mrb[154].mxu0 }
 0xa3a   : > { %v11261_v52 = vpop.f32.mrb[154].mxu1  ;;  %v6928_v9 = vpop.f32.mrb[155].mxu0  ;;  %5550 = vperm.xlu0 %7012, %v7955_v30   ;;  %4313 = vperm.xlu1 %7013, %v7953_v60   ;;  %v12946_v30 = vld [vmem:[#allocation57_spill] sm:$0xff] }
 0xa3b   : > { %v5421_v23 = vpop.f32.mrb[155].mxu1  ;;  %7966 = vrcp.f32 %v6926_v35  ;;  %v6929_v19 = vadd.f32 %v6928_v9, %v6927_v25  ;;  %v7957_v29 = vpop.eup %7956  ;;  %v12947_v9 = vld [vmem:[#allocation168_spill] sm:$0xff] }
 0xa3c   : > { %7968 = vrcp.f32 %v12944_v59 }
 0xa3d   : > { %v7959_v7 = vpop.eup %7958  ;;  %7970 = vrcp.f32 %v6929_v19 }
 0xa3e   : > { %5555 = vperm.xlu0 %7012, %v7959_v7   ;;  %4398 = vperm.xlu1 %7013, %v7957_v29   ;;  %v7961_v61 = vpop.eup %7960  ;;  %7972 = vrcp.f32 %v12946_v30 }
 0xa3f   : > { %v6930_v15 = vpop.f32.mrb[156].mxu0  ;;  %v11265_v5 = vpop.f32.mrb[156].mxu1 }
 0xa40   : > { %12945 = vst [vmem:[#allocation64_spill] sm:$0xff] %v11265_v5  ;;  %v6931_v0 = vpop.f32.mrb[157].mxu0  ;;  %v5426_v2 = vpop.f32.mrb[157].mxu1 }
 0xa41   : > { %v7963_v48 = vpop.eup %7962  ;;  %v6932_v16 = vadd.f32 %v6931_v0, %v6930_v15  ;;  %v6933_v47 = vpop.f32.mrb[158].mxu0 }
 0xa42   : > { %v11267_v31 = vpop.f32.mrb[158].mxu1  ;;  %v6934_v60 = vpop.f32.mrb[159].mxu0  ;;  %5560 = vperm.xlu0 %7012, %v7963_v48   ;;  %4318 = vperm.xlu1 %7013, %v7961_v61   ;;  %v12950_v48 = vld [vmem:[#allocation69_spill] sm:$0xff] }
 0xa43   : > { %v5429_v57 = vpop.f32.mrb[159].mxu1  ;;  %v6935_v35 = vadd.f32 %v6934_v60, %v6933_v47  ;;  %v7965_v25 = vpop.eup %7964 }
 0xa45   : > { %v7967_v20 = vpop.eup %7966  ;;  %7974 = vrcp.f32 %v6935_v35 }
 0xa46   : > { %5565 = vperm.xlu0 %7012, %v7967_v20   ;;  %4403 = vperm.xlu1 %7013, %v7965_v25   ;;  %7976 = vrcp.f32 %v12947_v9  ;;  %v7969_v29 = vpop.eup %7968  ;;  %v12951_v25 = vld [vmem:[#allocation170_spill] sm:$0xff] }
 0xa47   : > { %v6936_v23 = vpop.f32.mrb[160].mxu0  ;;  %v11271_v19 = vpop.f32.mrb[160].mxu1  ;;  %7978 = vrcp.f32 %v12950_v48 }
 0xa48   : > { %12948 = vst [vmem:[#allocation51_spill] sm:$0xff] %v11271_v19  ;;  %v6937_v7 = vpop.f32.mrb[161].mxu0  ;;  %v5434_v59 = vpop.f32.mrb[161].mxu1 }
 0xa49   : > { %v7971_v15 = vpop.eup %7970  ;;  %v6938_v0 = vadd.f32 %v6937_v7, %v6936_v23  ;;  %v6939_v2 = vpop.f32.mrb[162].mxu0 }
 0xa4a   : > { %v11273_v61 = vpop.f32.mrb[162].mxu1  ;;  %v6940_v47 = vpop.f32.mrb[163].mxu0  ;;  %5570 = vperm.xlu0 %7012, %v7971_v15   ;;  %4323 = vperm.xlu1 %7013, %v7969_v29  }
 0xa4b   : > { %12949 = vst [vmem:[#allocation33_spill] sm:$0xff] %v11273_v61  ;;  %v5437_v60 = vpop.f32.mrb[163].mxu1  ;;  %7980 = vrcp.f32 %v6938_v0  ;;  %v6941_v57 = vadd.f32 %v6940_v47, %v6939_v2  ;;  %v11276_v30 = vpop.trf.xlu1 }
 0xa4c   : > { %v7973_v35 = vpop.eup %7972  ;;  %7982 = vrcp.f32 %v12951_v25 }
 0xa4d   : > { %7984 = vrcp.f32 %v6941_v57  ;;  %v7047_v57 = vunpack.i.l.bf16 %v11222_v22 }
 0xa4e   : > { %4408 = vperm.xlu1 %7013, %v7973_v35   ;;  %7986 = vrcp.f32 %v6932_v16  ;;  %v7050_v35 = vunpack.i.h.bf16 %v11222_v22 }
 0xa4f   : > { %v7975_v20 = vpop.eup %7974  ;;  %v6942_v9 = vpop.f32.mrb[164].mxu0 }
 0xa50   : > { %v11279_v23 = vpop.f32.mrb[164].mxu1  ;;  %v6943_v7 = vpop.f32.mrb[165].mxu0  ;;  %5580 = vperm.xlu0 %7012, %v7975_v20   ;;  %v7052_v20 = vunpack.i.l.bf16 %v11228_v11 }
 0xa51   : > { %12952 = vst [vmem:[#allocation84_spill] sm:$0xff] %v11279_v23  ;;  %v5442_v59 = vpop.f32.mrb[165].mxu1  ;;  %v7977_v48 = vpop.eup %7976  ;;  %v6944_v60 = vadd.f32 %v6943_v7, %v6942_v9 }
 0xa52   : > { %v6945_v15 = vpop.f32.mrb[166].mxu0  ;;  %v11281_v29 = vpop.f32.mrb[166].mxu1  ;;  %4328 = vperm.xlu1 %7013, %v7977_v48   ;;  %v7055_v59 = vunpack.i.h.bf16 %v11228_v11 }
 0xa53   : > { %12953 = vst [vmem:[#allocation61_spill] sm:$0xff] %v11281_v29  ;;  %v6946_v0 = vpop.f32.mrb[167].mxu0  ;;  %v5445_v2 = vpop.f32.mrb[167].mxu1  ;;  %7988 = vrcp.f32 %v6944_v60 }
 0xa54   : > { %v6947_v47 = vadd.f32 %v6946_v0, %v6945_v15  ;;  %v7103_v25 = vpop.trf.xlu1  ;;  %v7979_v50 = vpop.eup %7978  ;;  %v2099_v0 = vpack.c.bf16 %v7055_v59, %v7050_v35  ;;  %v2098_v2 = vpack.c.bf16 %v7052_v20, %v7047_v57  ;;  %v7057_v35 = vunpack.i.l.bf16 %v11236_v33 }
 0xa55   : > { %v7981_v9 = vpop.eup %7980  ;;  %v7065_v57 = vunpack.i.h.bf16 %v11244_v26  ;;  %v7062_v59 = vunpack.i.l.bf16 %v11244_v26 }
 0xa56   : > { %5585 = vperm.xlu0 %7012, %v7981_v9   ;;  %4413 = vperm.xlu1 %7013, %v7979_v50   ;;  %7990 = vrcp.f32 %v6947_v47  ;;  %v7983_v48 = vpop.eup %7982 }
 0xa57   : > { %v6948_v16 = vpop.f32.mrb[168].mxu0  ;;  %v11287_v7 = vpop.f32.mrb[168].mxu1  ;;  %5763 = vmatprep.subr.bf16.mxu0 %v2099_v0 }
 0xa58   : > { %v6949_v60 = vpop.f32.mrb[169].mxu0  ;;  %v5450_v15 = vpop.f32.mrb[169].mxu1  ;;  %5764 = vmatpush1.bf16.msra.mxu0 %v2098_v2 }
 0xa59   : > { %v7985_v29 = vpop.eup %7984  ;;  %v6950_v22 = vadd.f32 %v6949_v60, %v6948_v16  ;;  %v6951_v5 = vpop.f32.mrb[170].mxu0  ;;  %v7060_v15 = vunpack.i.h.bf16 %v11236_v33  ;;  %v7099_v16 = vunpack.i.l.bf16 %v11276_v30  ;;  %v7104_v60 = vunpack.i.l.bf16 %v7103_v25 }
 0xa5a   : > { %v11289_v23 = vpop.f32.mrb[170].mxu1  ;;  %v6952_v61 = vpop.f32.mrb[171].mxu0  ;;  %5590 = vperm.xlu0 %7012, %v7985_v29   ;;  %4333 = vperm.xlu1 %7013, %v7983_v48   ;;  %v7107_v48 = vunpack.i.h.bf16 %v7103_v25 }
 0xa5b   : > { %v5453_v19 = vpop.f32.mrb[171].mxu1  ;;  %7992 = vrcp.f32 %v6950_v22  ;;  %v6953_v50 = vadd.f32 %v6952_v61, %v6951_v5  ;;  %v7108_v11 = vpop.trf.xlu1  ;;  %v2101_v20 = vpack.c.bf16 %v7065_v57, %v7060_v15  ;;  %v2100_v5 = vpack.c.bf16 %v7062_v59, %v7057_v35  ;;  %v11316_v59 = vld [vmem:[%s11954_s3 + $0x8] sm:$0xff]  }
 0xa5c   : > { %v7987_v47 = vpop.eup %7986  ;;  %v7102_v61 = vunpack.i.h.bf16 %v11276_v30  ;;  %v7112_v0 = vunpack.i.h.bf16 %v7108_v11  ;;  %v3305_v22 = vpack.c.bf16 %v7104_v60, %v7099_v16  ;;  %v11300_v30 = vld [vmem:[%s11954_s3] sm:$0xff]   ;;  %v11302_v25 = vpop.permute.xlu0 %4378  ;;  %12954 = vst [vmem:[#allocation99_spill] sm:$0xff] %v11316_v59 }
 0xa5d   : > { %v7989_v9 = vpop.eup %7988  ;;  %7994 = vrcp.f32 %v6953_v50  ;;  %5765 = vmatprep.subr.bf16.mxu0 %v2101_v20 }
 0xa5e   : > { %5595 = vperm.xlu0 %7012, %v7989_v9   ;;  %5575 = vperm.xlu1 %7013, %v7987_v47   ;;  %v3306_v2 = vpack.c.bf16 %v7107_v48, %v7102_v61  ;;  %v7109_v47 = vunpack.i.l.bf16 %v7108_v11  ;;  %v12955_v61 = vld [vmem:[#allocation13_spill] sm:$0xff] }
 0xa5f   : > { %v7113_v19 = vpop.trf.xlu1  ;;  %5766 = vmatpush1.bf16.msra.mxu0 %v2100_v5  ;;  %v11333_v16 = vmul.f32 %v11118_v54, %v12955_v61 }
 0xa60   : > { %v7991_v29 = vpop.eup %7990  ;;  %v7117_v26 = vunpack.i.h.bf16 %v7113_v19  ;;  %5836 = vmatprep.subr.bf16.mxu1 %v3306_v2  ;;  %v7114_v9 = vunpack.i.l.bf16 %v7113_v19  ;;  %v11362_v2 = vld [vmem:[%s11954_s3 + $0x18] sm:$0xff]  }
 0xa61   : > { %5837 = vmatpush1.bf16.msra.mxu1 %v3305_v22  ;;  %12957 = vst [vmem:[#allocation105_spill] sm:$0xff] %v11362_v2 }
 0xa62   : > { %5600 = vperm.xlu0 %7012, %v7991_v29   ;;  %v3308_v15 = vpack.c.bf16 %v7117_v26, %v7112_v0  ;;  %v3307_v35 = vpack.c.bf16 %v7114_v9, %v7109_v47  ;;  %6489 = vmatmul.mubr.msk.bf16.vlgmr.msra.gmra.mrb[176].mxu0 %vm926_vm1, %v11300_v30 }
 0xa63   : > { %5805 = vmatprep.mubr.bf16.mxu0 %v12925_v10 }
 0xa64   : > { %5838 = vmatprep.subr.bf16.mxu1 %v3308_v15 }
 0xa65   : > { %v7993_v33 = vpop.eup %7992  ;;  %5839 = vmatpush1.bf16.msra.mxu1 %v3307_v35 }
 0xa66   : > { %5605 = vperm.xlu0 %7012, %v7993_v33  }
 0xa67   : > { %v7995_v50 = vpop.eup %7994 }
 0xa68   : > { %6493 = vmatmul.mubr.msk.bf16.vlgmr.msra.gmra.mrb[176].mxu1 %vm926_vm1, %v11300_v30 }
 0xa69   : > { %5878 = vmatprep.mubr.bf16.mxu1 %v12925_v10 }
 0xa6a   : > { %5610 = vperm.xlu0 %7012, %v7995_v50   ;;  %6490 = vmatmul.mubr.msk.bf16.gmra.mrb[180].mxu0 %vm926_vm1, %v11316_v59 }
 0xa6b   : > { %5815 = vmatprep.mubr.bf16.mxu0 %v12925_v10 }
 0xa70   : > { %6494 = vmatmul.mubr.msk.bf16.gmra.mrb[180].mxu1 %vm926_vm1, %v11316_v59 }
 0xa71   : > { %5888 = vmatprep.mubr.bf16.mxu1 %v12925_v10 }
 0xa75   : > { %v5466_v11 = vpop.permute.xlu0 %5465 }
 0xa76   : > { %v11311_v57 = vmul.f32 %v5466_v11, %v11149_v32  ;;  %v12963_v32 = vld [vmem:[#allocation171_spill] sm:$0xff] }
 0xa79   : > { %v5471_v29 = vpop.permute.xlu0 %5470 }
 0xa7a   : > { %v11323_v20 = vmul.f32 %v5471_v29, %v11154_v55  ;;  %v11341_v55 = vld [vmem:[%s11954_s3 + $0x10] sm:$0xff]  }
 0xa7b   : > { %12956 = vst [vmem:[#allocation72_spill] sm:$0xff] %v11341_v55  ;;  %6491 = vmatmul.mubr.msk.bf16.gmra.mrb[184].mxu0 %vm926_vm1, %v11341_v55  ;;  %6495 = vmatmul.mubr.msk.bf16.gmra.mrb[184].mxu1 %vm926_vm1, %v11341_v55  ;;  %v12980_v55 = vld [vmem:[#allocation82_spill] sm:$0xff] }
 0xa7c   : > { %5825 = vmatprep.mubr.bf16.mxu0 %v12925_v10  ;;  %5898 = vmatprep.mubr.bf16.mxu1 %v12925_v10 }
 0xa7d   : > { %v5476_v5 = vpop.permute.xlu0 %5475 }
 0xa7e   : > { %v11336_v48 = vmul.f32 %v5476_v5, %v11165_v37 }
 0xa81   : > { %v5481_v33 = vpop.permute.xlu0 %5480 }
 0xa82   : > { %v11348_v0 = vmul.f32 %v5481_v33, %v11171_v46 }
 0xa83   : > { %6492 = vmatmul.mubr.msk.bf16.gmra.mrb[188].mxu0 %vm926_vm1, %v11362_v2  ;;  %6496 = vmatmul.mubr.msk.bf16.gmra.mrb[188].mxu1 %vm926_vm1, %v11362_v2  ;;  %v12964_v2 = vld [vmem:[#allocation12_spill] sm:$0xff] }
 0xa84   : > { %5941 = vmatprep.mubr.bf16.mxu0 %v12925_v10  ;;  %6014 = vmatprep.mubr.bf16.mxu1 %v12925_v10 }
 0xa85   : > { %v5486_v37 = vpop.permute.xlu0 %5485 }
 0xa86   : > { %v11357_v26 = vmul.f32 %v5486_v37, %v11183_v18 }
 0xa89   : > { %v5491_v22 = vpop.permute.xlu0 %5490 }
 0xa8a   : > { %v11369_v50 = vmul.f32 %v5491_v22, %v11188_v28 }
 0xa8d   : > { %v5496_v47 = vpop.permute.xlu0 %5495 }
 0xa8e   : > { %v11378_v9 = vmul.f32 %v5496_v47, %v11199_v53 }
 0xa91   : > { %v5501_v35 = vpop.permute.xlu0 %5500 }
 0xa92   : > { %v11383_v28 = vmul.f32 %v5501_v35, %v11204_v8  ;;  %v12958_v35 = vld [vmem:[#allocation158_spill] sm:$0xff] }
 0xa95   : > { %v5506_v29 = vpop.permute.xlu0 %5505 }
 0xa96   : > { %v11388_v5 = vmul.f32 %v5506_v29, %v11215_v14 }
 0xa99   : > { %v5511_v61 = vpop.permute.xlu0 %5510 }
 0xa9a   : > { %v11391_v33 = vmul.f32 %v5511_v61, %v11217_v63  ;;  %v12959_v61 = vld [vmem:[#allocation80_spill] sm:$0xff] }
 0xa9d   : > { %v5516_v53 = vpop.permute.xlu0 %5515 }
 0xa9e   : > { %v11394_v37 = vmul.f32 %v5516_v53, %v11224_v43 }
 0xaa1   : > { %v5521_v22 = vpop.permute.xlu0 %5520  ;;  %v4299_v47 = vpop.permute.xlu1 %4298 }
 0xaa2   : > { %v11397_v8 = vmul.f32 %v5521_v22, %v11226_v12  ;;  %v11400_v15 = vmul.f32 %v4299_v47, %v12958_v35  ;;  %v12960_v12 = vld [vmem:[#allocation160_spill] sm:$0xff] }
 0xaa5   : > { %v5526_v29 = vpop.permute.xlu0 %5525  ;;  %v4384_v11 = vpop.permute.xlu1 %4383 }
 0xaa6   : > { %v11405_v63 = vmul.f32 %v5526_v29, %v11231_v1  ;;  %v11408_v18 = vmul.f32 %v4384_v11, %v12959_v61  ;;  %v12961_v1 = vld [vmem:[#allocation79_spill] sm:$0xff] }
 0xaa9   : > { %v5531_v43 = vpop.permute.xlu0 %5530  ;;  %v4304_v53 = vpop.permute.xlu1 %4303 }
 0xaaa   : > { %v11411_v46 = vmul.f32 %v5531_v43, %v11233_v62  ;;  %v11414_v22 = vmul.f32 %v4304_v53, %v12960_v12  ;;  %v12962_v62 = vld [vmem:[#allocation59_spill] sm:$0xff] }
 0xaad   : > { %v5536_v35 = vpop.permute.xlu0 %5535  ;;  %v4389_v14 = vpop.permute.xlu1 %4388 }
 0xaae   : > { %v11419_v54 = vmul.f32 %v5536_v35, %v11239_v58  ;;  %v11422_v29 = vmul.f32 %v4389_v14, %v12961_v1  ;;  %v4432_v58 = vmul.f32 %v11127_v17, %v12963_v32 }
 0xab1   : > { %v5541_v11 = vpop.permute.xlu0 %5540  ;;  %v4309_v61 = vpop.permute.xlu1 %4308 }
 0xab2   : > { %v11425_v60 = vmul.f32 %v5541_v11, %v11241_v42  ;;  %v11428_v43 = vmul.f32 %v4309_v61, %v12962_v62  ;;  %v4433_v42 = vmul.f32 %v11131_v40, %v12964_v2  ;;  %v12965_v61 = vld [vmem:[#allocation162_spill] sm:$0xff] }
 0xab5   : > { %v5546_v12 = vpop.permute.xlu0 %5545  ;;  %v11432_v47 = vpop.permute.xlu1 %4393 }
 0xab6   : > { %v5639_v14 = vmul.f32 %v5546_v12, %v11247_v4  ;;  %v12966_v4 = vld [vmem:[#allocation8_spill] sm:$0xff] }
 0xab7   : > { %v4434_v32 = vmul.f32 %v11143_v49, %v12966_v4 }
 0xab8   : > { %v7118_v35 = vpack.i.bf16 %v5639_v14, %v4432_v58  ;;  %v12967_v58 = vld [vmem:[#allocation26_spill] sm:$0xff] }
 0xab9   : > { %v5551_v1 = vpop.permute.xlu0 %5550  ;;  %v4314_v19 = vpop.permute.xlu1 %4313 }
 0xaba   : > { %v5640_v11 = vmul.f32 %v5551_v1, %v11249_v6  ;;  %v11441_v62 = vmul.f32 %v4314_v19, %v12965_v61  ;;  %7119 = vxpose.xlu1.b32.start [1/16] (narrow) %v7118_v35, 32  ;;  %v4435_v19 = vmul.f32 %v11147_v56, %v12967_v58 }
 0xabc   : > { %v7120_v53 = vpack.i.bf16 %v5640_v11, %v4433_v42  ;;  %v12968_v42 = vld [vmem:[#allocation164_spill] sm:$0xff] }
 0xabd   : > { %v5556_v59 = vpop.permute.xlu0 %5555  ;;  %v11445_v17 = vpop.permute.xlu1 %4398 }
 0xabe   : > { %v5641_v12 = vmul.f32 %v5556_v59, %v11253_v24  ;;  %7121 = vxpose.xlu1.b32.cont [2/16] (narrow) %v7120_v53, 32  ;;  %v12977_v24 = vld [vmem:[#allocation84_spill] sm:$0xff] }
 0xac0   : > { %v7122_v40 = vpack.i.bf16 %v5641_v12, %v4434_v32 }
 0xac1   : > { %v5561_v2 = vpop.permute.xlu0 %5560  ;;  %v4319_v6 = vpop.permute.xlu1 %4318 }
 0xac2   : > { %v5642_v14 = vmul.f32 %v5561_v2, %v11255_v51  ;;  %v6954_v35 = vpop.f32.mrb[172].mxu0  ;;  %v11453_v1 = vpop.f32.mrb[172].mxu1  ;;  %v11456_v11 = vmul.f32 %v4319_v6, %v12968_v42  ;;  %7123 = vxpose.xlu1.b32.cont [3/16] (narrow) %v7122_v40, 32 }
 0xac3   : > { %v6955_v61 = vpop.f32.mrb[173].mxu0  ;;  %v5458_v49 = vpop.f32.mrb[173].mxu1 }
 0xac4   : > { %v7124_v4 = vpack.i.bf16 %v5642_v14, %v4435_v19  ;;  %v6956_v59 = vadd.f32 %v6955_v61, %v6954_v35  ;;  %v6957_v53 = vpop.f32.mrb[174].mxu0  ;;  %v11460_v32 = vpop.f32.mrb[174].mxu1  ;;  %v12969_v35 = vld [vmem:[#allocation165_spill] sm:$0xff] }
 0xac5   : > { %v6958_v56 = vpop.f32.mrb[175].mxu0  ;;  %v5461_v12 = vpop.f32.mrb[175].mxu1 }
 0xac6   : > { %7996 = vrcp.f32 %v6956_v59  ;;  %v6959_v51 = vadd.f32 %v6958_v56, %v6957_v53  ;;  %v5566_v2 = vpop.permute.xlu0 %5565  ;;  %v4404_v58 = vpop.permute.xlu1 %4403  ;;  %7125 = vxpose.xlu1.b32.cont [4/16] (narrow) %v7124_v4, 32  ;;  %v12970_v4 = vld [vmem:[#allocation106_spill] sm:$0xff] }
 0xac7   : > { %v5643_v6 = vmul.f32 %v5566_v2, %v11259_v45  ;;  %v12971_v2 = vld [vmem:[#allocation167_spill] sm:$0xff] }
 0xac8   : > { %7998 = vrcp.f32 %v6959_v51 }
 0xac9   : > { %v7126_v40 = vpack.i.bf16 %v5643_v6, %v11163_v41 }
 0xaca   : > { %v5571_v19 = vpop.permute.xlu0 %5570  ;;  %v4324_v14 = vpop.permute.xlu1 %4323 }
 0xacb   : > { %v5644_v42 = vmul.f32 %v5571_v19, %v11261_v52  ;;  %v11466_v61 = vmul.f32 %v4324_v14, %v12969_v35  ;;  %7127 = vxpose.xlu1.b32.cont [5/16] (narrow) %v7126_v40, 32  ;;  %v12972_v14 = vld [vmem:[#allocation77_spill] sm:$0xff]  ;;  %v12973_v35 = vld [vmem:[#allocation51_spill] sm:$0xff] }
 0xacd   : > { %v7128_v49 = vpack.i.bf16 %v5644_v42, %v11181_v27  ;;  %v4440_v42 = vmul.f32 %v11302_v25, %v12972_v14 }
 0xace   : > { %v4409_v53 = vpop.permute.xlu1 %4408 }
 0xacf   : > { %v11472_v56 = vmul.f32 %v4409_v53, %v12970_v4  ;;  %7129 = vxpose.xlu1.b32.cont [6/16] (narrow) %v7128_v49, 32  ;;  %v5581_v41 = vpop.permute.xlu0 %5580  ;;  %v12974_v4 = vld [vmem:[#allocation112_spill] sm:$0xff] }
 0xad0   : > { %v7997_v45 = vpop.eup %7996  ;;  %v5646_v12 = vmul.f32 %v5581_v41, %v11267_v31 }
 0xad1   : > { %5615 = vperm.xlu0 %7012, %v7997_v45  }
 0xad2   : > { %v7132_v52 = vpack.i.bf16 %v5646_v12, %v11213_v39  ;;  %v4329_v51 = vpop.permute.xlu1 %4328  ;;  %v7999_v40 = vpop.eup %7998  ;;  %v12975_v39 = vld [vmem:[#allocation33_spill] sm:$0xff] }
 0xad3   : > { %v4430_v6 = vmul.f32 %v4329_v51, %v12971_v2  ;;  %v12976_v51 = vld [vmem:[#allocation169_spill] sm:$0xff] }
 0xad5   : > { %v7198_v27 = vpack.i.bf16 %v11419_v54, %v4430_v6  ;;  %5620 = vperm.xlu0 %7012, %v7999_v40   ;;  %v5586_v19 = vpop.permute.xlu0 %5585 }
 0xad6   : > { %v5647_v49 = vmul.f32 %v5586_v19, %v12973_v35  ;;  %v4414_v53 = vpop.permute.xlu1 %4413  ;;  %v12978_v19 = vld [vmem:[#allocation64_spill] sm:$0xff] }
 0xad7   : > { %v11482_v59 = vmul.f32 %v4414_v53, %v12974_v4  ;;  %v12979_v4 = vld [vmem:[#allocation43_spill] sm:$0xff] }
 0xad8   : > { %v7134_v31 = vpack.i.bf16 %v5647_v49, %v4440_v42 }
 0xad9   : > { %v5591_v41 = vpop.permute.xlu0 %5590 }
 0xada   : > { %v5648_v45 = vmul.f32 %v5591_v41, %v12975_v39  ;;  %v4334_v12 = vpop.permute.xlu1 %4333  ;;  %v4443_v41 = vmul.f32 %v11432_v47, %v12980_v55  ;;  %v12981_v39 = vld [vmem:[#allocation61_spill] sm:$0xff]  ;;  %v12984_v55 = vpack.i.bf16 %v11311_v57, %v11110_v36  ;;  %v12985_v47 = vpack.i.bf16 %v11323_v20, %v11116_v21 }
 0xadb   : > { %v4431_v2 = vmul.f32 %v4334_v12, %v12976_v51  ;;  %v12988_v36 = vpack.i.bf16 %v11357_v26, %v11175_v3  ;;  %v12989_v57 = vpack.i.bf16 %v11369_v50, %v11191_v13  ;;  %v12990_v21 = vpack.i.bf16 %v11378_v9, %v11207_v38 }
 0xadc   : > { %v7136_v54 = vpack.i.bf16 %v5648_v45, %v11408_v18  ;;  %v12991_v20 = vpack.i.bf16 %v11383_v28, %v11220_v44  ;;  %v12993_v3 = vpack.i.bf16 %v11391_v33, %v11414_v22  ;;  %v12994_v13 = vpack.i.bf16 %v11394_v37, %v11428_v43 }
 0xadd   : > { %v7200_v6 = vpack.i.bf16 %v11425_v60, %v4431_v2  ;;  %v5596_v40 = vpop.permute.xlu0 %5595  ;;  %v12982_v60 = vld [vmem:[#allocation83_spill] sm:$0xff]  ;;  %v12995_v38 = vpack.i.bf16 %v11397_v8, %v11441_v62  ;;  %v12996_v44 = vpack.i.bf16 %v11405_v63, %v11456_v11  ;;  %v6119_v11 = vld [vmem:[%s11955_s4] sm:$0xff] }
 0xade   : > { %v5649_v25 = vmul.f32 %v5596_v40, %v12977_v24  ;;  %v5576_v14 = vpop.permute.xlu1 %5575  ;;  %v4444_v51 = vmul.f32 %v11445_v17, %v12982_v60 }
 0xadf   : > { %v5645_v35 = vmul.f32 %v5576_v14, %v12978_v19 }
 0xae0   : > { %v7138_v53 = vpack.i.bf16 %v5649_v25, %v11422_v29  ;;  %v12983_v29 = vld [vmem:[#allocation100_spill] sm:$0xff] }
 0xae1   : > { %v7130_v42 = vpack.i.bf16 %v5645_v35, %v12979_v4  ;;  %v5601_v49 = vpop.permute.xlu0 %5600  ;;  %v4445_v25 = vmul.f32 %v4404_v58, %v12983_v29 }
 0xae2   : > { %v5650_v12 = vmul.f32 %v5601_v49, %v12981_v39  ;;  %v6126_v39 = vld [vmem:[%s11955_s4 + $0x38] sm:$0xff] }
 0xae3   : > { %7131 = vxpose.xlu1.b32.cont [7/16] (narrow) %v7130_v42, 32 }
 0xae4   : > { %v7140_v18 = vpack.i.bf16 %v5650_v12, %v4443_v41 }
 0xae5   : > { %v5606_v45 = vpop.permute.xlu0 %5605 }
 0xae6   : > { %v5651_v24 = vmul.f32 %v5606_v45, %v11287_v7  ;;  %v12986_v7 = vpack.i.bf16 %v11336_v48, %v11333_v16  ;;  %v12997_v16 = vpack.i.bf16 %v11411_v46, %v11466_v61  ;;  %v6122_v61 = vld [vmem:[%s11955_s4 + $0x18] sm:$0xff] }
 0xae7   : > { %7133 = vxpose.xlu1.b32.cont [8/16] (narrow) %v7132_v52, 32 }
 0xae8   : > { %v7142_v2 = vpack.i.bf16 %v5651_v24, %v4444_v51 }
 0xae9   : > { %v5611_v40 = vpop.permute.xlu0 %5610 }
 0xaea   : > { %v5652_v14 = vmul.f32 %v5611_v40, %v11289_v23  ;;  %v12987_v23 = vpack.i.bf16 %v11348_v0, %v11157_v34  ;;  %v12992_v34 = vpack.i.bf16 %v11388_v5, %v11400_v15  ;;  %v6120_v40 = vld [vmem:[%s11955_s4 + $0x8] sm:$0xff] }
 0xaeb   : > { %7135 = vxpose.xlu1.b32.cont [9/16] (narrow) %v7134_v31, 32 }
 0xaec   : > { %v7144_v19 = vpack.i.bf16 %v5652_v14, %v4445_v25  ;;  %v6121_v25 = vld [vmem:[%s11955_s4 + $0x10] sm:$0xff] }
 0xaef   : > { %7137 = vxpose.xlu1.b32.cont [10/16] (narrow) %v7136_v54, 32 }
 0xaf3   : > { %7171 = vxpose.xlu0.b32.start [1/16] (narrow) %v12984_v55, 32  ;;  %7139 = vxpose.xlu1.b32.cont [11/16] (narrow) %v7138_v53, 32 }
 0xaf7   : > { %7173 = vxpose.xlu0.b32.cont [2/16] (narrow) %v12985_v47, 32  ;;  %7141 = vxpose.xlu1.b32.cont [12/16] (narrow) %v7140_v18, 32  ;;  %v6125_v47 = vld [vmem:[%s11955_s4 + $0x30] sm:$0xff] }
 0xafb   : > { %7175 = vxpose.xlu0.b32.cont [3/16] (narrow) %v12986_v7, 32  ;;  %7143 = vxpose.xlu1.b32.cont [13/16] (narrow) %v7142_v2, 32 }
 0xaff   : > { %7177 = vxpose.xlu0.b32.cont [4/16] (narrow) %v12987_v23, 32  ;;  %7145 = vxpose.xlu1.b32.cont [14/16] (narrow) %v7144_v19, 32  ;;  %v6123_v19 = vld [vmem:[%s11955_s4 + $0x20] sm:$0xff] }
 0xb03   : > { %7179 = vxpose.xlu0.b32.cont [5/16] (narrow) %v12988_v36, 32 }
 0xb07   : > { %7181 = vxpose.xlu0.b32.cont [6/16] (narrow) %v12989_v57, 32 }
 0xb0b   : > { %7183 = vxpose.xlu0.b32.cont [7/16] (narrow) %v12990_v21, 32 }
 0xb0f   : > { %7185 = vxpose.xlu0.b32.cont [8/16] (narrow) %v12991_v20, 32 }
 0xb13   : > { %7187 = vxpose.xlu0.b32.cont [9/16] (narrow) %v12992_v34, 32 }
 0xb17   : > { %7189 = vxpose.xlu0.b32.cont [10/16] (narrow) %v12993_v3, 32 }
 0xb1b   : > { %7191 = vxpose.xlu0.b32.cont [11/16] (narrow) %v12994_v13, 32 }
 0xb1f   : > { %7193 = vxpose.xlu0.b32.cont [12/16] (narrow) %v12995_v38, 32 }
 0xb23   : > { %7195 = vxpose.xlu0.b32.cont [13/16] (narrow) %v12996_v44, 32 }
 0xb27   : > { %7197 = vxpose.xlu0.b32.cont [14/16] (narrow) %v12997_v16, 32 }
 0xb2b   : > { %7199 = vxpose.xlu0.b32.cont [15/16] (narrow) %v7198_v27, 32 }
 0xb2f   : > { %7201 = vxpose.xlu0.b32.end [16/16] (narrow) %v7200_v6, 32 }
 0xb35   : > { %v11542_v48 = vpop.f32.mrb[176].mxu0 }
 0xb36   : > { %v11546_v26 = vpop.f32.mrb[177].mxu0 }
 0xb37   : > { %v11550_v9 = vpop.f32.mrb[178].mxu0 }
 0xb38   : > { %v11554_v28 = vpop.f32.mrb[179].mxu0 }
 0xb3b   : > { %v11544_v0 = vpop.f32.mrb[176].mxu1 }
 0xb3c   : > { %v11548_v50 = vpop.f32.mrb[177].mxu1 }
 0xb3d   : > { %v11552_v15 = vpop.f32.mrb[178].mxu1  ;;  %v11558_v46 = vpop.f32.mrb[180].mxu0 }
 0xb3e   : > { %v11556_v5 = vpop.f32.mrb[179].mxu1  ;;  %v11562_v37 = vpop.f32.mrb[181].mxu0 }
 0xb3f   : > { %v11576_v52 = vpop.f32.mrb[182].mxu0 }
 0xb43   : > { %v11560_v33 = vpop.f32.mrb[180].mxu1 }
 0xb44   : > { %v11564_v63 = vpop.f32.mrb[181].mxu1 }
 0xb50   : > { %v5616_v8 = vpop.permute.xlu0 %5615 }
 0xb51   : > { %v5653_v22 = vmul.f32 %v5616_v8, %v11453_v1  ;;  %v11578_v1 = vpop.f32.mrb[182].mxu1 }
 0xb53   : > { %v7146_v43 = vpack.i.bf16 %v5653_v22, %v11472_v56  ;;  %v11580_v56 = vpop.f32.mrb[183].mxu0 }
 0xb54   : > { %v5621_v62 = vpop.permute.xlu0 %5620  ;;  %v11584_v27 = vpop.f32.mrb[184].mxu0 }
 0xb55   : > { %v5654_v17 = vmul.f32 %v5621_v62, %v11460_v32  ;;  %7147 = vxpose.xlu1.b32.cont [15/16] (narrow) %v7146_v43, 32  ;;  %v11582_v32 = vpop.f32.mrb[183].mxu1  ;;  %v11591_v54 = vpop.f32.mrb[185].mxu0 }
 0xb56   : > { %v11586_v31 = vpop.f32.mrb[184].mxu1  ;;  %v11595_v35 = vpop.f32.mrb[186].mxu0 }
 0xb57   : > { %v7148_v58 = vpack.i.bf16 %v5654_v17, %v11482_v59  ;;  %v6124_v59 = vld [vmem:[%s11955_s4 + $0x28] sm:$0xff]  ;;  %v11593_v6 = vpop.f32.mrb[185].mxu1  ;;  %v11599_v4 = vpop.f32.mrb[187].mxu0 }
 0xb58   : > { %6129 = vperm.xlu0 %7012, %v6119_v11   ;;  %v11597_v53 = vpop.f32.mrb[186].mxu1  ;;  %v11603_v49 = vpop.f32.mrb[188].mxu0 }
 0xb59   : > { %7149 = vxpose.xlu1.b32.end [16/16] (narrow) %v7148_v58, 32  ;;  %v11601_v42 = vpop.f32.mrb[187].mxu1  ;;  %v11610_v12 = vpop.f32.mrb[189].mxu0 }
 0xb5a   : > { %v11605_v41 = vpop.f32.mrb[188].mxu1  ;;  %v11614_v45 = vpop.f32.mrb[190].mxu0 }
 0xb5b   : > { %v11612_v18 = vpop.f32.mrb[189].mxu1  ;;  %v11618_v51 = vpop.f32.mrb[191].mxu0 }
 0xb5c   : > { %6144 = vperm.xlu0 %7012, %v6122_v61   ;;  %v11616_v60 = vpop.f32.mrb[190].mxu1 }
 0xb5d   : > { %v11620_v24 = vpop.f32.mrb[191].mxu1 }
 0xb60   : > { %6154 = vperm.xlu0 %7012, %v6124_v59  }
 0xb64   : > { %6164 = vperm.xlu0 %7012, %v6126_v39  }
 0xb73   : > { %v7202_v2 = vpop.trf.xlu0 }
 0xb74   : > { %v7206_v23 = vunpack.i.h.bf16 %v7202_v2  ;;  %v7203_v36 = vunpack.i.l.bf16 %v7202_v2 }
 0xb77   : > { %6134 = vperm.xlu1 %7013, %v6120_v40   ;;  %v7207_v29 = vpop.trf.xlu0 }
 0xb78   : > { %v7211_v20 = vunpack.i.h.bf16 %v7207_v29  ;;  %v7208_v34 = vunpack.i.l.bf16 %v7207_v29 }
 0xb7a   : > { %v4512_v22 = vpack.c.bf16 %v7208_v34, %v7203_v36  ;;  %v5719_v43 = vpack.c.bf16 %v7211_v20, %v7206_v23  ;;  %v8001_v36 = vld [vmem:[%s8310_s28 + $0x10] sm:$0xff]  ;;  %v8003_v34 = vld [vmem:[%s8310_s28 + $0x18] sm:$0xff] }
 0xb7b   : > { %6139 = vperm.xlu1 %7013, %v6121_v25   ;;  %v7212_v14 = vpop.trf.xlu0 }
 0xb7c   : > { %v7216_v62 = vunpack.i.h.bf16 %v7212_v14  ;;  %v7213_v17 = vunpack.i.l.bf16 %v7212_v14  ;;  %v12998_v14 = vld [vmem:[#allocation99_spill] sm:$0xff] }
 0xb7f   : > { %6149 = vperm.xlu1 %7013, %v6123_v19   ;;  %v7217_v55 = vpop.trf.xlu0 }
 0xb80   : > { %v7221_v59 = vunpack.i.h.bf16 %v7217_v55  ;;  %v7218_v39 = vunpack.i.l.bf16 %v7217_v55  ;;  %v12999_v55 = vld [vmem:[#allocation72_spill] sm:$0xff] }
 0xb82   : > { %v4514_v19 = vpack.c.bf16 %v7218_v39, %v7213_v17 }
 0xb83   : > { %6159 = vperm.xlu1 %7013, %v6125_v47   ;;  %v5721_v47 = vpack.c.bf16 %v7221_v59, %v7216_v62  ;;  %v8009_v62 = vld [vmem:[%s8310_s28 + $0x150] sm:$0xff] }
 0xb84   : > { %v6097_v17 = vadd.f32 %v8009_v62, %v11597_v53 }
 0xb9d   : > { %v7150_v7 = vpop.trf.xlu1 }
 0xb9e   : > { %v7154_v57 = vunpack.i.h.bf16 %v7150_v7  ;;  %v7151_v21 = vunpack.i.l.bf16 %v7150_v7  ;;  %v8000_v7 = vld [vmem:[%s8310_s28] sm:$0xff] }
 0xb9f   : > { %v6055_v23 = vadd.f32 %v8000_v7, %v11542_v48  ;;  %v8006_v48 = vld [vmem:[%s8310_s28 + $0xc8] sm:$0xff] }
 0xba1   : > { %v7155_v3 = vpop.trf.xlu1 }
 0xba2   : > { %v7159_v13 = vunpack.i.h.bf16 %v7155_v3  ;;  %v7156_v38 = vunpack.i.l.bf16 %v7155_v3 }
 0xba4   : > { %v4513_v44 = vpack.c.bf16 %v7156_v38, %v7151_v21  ;;  %v5720_v16 = vpack.c.bf16 %v7159_v13, %v7154_v57  ;;  %v6057_v57 = vadd.f32 %v8001_v36, %v11544_v0  ;;  %v8002_v21 = vld [vmem:[%s8310_s28 + $0x8] sm:$0xff]  ;;  %v8004_v13 = vld [vmem:[%s8310_s28 + $0xc0] sm:$0xff]  ;;  %v6080_v0 = vadd.f32 %v8006_v48, %v11580_v56 }
 0xba5   : > { %v7160_v8 = vpop.trf.xlu1  ;;  %v6056_v20 = vadd.f32 %v8002_v21, %v11546_v26  ;;  %v6079_v38 = vadd.f32 %v8004_v13, %v11576_v52  ;;  %v8008_v56 = vld [vmem:[%s8310_s28 + $0x140] sm:$0xff]  ;;  %v8018_v13 = vld [vmem:[%s8310_s28 + $0x48] sm:$0xff] }
 0xba6   : > { %5909 = vmatprep.subr.bf16.mxu0 %v4513_v44  ;;  %5982 = vmatprep.subr.bf16.mxu1 %v5720_v16  ;;  %v7164_v11 = vunpack.i.h.bf16 %v7160_v8  ;;  %v7161_v58 = vunpack.i.l.bf16 %v7160_v8  ;;  %v8005_v44 = vld [vmem:[%s8310_s28 + $0xd0] sm:$0xff]  ;;  %v8007_v8 = vld [vmem:[%s8310_s28 + $0xd8] sm:$0xff]  ;;  %v8016_v21 = vld [vmem:[%s8310_s28 + $0x40] sm:$0xff] }
 0xba7   : > { %5910 = vmatpush1.bf16.msra.mxu0 %v4512_v22  ;;  %5983 = vmatpush1.bf16.msra.mxu1 %v5719_v43  ;;  %v6081_v16 = vadd.f32 %v8005_v44, %v11578_v1  ;;  %v6082_v26 = vadd.f32 %v8007_v8, %v11582_v32  ;;  %v6095_v32 = vadd.f32 %v8008_v56, %v11595_v35  ;;  %v8019_v44 = vld [vmem:[%s8310_s28 + $0x58] sm:$0xff]  ;;  %v8020_v48 = vld [vmem:[%s8310_s28 + $0x80] sm:$0xff]  ;;  %v8021_v8 = vld [vmem:[%s8310_s28 + $0x90] sm:$0xff] }
 0xba9   : > { %v7165_v61 = vpop.trf.xlu1 }
 0xbaa   : > { %v7169_v2 = vunpack.i.h.bf16 %v7165_v61  ;;  %v7166_v40 = vunpack.i.l.bf16 %v7165_v61  ;;  %v8011_v61 = vld [vmem:[%s8310_s28 + $0x158] sm:$0xff] }
 0xbab   : > { %v6098_v59 = vadd.f32 %v8011_v61, %v11601_v42 }
 0xbac   : > { %v4515_v29 = vpack.c.bf16 %v7166_v40, %v7161_v58  ;;  %v5722_v25 = vpack.c.bf16 %v7169_v2, %v7164_v11  ;;  %v8010_v11 = vld [vmem:[%s8310_s28 + $0x148] sm:$0xff] }
 0xbad   : > { %v6096_v58 = vadd.f32 %v8010_v11, %v11599_v4  ;;  %v8012_v4 = vld [vmem:[%s8310_s28 + $0x1c0] sm:$0xff] }
 0xbae   : > { %5911 = vmatprep.subr.bf16.mxu0 %v4515_v29  ;;  %5984 = vmatprep.subr.bf16.mxu1 %v5722_v25  ;;  %v6111_v42 = vadd.f32 %v8012_v4, %v11614_v45  ;;  %v8013_v29 = vld [vmem:[%s8310_s28 + $0x1d0] sm:$0xff]  ;;  %v8031_v4 = vld [vmem:[%s8310_s28 + $0x198] sm:$0xff] }
 0xbaf   : > { %5912 = vmatpush1.bf16.msra.mxu0 %v4514_v19  ;;  %5985 = vmatpush1.bf16.msra.mxu1 %v5721_v47  ;;  %v6113_v25 = vadd.f32 %v8013_v29, %v11616_v60  ;;  %v8014_v19 = vld [vmem:[%s8310_s28 + $0x1c8] sm:$0xff] }
 0xbb0   : > { %v6112_v47 = vadd.f32 %v8014_v19, %v11618_v51 }
 0xbb2   : > { %6497 = vmatmul.mubr.msk.bf16.vlgmr.msra.gmra.mrb[192].mxu0 %vm926_vm1, %v11300_v30  ;;  %6501 = vmatmul.mubr.msk.bf16.vlgmr.msra.gmra.mrb[192].mxu1 %vm926_vm1, %v11300_v30  ;;  %v13000_v30 = vld [vmem:[#allocation105_spill] sm:$0xff] }
 0xbb3   : > { %5951 = vmatprep.mubr.bf16.mxu0 %v12925_v10  ;;  %6024 = vmatprep.mubr.bf16.mxu1 %v12925_v10 }
 0xbba   : > { %6498 = vmatmul.mubr.msk.bf16.gmra.mrb[196].mxu0 %vm926_vm1, %v12998_v14  ;;  %6502 = vmatmul.mubr.msk.bf16.gmra.mrb[196].mxu1 %vm926_vm1, %v12998_v14  ;;  %v8015_v14 = vld [vmem:[%s8310_s28 + $0x1d8] sm:$0xff] }
 0xbbb   : > { %5961 = vmatprep.mubr.bf16.mxu0 %v12925_v10  ;;  %6034 = vmatprep.mubr.bf16.mxu1 %v12925_v10 }
 0xbc2   : > { %6499 = vmatmul.mubr.msk.bf16.gmra.mrb[200].mxu0 %vm926_vm1, %v12999_v55  ;;  %6503 = vmatmul.mubr.msk.bf16.gmra.mrb[200].mxu1 %vm926_vm1, %v12999_v55  ;;  %v6114_v55 = vadd.f32 %v8015_v14, %v11620_v24 }
 0xbc3   : > { %5971 = vmatprep.mubr.bf16.mxu0 %v12925_v10  ;;  %6044 = vmatprep.mubr.bf16.mxu1 %v12925_v10  ;;  %v6058_v10 = vadd.f32 %v8003_v34, %v11548_v50  ;;  %v8017_v34 = vld [vmem:[%s8310_s28 + $0x50] sm:$0xff] }
 0xbca   : > { %6500 = vmatmul.mubr.msk.bf16.gmra.mrb[204].mxu0 %vm926_vm1, %v13000_v30  ;;  %6504 = vmatmul.mubr.msk.bf16.gmra.mrb[204].mxu1 %vm926_vm1, %v13000_v30 }
 0xbd7   : > { %v11664_v3 = vpop.permute.xlu0 %6129 }
 0xbd8   : > { %v6167_v22 = vadd.f32 %v11664_v3, %v6055_v23  ;;  %v6168_v50 = vadd.f32 %v11664_v3, %v6056_v20  ;;  %v6169_v43 = vadd.f32 %v11664_v3, %v6057_v57  ;;  %v6170_v52 = vadd.f32 %v11664_v3, %v6058_v10 }
 0xbd9   : > { %v6063_v20 = vadd.f32 %v8016_v21, %v11550_v9  ;;  %v6065_v10 = vadd.f32 %v8017_v34, %v11552_v15  ;;  %v6073_v9 = vadd.f32 %v8021_v8, %v11560_v33  ;;  %v8024_v33 = vld [vmem:[%s8310_s28 + $0x100] sm:$0xff]  ;;  %v8034_v21 = vld [vmem:[%s8310_s28 + $0x28] sm:$0xff]  ;;  %v8035_v34 = vld [vmem:[%s8310_s28 + $0x38] sm:$0xff] }
 0xbda   : > { %6231 = vst [vmem:[%s11680_s10] sm:$0xff] %v6167_v22  ;;  %6232 = vst [vmem:[%s11680_s10 + $0x8] sm:$0xff] %v6168_v50  ;;  %v8037_v8 = vld [vmem:[%s8310_s28 + $0x70] sm:$0xff] }
 0xbdb   : > { %6233 = vst [vmem:[%s11680_s10 + $0x10] sm:$0xff] %v6169_v43  ;;  %6234 = vst [vmem:[%s11680_s10 + $0x18] sm:$0xff] %v6170_v52  ;;  %v11686_v1 = vpop.permute.xlu0 %6144 }
 0xbdc   : > { %v6191_v39 = vadd.f32 %v11686_v1, %v6079_v38  ;;  %v6192_v2 = vadd.f32 %v11686_v1, %v6080_v0  ;;  %v6193_v40 = vadd.f32 %v11686_v1, %v6081_v16  ;;  %v6194_v35 = vadd.f32 %v11686_v1, %v6082_v26  ;;  %v8022_v26 = vld [vmem:[%s8310_s28 + $0x88] sm:$0xff] }
 0xbdd   : > { %v6064_v38 = vadd.f32 %v8018_v13, %v11554_v28  ;;  %v6066_v16 = vadd.f32 %v8019_v44, %v11556_v5  ;;  %v6071_v0 = vadd.f32 %v8020_v48, %v11558_v46  ;;  %v6072_v15 = vadd.f32 %v8022_v26, %v11562_v37  ;;  %v8023_v28 = vld [vmem:[%s8310_s28 + $0x98] sm:$0xff]  ;;  %v8036_v48 = vld [vmem:[%s8310_s28 + $0x60] sm:$0xff] }
 0xbde   : > { %6255 = vst [vmem:[%s11680_s10 + $0xc0] sm:$0xff] %v6191_v39  ;;  %6256 = vst [vmem:[%s11680_s10 + $0xc8] sm:$0xff] %v6192_v2  ;;  %v6074_v22 = vadd.f32 %v8023_v28, %v11564_v63  ;;  %v6087_v37 = vadd.f32 %v8024_v33, %v11584_v27  ;;  %v8025_v63 = vld [vmem:[%s8310_s28 + $0x110] sm:$0xff] }
 0xbdf   : > { %6257 = vst [vmem:[%s11680_s10 + $0xd0] sm:$0xff] %v6193_v40  ;;  %6258 = vst [vmem:[%s11680_s10 + $0xd8] sm:$0xff] %v6194_v35  ;;  %v11704_v53 = vpop.permute.xlu0 %6154  ;;  %v6089_v56 = vadd.f32 %v8025_v63, %v11586_v31  ;;  %v8028_v31 = vld [vmem:[%s8310_s28 + $0x180] sm:$0xff]  ;;  %v8030_v40 = vld [vmem:[%s8310_s28 + $0x188] sm:$0xff] }
 0xbe0   : > { %v6207_v30 = vadd.f32 %v11704_v53, %v6095_v32  ;;  %v6208_v7 = vadd.f32 %v11704_v53, %v6096_v58  ;;  %v6209_v45 = vadd.f32 %v11704_v53, %v6097_v17  ;;  %v6210_v23 = vadd.f32 %v11704_v53, %v6098_v59  ;;  %v8026_v32 = vld [vmem:[%s8310_s28 + $0x108] sm:$0xff]  ;;  %v8027_v17 = vld [vmem:[%s8310_s28 + $0x118] sm:$0xff] }
 0xbe1   : > { %v6088_v62 = vadd.f32 %v8026_v32, %v11591_v54  ;;  %v6090_v11 = vadd.f32 %v8027_v17, %v11593_v6  ;;  %v6103_v54 = vadd.f32 %v8028_v31, %v11603_v49  ;;  %v8029_v6 = vld [vmem:[%s8310_s28 + $0x190] sm:$0xff]  ;;  %v6104_v35 = vadd.f32 %v8030_v40, %v11610_v12 }
 0xbe2   : > { %6271 = vst [vmem:[%s11680_s10 + $0x140] sm:$0xff] %v6207_v30  ;;  %6272 = vst [vmem:[%s11680_s10 + $0x148] sm:$0xff] %v6208_v7  ;;  %v6105_v2 = vadd.f32 %v8029_v6, %v11605_v41 }
 0xbe3   : > { %6273 = vst [vmem:[%s11680_s10 + $0x150] sm:$0xff] %v6209_v45  ;;  %6274 = vst [vmem:[%s11680_s10 + $0x158] sm:$0xff] %v6210_v23  ;;  %v11722_v60 = vpop.permute.xlu0 %6164  ;;  %v8032_v45 = vld [vmem:[%s8310_s28 + $0x20] sm:$0xff] }
 0xbe4   : > { %v6223_v51 = vadd.f32 %v11722_v60, %v6111_v42  ;;  %v6224_v24 = vadd.f32 %v11722_v60, %v6112_v47  ;;  %v6225_v36 = vadd.f32 %v11722_v60, %v6113_v25  ;;  %v6226_v57 = vadd.f32 %v11722_v60, %v6114_v55 }
 0xbe5   : > { %v6106_v42 = vadd.f32 %v8031_v4, %v11612_v18  ;;  %v8044_v4 = vld [vmem:[%s8310_s28 + $0xe0] sm:$0xff] }
 0xbe6   : > { %6287 = vst [vmem:[%s11680_s10 + $0x1c0] sm:$0xff] %v6223_v51  ;;  %6288 = vst [vmem:[%s11680_s10 + $0x1c8] sm:$0xff] %v6224_v24  ;;  %v8033_v51 = vld [vmem:[%s8310_s28 + $0x30] sm:$0xff] }
 0xbe7   : > { %6289 = vst [vmem:[%s11680_s10 + $0x1d0] sm:$0xff] %v6225_v36  ;;  %6290 = vst [vmem:[%s11680_s10 + $0x1d8] sm:$0xff] %v6226_v57 }
 0xbf6   : > { %v11748_v50 = vpop.permute.xlu1 %6134 }
 0xbf7   : > { %v6175_v5 = vadd.f32 %v11748_v50, %v6063_v20  ;;  %v6176_v43 = vadd.f32 %v11748_v50, %v6064_v38  ;;  %v6177_v46 = vadd.f32 %v11748_v50, %v6065_v10  ;;  %v6178_v52 = vadd.f32 %v11748_v50, %v6066_v16 }
 0xbf9   : > { %6239 = vst [vmem:[%s11680_s10 + $0x40] sm:$0xff] %v6175_v5  ;;  %6240 = vst [vmem:[%s11680_s10 + $0x48] sm:$0xff] %v6176_v43  ;;  %v8038_v5 = vld [vmem:[%s8310_s28 + $0x68] sm:$0xff] }
 0xbfa   : > { %6241 = vst [vmem:[%s11680_s10 + $0x50] sm:$0xff] %v6177_v46  ;;  %6242 = vst [vmem:[%s11680_s10 + $0x58] sm:$0xff] %v6178_v52  ;;  %v11766_v58 = vpop.permute.xlu1 %6139  ;;  %v8039_v46 = vld [vmem:[%s8310_s28 + $0x78] sm:$0xff] }
 0xbfb   : > { %v6183_v61 = vadd.f32 %v11766_v58, %v6071_v0  ;;  %v6184_v59 = vadd.f32 %v11766_v58, %v6072_v15  ;;  %v6185_v27 = vadd.f32 %v11766_v58, %v6073_v9  ;;  %v6186_v39 = vadd.f32 %v11766_v58, %v6074_v22 }
 0xbfd   : > { %6247 = vst [vmem:[%s11680_s10 + $0x80] sm:$0xff] %v6183_v61  ;;  %6248 = vst [vmem:[%s11680_s10 + $0x88] sm:$0xff] %v6184_v59 }
 0xbfe   : > { %6249 = vst [vmem:[%s11680_s10 + $0x90] sm:$0xff] %v6185_v27  ;;  %6250 = vst [vmem:[%s11680_s10 + $0x98] sm:$0xff] %v6186_v39  ;;  %v11784_v29 = vpop.permute.xlu1 %6149  ;;  %v8042_v39 = vld [vmem:[%s8310_s28 + $0xa8] sm:$0xff] }
 0xbff   : > { %v6199_v25 = vadd.f32 %v11784_v29, %v6087_v37  ;;  %v6200_v19 = vadd.f32 %v11784_v29, %v6088_v62  ;;  %v6201_v49 = vadd.f32 %v11784_v29, %v6089_v56  ;;  %v6202_v41 = vadd.f32 %v11784_v29, %v6090_v11  ;;  %v8040_v62 = vld [vmem:[%s8310_s28 + $0xa0] sm:$0xff]  ;;  %v8041_v11 = vld [vmem:[%s8310_s28 + $0xb0] sm:$0xff] }
 0xc01   : > { %6263 = vst [vmem:[%s11680_s10 + $0x100] sm:$0xff] %v6199_v25  ;;  %6264 = vst [vmem:[%s11680_s10 + $0x108] sm:$0xff] %v6200_v19  ;;  %v8045_v25 = vld [vmem:[%s8310_s28 + $0xf0] sm:$0xff] }
 0xc02   : > { %6265 = vst [vmem:[%s11680_s10 + $0x110] sm:$0xff] %v6201_v49  ;;  %6266 = vst [vmem:[%s11680_s10 + $0x118] sm:$0xff] %v6202_v41  ;;  %v11794_v12 = vpop.permute.xlu1 %6159 }
 0xc03   : > { %v6215_v18 = vadd.f32 %v11794_v12, %v6103_v54  ;;  %v6216_v47 = vadd.f32 %v11794_v12, %v6104_v35  ;;  %v6217_v14 = vadd.f32 %v11794_v12, %v6105_v2  ;;  %v6218_v55 = vadd.f32 %v11794_v12, %v6106_v42  ;;  %v8043_v54 = vld [vmem:[%s8310_s28 + $0xb8] sm:$0xff] }
 0xc05   : > { %6279 = vst [vmem:[%s11680_s10 + $0x180] sm:$0xff] %v6215_v18  ;;  %6280 = vst [vmem:[%s11680_s10 + $0x188] sm:$0xff] %v6216_v47 }
 0xc06   : > { %6281 = vst [vmem:[%s11680_s10 + $0x190] sm:$0xff] %v6217_v14  ;;  %6282 = vst [vmem:[%s11680_s10 + $0x198] sm:$0xff] %v6218_v55  ;;  %v8046_v14 = vld [vmem:[%s8310_s28 + $0xe8] sm:$0xff] }
 0xc85   : > { %v5943_v30 = vpop.f32.mrb[192].mxu0  ;;  %v6016_v7 = vpop.f32.mrb[192].mxu1 }
 0xc86   : > { %v6059_v23 = vadd.f32 %v8032_v45, %v5943_v30  ;;  %v6061_v24 = vadd.f32 %v8033_v51, %v6016_v7  ;;  %v5945_v36 = vpop.f32.mrb[193].mxu0  ;;  %v6018_v57 = vpop.f32.mrb[193].mxu1  ;;  %v8047_v30 = vld [vmem:[%s8310_s28 + $0xf8] sm:$0xff] }
 0xc87   : > { %v6060_v20 = vadd.f32 %v8034_v21, %v5945_v36  ;;  %v6062_v10 = vadd.f32 %v8035_v34, %v6018_v57  ;;  %v5947_v13 = vpop.f32.mrb[194].mxu0  ;;  %v6020_v38 = vpop.f32.mrb[194].mxu1  ;;  %v8048_v57 = vld [vmem:[%s8310_s28 + $0x120] sm:$0xff] }
 0xc88   : > { %v6171_v44 = vadd.f32 %v11664_v3, %v6059_v23  ;;  %v6173_v16 = vadd.f32 %v11664_v3, %v6061_v24  ;;  %v6067_v0 = vadd.f32 %v8036_v48, %v5947_v13  ;;  %v6069_v9 = vadd.f32 %v8037_v8, %v6020_v38  ;;  %v5949_v26 = vpop.f32.mrb[195].mxu0  ;;  %v6022_v15 = vpop.f32.mrb[195].mxu1  ;;  %v8050_v38 = vld [vmem:[%s8310_s28 + $0x128] sm:$0xff] }
 0xc89   : > { %v6172_v28 = vadd.f32 %v11664_v3, %v6060_v20  ;;  %v6174_v22 = vadd.f32 %v11664_v3, %v6062_v10  ;;  %v6068_v43 = vadd.f32 %v8038_v5, %v5949_v26  ;;  %v6070_v52 = vadd.f32 %v8039_v46, %v6022_v15  ;;  %v8049_v20 = vld [vmem:[%s8310_s28 + $0x130] sm:$0xff]  ;;  %v8052_v26 = vld [vmem:[%s8310_s28 + $0x160] sm:$0xff] }
 0xc8a   : > { %6235 = vst [vmem:[%s11680_s10 + $0x20] sm:$0xff] %v6171_v44  ;;  %6237 = vst [vmem:[%s11680_s10 + $0x30] sm:$0xff] %v6173_v16  ;;  %v6179_v33 = vadd.f32 %v11748_v50, %v6067_v0  ;;  %v6181_v37 = vadd.f32 %v11748_v50, %v6069_v9  ;;  %v8051_v16 = vld [vmem:[%s8310_s28 + $0x138] sm:$0xff] }
 0xc8b   : > { %6236 = vst [vmem:[%s11680_s10 + $0x28] sm:$0xff] %v6172_v28  ;;  %6238 = vst [vmem:[%s11680_s10 + $0x38] sm:$0xff] %v6174_v22  ;;  %v6180_v63 = vadd.f32 %v11748_v50, %v6068_v43  ;;  %v6182_v3 = vadd.f32 %v11748_v50, %v6070_v52  ;;  %v8053_v28 = vld [vmem:[%s8310_s28 + $0x170] sm:$0xff] }
 0xc8c   : > { %6243 = vst [vmem:[%s11680_s10 + $0x60] sm:$0xff] %v6179_v33  ;;  %6245 = vst [vmem:[%s11680_s10 + $0x70] sm:$0xff] %v6181_v37  ;;  %v8054_v33 = vld [vmem:[%s8310_s28 + $0x168] sm:$0xff] }
 0xc8d   : > { %6244 = vst [vmem:[%s11680_s10 + $0x68] sm:$0xff] %v6180_v63  ;;  %6246 = vst [vmem:[%s11680_s10 + $0x78] sm:$0xff] %v6182_v3  ;;  %v5953_v56 = vpop.f32.mrb[196].mxu0  ;;  %v6026_v32 = vpop.f32.mrb[196].mxu1  ;;  %v8055_v63 = vld [vmem:[%s8310_s28 + $0x178] sm:$0xff] }
 0xc8e   : > { %v6075_v17 = vadd.f32 %v8040_v62, %v5953_v56  ;;  %v6077_v61 = vadd.f32 %v8041_v11, %v6026_v32  ;;  %v5955_v59 = vpop.f32.mrb[197].mxu0  ;;  %v6028_v27 = vpop.f32.mrb[197].mxu1 }
 0xc8f   : > { %v6076_v31 = vadd.f32 %v8042_v39, %v5955_v59  ;;  %v6078_v50 = vadd.f32 %v8043_v54, %v6028_v27  ;;  %v5957_v6 = vpop.f32.mrb[198].mxu0  ;;  %v6030_v2 = vpop.f32.mrb[198].mxu1  ;;  %v8057_v27 = vld [vmem:[%s8310_s28 + $0x1b0] sm:$0xff] }
 0xc90   : > { %v6187_v40 = vadd.f32 %v11766_v58, %v6075_v17  ;;  %v6189_v35 = vadd.f32 %v11766_v58, %v6077_v61  ;;  %v6083_v42 = vadd.f32 %v8044_v4, %v5957_v6  ;;  %v6085_v19 = vadd.f32 %v8045_v25, %v6030_v2  ;;  %v5959_v49 = vpop.f32.mrb[199].mxu0  ;;  %v6032_v41 = vpop.f32.mrb[199].mxu1  ;;  %v8056_v61 = vld [vmem:[%s8310_s28 + $0x1a0] sm:$0xff]  ;;  %v8059_v2 = vld [vmem:[%s8310_s28 + $0x1b8] sm:$0xff] }
 0xc91   : > { %v6188_v18 = vadd.f32 %v11766_v58, %v6076_v31  ;;  %v6190_v47 = vadd.f32 %v11766_v58, %v6078_v50  ;;  %v6084_v55 = vadd.f32 %v8046_v14, %v5959_v49  ;;  %v6086_v7 = vadd.f32 %v8047_v30, %v6032_v41  ;;  %v8058_v50 = vld [vmem:[%s8310_s28 + $0x1a8] sm:$0xff]  ;;  %v8060_v25 = vld [vmem:[%s8310_s28 + $0x1e0] sm:$0xff]  ;;  %v8061_v49 = vld [vmem:[%s8310_s28 + $0x1f0] sm:$0xff] }
 0xc92   : > { %6251 = vst [vmem:[%s11680_s10 + $0xa0] sm:$0xff] %v6187_v40  ;;  %6253 = vst [vmem:[%s11680_s10 + $0xb0] sm:$0xff] %v6189_v35  ;;  %v6195_v45 = vadd.f32 %v11686_v1, %v6083_v42  ;;  %v6197_v23 = vadd.f32 %v11686_v1, %v6085_v19  ;;  %v8062_v30 = vld [vmem:[%s8310_s28 + $0x1e8] sm:$0xff] }
 0xc93   : > { %6252 = vst [vmem:[%s11680_s10 + $0xa8] sm:$0xff] %v6188_v18  ;;  %6254 = vst [vmem:[%s11680_s10 + $0xb8] sm:$0xff] %v6190_v47  ;;  %v6196_v51 = vadd.f32 %v11686_v1, %v6084_v55  ;;  %v6198_v58 = vadd.f32 %v11686_v1, %v6086_v7 }
 0xc94   : > { %6259 = vst [vmem:[%s11680_s10 + $0xe0] sm:$0xff] %v6195_v45  ;;  %6261 = vst [vmem:[%s11680_s10 + $0xf0] sm:$0xff] %v6197_v23  ;;  %v8063_v45 = vld [vmem:[%s8310_s28 + $0x1f8] sm:$0xff]  ;;  %s6296_s28 = scalar_lea.sflag [#allocation4], %s8304_s23 }
 0xc95   : > { %6260 = vst [vmem:[%s11680_s10 + $0xe8] sm:$0xff] %v6196_v51  ;;  %6262 = vst [vmem:[%s11680_s10 + $0xf8] sm:$0xff] %v6198_v58  ;;  %v5963_v24 = vpop.f32.mrb[200].mxu0  ;;  %v6036_v36 = vpop.f32.mrb[200].mxu1 }
 0xc96   : > { %v6091_v21 = vadd.f32 %v8048_v57, %v5963_v24  ;;  %v6093_v34 = vadd.f32 %v8049_v20, %v6036_v36  ;;  %v5965_v10 = vpop.f32.mrb[201].mxu0  ;;  %v6038_v13 = vpop.f32.mrb[201].mxu1 }
 0xc97   : > { %v6092_v44 = vadd.f32 %v8050_v38, %v5965_v10  ;;  %v6094_v1 = vadd.f32 %v8051_v16, %v6038_v13  ;;  %v5967_v48 = vpop.f32.mrb[202].mxu0  ;;  %v6040_v0 = vpop.f32.mrb[202].mxu1 }
 0xc98   : > { %v6203_v8 = vadd.f32 %v11784_v29, %v6091_v21  ;;  %v6205_v9 = vadd.f32 %v11784_v29, %v6093_v34  ;;  %v6099_v15 = vadd.f32 %v8052_v26, %v5967_v48  ;;  %v6101_v22 = vadd.f32 %v8053_v28, %v6040_v0  ;;  %v5969_v5 = vpop.f32.mrb[203].mxu0  ;;  %v6042_v43 = vpop.f32.mrb[203].mxu1 }
 0xc99   : > { %v6204_v46 = vadd.f32 %v11784_v29, %v6092_v44  ;;  %v6206_v52 = vadd.f32 %v11784_v29, %v6094_v1  ;;  %v6100_v37 = vadd.f32 %v8054_v33, %v5969_v5  ;;  %v6102_v3 = vadd.f32 %v8055_v63, %v6042_v43 }
 0xc9a   : > { %6267 = vst [vmem:[%s11680_s10 + $0x120] sm:$0xff] %v6203_v8  ;;  %6269 = vst [vmem:[%s11680_s10 + $0x130] sm:$0xff] %v6205_v9  ;;  %v6211_v56 = vadd.f32 %v11704_v53, %v6099_v15  ;;  %v6213_v32 = vadd.f32 %v11704_v53, %v6101_v22 }
 0xc9b   : > { %6268 = vst [vmem:[%s11680_s10 + $0x128] sm:$0xff] %v6204_v46  ;;  %6270 = vst [vmem:[%s11680_s10 + $0x138] sm:$0xff] %v6206_v52  ;;  %v6212_v62 = vadd.f32 %v11704_v53, %v6100_v37  ;;  %v6214_v29 = vadd.f32 %v11704_v53, %v6102_v3 }
 0xc9c   : > { %6275 = vst [vmem:[%s11680_s10 + $0x160] sm:$0xff] %v6211_v56  ;;  %6277 = vst [vmem:[%s11680_s10 + $0x170] sm:$0xff] %v6213_v32 }
 0xc9d   : > { %6276 = vst [vmem:[%s11680_s10 + $0x168] sm:$0xff] %v6212_v62  ;;  %6278 = vst [vmem:[%s11680_s10 + $0x178] sm:$0xff] %v6214_v29  ;;  %v5973_v17 = vpop.f32.mrb[204].mxu0  ;;  %v6046_v11 = vpop.f32.mrb[204].mxu1 }
 0xc9e   : > { %v6107_v59 = vadd.f32 %v8056_v61, %v5973_v17  ;;  %v6109_v39 = vadd.f32 %v8057_v27, %v6046_v11  ;;  %v5975_v31 = vpop.f32.mrb[205].mxu0  ;;  %v6048_v54 = vpop.f32.mrb[205].mxu1 }
 0xc9f   : > { %v6108_v6 = vadd.f32 %v8058_v50, %v5975_v31  ;;  %v6110_v53 = vadd.f32 %v8059_v2, %v6048_v54  ;;  %v5977_v40 = vpop.f32.mrb[206].mxu0  ;;  %v6050_v35 = vpop.f32.mrb[206].mxu1 }
 0xca0   : > { %v6219_v4 = vadd.f32 %v11794_v12, %v6107_v59  ;;  %v6221_v42 = vadd.f32 %v11794_v12, %v6109_v39  ;;  %v6115_v19 = vadd.f32 %v8060_v25, %v5977_v40  ;;  %v6117_v41 = vadd.f32 %v8061_v49, %v6050_v35  ;;  %v5979_v18 = vpop.f32.mrb[207].mxu0  ;;  %v6052_v47 = vpop.f32.mrb[207].mxu1 }
 0xca1   : > { %v6220_v14 = vadd.f32 %v11794_v12, %v6108_v6  ;;  %v6222_v55 = vadd.f32 %v11794_v12, %v6110_v53  ;;  %v6116_v7 = vadd.f32 %v8062_v30, %v5979_v18  ;;  %v6118_v23 = vadd.f32 %v8063_v45, %v6052_v47 }
 0xca2   : > { %6283 = vst [vmem:[%s11680_s10 + $0x1a0] sm:$0xff] %v6219_v4  ;;  %6285 = vst [vmem:[%s11680_s10 + $0x1b0] sm:$0xff] %v6221_v42  ;;  %v6227_v51 = vadd.f32 %v11722_v60, %v6115_v19  ;;  %v6229_v58 = vadd.f32 %v11722_v60, %v6117_v41 }
 0xca3   : > { %6284 = vst [vmem:[%s11680_s10 + $0x1a8] sm:$0xff] %v6220_v14  ;;  %6286 = vst [vmem:[%s11680_s10 + $0x1b8] sm:$0xff] %v6222_v55  ;;  %v6228_v12 = vadd.f32 %v11722_v60, %v6116_v7  ;;  %v6230_v24 = vadd.f32 %v11722_v60, %v6118_v23 }
 0xca4   : > { %6291 = vst [vmem:[%s11680_s10 + $0x1e0] sm:$0xff] %v6227_v51  ;;  %6293 = vst [vmem:[%s11680_s10 + $0x1f0] sm:$0xff] %v6229_v58 }
 0xca5   : > { %6292 = vst [vmem:[%s11680_s10 + $0x1e8] sm:$0xff] %v6228_v12  ;;  %6294 = vst [vmem:[%s11680_s10 + $0x1f8] sm:$0xff] %v6230_v24 }
 0xca6   : > { %8107 = shalt.err (!%p8104_p2)
}
 0xca7   : > { %s8108_s15 = scalar_lea.hbm %s11897_s17, 8192  ;;  %s8112_s7 = scalar_lea.hbm %s11956_s5, 16384 }
 0xca8   : > { %p8109_p4 = scmp.ne.s32.totalorder %s11897_s17, %s8108_s15  ;;  %p8113_p9 = scmp.lt.u32.totalorder %s11897_s17, %s11956_s5 }
 0xca9   : > { %p8114_p1 = scmp.lt.u32.totalorder %s8112_s7, %s8108_s15  ;;  %p8116_p6 = scmp.lt.u32.totalorder %s8108_s15, %s11897_s17 }
 0xcaa   : > { %p8110_p5 = pnand %p8109_p4, %p13001_p11 }
 0xcab   : > { %p8115_p3 = por %p8114_p1, %p8113_p9 }
 0xcac   : > { %p8111_p7 = pneg %p8110_p5 }
 0xcad   : > { %p8117_p12 = por %p8116_p6, %p8115_p3 }
 0xcaf   : > { %p8118_p13 = pnand %p8117_p12, %p8111_p7 }
 0xcb1   : > { %8121 = shalt.err (!%p8118_p13)
}
 0xcb2   : > { %s8168_s25 = smov 1024   ;;  %s8169_s22 = smov 64  }
 0xcb3   : > { %6962 = dma.vmem_to_hbm [thread:$0]  (%p13001_p11), %s11899_s11, 8192, %s11897_s17, %s6296_s28, %s8168_s25, %s8168_s25, %s8169_s22  }
 0xcb4 PF: > { %s6324_s13 = sand.u32 1, %s8148_s18   ;;  %p13002_p8 = scmp.ne.s32.totalorder %s12139_s6, 0 }
 0xcb5   : > { %p13003_p10 = scmp.ge.s32.totalorder %s8160_s21, 2  ;;  %s6325_s26 = scalar_lea.sflag [#allocation4], %s6324_s13 }
 0xcb7   : > { %p6969_p0 = pnand %p13003_p10, %p13002_p8 }
 0xcb9   : > { %8143 = dma.done.wait (!%p6969_p0), %s6325_s26, 8192  }
 0xcba   : > { %8145 = vsyncadd (!%p6969_p0), %s6325_s26, 4294959104  ;;  %p18_p2 = scmp.ge.s32.totalorder %s8225_s24, 4   ;;  %s13004_s18 = smov %s8152_s19 }
 0xcbb   : > { %s13005_s19 = smov %s8156_s20  ;;  %s13006_s20 = smov %s8237_s27 }
 0xcbc   : > { %s13007_s21 = smov %s8225_s24  ;;  %20 = sbr.rel (!%p18_p2) target bundleno = 5 (0x5), region = 85 }
 0xcc3   :  { %6330 = vsyncpa [#allocation3], 1 }
 0xcc4   :  { %6332 = vsyncpa [#allocation3 + $0x1], 1 }
 0xcc5   :  { %6333 = vsyncpa [#allocation4], 1 }
 0xcc6   :  { %6335 = vsyncpa [#allocation4 + $0x1], 1 }

</bundles_post_ra>
